<compile_context>
chip_gen: v6e
topology: v6e:2x2x1
jax: 0.10.0
libtpu: 0.0.40
codegen_flags: <defaults>
</compile_context>

<pallas_src>
import functools

import jax
import jax.numpy as jnp
from jax.experimental import pallas as pl
from jax.experimental.pallas import tpu as pltpu


def _round_up(x, m):
    return ((x + m - 1) // m) * m


# ------------------------------- kernel --------------------------------------

def bigru_encoder_kernel(ids_ref, lens_ref, tbl_ref, wih_ref, whh_ref,
                         bih_ref, bhh_ref, out_ref, hid_ref,
                         x_scr, gxf_scr, gxb_scr, *, L, TB, Bp, Hp):
    col0 = pl.program_id(0) * TB            # first batch column of this tile
    H2, H3 = 2 * Hp, 3 * Hp

    # ---- Phase 0: embedding row gather (SMEM token ids -> VMEM x rows) ------
    # One (1, Hp) dynamic row read per token; no O(V) one-hot matmul.
    for t in range(L):                      # static: L is small
        for b in range(TB):                 # static: one row copy per token
            tok = ids_ref[t * Bp + col0 + b]
            r = t * TB + b
            x_scr[r:r + 1, :] = tbl_ref[pl.ds(tok, 1), :]

    # ---- Phase 1: all input-to-hidden gates, both directions, one matmul ----
    gx = jnp.dot(x_scr[...], wih_ref[...],
                 preferred_element_type=jnp.float32) + bih_ref[...]  # (L*TB, 6Hp)
    gxf_scr[...] = gx[:, :H3]
    gxb_scr[...] = gx[:, H3:]

    # ---- Phase 2: serial bidirectional recurrence ----------------------------
    lens = lens_ref[...]                    # (TB, 1) int32 — tiny, safe to hoist
    h_f = jnp.zeros((TB, Hp), jnp.float32)
    h_b = jnp.zeros((TB, Hp), jnp.float32)

    def gru(gx_t, gh_t, h_prev):
        # single sigmoid over the concatenated r|z lanes (one EUP pass)
        rz = jax.nn.sigmoid(gx_t[:, :H2] + gh_t[:, :H2])
        rg, zg = rz[:, :Hp], rz[:, Hp:]
        n = jnp.tanh(gx_t[:, H2:] + rg * gh_t[:, H2:])
        return (1.0 - zg) * n + zg * h_prev

    # Fully unrolled (static trip count): lets the scheduler interleave the
    # fwd-direction MXU push/drain with the bwd-direction gate math, and keeps
    # every index static.
    for t in range(L):
        tb = L - 1 - t

        # One fused MXU call for BOTH directions' recurrent matmul.
        h_cat = jnp.concatenate([h_f, h_b], axis=0)                    # (2TB, Hp)
        gh = jnp.dot(h_cat, whh_ref[...],
                     preferred_element_type=jnp.float32) + bhh_ref[...]  # (2TB, 6Hp)

        # forward direction at timestep t
        mask_f = lens > t                                              # (TB, 1)
        h_f = jnp.where(mask_f,
                        gru(gxf_scr[t * TB:(t + 1) * TB, :], gh[:TB, :H3], h_f),
                        h_f)                                           # freeze past len
        o_f = jnp.where(mask_f, h_f, 0.0)

        # backward direction at timestep tb = L-1-t
        mask_b = lens > tb
        h_b = jnp.where(mask_b,
                        gru(gxb_scr[tb * TB:(tb + 1) * TB, :], gh[TB:, H3:], h_b),
                        h_b)
        o_b = jnp.where(mask_b, h_b, 0.0)

        # First direction to touch a timestep overwrites, the second accumulates
        # (no zero-init pass; one store + at most one load/store per element).
        if 2 * t <= L - 1:
            out_ref[t] = o_f
        else:
            out_ref[t] = out_ref[t] + o_f
        if 2 * t < L - 1:
            out_ref[tb] = o_b
        else:
            out_ref[tb] = out_ref[tb] + o_b

    hid_ref[0] = h_f     # forward final hidden (frozen at each sequence's last step)
    hid_ref[1] = h_b     # backward final hidden (after position 0)


# ------------------------------- wrapper --------------------------------------

def encoder_rnn_forward(input_seq, input_lengths, params, hidden_size):
    """input_seq: (L, B) int tokens; input_lengths: (B,).
    Returns (outputs (L, B, H), hidden (2, B, H)) — PyTorch EncoderRNN.forward
    with hidden=None, n_layers=1 (assumes max(input_lengths) == L, as produced
    by the batch padding in the original pipeline)."""
    L, B = input_seq.shape
    H = hidden_size
    V = params['embedding'].shape[0]
    Hp = _round_up(H, 128)               # lane-dense hidden width
    Vp = _round_up(V, 8)                 # sublane-aligned vocab rows
    f32 = jnp.float32

    # Batch tile: pad to the 8-row sublane granule; for larger batches give the
    # "parallel" grid axis >= 2 steps so it can span both v7x TensorCores.
    Bp = _round_up(B, 8)
    if Bp <= 8:
        TB = Bp
    else:
        TB = _round_up((Bp + 1) // 2, 8)
        Bp = _round_up(Bp, TB)
    grid = (Bp // TB,)

    # ---- parameters: pad, gate-align, pre-transpose, concat fwd|bwd once -----
    table_p = jnp.zeros((Vp, Hp), f32).at[:V, :H].set(
        params['embedding'].astype(f32))

    def pad_w(w):                        # (3H, H) -> (Hp, 3Hp), pre-transposed
        wp = jnp.zeros((3 * Hp, Hp), f32)
        for g in range(3):               # keep the 3 gate blocks Hp-aligned
            wp = wp.at[g * Hp:g * Hp + H, :H].set(
                w[g * H:(g + 1) * H, :].astype(f32))
        return wp.T

    def pad_b(b):                        # (3H,) -> (1, 3Hp)
        bp = jnp.zeros((3 * Hp,), f32)
        for g in range(3):
            bp = bp.at[g * Hp:g * Hp + H].set(b[g * H:(g + 1) * H].astype(f32))
        return bp.reshape(1, 3 * Hp)

    # TODO(synk): cast to bf16 for the MXU on v6e/v7x (kept f32 to match the
    #             PyTorch f32 module numerics).
    wih_cat = jnp.concatenate([pad_w(params['w_ih_f']), pad_w(params['w_ih_b'])], axis=1)
    whh_cat = jnp.concatenate([pad_w(params['w_hh_f']), pad_w(params['w_hh_b'])], axis=1)
    bih_cat = jnp.concatenate([pad_b(params['b_ih_f']), pad_b(params['b_ih_b'])], axis=1)
    bhh_cat = jnp.concatenate([pad_b(params['b_hh_f']), pad_b(params['b_hh_b'])], axis=1)

    # ---- activations / scalars ------------------------------------------------
    ids_flat = (jnp.zeros((L, Bp), jnp.int32)
                .at[:, :B].set(input_seq.astype(jnp.int32))
                .reshape(L * Bp))                                # scalar prefetch
    lens_p = jnp.zeros((Bp, 1), jnp.int32).at[:B, 0].set(
        input_lengths.astype(jnp.int32))

    kernel = functools.partial(bigru_encoder_kernel, L=L, TB=TB, Bp=Bp, Hp=Hp)
    const2 = lambda g, ids: (0, 0)

    grid_spec = pltpu.PrefetchScalarGridSpec(
        num_scalar_prefetch=1,                                   # token ids -> SMEM
        grid=grid,
        in_specs=[
            pl.BlockSpec((TB, 1), lambda g, ids: (g, 0)),        # lengths
            pl.BlockSpec((Vp, Hp), const2),                      # embedding table
            pl.BlockSpec((Hp, 6 * Hp), const2),                  # W_ih [fwd|bwd]
            pl.BlockSpec((Hp, 6 * Hp), const2),                  # W_hh [fwd|bwd]
            pl.BlockSpec((1, 6 * Hp), const2),                   # b_ih [fwd|bwd]
            pl.BlockSpec((1, 6 * Hp), const2),                   # b_hh [fwd|bwd]
        ],
        out_specs=(
            pl.BlockSpec((L, TB, Hp), lambda g, ids: (0, g, 0)), # fwd+bwd summed out
            pl.BlockSpec((2, TB, Hp), lambda g, ids: (0, g, 0)), # final hidden
        ),
        scratch_shapes=[
            pltpu.VMEM((L * TB, Hp), f32),           # gathered embeddings
            pltpu.VMEM((L * TB, 3 * Hp), f32),       # input-to-hidden gates, fwd
            pltpu.VMEM((L * TB, 3 * Hp), f32),       # input-to-hidden gates, bwd
        ],
    )

    out_shape = (jax.ShapeDtypeStruct((L, Bp, Hp), f32),
                 jax.ShapeDtypeStruct((2, Bp, Hp), f32))

    outputs_p, hidden_p = pl.pallas_call(
        kernel,
        out_shape=out_shape,
        grid_spec=grid_spec,
        compiler_params=pltpu.CompilerParams(
            dimension_semantics=("parallel",),
            # fits every generation's physical VMEM (v7x has only 64 MiB / TC)
            vmem_limit_bytes=48 * 1024 * 1024),
    )(ids_flat, lens_p, table_p, wih_cat, whh_cat, bih_cat, bhh_cat)

    return outputs_p[:, :B, :H], hidden_p[:, :B, :H]


# --------------------------- pure-JAX reference -------------------------------

def _ref_gru_cell(x, h, w_ih, w_hh, b_ih, b_hh, H):
    hi = jax.lax.Precision.HIGHEST
    gx = jnp.dot(x, w_ih.T, precision=hi) + b_ih
    gh = jnp.dot(h, w_hh.T, precision=hi) + b_hh
    r = jax.nn.sigmoid(gx[:, :H] + gh[:, :H])
    z = jax.nn.sigmoid(gx[:, H:2 * H] + gh[:, H:2 * H])
    n = jnp.tanh(gx[:, 2 * H:] + r * gh[:, 2 * H:])
    return (1.0 - z) * n + z * h


def encoder_rnn_reference(input_seq, input_lengths, params, H):
    L, B = input_seq.shape
    emb = jnp.take(params['embedding'], input_seq, axis=0)        # (L, B, H)
    lens = input_lengths.astype(jnp.int32)
    h_f = jnp.zeros((B, H), jnp.float32)
    h_b = jnp.zeros((B, H), jnp.float32)
    out_f = []
    for t in range(L):
        m = (lens > t)[:, None]
        h_new = _ref_gru_cell(emb[t], h_f, params['w_ih_f'], params['w_hh_f'],
                              params['b_ih_f'], params['b_hh_f'], H)
        h_f = jnp.where(m, h_new, h_f)
        out_f.append(jnp.where(m, h_f, 0.0))
    out_b = [None] * L
    for t in range(L - 1, -1, -1):
        m = (lens > t)[:, None]
        h_new = _ref_gru_cell(emb[t], h_b, params['w_ih_b'], params['w_hh_b'],
                              params['b_ih_b'], params['b_hh_b'], H)
        h_b = jnp.where(m, h_new, h_b)
        out_b[t] = jnp.where(m, h_b, 0.0)
    outputs = jnp.stack(out_f, 0) + jnp.stack(out_b, 0)
    hidden = jnp.stack([h_f, h_b], 0)
    return outputs, hidden


# ---------------------------------- main ---------------------------------------

if __name__ == "__main__":
    L, B, H, V = 8, 2, 32, 64            # seq len, batch, hidden_size, vocab

    key = jax.random.PRNGKey(0)
    keys = jax.random.split(key, 12)

    def winit(k, shape):
        return 0.1 * jax.random.normal(k, shape, dtype=jnp.float32)

    params = {
        'embedding': jax.random.normal(keys[0], (V, H), dtype=jnp.float32),
        'w_ih_f': winit(keys[1], (3 * H, H)), 'w_hh_f': winit(keys[2], (3 * H, H)),
        'b_ih_f': winit(keys[3], (3 * H,)),   'b_hh_f': winit(keys[4], (3 * H,)),
        'w_ih_b': winit(keys[5], (3 * H, H)), 'w_hh_b': winit(keys[6], (3 * H, H)),
        'b_ih_b': winit(keys[7], (3 * H,)),   'b_hh_b': winit(keys[8], (3 * H,)),
    }

    lengths = jnp.array([L, 5], dtype=jnp.int32)       # sorted desc, max == L
    tok = jax.random.randint(keys[9], (L, B), 3, V, dtype=jnp.int32)
    t_idx = jnp.arange(L)[:, None]
    input_seq = jnp.where(t_idx < lengths[None, :], tok, 0)   # PAD = 0

    out, hid = encoder_rnn_forward(input_seq, lengths, params, H)
    out = jax.block_until_ready(out)
    hid = jax.block_until_ready(hid)

    ref_out, ref_hid = encoder_rnn_reference(input_seq, lengths, params, H)

    assert out.shape == (L, B, H), out.shape
    assert hid.shape == (2, B, H), hid.shape
    ok = (bool(jnp.allclose(out, ref_out, atol=1e-4, rtol=1e-4)) and
          bool(jnp.allclose(hid, ref_hid, atol=1e-4, rtol=1e-4)))
    if ok:
        print("KERNEL_OK")
    else:
        print("mismatch: max|out-ref|=",
              float(jnp.max(jnp.abs(out - ref_out))),
              " max|hid-ref|=", float(jnp.max(jnp.abs(hid - ref_hid))))
</pallas_src>

<mosaic_0001>
module attributes {stable_mosaic.version = 11 : i64} {
  func.func @bigru_encoder_kernel(%arg0: i32, %arg1: memref<64xi32, #tpu.memory_space<smem>>, %arg2: memref<8x1xi32, #tpu.memory_space<vmem>>, %arg3: memref<64x128xf32, #tpu.memory_space<vmem>>, %arg4: memref<128x768xf32, #tpu.memory_space<vmem>>, %arg5: memref<128x768xf32, #tpu.memory_space<vmem>>, %arg6: memref<1x768xf32, #tpu.memory_space<vmem>>, %arg7: memref<1x768xf32, #tpu.memory_space<vmem>>, %arg8: memref<8x8x128xf32, #tpu.memory_space<vmem>>, %arg9: memref<2x8x128xf32, #tpu.memory_space<vmem>>, %arg10: memref<64x128xf32, #tpu.memory_space<vmem>>, %arg11: memref<64x384xf32, #tpu.memory_space<vmem>>, %arg12: memref<64x384xf32, #tpu.memory_space<vmem>>) attributes {dimension_semantics = [#tpu.dimension_semantics<parallel>], iteration_bounds = array<i64: 1>, scalar_prefetch = 1 : i64, scratch_operands = 3 : i64, tpu.core_type = #tpu.core_type<tc>, window_params = [{transform_indices = @transform_0, window_bounds = array<i64: 8, 1>}, {pipeline_mode = #tpu.pipeline_mode<synchronous>, transform_indices = @transform_1, window_bounds = array<i64: 64, 128>}, {pipeline_mode = #tpu.pipeline_mode<synchronous>, transform_indices = @transform_2, window_bounds = array<i64: 128, 768>}, {pipeline_mode = #tpu.pipeline_mode<synchronous>, transform_indices = @transform_3, window_bounds = array<i64: 128, 768>}, {pipeline_mode = #tpu.pipeline_mode<synchronous>, transform_indices = @transform_4, window_bounds = array<i64: 1, 768>}, {pipeline_mode = #tpu.pipeline_mode<synchronous>, transform_indices = @transform_5, window_bounds = array<i64: 1, 768>}, {transform_indices = @transform_6, window_bounds = array<i64: 8, 8, 128>}, {transform_indices = @transform_7, window_bounds = array<i64: 2, 8, 128>}]} {
    %c8_i32 = arith.constant 8 : i32
    %0 = arith.muli %arg0, %c8_i32 : i32
    %c0_i32 = arith.constant 0 : i32
    %1 = arith.addi %c0_i32, %0 : i32
    %c0_i32_0 = arith.constant 0 : i32
    %2 = arith.addi %1, %c0_i32_0 : i32
    %3 = arith.index_cast %2 : i32 to index
    %4 = memref.load %arg1[%3] : memref<64xi32, #tpu.memory_space<smem>>
    %5 = arith.index_cast %4 : i32 to index
    %c0 = arith.constant 0 : index
    %6 = vector.load %arg3[%5, %c0] : memref<64x128xf32, #tpu.memory_space<vmem>>, vector<1x128xf32>
    %c0_1 = arith.constant 0 : index
    %c0_2 = arith.constant 0 : index
    %7 = vector.load %arg10[%c0_1, %c0_2] : memref<64x128xf32, #tpu.memory_space<vmem>>, vector<1x128xf32>
    tpu.vector_store %arg10[%c0_1, %c0_2], %6 {strides = array<i32>} : memref<64x128xf32, #tpu.memory_space<vmem>>, vector<1x128xf32>,
    %c0_i32_3 = arith.constant 0 : i32
    %8 = arith.addi %c0_i32_3, %0 : i32
    %c1_i32 = arith.constant 1 : i32
    %9 = arith.addi %8, %c1_i32 : i32
    %10 = arith.index_cast %9 : i32 to index
    %11 = memref.load %arg1[%10] : memref<64xi32, #tpu.memory_space<smem>>
    %12 = arith.index_cast %11 : i32 to index
    %c0_4 = arith.constant 0 : index
    %13 = vector.load %arg3[%12, %c0_4] : memref<64x128xf32, #tpu.memory_space<vmem>>, vector<1x128xf32>
    %c1 = arith.constant 1 : index
    %c0_5 = arith.constant 0 : index
    %14 = vector.load %arg10[%c1, %c0_5] : memref<64x128xf32, #tpu.memory_space<vmem>>, vector<1x128xf32>
    tpu.vector_store %arg10[%c1, %c0_5], %13 {strides = array<i32>} : memref<64x128xf32, #tpu.memory_space<vmem>>, vector<1x128xf32>,
    %c0_i32_6 = arith.constant 0 : i32
    %15 = arith.addi %c0_i32_6, %0 : i32
    %c2_i32 = arith.constant 2 : i32
    %16 = arith.addi %15, %c2_i32 : i32
    %17 = arith.index_cast %16 : i32 to index
    %18 = memref.load %arg1[%17] : memref<64xi32, #tpu.memory_space<smem>>
    %19 = arith.index_cast %18 : i32 to index
    %c0_7 = arith.constant 0 : index
    %20 = vector.load %arg3[%19, %c0_7] : memref<64x128xf32, #tpu.memory_space<vmem>>, vector<1x128xf32>
    %c2 = arith.constant 2 : index
    %c0_8 = arith.constant 0 : index
    %21 = vector.load %arg10[%c2, %c0_8] : memref<64x128xf32, #tpu.memory_space<vmem>>, vector<1x128xf32>
    tpu.vector_store %arg10[%c2, %c0_8], %20 {strides = array<i32>} : memref<64x128xf32, #tpu.memory_space<vmem>>, vector<1x128xf32>,
    %c0_i32_9 = arith.constant 0 : i32
    %22 = arith.addi %c0_i32_9, %0 : i32
    %c3_i32 = arith.constant 3 : i32
    %23 = arith.addi %22, %c3_i32 : i32
    %24 = arith.index_cast %23 : i32 to index
    %25 = memref.load %arg1[%24] : memref<64xi32, #tpu.memory_space<smem>>
    %26 = arith.index_cast %25 : i32 to index
    %c0_10 = arith.constant 0 : index
    %27 = vector.load %arg3[%26, %c0_10] : memref<64x128xf32, #tpu.memory_space<vmem>>, vector<1x128xf32>
    %c3 = arith.constant 3 : index
    %c0_11 = arith.constant 0 : index
    %28 = vector.load %arg10[%c3, %c0_11] : memref<64x128xf32, #tpu.memory_space<vmem>>, vector<1x128xf32>
    tpu.vector_store %arg10[%c3, %c0_11], %27 {strides = array<i32>} : memref<64x128xf32, #tpu.memory_space<vmem>>, vector<1x128xf32>,
    %c0_i32_12 = arith.constant 0 : i32
    %29 = arith.addi %c0_i32_12, %0 : i32
    %c4_i32 = arith.constant 4 : i32
    %30 = arith.addi %29, %c4_i32 : i32
    %31 = arith.index_cast %30 : i32 to index
    %32 = memref.load %arg1[%31] : memref<64xi32, #tpu.memory_space<smem>>
    %33 = arith.index_cast %32 : i32 to index
    %c0_13 = arith.constant 0 : index
    %34 = vector.load %arg3[%33, %c0_13] : memref<64x128xf32, #tpu.memory_space<vmem>>, vector<1x128xf32>
    %c4 = arith.constant 4 : index
    %c0_14 = arith.constant 0 : index
    %35 = vector.load %arg10[%c4, %c0_14] : memref<64x128xf32, #tpu.memory_space<vmem>>, vector<1x128xf32>
    tpu.vector_store %arg10[%c4, %c0_14], %34 {strides = array<i32>} : memref<64x128xf32, #tpu.memory_space<vmem>>, vector<1x128xf32>,
    %c0_i32_15 = arith.constant 0 : i32
    %36 = arith.addi %c0_i32_15, %0 : i32
    %c5_i32 = arith.constant 5 : i32
    %37 = arith.addi %36, %c5_i32 : i32
    %38 = arith.index_cast %37 : i32 to index
    %39 = memref.load %arg1[%38] : memref<64xi32, #tpu.memory_space<smem>>
    %40 = arith.index_cast %39 : i32 to index
    %c0_16 = arith.constant 0 : index
    %41 = vector.load %arg3[%40, %c0_16] : memref<64x128xf32, #tpu.memory_space<vmem>>, vector<1x128xf32>
    %c5 = arith.constant 5 : index
    %c0_17 = arith.constant 0 : index
    %42 = vector.load %arg10[%c5, %c0_17] : memref<64x128xf32, #tpu.memory_space<vmem>>, vector<1x128xf32>
    tpu.vector_store %arg10[%c5, %c0_17], %41 {strides = array<i32>} : memref<64x128xf32, #tpu.memory_space<vmem>>, vector<1x128xf32>,
    %c0_i32_18 = arith.constant 0 : i32
    %43 = arith.addi %c0_i32_18, %0 : i32
    %c6_i32 = arith.constant 6 : i32
    %44 = arith.addi %43, %c6_i32 : i32
    %45 = arith.index_cast %44 : i32 to index
    %46 = memref.load %arg1[%45] : memref<64xi32, #tpu.memory_space<smem>>
    %47 = arith.index_cast %46 : i32 to index
    %c0_19 = arith.constant 0 : index
    %48 = vector.load %arg3[%47, %c0_19] : memref<64x128xf32, #tpu.memory_space<vmem>>, vector<1x128xf32>
    %c6 = arith.constant 6 : index
    %c0_20 = arith.constant 0 : index
    %49 = vector.load %arg10[%c6, %c0_20] : memref<64x128xf32, #tpu.memory_space<vmem>>, vector<1x128xf32>
    tpu.vector_store %arg10[%c6, %c0_20], %48 {strides = array<i32>} : memref<64x128xf32, #tpu.memory_space<vmem>>, vector<1x128xf32>,
    %c0_i32_21 = arith.constant 0 : i32
    %50 = arith.addi %c0_i32_21, %0 : i32
    %c7_i32 = arith.constant 7 : i32
    %51 = arith.addi %50, %c7_i32 : i32
    %52 = arith.index_cast %51 : i32 to index
    %53 = memref.load %arg1[%52] : memref<64xi32, #tpu.memory_space<smem>>
    %54 = arith.index_cast %53 : i32 to index
    %c0_22 = arith.constant 0 : index
    %55 = vector.load %arg3[%54, %c0_22] : memref<64x128xf32, #tpu.memory_space<vmem>>, vector<1x128xf32>
    %c7 = arith.constant 7 : index
    %c0_23 = arith.constant 0 : index
    %56 = vector.load %arg10[%c7, %c0_23] : memref<64x128xf32, #tpu.memory_space<vmem>>, vector<1x128xf32>
    tpu.vector_store %arg10[%c7, %c0_23], %55 {strides = array<i32>} : memref<64x128xf32, #tpu.memory_space<vmem>>, vector<1x128xf32>,
    %c8_i32_24 = arith.constant 8 : i32
    %57 = arith.addi %c8_i32_24, %0 : i32
    %c0_i32_25 = arith.constant 0 : i32
    %58 = arith.addi %57, %c0_i32_25 : i32
    %59 = arith.index_cast %58 : i32 to index
    %60 = memref.load %arg1[%59] : memref<64xi32, #tpu.memory_space<smem>>
    %61 = arith.index_cast %60 : i32 to index
    %c0_26 = arith.constant 0 : index
    %62 = vector.load %arg3[%61, %c0_26] : memref<64x128xf32, #tpu.memory_space<vmem>>, vector<1x128xf32>
    %c8 = arith.constant 8 : index
    %c0_27 = arith.constant 0 : index
    %63 = vector.load %arg10[%c8, %c0_27] : memref<64x128xf32, #tpu.memory_space<vmem>>, vector<1x128xf32>
    tpu.vector_store %arg10[%c8, %c0_27], %62 {strides = array<i32>} : memref<64x128xf32, #tpu.memory_space<vmem>>, vector<1x128xf32>,
    %c8_i32_28 = arith.constant 8 : i32
    %64 = arith.addi %c8_i32_28, %0 : i32
    %c1_i32_29 = arith.constant 1 : i32
    %65 = arith.addi %64, %c1_i32_29 : i32
    %66 = arith.index_cast %65 : i32 to index
    %67 = memref.load %arg1[%66] : memref<64xi32, #tpu.memory_space<smem>>
    %68 = arith.index_cast %67 : i32 to index
    %c0_30 = arith.constant 0 : index
    %69 = vector.load %arg3[%68, %c0_30] : memref<64x128xf32, #tpu.memory_space<vmem>>, vector<1x128xf32>
    %c9 = arith.constant 9 : index
    %c0_31 = arith.constant 0 : index
    %70 = vector.load %arg10[%c9, %c0_31] : memref<64x128xf32, #tpu.memory_space<vmem>>, vector<1x128xf32>
    tpu.vector_store %arg10[%c9, %c0_31], %69 {strides = array<i32>} : memref<64x128xf32, #tpu.memory_space<vmem>>, vector<1x128xf32>,
    %c8_i32_32 = arith.constant 8 : i32
    %71 = arith.addi %c8_i32_32, %0 : i32
    %c2_i32_33 = arith.constant 2 : i32
    %72 = arith.addi %71, %c2_i32_33 : i32
    %73 = arith.index_cast %72 : i32 to index
    %74 = memref.load %arg1[%73] : memref<64xi32, #tpu.memory_space<smem>>
    %75 = arith.index_cast %74 : i32 to index
    %c0_34 = arith.constant 0 : index
    %76 = vector.load %arg3[%75, %c0_34] : memref<64x128xf32, #tpu.memory_space<vmem>>, vector<1x128xf32>
    %c10 = arith.constant 10 : index
    %c0_35 = arith.constant 0 : index
    %77 = vector.load %arg10[%c10, %c0_35] : memref<64x128xf32, #tpu.memory_space<vmem>>, vector<1x128xf32>
    tpu.vector_store %arg10[%c10, %c0_35], %76 {strides = array<i32>} : memref<64x128xf32, #tpu.memory_space<vmem>>, vector<1x128xf32>,
    %c8_i32_36 = arith.constant 8 : i32
    %78 = arith.addi %c8_i32_36, %0 : i32
    %c3_i32_37 = arith.constant 3 : i32
    %79 = arith.addi %78, %c3_i32_37 : i32
    %80 = arith.index_cast %79 : i32 to index
    %81 = memref.load %arg1[%80] : memref<64xi32, #tpu.memory_space<smem>>
    %82 = arith.index_cast %81 : i32 to index
    %c0_38 = arith.constant 0 : index
    %83 = vector.load %arg3[%82, %c0_38] : memref<64x128xf32, #tpu.memory_space<vmem>>, vector<1x128xf32>
    %c11 = arith.constant 11 : index
    %c0_39 = arith.constant 0 : index
    %84 = vector.load %arg10[%c11, %c0_39] : memref<64x128xf32, #tpu.memory_space<vmem>>, vector<1x128xf32>
    tpu.vector_store %arg10[%c11, %c0_39], %83 {strides = array<i32>} : memref<64x128xf32, #tpu.memory_space<vmem>>, vector<1x128xf32>,
    %c8_i32_40 = arith.constant 8 : i32
    %85 = arith.addi %c8_i32_40, %0 : i32
    %c4_i32_41 = arith.constant 4 : i32
    %86 = arith.addi %85, %c4_i32_41 : i32
    %87 = arith.index_cast %86 : i32 to index
    %88 = memref.load %arg1[%87] : memref<64xi32, #tpu.memory_space<smem>>
    %89 = arith.index_cast %88 : i32 to index
    %c0_42 = arith.constant 0 : index
    %90 = vector.load %arg3[%89, %c0_42] : memref<64x128xf32, #tpu.memory_space<vmem>>, vector<1x128xf32>
    %c12 = arith.constant 12 : index
    %c0_43 = arith.constant 0 : index
    %91 = vector.load %arg10[%c12, %c0_43] : memref<64x128xf32, #tpu.memory_space<vmem>>, vector<1x128xf32>
    tpu.vector_store %arg10[%c12, %c0_43], %90 {strides = array<i32>} : memref<64x128xf32, #tpu.memory_space<vmem>>, vector<1x128xf32>,
    %c8_i32_44 = arith.constant 8 : i32
    %92 = arith.addi %c8_i32_44, %0 : i32
    %c5_i32_45 = arith.constant 5 : i32
    %93 = arith.addi %92, %c5_i32_45 : i32
    %94 = arith.index_cast %93 : i32 to index
    %95 = memref.load %arg1[%94] : memref<64xi32, #tpu.memory_space<smem>>
    %96 = arith.index_cast %95 : i32 to index
    %c0_46 = arith.constant 0 : index
    %97 = vector.load %arg3[%96, %c0_46] : memref<64x128xf32, #tpu.memory_space<vmem>>, vector<1x128xf32>
    %c13 = arith.constant 13 : index
    %c0_47 = arith.constant 0 : index
    %98 = vector.load %arg10[%c13, %c0_47] : memref<64x128xf32, #tpu.memory_space<vmem>>, vector<1x128xf32>
    tpu.vector_store %arg10[%c13, %c0_47], %97 {strides = array<i32>} : memref<64x128xf32, #tpu.memory_space<vmem>>, vector<1x128xf32>,
    %c8_i32_48 = arith.constant 8 : i32
    %99 = arith.addi %c8_i32_48, %0 : i32
    %c6_i32_49 = arith.constant 6 : i32
    %100 = arith.addi %99, %c6_i32_49 : i32
    %101 = arith.index_cast %100 : i32 to index
    %102 = memref.load %arg1[%101] : memref<64xi32, #tpu.memory_space<smem>>
    %103 = arith.index_cast %102 : i32 to index
    %c0_50 = arith.constant 0 : index
    %104 = vector.load %arg3[%103, %c0_50] : memref<64x128xf32, #tpu.memory_space<vmem>>, vector<1x128xf32>
    %c14 = arith.constant 14 : index
    %c0_51 = arith.constant 0 : index
    %105 = vector.load %arg10[%c14, %c0_51] : memref<64x128xf32, #tpu.memory_space<vmem>>, vector<1x128xf32>
    tpu.vector_store %arg10[%c14, %c0_51], %104 {strides = array<i32>} : memref<64x128xf32, #tpu.memory_space<vmem>>, vector<1x128xf32>,
    %c8_i32_52 = arith.constant 8 : i32
    %106 = arith.addi %c8_i32_52, %0 : i32
    %c7_i32_53 = arith.constant 7 : i32
    %107 = arith.addi %106, %c7_i32_53 : i32
    %108 = arith.index_cast %107 : i32 to index
    %109 = memref.load %arg1[%108] : memref<64xi32, #tpu.memory_space<smem>>
    %110 = arith.index_cast %109 : i32 to index
    %c0_54 = arith.constant 0 : index
    %111 = vector.load %arg3[%110, %c0_54] : memref<64x128xf32, #tpu.memory_space<vmem>>, vector<1x128xf32>
    %c15 = arith.constant 15 : index
    %c0_55 = arith.constant 0 : index
    %112 = vector.load %arg10[%c15, %c0_55] : memref<64x128xf32, #tpu.memory_space<vmem>>, vector<1x128xf32>
    tpu.vector_store %arg10[%c15, %c0_55], %111 {strides = array<i32>} : memref<64x128xf32, #tpu.memory_space<vmem>>, vector<1x128xf32>,
    %c16_i32 = arith.constant 16 : i32
    %113 = arith.addi %c16_i32, %0 : i32
    %c0_i32_56 = arith.constant 0 : i32
    %114 = arith.addi %113, %c0_i32_56 : i32
    %115 = arith.index_cast %114 : i32 to index
    %116 = memref.load %arg1[%115] : memref<64xi32, #tpu.memory_space<smem>>
    %117 = arith.index_cast %116 : i32 to index
    %c0_57 = arith.constant 0 : index
    %118 = vector.load %arg3[%117, %c0_57] : memref<64x128xf32, #tpu.memory_space<vmem>>, vector<1x128xf32>
    %c16 = arith.constant 16 : index
    %c0_58 = arith.constant 0 : index
    %119 = vector.load %arg10[%c16, %c0_58] : memref<64x128xf32, #tpu.memory_space<vmem>>, vector<1x128xf32>
    tpu.vector_store %arg10[%c16, %c0_58], %118 {strides = array<i32>} : memref<64x128xf32, #tpu.memory_space<vmem>>, vector<1x128xf32>,
    %c16_i32_59 = arith.constant 16 : i32
    %120 = arith.addi %c16_i32_59, %0 : i32
    %c1_i32_60 = arith.constant 1 : i32
    %121 = arith.addi %120, %c1_i32_60 : i32
    %122 = arith.index_cast %121 : i32 to index
    %123 = memref.load %arg1[%122] : memref<64xi32, #tpu.memory_space<smem>>
    %124 = arith.index_cast %123 : i32 to index
    %c0_61 = arith.constant 0 : index
    %125 = vector.load %arg3[%124, %c0_61] : memref<64x128xf32, #tpu.memory_space<vmem>>, vector<1x128xf32>
    %c17 = arith.constant 17 : index
    %c0_62 = arith.constant 0 : index
    %126 = vector.load %arg10[%c17, %c0_62] : memref<64x128xf32, #tpu.memory_space<vmem>>, vector<1x128xf32>
    tpu.vector_store %arg10[%c17, %c0_62], %125 {strides = array<i32>} : memref<64x128xf32, #tpu.memory_space<vmem>>, vector<1x128xf32>,
    %c16_i32_63 = arith.constant 16 : i32
    %127 = arith.addi %c16_i32_63, %0 : i32
    %c2_i32_64 = arith.constant 2 : i32
    %128 = arith.addi %127, %c2_i32_64 : i32
    %129 = arith.index_cast %128 : i32 to index
    %130 = memref.load %arg1[%129] : memref<64xi32, #tpu.memory_space<smem>>
    %131 = arith.index_cast %130 : i32 to index
    %c0_65 = arith.constant 0 : index
    %132 = vector.load %arg3[%131, %c0_65] : memref<64x128xf32, #tpu.memory_space<vmem>>, vector<1x128xf32>
    %c18 = arith.constant 18 : index
    %c0_66 = arith.constant 0 : index
    %133 = vector.load %arg10[%c18, %c0_66] : memref<64x128xf32, #tpu.memory_space<vmem>>, vector<1x128xf32>
    tpu.vector_store %arg10[%c18, %c0_66], %132 {strides = array<i32>} : memref<64x128xf32, #tpu.memory_space<vmem>>, vector<1x128xf32>,
    %c16_i32_67 = arith.constant 16 : i32
    %134 = arith.addi %c16_i32_67, %0 : i32
    %c3_i32_68 = arith.constant 3 : i32
    %135 = arith.addi %134, %c3_i32_68 : i32
    %136 = arith.index_cast %135 : i32 to index
    %137 = memref.load %arg1[%136] : memref<64xi32, #tpu.memory_space<smem>>
    %138 = arith.index_cast %137 : i32 to index
    %c0_69 = arith.constant 0 : index
    %139 = vector.load %arg3[%138, %c0_69] : memref<64x128xf32, #tpu.memory_space<vmem>>, vector<1x128xf32>
    %c19 = arith.constant 19 : index
    %c0_70 = arith.constant 0 : index
    %140 = vector.load %arg10[%c19, %c0_70] : memref<64x128xf32, #tpu.memory_space<vmem>>, vector<1x128xf32>
    tpu.vector_store %arg10[%c19, %c0_70], %139 {strides = array<i32>} : memref<64x128xf32, #tpu.memory_space<vmem>>, vector<1x128xf32>,
    %c16_i32_71 = arith.constant 16 : i32
    %141 = arith.addi %c16_i32_71, %0 : i32
    %c4_i32_72 = arith.constant 4 : i32
    %142 = arith.addi %141, %c4_i32_72 : i32
    %143 = arith.index_cast %142 : i32 to index
    %144 = memref.load %arg1[%143] : memref<64xi32, #tpu.memory_space<smem>>
    %145 = arith.index_cast %144 : i32 to index
    %c0_73 = arith.constant 0 : index
    %146 = vector.load %arg3[%145, %c0_73] : memref<64x128xf32, #tpu.memory_space<vmem>>, vector<1x128xf32>
    %c20 = arith.constant 20 : index
    %c0_74 = arith.constant 0 : index
    %147 = vector.load %arg10[%c20, %c0_74] : memref<64x128xf32, #tpu.memory_space<vmem>>, vector<1x128xf32>
    tpu.vector_store %arg10[%c20, %c0_74], %146 {strides = array<i32>} : memref<64x128xf32, #tpu.memory_space<vmem>>, vector<1x128xf32>,
    %c16_i32_75 = arith.constant 16 : i32
    %148 = arith.addi %c16_i32_75, %0 : i32
    %c5_i32_76 = arith.constant 5 : i32
    %149 = arith.addi %148, %c5_i32_76 : i32
    %150 = arith.index_cast %149 : i32 to index
    %151 = memref.load %arg1[%150] : memref<64xi32, #tpu.memory_space<smem>>
    %152 = arith.index_cast %151 : i32 to index
    %c0_77 = arith.constant 0 : index
    %153 = vector.load %arg3[%152, %c0_77] : memref<64x128xf32, #tpu.memory_space<vmem>>, vector<1x128xf32>
    %c21 = arith.constant 21 : index
    %c0_78 = arith.constant 0 : index
    %154 = vector.load %arg10[%c21, %c0_78] : memref<64x128xf32, #tpu.memory_space<vmem>>, vector<1x128xf32>
    tpu.vector_store %arg10[%c21, %c0_78], %153 {strides = array<i32>} : memref<64x128xf32, #tpu.memory_space<vmem>>, vector<1x128xf32>,
    %c16_i32_79 = arith.constant 16 : i32
    %155 = arith.addi %c16_i32_79, %0 : i32
    %c6_i32_80 = arith.constant 6 : i32
    %156 = arith.addi %155, %c6_i32_80 : i32
    %157 = arith.index_cast %156 : i32 to index
    %158 = memref.load %arg1[%157] : memref<64xi32, #tpu.memory_space<smem>>
    %159 = arith.index_cast %158 : i32 to index
    %c0_81 = arith.constant 0 : index
    %160 = vector.load %arg3[%159, %c0_81] : memref<64x128xf32, #tpu.memory_space<vmem>>, vector<1x128xf32>
    %c22 = arith.constant 22 : index
    %c0_82 = arith.constant 0 : index
    %161 = vector.load %arg10[%c22, %c0_82] : memref<64x128xf32, #tpu.memory_space<vmem>>, vector<1x128xf32>
    tpu.vector_store %arg10[%c22, %c0_82], %160 {strides = array<i32>} : memref<64x128xf32, #tpu.memory_space<vmem>>, vector<1x128xf32>,
    %c16_i32_83 = arith.constant 16 : i32
    %162 = arith.addi %c16_i32_83, %0 : i32
    %c7_i32_84 = arith.constant 7 : i32
    %163 = arith.addi %162, %c7_i32_84 : i32
    %164 = arith.index_cast %163 : i32 to index
    %165 = memref.load %arg1[%164] : memref<64xi32, #tpu.memory_space<smem>>
    %166 = arith.index_cast %165 : i32 to index
    %c0_85 = arith.constant 0 : index
    %167 = vector.load %arg3[%166, %c0_85] : memref<64x128xf32, #tpu.memory_space<vmem>>, vector<1x128xf32>
    %c23 = arith.constant 23 : index
    %c0_86 = arith.constant 0 : index
    %168 = vector.load %arg10[%c23, %c0_86] : memref<64x128xf32, #tpu.memory_space<vmem>>, vector<1x128xf32>
    tpu.vector_store %arg10[%c23, %c0_86], %167 {strides = array<i32>} : memref<64x128xf32, #tpu.memory_space<vmem>>, vector<1x128xf32>,
    %c24_i32 = arith.constant 24 : i32
    %169 = arith.addi %c24_i32, %0 : i32
    %c0_i32_87 = arith.constant 0 : i32
    %170 = arith.addi %169, %c0_i32_87 : i32
    %171 = arith.index_cast %170 : i32 to index
    %172 = memref.load %arg1[%171] : memref<64xi32, #tpu.memory_space<smem>>
    %173 = arith.index_cast %172 : i32 to index
    %c0_88 = arith.constant 0 : index
    %174 = vector.load %arg3[%173, %c0_88] : memref<64x128xf32, #tpu.memory_space<vmem>>, vector<1x128xf32>
    %c24 = arith.constant 24 : index
    %c0_89 = arith.constant 0 : index
    %175 = vector.load %arg10[%c24, %c0_89] : memref<64x128xf32, #tpu.memory_space<vmem>>, vector<1x128xf32>
    tpu.vector_store %arg10[%c24, %c0_89], %174 {strides = array<i32>} : memref<64x128xf32, #tpu.memory_space<vmem>>, vector<1x128xf32>,
    %c24_i32_90 = arith.constant 24 : i32
    %176 = arith.addi %c24_i32_90, %0 : i32
    %c1_i32_91 = arith.constant 1 : i32
    %177 = arith.addi %176, %c1_i32_91 : i32
    %178 = arith.index_cast %177 : i32 to index
    %179 = memref.load %arg1[%178] : memref<64xi32, #tpu.memory_space<smem>>
    %180 = arith.index_cast %179 : i32 to index
    %c0_92 = arith.constant 0 : index
    %181 = vector.load %arg3[%180, %c0_92] : memref<64x128xf32, #tpu.memory_space<vmem>>, vector<1x128xf32>
    %c25 = arith.constant 25 : index
    %c0_93 = arith.constant 0 : index
    %182 = vector.load %arg10[%c25, %c0_93] : memref<64x128xf32, #tpu.memory_space<vmem>>, vector<1x128xf32>
    tpu.vector_store %arg10[%c25, %c0_93], %181 {strides = array<i32>} : memref<64x128xf32, #tpu.memory_space<vmem>>, vector<1x128xf32>,
    %c24_i32_94 = arith.constant 24 : i32
    %183 = arith.addi %c24_i32_94, %0 : i32
    %c2_i32_95 = arith.constant 2 : i32
    %184 = arith.addi %183, %c2_i32_95 : i32
    %185 = arith.index_cast %184 : i32 to index
    %186 = memref.load %arg1[%185] : memref<64xi32, #tpu.memory_space<smem>>
    %187 = arith.index_cast %186 : i32 to index
    %c0_96 = arith.constant 0 : index
    %188 = vector.load %arg3[%187, %c0_96] : memref<64x128xf32, #tpu.memory_space<vmem>>, vector<1x128xf32>
    %c26 = arith.constant 26 : index
    %c0_97 = arith.constant 0 : index
    %189 = vector.load %arg10[%c26, %c0_97] : memref<64x128xf32, #tpu.memory_space<vmem>>, vector<1x128xf32>
    tpu.vector_store %arg10[%c26, %c0_97], %188 {strides = array<i32>} : memref<64x128xf32, #tpu.memory_space<vmem>>, vector<1x128xf32>,
    %c24_i32_98 = arith.constant 24 : i32
    %190 = arith.addi %c24_i32_98, %0 : i32
    %c3_i32_99 = arith.constant 3 : i32
    %191 = arith.addi %190, %c3_i32_99 : i32
    %192 = arith.index_cast %191 : i32 to index
    %193 = memref.load %arg1[%192] : memref<64xi32, #tpu.memory_space<smem>>
    %194 = arith.index_cast %193 : i32 to index
    %c0_100 = arith.constant 0 : index
    %195 = vector.load %arg3[%194, %c0_100] : memref<64x128xf32, #tpu.memory_space<vmem>>, vector<1x128xf32>
    %c27 = arith.constant 27 : index
    %c0_101 = arith.constant 0 : index
    %196 = vector.load %arg10[%c27, %c0_101] : memref<64x128xf32, #tpu.memory_space<vmem>>, vector<1x128xf32>
    tpu.vector_store %arg10[%c27, %c0_101], %195 {strides = array<i32>} : memref<64x128xf32, #tpu.memory_space<vmem>>, vector<1x128xf32>,
    %c24_i32_102 = arith.constant 24 : i32
    %197 = arith.addi %c24_i32_102, %0 : i32
    %c4_i32_103 = arith.constant 4 : i32
    %198 = arith.addi %197, %c4_i32_103 : i32
    %199 = arith.index_cast %198 : i32 to index
    %200 = memref.load %arg1[%199] : memref<64xi32, #tpu.memory_space<smem>>
    %201 = arith.index_cast %200 : i32 to index
    %c0_104 = arith.constant 0 : index
    %202 = vector.load %arg3[%201, %c0_104] : memref<64x128xf32, #tpu.memory_space<vmem>>, vector<1x128xf32>
    %c28 = arith.constant 28 : index
    %c0_105 = arith.constant 0 : index
    %203 = vector.load %arg10[%c28, %c0_105] : memref<64x128xf32, #tpu.memory_space<vmem>>, vector<1x128xf32>
    tpu.vector_store %arg10[%c28, %c0_105], %202 {strides = array<i32>} : memref<64x128xf32, #tpu.memory_space<vmem>>, vector<1x128xf32>,
    %c24_i32_106 = arith.constant 24 : i32
    %204 = arith.addi %c24_i32_106, %0 : i32
    %c5_i32_107 = arith.constant 5 : i32
    %205 = arith.addi %204, %c5_i32_107 : i32
    %206 = arith.index_cast %205 : i32 to index
    %207 = memref.load %arg1[%206] : memref<64xi32, #tpu.memory_space<smem>>
    %208 = arith.index_cast %207 : i32 to index
    %c0_108 = arith.constant 0 : index
    %209 = vector.load %arg3[%208, %c0_108] : memref<64x128xf32, #tpu.memory_space<vmem>>, vector<1x128xf32>
    %c29 = arith.constant 29 : index
    %c0_109 = arith.constant 0 : index
    %210 = vector.load %arg10[%c29, %c0_109] : memref<64x128xf32, #tpu.memory_space<vmem>>, vector<1x128xf32>
    tpu.vector_store %arg10[%c29, %c0_109], %209 {strides = array<i32>} : memref<64x128xf32, #tpu.memory_space<vmem>>, vector<1x128xf32>,
    %c24_i32_110 = arith.constant 24 : i32
    %211 = arith.addi %c24_i32_110, %0 : i32
    %c6_i32_111 = arith.constant 6 : i32
    %212 = arith.addi %211, %c6_i32_111 : i32
    %213 = arith.index_cast %212 : i32 to index
    %214 = memref.load %arg1[%213] : memref<64xi32, #tpu.memory_space<smem>>
    %215 = arith.index_cast %214 : i32 to index
    %c0_112 = arith.constant 0 : index
    %216 = vector.load %arg3[%215, %c0_112] : memref<64x128xf32, #tpu.memory_space<vmem>>, vector<1x128xf32>
    %c30 = arith.constant 30 : index
    %c0_113 = arith.constant 0 : index
    %217 = vector.load %arg10[%c30, %c0_113] : memref<64x128xf32, #tpu.memory_space<vmem>>, vector<1x128xf32>
    tpu.vector_store %arg10[%c30, %c0_113], %216 {strides = array<i32>} : memref<64x128xf32, #tpu.memory_space<vmem>>, vector<1x128xf32>,
    %c24_i32_114 = arith.constant 24 : i32
    %218 = arith.addi %c24_i32_114, %0 : i32
    %c7_i32_115 = arith.constant 7 : i32
    %219 = arith.addi %218, %c7_i32_115 : i32
    %220 = arith.index_cast %219 : i32 to index
    %221 = memref.load %arg1[%220] : memref<64xi32, #tpu.memory_space<smem>>
    %222 = arith.index_cast %221 : i32 to index
    %c0_116 = arith.constant 0 : index
    %223 = vector.load %arg3[%222, %c0_116] : memref<64x128xf32, #tpu.memory_space<vmem>>, vector<1x128xf32>
    %c31 = arith.constant 31 : index
    %c0_117 = arith.constant 0 : index
    %224 = vector.load %arg10[%c31, %c0_117] : memref<64x128xf32, #tpu.memory_space<vmem>>, vector<1x128xf32>
    tpu.vector_store %arg10[%c31, %c0_117], %223 {strides = array<i32>} : memref<64x128xf32, #tpu.memory_space<vmem>>, vector<1x128xf32>,
    %c32_i32 = arith.constant 32 : i32
    %225 = arith.addi %c32_i32, %0 : i32
    %c0_i32_118 = arith.constant 0 : i32
    %226 = arith.addi %225, %c0_i32_118 : i32
    %227 = arith.index_cast %226 : i32 to index
    %228 = memref.load %arg1[%227] : memref<64xi32, #tpu.memory_space<smem>>
    %229 = arith.index_cast %228 : i32 to index
    %c0_119 = arith.constant 0 : index
    %230 = vector.load %arg3[%229, %c0_119] : memref<64x128xf32, #tpu.memory_space<vmem>>, vector<1x128xf32>
    %c32 = arith.constant 32 : index
    %c0_120 = arith.constant 0 : index
    %231 = vector.load %arg10[%c32, %c0_120] : memref<64x128xf32, #tpu.memory_space<vmem>>, vector<1x128xf32>
    tpu.vector_store %arg10[%c32, %c0_120], %230 {strides = array<i32>} : memref<64x128xf32, #tpu.memory_space<vmem>>, vector<1x128xf32>,
    %c32_i32_121 = arith.constant 32 : i32
    %232 = arith.addi %c32_i32_121, %0 : i32
    %c1_i32_122 = arith.constant 1 : i32
    %233 = arith.addi %232, %c1_i32_122 : i32
    %234 = arith.index_cast %233 : i32 to index
    %235 = memref.load %arg1[%234] : memref<64xi32, #tpu.memory_space<smem>>
    %236 = arith.index_cast %235 : i32 to index
    %c0_123 = arith.constant 0 : index
    %237 = vector.load %arg3[%236, %c0_123] : memref<64x128xf32, #tpu.memory_space<vmem>>, vector<1x128xf32>
    %c33 = arith.constant 33 : index
    %c0_124 = arith.constant 0 : index
    %238 = vector.load %arg10[%c33, %c0_124] : memref<64x128xf32, #tpu.memory_space<vmem>>, vector<1x128xf32>
    tpu.vector_store %arg10[%c33, %c0_124], %237 {strides = array<i32>} : memref<64x128xf32, #tpu.memory_space<vmem>>, vector<1x128xf32>,
    %c32_i32_125 = arith.constant 32 : i32
    %239 = arith.addi %c32_i32_125, %0 : i32
    %c2_i32_126 = arith.constant 2 : i32
    %240 = arith.addi %239, %c2_i32_126 : i32
    %241 = arith.index_cast %240 : i32 to index
    %242 = memref.load %arg1[%241] : memref<64xi32, #tpu.memory_space<smem>>
    %243 = arith.index_cast %242 : i32 to index
    %c0_127 = arith.constant 0 : index
    %244 = vector.load %arg3[%243, %c0_127] : memref<64x128xf32, #tpu.memory_space<vmem>>, vector<1x128xf32>
    %c34 = arith.constant 34 : index
    %c0_128 = arith.constant 0 : index
    %245 = vector.load %arg10[%c34, %c0_128] : memref<64x128xf32, #tpu.memory_space<vmem>>, vector<1x128xf32>
    tpu.vector_store %arg10[%c34, %c0_128], %244 {strides = array<i32>} : memref<64x128xf32, #tpu.memory_space<vmem>>, vector<1x128xf32>,
    %c32_i32_129 = arith.constant 32 : i32
    %246 = arith.addi %c32_i32_129, %0 : i32
    %c3_i32_130 = arith.constant 3 : i32
    %247 = arith.addi %246, %c3_i32_130 : i32
    %248 = arith.index_cast %247 : i32 to index
    %249 = memref.load %arg1[%248] : memref<64xi32, #tpu.memory_space<smem>>
    %250 = arith.index_cast %249 : i32 to index
    %c0_131 = arith.constant 0 : index
    %251 = vector.load %arg3[%250, %c0_131] : memref<64x128xf32, #tpu.memory_space<vmem>>, vector<1x128xf32>
    %c35 = arith.constant 35 : index
    %c0_132 = arith.constant 0 : index
    %252 = vector.load %arg10[%c35, %c0_132] : memref<64x128xf32, #tpu.memory_space<vmem>>, vector<1x128xf32>
    tpu.vector_store %arg10[%c35, %c0_132], %251 {strides = array<i32>} : memref<64x128xf32, #tpu.memory_space<vmem>>, vector<1x128xf32>,
    %c32_i32_133 = arith.constant 32 : i32
    %253 = arith.addi %c32_i32_133, %0 : i32
    %c4_i32_134 = arith.constant 4 : i32
    %254 = arith.addi %253, %c4_i32_134 : i32
    %255 = arith.index_cast %254 : i32 to index
    %256 = memref.load %arg1[%255] : memref<64xi32, #tpu.memory_space<smem>>
    %257 = arith.index_cast %256 : i32 to index
    %c0_135 = arith.constant 0 : index
    %258 = vector.load %arg3[%257, %c0_135] : memref<64x128xf32, #tpu.memory_space<vmem>>, vector<1x128xf32>
    %c36 = arith.constant 36 : index
    %c0_136 = arith.constant 0 : index
    %259 = vector.load %arg10[%c36, %c0_136] : memref<64x128xf32, #tpu.memory_space<vmem>>, vector<1x128xf32>
    tpu.vector_store %arg10[%c36, %c0_136], %258 {strides = array<i32>} : memref<64x128xf32, #tpu.memory_space<vmem>>, vector<1x128xf32>,
    %c32_i32_137 = arith.constant 32 : i32
    %260 = arith.addi %c32_i32_137, %0 : i32
    %c5_i32_138 = arith.constant 5 : i32
    %261 = arith.addi %260, %c5_i32_138 : i32
    %262 = arith.index_cast %261 : i32 to index
    %263 = memref.load %arg1[%262] : memref<64xi32, #tpu.memory_space<smem>>
    %264 = arith.index_cast %263 : i32 to index
    %c0_139 = arith.constant 0 : index
    %265 = vector.load %arg3[%264, %c0_139] : memref<64x128xf32, #tpu.memory_space<vmem>>, vector<1x128xf32>
    %c37 = arith.constant 37 : index
    %c0_140 = arith.constant 0 : index
    %266 = vector.load %arg10[%c37, %c0_140] : memref<64x128xf32, #tpu.memory_space<vmem>>, vector<1x128xf32>
    tpu.vector_store %arg10[%c37, %c0_140], %265 {strides = array<i32>} : memref<64x128xf32, #tpu.memory_space<vmem>>, vector<1x128xf32>,
    %c32_i32_141 = arith.constant 32 : i32
    %267 = arith.addi %c32_i32_141, %0 : i32
    %c6_i32_142 = arith.constant 6 : i32
    %268 = arith.addi %267, %c6_i32_142 : i32
    %269 = arith.index_cast %268 : i32 to index
    %270 = memref.load %arg1[%269] : memref<64xi32, #tpu.memory_space<smem>>
    %271 = arith.index_cast %270 : i32 to index
    %c0_143 = arith.constant 0 : index
    %272 = vector.load %arg3[%271, %c0_143] : memref<64x128xf32, #tpu.memory_space<vmem>>, vector<1x128xf32>
    %c38 = arith.constant 38 : index
    %c0_144 = arith.constant 0 : index
    %273 = vector.load %arg10[%c38, %c0_144] : memref<64x128xf32, #tpu.memory_space<vmem>>, vector<1x128xf32>
    tpu.vector_store %arg10[%c38, %c0_144], %272 {strides = array<i32>} : memref<64x128xf32, #tpu.memory_space<vmem>>, vector<1x128xf32>,
    %c32_i32_145 = arith.constant 32 : i32
    %274 = arith.addi %c32_i32_145, %0 : i32
    %c7_i32_146 = arith.constant 7 : i32
    %275 = arith.addi %274, %c7_i32_146 : i32
    %276 = arith.index_cast %275 : i32 to index
    %277 = memref.load %arg1[%276] : memref<64xi32, #tpu.memory_space<smem>>
    %278 = arith.index_cast %277 : i32 to index
    %c0_147 = arith.constant 0 : index
    %279 = vector.load %arg3[%278, %c0_147] : memref<64x128xf32, #tpu.memory_space<vmem>>, vector<1x128xf32>
    %c39 = arith.constant 39 : index
    %c0_148 = arith.constant 0 : index
    %280 = vector.load %arg10[%c39, %c0_148] : memref<64x128xf32, #tpu.memory_space<vmem>>, vector<1x128xf32>
    tpu.vector_store %arg10[%c39, %c0_148], %279 {strides = array<i32>} : memref<64x128xf32, #tpu.memory_space<vmem>>, vector<1x128xf32>,
    %c40_i32 = arith.constant 40 : i32
    %281 = arith.addi %c40_i32, %0 : i32
    %c0_i32_149 = arith.constant 0 : i32
    %282 = arith.addi %281, %c0_i32_149 : i32
    %283 = arith.index_cast %282 : i32 to index
    %284 = memref.load %arg1[%283] : memref<64xi32, #tpu.memory_space<smem>>
    %285 = arith.index_cast %284 : i32 to index
    %c0_150 = arith.constant 0 : index
    %286 = vector.load %arg3[%285, %c0_150] : memref<64x128xf32, #tpu.memory_space<vmem>>, vector<1x128xf32>
    %c40 = arith.constant 40 : index
    %c0_151 = arith.constant 0 : index
    %287 = vector.load %arg10[%c40, %c0_151] : memref<64x128xf32, #tpu.memory_space<vmem>>, vector<1x128xf32>
    tpu.vector_store %arg10[%c40, %c0_151], %286 {strides = array<i32>} : memref<64x128xf32, #tpu.memory_space<vmem>>, vector<1x128xf32>,
    %c40_i32_152 = arith.constant 40 : i32
    %288 = arith.addi %c40_i32_152, %0 : i32
    %c1_i32_153 = arith.constant 1 : i32
    %289 = arith.addi %288, %c1_i32_153 : i32
    %290 = arith.index_cast %289 : i32 to index
    %291 = memref.load %arg1[%290] : memref<64xi32, #tpu.memory_space<smem>>
    %292 = arith.index_cast %291 : i32 to index
    %c0_154 = arith.constant 0 : index
    %293 = vector.load %arg3[%292, %c0_154] : memref<64x128xf32, #tpu.memory_space<vmem>>, vector<1x128xf32>
    %c41 = arith.constant 41 : index
    %c0_155 = arith.constant 0 : index
    %294 = vector.load %arg10[%c41, %c0_155] : memref<64x128xf32, #tpu.memory_space<vmem>>, vector<1x128xf32>
    tpu.vector_store %arg10[%c41, %c0_155], %293 {strides = array<i32>} : memref<64x128xf32, #tpu.memory_space<vmem>>, vector<1x128xf32>,
    %c40_i32_156 = arith.constant 40 : i32
    %295 = arith.addi %c40_i32_156, %0 : i32
    %c2_i32_157 = arith.constant 2 : i32
    %296 = arith.addi %295, %c2_i32_157 : i32
    %297 = arith.index_cast %296 : i32 to index
    %298 = memref.load %arg1[%297] : memref<64xi32, #tpu.memory_space<smem>>
    %299 = arith.index_cast %298 : i32 to index
    %c0_158 = arith.constant 0 : index
    %300 = vector.load %arg3[%299, %c0_158] : memref<64x128xf32, #tpu.memory_space<vmem>>, vector<1x128xf32>
    %c42 = arith.constant 42 : index
    %c0_159 = arith.constant 0 : index
    %301 = vector.load %arg10[%c42, %c0_159] : memref<64x128xf32, #tpu.memory_space<vmem>>, vector<1x128xf32>
    tpu.vector_store %arg10[%c42, %c0_159], %300 {strides = array<i32>} : memref<64x128xf32, #tpu.memory_space<vmem>>, vector<1x128xf32>,
    %c40_i32_160 = arith.constant 40 : i32
    %302 = arith.addi %c40_i32_160, %0 : i32
    %c3_i32_161 = arith.constant 3 : i32
    %303 = arith.addi %302, %c3_i32_161 : i32
    %304 = arith.index_cast %303 : i32 to index
    %305 = memref.load %arg1[%304] : memref<64xi32, #tpu.memory_space<smem>>
    %306 = arith.index_cast %305 : i32 to index
    %c0_162 = arith.constant 0 : index
    %307 = vector.load %arg3[%306, %c0_162] : memref<64x128xf32, #tpu.memory_space<vmem>>, vector<1x128xf32>
    %c43 = arith.constant 43 : index
    %c0_163 = arith.constant 0 : index
    %308 = vector.load %arg10[%c43, %c0_163] : memref<64x128xf32, #tpu.memory_space<vmem>>, vector<1x128xf32>
    tpu.vector_store %arg10[%c43, %c0_163], %307 {strides = array<i32>} : memref<64x128xf32, #tpu.memory_space<vmem>>, vector<1x128xf32>,
    %c40_i32_164 = arith.constant 40 : i32
    %309 = arith.addi %c40_i32_164, %0 : i32
    %c4_i32_165 = arith.constant 4 : i32
    %310 = arith.addi %309, %c4_i32_165 : i32
    %311 = arith.index_cast %310 : i32 to index
    %312 = memref.load %arg1[%311] : memref<64xi32, #tpu.memory_space<smem>>
    %313 = arith.index_cast %312 : i32 to index
    %c0_166 = arith.constant 0 : index
    %314 = vector.load %arg3[%313, %c0_166] : memref<64x128xf32, #tpu.memory_space<vmem>>, vector<1x128xf32>
    %c44 = arith.constant 44 : index
    %c0_167 = arith.constant 0 : index
    %315 = vector.load %arg10[%c44, %c0_167] : memref<64x128xf32, #tpu.memory_space<vmem>>, vector<1x128xf32>
    tpu.vector_store %arg10[%c44, %c0_167], %314 {strides = array<i32>} : memref<64x128xf32, #tpu.memory_space<vmem>>, vector<1x128xf32>,
    %c40_i32_168 = arith.constant 40 : i32
    %316 = arith.addi %c40_i32_168, %0 : i32
    %c5_i32_169 = arith.constant 5 : i32
    %317 = arith.addi %316, %c5_i32_169 : i32
    %318 = arith.index_cast %317 : i32 to index
    %319 = memref.load %arg1[%318] : memref<64xi32, #tpu.memory_space<smem>>
    %320 = arith.index_cast %319 : i32 to index
    %c0_170 = arith.constant 0 : index
    %321 = vector.load %arg3[%320, %c0_170] : memref<64x128xf32, #tpu.memory_space<vmem>>, vector<1x128xf32>
    %c45 = arith.constant 45 : index
    %c0_171 = arith.constant 0 : index
    %322 = vector.load %arg10[%c45, %c0_171] : memref<64x128xf32, #tpu.memory_space<vmem>>, vector<1x128xf32>
    tpu.vector_store %arg10[%c45, %c0_171], %321 {strides = array<i32>} : memref<64x128xf32, #tpu.memory_space<vmem>>, vector<1x128xf32>,
    %c40_i32_172 = arith.constant 40 : i32
    %323 = arith.addi %c40_i32_172, %0 : i32
    %c6_i32_173 = arith.constant 6 : i32
    %324 = arith.addi %323, %c6_i32_173 : i32
    %325 = arith.index_cast %324 : i32 to index
    %326 = memref.load %arg1[%325] : memref<64xi32, #tpu.memory_space<smem>>
    %327 = arith.index_cast %326 : i32 to index
    %c0_174 = arith.constant 0 : index
    %328 = vector.load %arg3[%327, %c0_174] : memref<64x128xf32, #tpu.memory_space<vmem>>, vector<1x128xf32>
    %c46 = arith.constant 46 : index
    %c0_175 = arith.constant 0 : index
    %329 = vector.load %arg10[%c46, %c0_175] : memref<64x128xf32, #tpu.memory_space<vmem>>, vector<1x128xf32>
    tpu.vector_store %arg10[%c46, %c0_175], %328 {strides = array<i32>} : memref<64x128xf32, #tpu.memory_space<vmem>>, vector<1x128xf32>,
    %c40_i32_176 = arith.constant 40 : i32
    %330 = arith.addi %c40_i32_176, %0 : i32
    %c7_i32_177 = arith.constant 7 : i32
    %331 = arith.addi %330, %c7_i32_177 : i32
    %332 = arith.index_cast %331 : i32 to index
    %333 = memref.load %arg1[%332] : memref<64xi32, #tpu.memory_space<smem>>
    %334 = arith.index_cast %333 : i32 to index
    %c0_178 = arith.constant 0 : index
    %335 = vector.load %arg3[%334, %c0_178] : memref<64x128xf32, #tpu.memory_space<vmem>>, vector<1x128xf32>
    %c47 = arith.constant 47 : index
    %c0_179 = arith.constant 0 : index
    %336 = vector.load %arg10[%c47, %c0_179] : memref<64x128xf32, #tpu.memory_space<vmem>>, vector<1x128xf32>
    tpu.vector_store %arg10[%c47, %c0_179], %335 {strides = array<i32>} : memref<64x128xf32, #tpu.memory_space<vmem>>, vector<1x128xf32>,
    %c48_i32 = arith.constant 48 : i32
    %337 = arith.addi %c48_i32, %0 : i32
    %c0_i32_180 = arith.constant 0 : i32
    %338 = arith.addi %337, %c0_i32_180 : i32
    %339 = arith.index_cast %338 : i32 to index
    %340 = memref.load %arg1[%339] : memref<64xi32, #tpu.memory_space<smem>>
    %341 = arith.index_cast %340 : i32 to index
    %c0_181 = arith.constant 0 : index
    %342 = vector.load %arg3[%341, %c0_181] : memref<64x128xf32, #tpu.memory_space<vmem>>, vector<1x128xf32>
    %c48 = arith.constant 48 : index
    %c0_182 = arith.constant 0 : index
    %343 = vector.load %arg10[%c48, %c0_182] : memref<64x128xf32, #tpu.memory_space<vmem>>, vector<1x128xf32>
    tpu.vector_store %arg10[%c48, %c0_182], %342 {strides = array<i32>} : memref<64x128xf32, #tpu.memory_space<vmem>>, vector<1x128xf32>,
    %c48_i32_183 = arith.constant 48 : i32
    %344 = arith.addi %c48_i32_183, %0 : i32
    %c1_i32_184 = arith.constant 1 : i32
    %345 = arith.addi %344, %c1_i32_184 : i32
    %346 = arith.index_cast %345 : i32 to index
    %347 = memref.load %arg1[%346] : memref<64xi32, #tpu.memory_space<smem>>
    %348 = arith.index_cast %347 : i32 to index
    %c0_185 = arith.constant 0 : index
    %349 = vector.load %arg3[%348, %c0_185] : memref<64x128xf32, #tpu.memory_space<vmem>>, vector<1x128xf32>
    %c49 = arith.constant 49 : index
    %c0_186 = arith.constant 0 : index
    %350 = vector.load %arg10[%c49, %c0_186] : memref<64x128xf32, #tpu.memory_space<vmem>>, vector<1x128xf32>
    tpu.vector_store %arg10[%c49, %c0_186], %349 {strides = array<i32>} : memref<64x128xf32, #tpu.memory_space<vmem>>, vector<1x128xf32>,
    %c48_i32_187 = arith.constant 48 : i32
    %351 = arith.addi %c48_i32_187, %0 : i32
    %c2_i32_188 = arith.constant 2 : i32
    %352 = arith.addi %351, %c2_i32_188 : i32
    %353 = arith.index_cast %352 : i32 to index
    %354 = memref.load %arg1[%353] : memref<64xi32, #tpu.memory_space<smem>>
    %355 = arith.index_cast %354 : i32 to index
    %c0_189 = arith.constant 0 : index
    %356 = vector.load %arg3[%355, %c0_189] : memref<64x128xf32, #tpu.memory_space<vmem>>, vector<1x128xf32>
    %c50 = arith.constant 50 : index
    %c0_190 = arith.constant 0 : index
    %357 = vector.load %arg10[%c50, %c0_190] : memref<64x128xf32, #tpu.memory_space<vmem>>, vector<1x128xf32>
    tpu.vector_store %arg10[%c50, %c0_190], %356 {strides = array<i32>} : memref<64x128xf32, #tpu.memory_space<vmem>>, vector<1x128xf32>,
    %c48_i32_191 = arith.constant 48 : i32
    %358 = arith.addi %c48_i32_191, %0 : i32
    %c3_i32_192 = arith.constant 3 : i32
    %359 = arith.addi %358, %c3_i32_192 : i32
    %360 = arith.index_cast %359 : i32 to index
    %361 = memref.load %arg1[%360] : memref<64xi32, #tpu.memory_space<smem>>
    %362 = arith.index_cast %361 : i32 to index
    %c0_193 = arith.constant 0 : index
    %363 = vector.load %arg3[%362, %c0_193] : memref<64x128xf32, #tpu.memory_space<vmem>>, vector<1x128xf32>
    %c51 = arith.constant 51 : index
    %c0_194 = arith.constant 0 : index
    %364 = vector.load %arg10[%c51, %c0_194] : memref<64x128xf32, #tpu.memory_space<vmem>>, vector<1x128xf32>
    tpu.vector_store %arg10[%c51, %c0_194], %363 {strides = array<i32>} : memref<64x128xf32, #tpu.memory_space<vmem>>, vector<1x128xf32>,
    %c48_i32_195 = arith.constant 48 : i32
    %365 = arith.addi %c48_i32_195, %0 : i32
    %c4_i32_196 = arith.constant 4 : i32
    %366 = arith.addi %365, %c4_i32_196 : i32
    %367 = arith.index_cast %366 : i32 to index
    %368 = memref.load %arg1[%367] : memref<64xi32, #tpu.memory_space<smem>>
    %369 = arith.index_cast %368 : i32 to index
    %c0_197 = arith.constant 0 : index
    %370 = vector.load %arg3[%369, %c0_197] : memref<64x128xf32, #tpu.memory_space<vmem>>, vector<1x128xf32>
    %c52 = arith.constant 52 : index
    %c0_198 = arith.constant 0 : index
    %371 = vector.load %arg10[%c52, %c0_198] : memref<64x128xf32, #tpu.memory_space<vmem>>, vector<1x128xf32>
    tpu.vector_store %arg10[%c52, %c0_198], %370 {strides = array<i32>} : memref<64x128xf32, #tpu.memory_space<vmem>>, vector<1x128xf32>,
    %c48_i32_199 = arith.constant 48 : i32
    %372 = arith.addi %c48_i32_199, %0 : i32
    %c5_i32_200 = arith.constant 5 : i32
    %373 = arith.addi %372, %c5_i32_200 : i32
    %374 = arith.index_cast %373 : i32 to index
    %375 = memref.load %arg1[%374] : memref<64xi32, #tpu.memory_space<smem>>
    %376 = arith.index_cast %375 : i32 to index
    %c0_201 = arith.constant 0 : index
    %377 = vector.load %arg3[%376, %c0_201] : memref<64x128xf32, #tpu.memory_space<vmem>>, vector<1x128xf32>
    %c53 = arith.constant 53 : index
    %c0_202 = arith.constant 0 : index
    %378 = vector.load %arg10[%c53, %c0_202] : memref<64x128xf32, #tpu.memory_space<vmem>>, vector<1x128xf32>
    tpu.vector_store %arg10[%c53, %c0_202], %377 {strides = array<i32>} : memref<64x128xf32, #tpu.memory_space<vmem>>, vector<1x128xf32>,
    %c48_i32_203 = arith.constant 48 : i32
    %379 = arith.addi %c48_i32_203, %0 : i32
    %c6_i32_204 = arith.constant 6 : i32
    %380 = arith.addi %379, %c6_i32_204 : i32
    %381 = arith.index_cast %380 : i32 to index
    %382 = memref.load %arg1[%381] : memref<64xi32, #tpu.memory_space<smem>>
    %383 = arith.index_cast %382 : i32 to index
    %c0_205 = arith.constant 0 : index
    %384 = vector.load %arg3[%383, %c0_205] : memref<64x128xf32, #tpu.memory_space<vmem>>, vector<1x128xf32>
    %c54 = arith.constant 54 : index
    %c0_206 = arith.constant 0 : index
    %385 = vector.load %arg10[%c54, %c0_206] : memref<64x128xf32, #tpu.memory_space<vmem>>, vector<1x128xf32>
    tpu.vector_store %arg10[%c54, %c0_206], %384 {strides = array<i32>} : memref<64x128xf32, #tpu.memory_space<vmem>>, vector<1x128xf32>,
    %c48_i32_207 = arith.constant 48 : i32
    %386 = arith.addi %c48_i32_207, %0 : i32
    %c7_i32_208 = arith.constant 7 : i32
    %387 = arith.addi %386, %c7_i32_208 : i32
    %388 = arith.index_cast %387 : i32 to index
    %389 = memref.load %arg1[%388] : memref<64xi32, #tpu.memory_space<smem>>
    %390 = arith.index_cast %389 : i32 to index
    %c0_209 = arith.constant 0 : index
    %391 = vector.load %arg3[%390, %c0_209] : memref<64x128xf32, #tpu.memory_space<vmem>>, vector<1x128xf32>
    %c55 = arith.constant 55 : index
    %c0_210 = arith.constant 0 : index
    %392 = vector.load %arg10[%c55, %c0_210] : memref<64x128xf32, #tpu.memory_space<vmem>>, vector<1x128xf32>
    tpu.vector_store %arg10[%c55, %c0_210], %391 {strides = array<i32>} : memref<64x128xf32, #tpu.memory_space<vmem>>, vector<1x128xf32>,
    %c56_i32 = arith.constant 56 : i32
    %393 = arith.addi %c56_i32, %0 : i32
    %c0_i32_211 = arith.constant 0 : i32
    %394 = arith.addi %393, %c0_i32_211 : i32
    %395 = arith.index_cast %394 : i32 to index
    %396 = memref.load %arg1[%395] : memref<64xi32, #tpu.memory_space<smem>>
    %397 = arith.index_cast %396 : i32 to index
    %c0_212 = arith.constant 0 : index
    %398 = vector.load %arg3[%397, %c0_212] : memref<64x128xf32, #tpu.memory_space<vmem>>, vector<1x128xf32>
    %c56 = arith.constant 56 : index
    %c0_213 = arith.constant 0 : index
    %399 = vector.load %arg10[%c56, %c0_213] : memref<64x128xf32, #tpu.memory_space<vmem>>, vector<1x128xf32>
    tpu.vector_store %arg10[%c56, %c0_213], %398 {strides = array<i32>} : memref<64x128xf32, #tpu.memory_space<vmem>>, vector<1x128xf32>,
    %c56_i32_214 = arith.constant 56 : i32
    %400 = arith.addi %c56_i32_214, %0 : i32
    %c1_i32_215 = arith.constant 1 : i32
    %401 = arith.addi %400, %c1_i32_215 : i32
    %402 = arith.index_cast %401 : i32 to index
    %403 = memref.load %arg1[%402] : memref<64xi32, #tpu.memory_space<smem>>
    %404 = arith.index_cast %403 : i32 to index
    %c0_216 = arith.constant 0 : index
    %405 = vector.load %arg3[%404, %c0_216] : memref<64x128xf32, #tpu.memory_space<vmem>>, vector<1x128xf32>
    %c57 = arith.constant 57 : index
    %c0_217 = arith.constant 0 : index
    %406 = vector.load %arg10[%c57, %c0_217] : memref<64x128xf32, #tpu.memory_space<vmem>>, vector<1x128xf32>
    tpu.vector_store %arg10[%c57, %c0_217], %405 {strides = array<i32>} : memref<64x128xf32, #tpu.memory_space<vmem>>, vector<1x128xf32>,
    %c56_i32_218 = arith.constant 56 : i32
    %407 = arith.addi %c56_i32_218, %0 : i32
    %c2_i32_219 = arith.constant 2 : i32
    %408 = arith.addi %407, %c2_i32_219 : i32
    %409 = arith.index_cast %408 : i32 to index
    %410 = memref.load %arg1[%409] : memref<64xi32, #tpu.memory_space<smem>>
    %411 = arith.index_cast %410 : i32 to index
    %c0_220 = arith.constant 0 : index
    %412 = vector.load %arg3[%411, %c0_220] : memref<64x128xf32, #tpu.memory_space<vmem>>, vector<1x128xf32>
    %c58 = arith.constant 58 : index
    %c0_221 = arith.constant 0 : index
    %413 = vector.load %arg10[%c58, %c0_221] : memref<64x128xf32, #tpu.memory_space<vmem>>, vector<1x128xf32>
    tpu.vector_store %arg10[%c58, %c0_221], %412 {strides = array<i32>} : memref<64x128xf32, #tpu.memory_space<vmem>>, vector<1x128xf32>,
    %c56_i32_222 = arith.constant 56 : i32
    %414 = arith.addi %c56_i32_222, %0 : i32
    %c3_i32_223 = arith.constant 3 : i32
    %415 = arith.addi %414, %c3_i32_223 : i32
    %416 = arith.index_cast %415 : i32 to index
    %417 = memref.load %arg1[%416] : memref<64xi32, #tpu.memory_space<smem>>
    %418 = arith.index_cast %417 : i32 to index
    %c0_224 = arith.constant 0 : index
    %419 = vector.load %arg3[%418, %c0_224] : memref<64x128xf32, #tpu.memory_space<vmem>>, vector<1x128xf32>
    %c59 = arith.constant 59 : index
    %c0_225 = arith.constant 0 : index
    %420 = vector.load %arg10[%c59, %c0_225] : memref<64x128xf32, #tpu.memory_space<vmem>>, vector<1x128xf32>
    tpu.vector_store %arg10[%c59, %c0_225], %419 {strides = array<i32>} : memref<64x128xf32, #tpu.memory_space<vmem>>, vector<1x128xf32>,
    %c56_i32_226 = arith.constant 56 : i32
    %421 = arith.addi %c56_i32_226, %0 : i32
    %c4_i32_227 = arith.constant 4 : i32
    %422 = arith.addi %421, %c4_i32_227 : i32
    %423 = arith.index_cast %422 : i32 to index
    %424 = memref.load %arg1[%423] : memref<64xi32, #tpu.memory_space<smem>>
    %425 = arith.index_cast %424 : i32 to index
    %c0_228 = arith.constant 0 : index
    %426 = vector.load %arg3[%425, %c0_228] : memref<64x128xf32, #tpu.memory_space<vmem>>, vector<1x128xf32>
    %c60 = arith.constant 60 : index
    %c0_229 = arith.constant 0 : index
    %427 = vector.load %arg10[%c60, %c0_229] : memref<64x128xf32, #tpu.memory_space<vmem>>, vector<1x128xf32>
    tpu.vector_store %arg10[%c60, %c0_229], %426 {strides = array<i32>} : memref<64x128xf32, #tpu.memory_space<vmem>>, vector<1x128xf32>,
    %c56_i32_230 = arith.constant 56 : i32
    %428 = arith.addi %c56_i32_230, %0 : i32
    %c5_i32_231 = arith.constant 5 : i32
    %429 = arith.addi %428, %c5_i32_231 : i32
    %430 = arith.index_cast %429 : i32 to index
    %431 = memref.load %arg1[%430] : memref<64xi32, #tpu.memory_space<smem>>
    %432 = arith.index_cast %431 : i32 to index
    %c0_232 = arith.constant 0 : index
    %433 = vector.load %arg3[%432, %c0_232] : memref<64x128xf32, #tpu.memory_space<vmem>>, vector<1x128xf32>
    %c61 = arith.constant 61 : index
    %c0_233 = arith.constant 0 : index
    %434 = vector.load %arg10[%c61, %c0_233] : memref<64x128xf32, #tpu.memory_space<vmem>>, vector<1x128xf32>
    tpu.vector_store %arg10[%c61, %c0_233], %433 {strides = array<i32>} : memref<64x128xf32, #tpu.memory_space<vmem>>, vector<1x128xf32>,
    %c56_i32_234 = arith.constant 56 : i32
    %435 = arith.addi %c56_i32_234, %0 : i32
    %c6_i32_235 = arith.constant 6 : i32
    %436 = arith.addi %435, %c6_i32_235 : i32
    %437 = arith.index_cast %436 : i32 to index
    %438 = memref.load %arg1[%437] : memref<64xi32, #tpu.memory_space<smem>>
    %439 = arith.index_cast %438 : i32 to index
    %c0_236 = arith.constant 0 : index
    %440 = vector.load %arg3[%439, %c0_236] : memref<64x128xf32, #tpu.memory_space<vmem>>, vector<1x128xf32>
    %c62 = arith.constant 62 : index
    %c0_237 = arith.constant 0 : index
    %441 = vector.load %arg10[%c62, %c0_237] : memref<64x128xf32, #tpu.memory_space<vmem>>, vector<1x128xf32>
    tpu.vector_store %arg10[%c62, %c0_237], %440 {strides = array<i32>} : memref<64x128xf32, #tpu.memory_space<vmem>>, vector<1x128xf32>,
    %c56_i32_238 = arith.constant 56 : i32
    %442 = arith.addi %c56_i32_238, %0 : i32
    %c7_i32_239 = arith.constant 7 : i32
    %443 = arith.addi %442, %c7_i32_239 : i32
    %444 = arith.index_cast %443 : i32 to index
    %445 = memref.load %arg1[%444] : memref<64xi32, #tpu.memory_space<smem>>
    %446 = arith.index_cast %445 : i32 to index
    %c0_240 = arith.constant 0 : index
    %447 = vector.load %arg3[%446, %c0_240] : memref<64x128xf32, #tpu.memory_space<vmem>>, vector<1x128xf32>
    %c63 = arith.constant 63 : index
    %c0_241 = arith.constant 0 : index
    %448 = vector.load %arg10[%c63, %c0_241] : memref<64x128xf32, #tpu.memory_space<vmem>>, vector<1x128xf32>
    tpu.vector_store %arg10[%c63, %c0_241], %447 {strides = array<i32>} : memref<64x128xf32, #tpu.memory_space<vmem>>, vector<1x128xf32>,
    %c0_242 = arith.constant 0 : index
    %c0_243 = arith.constant 0 : index
    %449 = vector.load %arg10[%c0_242, %c0_243] : memref<64x128xf32, #tpu.memory_space<vmem>>, vector<64x128xf32>
    %c0_244 = arith.constant 0 : index
    %c0_245 = arith.constant 0 : index
    %450 = vector.load %arg4[%c0_244, %c0_245] : memref<128x768xf32, #tpu.memory_space<vmem>>, vector<128x768xf32>
    %cst = arith.constant dense<0.000000e+00> : vector<64x768xf32>
    %451 = tpu.matmul %449, %450, %cst {dimension_numbers = #tpu.dot_dimension_numbers<[1], [0], [0], [1], [0, 0, 1, 1], [], []>} : vector<64x128xf32>, vector<128x768xf32>, vector<64x768xf32> -> vector<64x768xf32>
    %c0_246 = arith.constant 0 : index
    %c0_247 = arith.constant 0 : index
    %452 = vector.load %arg6[%c0_246, %c0_247] : memref<1x768xf32, #tpu.memory_space<vmem>>, vector<1x768xf32>
    %453 = vector.broadcast %452 : vector<1x768xf32> to vector<64x768xf32>
    %454 = arith.addf %451, %453 : vector<64x768xf32>
    %455 = vector.extract_strided_slice %454 {offsets = [0, 0], sizes = [64, 384], strides = [1, 1]} : vector<64x768xf32> to vector<64x384xf32>
    %c0_248 = arith.constant 0 : index
    %c0_249 = arith.constant 0 : index
    %456 = vector.load %arg11[%c0_248, %c0_249] : memref<64x384xf32, #tpu.memory_space<vmem>>, vector<64x384xf32>
    tpu.vector_store %arg11[%c0_248, %c0_249], %455 {strides = array<i32>} : memref<64x384xf32, #tpu.memory_space<vmem>>, vector<64x384xf32>,
    %457 = vector.extract_strided_slice %454 {offsets = [0, 384], sizes = [64, 384], strides = [1, 1]} : vector<64x768xf32> to vector<64x384xf32>
    %c0_250 = arith.constant 0 : index
    %c0_251 = arith.constant 0 : index
    %458 = vector.load %arg12[%c0_250, %c0_251] : memref<64x384xf32, #tpu.memory_space<vmem>>, vector<64x384xf32>
    tpu.vector_store %arg12[%c0_250, %c0_251], %457 {strides = array<i32>} : memref<64x384xf32, #tpu.memory_space<vmem>>, vector<64x384xf32>,
    %c0_252 = arith.constant 0 : index
    %c0_253 = arith.constant 0 : index
    %459 = vector.load %arg2[%c0_252, %c0_253] : memref<8x1xi32, #tpu.memory_space<vmem>>, vector<8x1xi32>
    %cst_254 = arith.constant 0.000000e+00 : f32
    %460 = vector.broadcast %cst_254 : f32 to vector<8x128xf32>
    %cst_255 = arith.constant 0.000000e+00 : f32
    %461 = vector.broadcast %cst_255 : f32 to vector<8x128xf32>
    %462 = tpu.concatenate %460, %461 in 0 : vector<8x128xf32>, vector<8x128xf32> -> vector<16x128xf32>
    %c0_256 = arith.constant 0 : index
    %c0_257 = arith.constant 0 : index
    %463 = vector.load %arg5[%c0_256, %c0_257] : memref<128x768xf32, #tpu.memory_space<vmem>>, vector<128x768xf32>
    %cst_258 = arith.constant dense<0.000000e+00> : vector<16x768xf32>
    %464 = tpu.matmul %462, %463, %cst_258 {dimension_numbers = #tpu.dot_dimension_numbers<[1], [0], [0], [1], [0, 0, 1, 1], [], []>} : vector<16x128xf32>, vector<128x768xf32>, vector<16x768xf32> -> vector<16x768xf32>
    %c0_259 = arith.constant 0 : index
    %c0_260 = arith.constant 0 : index
    %465 = vector.load %arg7[%c0_259, %c0_260] : memref<1x768xf32, #tpu.memory_space<vmem>>, vector<1x768xf32>
    %466 = vector.broadcast %465 : vector<1x768xf32> to vector<16x768xf32>
    %467 = arith.addf %464, %466 : vector<16x768xf32>
    %c0_i32_261 = arith.constant 0 : i32
    %468 = vector.broadcast %c0_i32_261 : i32 to vector<8x1xi32>
    %469 = arith.cmpi sgt, %459, %468 : vector<8x1xi32>
    %c0_262 = arith.constant 0 : index
    %c0_263 = arith.constant 0 : index
    %470 = vector.load %arg11[%c0_262, %c0_263] : memref<64x384xf32, #tpu.memory_space<vmem>>, vector<8x384xf32>
    %471 = vector.extract_strided_slice %467 {offsets = [0, 0], sizes = [8, 384], strides = [1, 1]} : vector<16x768xf32> to vector<8x384xf32>
    %472 = vector.extract_strided_slice %470 {offsets = [0, 0], sizes = [8, 256], strides = [1, 1]} : vector<8x384xf32> to vector<8x256xf32>
    %473 = vector.extract_strided_slice %471 {offsets = [0, 0], sizes = [8, 256], strides = [1, 1]} : vector<8x384xf32> to vector<8x256xf32>
    %474 = arith.addf %472, %473 : vector<8x256xf32>
    %475 = arith.negf %474 : vector<8x256xf32>
    %476 = math.exp %475 : vector<8x256xf32>
    %cst_264 = arith.constant 1.000000e+00 : f32
    %477 = vector.broadcast %cst_264 : f32 to vector<8x256xf32>
    %478 = arith.addf %477, %476 : vector<8x256xf32>
    %479 = arith.divf %477, %478 : vector<8x256xf32>
    %480 = vector.extract_strided_slice %479 {offsets = [0, 0], sizes = [8, 128], strides = [1, 1]} : vector<8x256xf32> to vector<8x128xf32>
    %481 = vector.extract_strided_slice %479 {offsets = [0, 128], sizes = [8, 128], strides = [1, 1]} : vector<8x256xf32> to vector<8x128xf32>
    %482 = vector.extract_strided_slice %470 {offsets = [0, 256], sizes = [8, 128], strides = [1, 1]} : vector<8x384xf32> to vector<8x128xf32>
    %483 = vector.extract_strided_slice %471 {offsets = [0, 256], sizes = [8, 128], strides = [1, 1]} : vector<8x384xf32> to vector<8x128xf32>
    %484 = arith.mulf %480, %483 : vector<8x128xf32>
    %485 = arith.addf %482, %484 : vector<8x128xf32>
    %486 = math.tanh %485 : vector<8x128xf32>
    %cst_265 = arith.constant 1.000000e+00 : f32
    %487 = vector.broadcast %cst_265 : f32 to vector<8x128xf32>
    %488 = arith.subf %487, %481 : vector<8x128xf32>
    %489 = arith.mulf %488, %486 : vector<8x128xf32>
    %490 = arith.mulf %481, %460 : vector<8x128xf32>
    %491 = arith.addf %489, %490 : vector<8x128xf32>
    %492 = vector.shape_cast %469 : vector<8x1xi1> to vector<8x1xi1>
    %493 = vector.broadcast %492 : vector<8x1xi1> to vector<8x128xi1>
    %494 = arith.select %493, %491, %460 : vector<8x128xi1>, vector<8x128xf32>
    %cst_266 = arith.constant 0.000000e+00 : f32
    %495 = vector.shape_cast %469 : vector<8x1xi1> to vector<8x1xi1>
    %496 = vector.broadcast %495 : vector<8x1xi1> to vector<8x128xi1>
    %497 = vector.broadcast %cst_266 : f32 to vector<8x128xf32>
    %498 = arith.select %496, %494, %497 : vector<8x128xi1>, vector<8x128xf32>
    %c7_i32_267 = arith.constant 7 : i32
    %499 = vector.broadcast %c7_i32_267 : i32 to vector<8x1xi32>
    %500 = arith.cmpi sgt, %459, %499 : vector<8x1xi32>
    %c56_268 = arith.constant 56 : index
    %c0_269 = arith.constant 0 : index
    %501 = vector.load %arg12[%c56_268, %c0_269] : memref<64x384xf32, #tpu.memory_space<vmem>>, vector<8x384xf32>
    %502 = vector.extract_strided_slice %467 {offsets = [8, 384], sizes = [8, 384], strides = [1, 1]} : vector<16x768xf32> to vector<8x384xf32>
    %503 = vector.extract_strided_slice %501 {offsets = [0, 0], sizes = [8, 256], strides = [1, 1]} : vector<8x384xf32> to vector<8x256xf32>
    %504 = vector.extract_strided_slice %502 {offsets = [0, 0], sizes = [8, 256], strides = [1, 1]} : vector<8x384xf32> to vector<8x256xf32>
    %505 = arith.addf %503, %504 : vector<8x256xf32>
    %506 = arith.negf %505 : vector<8x256xf32>
    %507 = math.exp %506 : vector<8x256xf32>
    %cst_270 = arith.constant 1.000000e+00 : f32
    %508 = vector.broadcast %cst_270 : f32 to vector<8x256xf32>
    %509 = arith.addf %508, %507 : vector<8x256xf32>
    %510 = arith.divf %508, %509 : vector<8x256xf32>
    %511 = vector.extract_strided_slice %510 {offsets = [0, 0], sizes = [8, 128], strides = [1, 1]} : vector<8x256xf32> to vector<8x128xf32>
    %512 = vector.extract_strided_slice %510 {offsets = [0, 128], sizes = [8, 128], strides = [1, 1]} : vector<8x256xf32> to vector<8x128xf32>
    %513 = vector.extract_strided_slice %501 {offsets = [0, 256], sizes = [8, 128], strides = [1, 1]} : vector<8x384xf32> to vector<8x128xf32>
    %514 = vector.extract_strided_slice %502 {offsets = [0, 256], sizes = [8, 128], strides = [1, 1]} : vector<8x384xf32> to vector<8x128xf32>
    %515 = arith.mulf %511, %514 : vector<8x128xf32>
    %516 = arith.addf %513, %515 : vector<8x128xf32>
    %517 = math.tanh %516 : vector<8x128xf32>
    %cst_271 = arith.constant 1.000000e+00 : f32
    %518 = vector.broadcast %cst_271 : f32 to vector<8x128xf32>
    %519 = arith.subf %518, %512 : vector<8x128xf32>
    %520 = arith.mulf %519, %517 : vector<8x128xf32>
    %521 = arith.mulf %512, %461 : vector<8x128xf32>
    %522 = arith.addf %520, %521 : vector<8x128xf32>
    %523 = vector.shape_cast %500 : vector<8x1xi1> to vector<8x1xi1>
    %524 = vector.broadcast %523 : vector<8x1xi1> to vector<8x128xi1>
    %525 = arith.select %524, %522, %461 : vector<8x128xi1>, vector<8x128xf32>
    %cst_272 = arith.constant 0.000000e+00 : f32
    %526 = vector.shape_cast %500 : vector<8x1xi1> to vector<8x1xi1>
    %527 = vector.broadcast %526 : vector<8x1xi1> to vector<8x128xi1>
    %528 = vector.broadcast %cst_272 : f32 to vector<8x128xf32>
    %529 = arith.select %527, %525, %528 : vector<8x128xi1>, vector<8x128xf32>
    %c0_273 = arith.constant 0 : index
    %c0_274 = arith.constant 0 : index
    %c0_275 = arith.constant 0 : index
    %530 = vector.load %arg8[%c0_273, %c0_274, %c0_275] : memref<8x8x128xf32, #tpu.memory_space<vmem>>, vector<1x8x128xf32>
    %531 = vector.shape_cast %530 : vector<1x8x128xf32> to vector<8x128xf32>
    %532 = vector.shape_cast %498 : vector<8x128xf32> to vector<1x8x128xf32>
    tpu.vector_store %arg8[%c0_273, %c0_274, %c0_275], %532 {strides = array<i32>} : memref<8x8x128xf32, #tpu.memory_space<vmem>>, vector<1x8x128xf32>,
    %c7_276 = arith.constant 7 : index
    %c0_277 = arith.constant 0 : index
    %c0_278 = arith.constant 0 : index
    %533 = vector.load %arg8[%c7_276, %c0_277, %c0_278] : memref<8x8x128xf32, #tpu.memory_space<vmem>>, vector<1x8x128xf32>
    %534 = vector.shape_cast %533 : vector<1x8x128xf32> to vector<8x128xf32>
    %535 = vector.shape_cast %529 : vector<8x128xf32> to vector<1x8x128xf32>
    tpu.vector_store %arg8[%c7_276, %c0_277, %c0_278], %535 {strides = array<i32>} : memref<8x8x128xf32, #tpu.memory_space<vmem>>, vector<1x8x128xf32>,
    %536 = tpu.concatenate %494, %525 in 0 : vector<8x128xf32>, vector<8x128xf32> -> vector<16x128xf32>
    %c0_279 = arith.constant 0 : index
    %c0_280 = arith.constant 0 : index
    %537 = vector.load %arg5[%c0_279, %c0_280] : memref<128x768xf32, #tpu.memory_space<vmem>>, vector<128x768xf32>
    %cst_281 = arith.constant dense<0.000000e+00> : vector<16x768xf32>
    %538 = tpu.matmul %536, %537, %cst_281 {dimension_numbers = #tpu.dot_dimension_numbers<[1], [0], [0], [1], [0, 0, 1, 1], [], []>} : vector<16x128xf32>, vector<128x768xf32>, vector<16x768xf32> -> vector<16x768xf32>
    %c0_282 = arith.constant 0 : index
    %c0_283 = arith.constant 0 : index
    %539 = vector.load %arg7[%c0_282, %c0_283] : memref<1x768xf32, #tpu.memory_space<vmem>>, vector<1x768xf32>
    %540 = vector.broadcast %539 : vector<1x768xf32> to vector<16x768xf32>
    %541 = arith.addf %538, %540 : vector<16x768xf32>
    %c1_i32_284 = arith.constant 1 : i32
    %542 = vector.broadcast %c1_i32_284 : i32 to vector<8x1xi32>
    %543 = arith.cmpi sgt, %459, %542 : vector<8x1xi32>
    %c8_285 = arith.constant 8 : index
    %c0_286 = arith.constant 0 : index
    %544 = vector.load %arg11[%c8_285, %c0_286] : memref<64x384xf32, #tpu.memory_space<vmem>>, vector<8x384xf32>
    %545 = vector.extract_strided_slice %541 {offsets = [0, 0], sizes = [8, 384], strides = [1, 1]} : vector<16x768xf32> to vector<8x384xf32>
    %546 = vector.extract_strided_slice %544 {offsets = [0, 0], sizes = [8, 256], strides = [1, 1]} : vector<8x384xf32> to vector<8x256xf32>
    %547 = vector.extract_strided_slice %545 {offsets = [0, 0], sizes = [8, 256], strides = [1, 1]} : vector<8x384xf32> to vector<8x256xf32>
    %548 = arith.addf %546, %547 : vector<8x256xf32>
    %549 = arith.negf %548 : vector<8x256xf32>
    %550 = math.exp %549 : vector<8x256xf32>
    %cst_287 = arith.constant 1.000000e+00 : f32
    %551 = vector.broadcast %cst_287 : f32 to vector<8x256xf32>
    %552 = arith.addf %551, %550 : vector<8x256xf32>
    %553 = arith.divf %551, %552 : vector<8x256xf32>
    %554 = vector.extract_strided_slice %553 {offsets = [0, 0], sizes = [8, 128], strides = [1, 1]} : vector<8x256xf32> to vector<8x128xf32>
    %555 = vector.extract_strided_slice %553 {offsets = [0, 128], sizes = [8, 128], strides = [1, 1]} : vector<8x256xf32> to vector<8x128xf32>
    %556 = vector.extract_strided_slice %544 {offsets = [0, 256], sizes = [8, 128], strides = [1, 1]} : vector<8x384xf32> to vector<8x128xf32>
    %557 = vector.extract_strided_slice %545 {offsets = [0, 256], sizes = [8, 128], strides = [1, 1]} : vector<8x384xf32> to vector<8x128xf32>
    %558 = arith.mulf %554, %557 : vector<8x128xf32>
    %559 = arith.addf %556, %558 : vector<8x128xf32>
    %560 = math.tanh %559 : vector<8x128xf32>
    %cst_288 = arith.constant 1.000000e+00 : f32
    %561 = vector.broadcast %cst_288 : f32 to vector<8x128xf32>
    %562 = arith.subf %561, %555 : vector<8x128xf32>
    %563 = arith.mulf %562, %560 : vector<8x128xf32>
    %564 = arith.mulf %555, %494 : vector<8x128xf32>
    %565 = arith.addf %563, %564 : vector<8x128xf32>
    %566 = vector.shape_cast %543 : vector<8x1xi1> to vector<8x1xi1>
    %567 = vector.broadcast %566 : vector<8x1xi1> to vector<8x128xi1>
    %568 = arith.select %567, %565, %494 : vector<8x128xi1>, vector<8x128xf32>
    %cst_289 = arith.constant 0.000000e+00 : f32
    %569 = vector.shape_cast %543 : vector<8x1xi1> to vector<8x1xi1>
    %570 = vector.broadcast %569 : vector<8x1xi1> to vector<8x128xi1>
    %571 = vector.broadcast %cst_289 : f32 to vector<8x128xf32>
    %572 = arith.select %570, %568, %571 : vector<8x128xi1>, vector<8x128xf32>
    %c6_i32_290 = arith.constant 6 : i32
    %573 = vector.broadcast %c6_i32_290 : i32 to vector<8x1xi32>
    %574 = arith.cmpi sgt, %459, %573 : vector<8x1xi32>
    %c48_291 = arith.constant 48 : index
    %c0_292 = arith.constant 0 : index
    %575 = vector.load %arg12[%c48_291, %c0_292] : memref<64x384xf32, #tpu.memory_space<vmem>>, vector<8x384xf32>
    %576 = vector.extract_strided_slice %541 {offsets = [8, 384], sizes = [8, 384], strides = [1, 1]} : vector<16x768xf32> to vector<8x384xf32>
    %577 = vector.extract_strided_slice %575 {offsets = [0, 0], sizes = [8, 256], strides = [1, 1]} : vector<8x384xf32> to vector<8x256xf32>
    %578 = vector.extract_strided_slice %576 {offsets = [0, 0], sizes = [8, 256], strides = [1, 1]} : vector<8x384xf32> to vector<8x256xf32>
    %579 = arith.addf %577, %578 : vector<8x256xf32>
    %580 = arith.negf %579 : vector<8x256xf32>
    %581 = math.exp %580 : vector<8x256xf32>
    %cst_293 = arith.constant 1.000000e+00 : f32
    %582 = vector.broadcast %cst_293 : f32 to vector<8x256xf32>
    %583 = arith.addf %582, %581 : vector<8x256xf32>
    %584 = arith.divf %582, %583 : vector<8x256xf32>
    %585 = vector.extract_strided_slice %584 {offsets = [0, 0], sizes = [8, 128], strides = [1, 1]} : vector<8x256xf32> to vector<8x128xf32>
    %586 = vector.extract_strided_slice %584 {offsets = [0, 128], sizes = [8, 128], strides = [1, 1]} : vector<8x256xf32> to vector<8x128xf32>
    %587 = vector.extract_strided_slice %575 {offsets = [0, 256], sizes = [8, 128], strides = [1, 1]} : vector<8x384xf32> to vector<8x128xf32>
    %588 = vector.extract_strided_slice %576 {offsets = [0, 256], sizes = [8, 128], strides = [1, 1]} : vector<8x384xf32> to vector<8x128xf32>
    %589 = arith.mulf %585, %588 : vector<8x128xf32>
    %590 = arith.addf %587, %589 : vector<8x128xf32>
    %591 = math.tanh %590 : vector<8x128xf32>
    %cst_294 = arith.constant 1.000000e+00 : f32
    %592 = vector.broadcast %cst_294 : f32 to vector<8x128xf32>
    %593 = arith.subf %592, %586 : vector<8x128xf32>
    %594 = arith.mulf %593, %591 : vector<8x128xf32>
    %595 = arith.mulf %586, %525 : vector<8x128xf32>
    %596 = arith.addf %594, %595 : vector<8x128xf32>
    %597 = vector.shape_cast %574 : vector<8x1xi1> to vector<8x1xi1>
    %598 = vector.broadcast %597 : vector<8x1xi1> to vector<8x128xi1>
    %599 = arith.select %598, %596, %525 : vector<8x128xi1>, vector<8x128xf32>
    %cst_295 = arith.constant 0.000000e+00 : f32
    %600 = vector.shape_cast %574 : vector<8x1xi1> to vector<8x1xi1>
    %601 = vector.broadcast %600 : vector<8x1xi1> to vector<8x128xi1>
    %602 = vector.broadcast %cst_295 : f32 to vector<8x128xf32>
    %603 = arith.select %601, %599, %602 : vector<8x128xi1>, vector<8x128xf32>
    %c1_296 = arith.constant 1 : index
    %c0_297 = arith.constant 0 : index
    %c0_298 = arith.constant 0 : index
    %604 = vector.load %arg8[%c1_296, %c0_297, %c0_298] : memref<8x8x128xf32, #tpu.memory_space<vmem>>, vector<1x8x128xf32>
    %605 = vector.shape_cast %604 : vector<1x8x128xf32> to vector<8x128xf32>
    %606 = vector.shape_cast %572 : vector<8x128xf32> to vector<1x8x128xf32>
    tpu.vector_store %arg8[%c1_296, %c0_297, %c0_298], %606 {strides = array<i32>} : memref<8x8x128xf32, #tpu.memory_space<vmem>>, vector<1x8x128xf32>,
    %c6_299 = arith.constant 6 : index
    %c0_300 = arith.constant 0 : index
    %c0_301 = arith.constant 0 : index
    %607 = vector.load %arg8[%c6_299, %c0_300, %c0_301] : memref<8x8x128xf32, #tpu.memory_space<vmem>>, vector<1x8x128xf32>
    %608 = vector.shape_cast %607 : vector<1x8x128xf32> to vector<8x128xf32>
    %609 = vector.shape_cast %603 : vector<8x128xf32> to vector<1x8x128xf32>
    tpu.vector_store %arg8[%c6_299, %c0_300, %c0_301], %609 {strides = array<i32>} : memref<8x8x128xf32, #tpu.memory_space<vmem>>, vector<1x8x128xf32>,
    %610 = tpu.concatenate %568, %599 in 0 : vector<8x128xf32>, vector<8x128xf32> -> vector<16x128xf32>
    %c0_302 = arith.constant 0 : index
    %c0_303 = arith.constant 0 : index
    %611 = vector.load %arg5[%c0_302, %c0_303] : memref<128x768xf32, #tpu.memory_space<vmem>>, vector<128x768xf32>
    %cst_304 = arith.constant dense<0.000000e+00> : vector<16x768xf32>
    %612 = tpu.matmul %610, %611, %cst_304 {dimension_numbers = #tpu.dot_dimension_numbers<[1], [0], [0], [1], [0, 0, 1, 1], [], []>} : vector<16x128xf32>, vector<128x768xf32>, vector<16x768xf32> -> vector<16x768xf32>
    %c0_305 = arith.constant 0 : index
    %c0_306 = arith.constant 0 : index
    %613 = vector.load %arg7[%c0_305, %c0_306] : memref<1x768xf32, #tpu.memory_space<vmem>>, vector<1x768xf32>
    %614 = vector.broadcast %613 : vector<1x768xf32> to vector<16x768xf32>
    %615 = arith.addf %612, %614 : vector<16x768xf32>
    %c2_i32_307 = arith.constant 2 : i32
    %616 = vector.broadcast %c2_i32_307 : i32 to vector<8x1xi32>
    %617 = arith.cmpi sgt, %459, %616 : vector<8x1xi32>
    %c16_308 = arith.constant 16 : index
    %c0_309 = arith.constant 0 : index
    %618 = vector.load %arg11[%c16_308, %c0_309] : memref<64x384xf32, #tpu.memory_space<vmem>>, vector<8x384xf32>
    %619 = vector.extract_strided_slice %615 {offsets = [0, 0], sizes = [8, 384], strides = [1, 1]} : vector<16x768xf32> to vector<8x384xf32>
    %620 = vector.extract_strided_slice %618 {offsets = [0, 0], sizes = [8, 256], strides = [1, 1]} : vector<8x384xf32> to vector<8x256xf32>
    %621 = vector.extract_strided_slice %619 {offsets = [0, 0], sizes = [8, 256], strides = [1, 1]} : vector<8x384xf32> to vector<8x256xf32>
    %622 = arith.addf %620, %621 : vector<8x256xf32>
    %623 = arith.negf %622 : vector<8x256xf32>
    %624 = math.exp %623 : vector<8x256xf32>
    %cst_310 = arith.constant 1.000000e+00 : f32
    %625 = vector.broadcast %cst_310 : f32 to vector<8x256xf32>
    %626 = arith.addf %625, %624 : vector<8x256xf32>
    %627 = arith.divf %625, %626 : vector<8x256xf32>
    %628 = vector.extract_strided_slice %627 {offsets = [0, 0], sizes = [8, 128], strides = [1, 1]} : vector<8x256xf32> to vector<8x128xf32>
    %629 = vector.extract_strided_slice %627 {offsets = [0, 128], sizes = [8, 128], strides = [1, 1]} : vector<8x256xf32> to vector<8x128xf32>
    %630 = vector.extract_strided_slice %618 {offsets = [0, 256], sizes = [8, 128], strides = [1, 1]} : vector<8x384xf32> to vector<8x128xf32>
    %631 = vector.extract_strided_slice %619 {offsets = [0, 256], sizes = [8, 128], strides = [1, 1]} : vector<8x384xf32> to vector<8x128xf32>
    %632 = arith.mulf %628, %631 : vector<8x128xf32>
    %633 = arith.addf %630, %632 : vector<8x128xf32>
    %634 = math.tanh %633 : vector<8x128xf32>
    %cst_311 = arith.constant 1.000000e+00 : f32
    %635 = vector.broadcast %cst_311 : f32 to vector<8x128xf32>
    %636 = arith.subf %635, %629 : vector<8x128xf32>
    %637 = arith.mulf %636, %634 : vector<8x128xf32>
    %638 = arith.mulf %629, %568 : vector<8x128xf32>
    %639 = arith.addf %637, %638 : vector<8x128xf32>
    %640 = vector.shape_cast %617 : vector<8x1xi1> to vector<8x1xi1>
    %641 = vector.broadcast %640 : vector<8x1xi1> to vector<8x128xi1>
    %642 = arith.select %641, %639, %568 : vector<8x128xi1>, vector<8x128xf32>
    %cst_312 = arith.constant 0.000000e+00 : f32
    %643 = vector.shape_cast %617 : vector<8x1xi1> to vector<8x1xi1>
    %644 = vector.broadcast %643 : vector<8x1xi1> to vector<8x128xi1>
    %645 = vector.broadcast %cst_312 : f32 to vector<8x128xf32>
    %646 = arith.select %644, %642, %645 : vector<8x128xi1>, vector<8x128xf32>
    %c5_i32_313 = arith.constant 5 : i32
    %647 = vector.broadcast %c5_i32_313 : i32 to vector<8x1xi32>
    %648 = arith.cmpi sgt, %459, %647 : vector<8x1xi32>
    %c40_314 = arith.constant 40 : index
    %c0_315 = arith.constant 0 : index
    %649 = vector.load %arg12[%c40_314, %c0_315] : memref<64x384xf32, #tpu.memory_space<vmem>>, vector<8x384xf32>
    %650 = vector.extract_strided_slice %615 {offsets = [8, 384], sizes = [8, 384], strides = [1, 1]} : vector<16x768xf32> to vector<8x384xf32>
    %651 = vector.extract_strided_slice %649 {offsets = [0, 0], sizes = [8, 256], strides = [1, 1]} : vector<8x384xf32> to vector<8x256xf32>
    %652 = vector.extract_strided_slice %650 {offsets = [0, 0], sizes = [8, 256], strides = [1, 1]} : vector<8x384xf32> to vector<8x256xf32>
    %653 = arith.addf %651, %652 : vector<8x256xf32>
    %654 = arith.negf %653 : vector<8x256xf32>
    %655 = math.exp %654 : vector<8x256xf32>
    %cst_316 = arith.constant 1.000000e+00 : f32
    %656 = vector.broadcast %cst_316 : f32 to vector<8x256xf32>
    %657 = arith.addf %656, %655 : vector<8x256xf32>
    %658 = arith.divf %656, %657 : vector<8x256xf32>
    %659 = vector.extract_strided_slice %658 {offsets = [0, 0], sizes = [8, 128], strides = [1, 1]} : vector<8x256xf32> to vector<8x128xf32>
    %660 = vector.extract_strided_slice %658 {offsets = [0, 128], sizes = [8, 128], strides = [1, 1]} : vector<8x256xf32> to vector<8x128xf32>
    %661 = vector.extract_strided_slice %649 {offsets = [0, 256], sizes = [8, 128], strides = [1, 1]} : vector<8x384xf32> to vector<8x128xf32>
    %662 = vector.extract_strided_slice %650 {offsets = [0, 256], sizes = [8, 128], strides = [1, 1]} : vector<8x384xf32> to vector<8x128xf32>
    %663 = arith.mulf %659, %662 : vector<8x128xf32>
    %664 = arith.addf %661, %663 : vector<8x128xf32>
    %665 = math.tanh %664 : vector<8x128xf32>
    %cst_317 = arith.constant 1.000000e+00 : f32
    %666 = vector.broadcast %cst_317 : f32 to vector<8x128xf32>
    %667 = arith.subf %666, %660 : vector<8x128xf32>
    %668 = arith.mulf %667, %665 : vector<8x128xf32>
    %669 = arith.mulf %660, %599 : vector<8x128xf32>
    %670 = arith.addf %668, %669 : vector<8x128xf32>
    %671 = vector.shape_cast %648 : vector<8x1xi1> to vector<8x1xi1>
    %672 = vector.broadcast %671 : vector<8x1xi1> to vector<8x128xi1>
    %673 = arith.select %672, %670, %599 : vector<8x128xi1>, vector<8x128xf32>
    %cst_318 = arith.constant 0.000000e+00 : f32
    %674 = vector.shape_cast %648 : vector<8x1xi1> to vector<8x1xi1>
    %675 = vector.broadcast %674 : vector<8x1xi1> to vector<8x128xi1>
    %676 = vector.broadcast %cst_318 : f32 to vector<8x128xf32>
    %677 = arith.select %675, %673, %676 : vector<8x128xi1>, vector<8x128xf32>
    %c2_319 = arith.constant 2 : index
    %c0_320 = arith.constant 0 : index
    %c0_321 = arith.constant 0 : index
    %678 = vector.load %arg8[%c2_319, %c0_320, %c0_321] : memref<8x8x128xf32, #tpu.memory_space<vmem>>, vector<1x8x128xf32>
    %679 = vector.shape_cast %678 : vector<1x8x128xf32> to vector<8x128xf32>
    %680 = vector.shape_cast %646 : vector<8x128xf32> to vector<1x8x128xf32>
    tpu.vector_store %arg8[%c2_319, %c0_320, %c0_321], %680 {strides = array<i32>} : memref<8x8x128xf32, #tpu.memory_space<vmem>>, vector<1x8x128xf32>,
    %c5_322 = arith.constant 5 : index
    %c0_323 = arith.constant 0 : index
    %c0_324 = arith.constant 0 : index
    %681 = vector.load %arg8[%c5_322, %c0_323, %c0_324] : memref<8x8x128xf32, #tpu.memory_space<vmem>>, vector<1x8x128xf32>
    %682 = vector.shape_cast %681 : vector<1x8x128xf32> to vector<8x128xf32>
    %683 = vector.shape_cast %677 : vector<8x128xf32> to vector<1x8x128xf32>
    tpu.vector_store %arg8[%c5_322, %c0_323, %c0_324], %683 {strides = array<i32>} : memref<8x8x128xf32, #tpu.memory_space<vmem>>, vector<1x8x128xf32>,
    %684 = tpu.concatenate %642, %673 in 0 : vector<8x128xf32>, vector<8x128xf32> -> vector<16x128xf32>
    %c0_325 = arith.constant 0 : index
    %c0_326 = arith.constant 0 : index
    %685 = vector.load %arg5[%c0_325, %c0_326] : memref<128x768xf32, #tpu.memory_space<vmem>>, vector<128x768xf32>
    %cst_327 = arith.constant dense<0.000000e+00> : vector<16x768xf32>
    %686 = tpu.matmul %684, %685, %cst_327 {dimension_numbers = #tpu.dot_dimension_numbers<[1], [0], [0], [1], [0, 0, 1, 1], [], []>} : vector<16x128xf32>, vector<128x768xf32>, vector<16x768xf32> -> vector<16x768xf32>
    %c0_328 = arith.constant 0 : index
    %c0_329 = arith.constant 0 : index
    %687 = vector.load %arg7[%c0_328, %c0_329] : memref<1x768xf32, #tpu.memory_space<vmem>>, vector<1x768xf32>
    %688 = vector.broadcast %687 : vector<1x768xf32> to vector<16x768xf32>
    %689 = arith.addf %686, %688 : vector<16x768xf32>
    %c3_i32_330 = arith.constant 3 : i32
    %690 = vector.broadcast %c3_i32_330 : i32 to vector<8x1xi32>
    %691 = arith.cmpi sgt, %459, %690 : vector<8x1xi32>
    %c24_331 = arith.constant 24 : index
    %c0_332 = arith.constant 0 : index
    %692 = vector.load %arg11[%c24_331, %c0_332] : memref<64x384xf32, #tpu.memory_space<vmem>>, vector<8x384xf32>
    %693 = vector.extract_strided_slice %689 {offsets = [0, 0], sizes = [8, 384], strides = [1, 1]} : vector<16x768xf32> to vector<8x384xf32>
    %694 = vector.extract_strided_slice %692 {offsets = [0, 0], sizes = [8, 256], strides = [1, 1]} : vector<8x384xf32> to vector<8x256xf32>
    %695 = vector.extract_strided_slice %693 {offsets = [0, 0], sizes = [8, 256], strides = [1, 1]} : vector<8x384xf32> to vector<8x256xf32>
    %696 = arith.addf %694, %695 : vector<8x256xf32>
    %697 = arith.negf %696 : vector<8x256xf32>
    %698 = math.exp %697 : vector<8x256xf32>
    %cst_333 = arith.constant 1.000000e+00 : f32
    %699 = vector.broadcast %cst_333 : f32 to vector<8x256xf32>
    %700 = arith.addf %699, %698 : vector<8x256xf32>
    %701 = arith.divf %699, %700 : vector<8x256xf32>
    %702 = vector.extract_strided_slice %701 {offsets = [0, 0], sizes = [8, 128], strides = [1, 1]} : vector<8x256xf32> to vector<8x128xf32>
    %703 = vector.extract_strided_slice %701 {offsets = [0, 128], sizes = [8, 128], strides = [1, 1]} : vector<8x256xf32> to vector<8x128xf32>
    %704 = vector.extract_strided_slice %692 {offsets = [0, 256], sizes = [8, 128], strides = [1, 1]} : vector<8x384xf32> to vector<8x128xf32>
    %705 = vector.extract_strided_slice %693 {offsets = [0, 256], sizes = [8, 128], strides = [1, 1]} : vector<8x384xf32> to vector<8x128xf32>
    %706 = arith.mulf %702, %705 : vector<8x128xf32>
    %707 = arith.addf %704, %706 : vector<8x128xf32>
    %708 = math.tanh %707 : vector<8x128xf32>
    %cst_334 = arith.constant 1.000000e+00 : f32
    %709 = vector.broadcast %cst_334 : f32 to vector<8x128xf32>
    %710 = arith.subf %709, %703 : vector<8x128xf32>
    %711 = arith.mulf %710, %708 : vector<8x128xf32>
    %712 = arith.mulf %703, %642 : vector<8x128xf32>
    %713 = arith.addf %711, %712 : vector<8x128xf32>
    %714 = vector.shape_cast %691 : vector<8x1xi1> to vector<8x1xi1>
    %715 = vector.broadcast %714 : vector<8x1xi1> to vector<8x128xi1>
    %716 = arith.select %715, %713, %642 : vector<8x128xi1>, vector<8x128xf32>
    %cst_335 = arith.constant 0.000000e+00 : f32
    %717 = vector.shape_cast %691 : vector<8x1xi1> to vector<8x1xi1>
    %718 = vector.broadcast %717 : vector<8x1xi1> to vector<8x128xi1>
    %719 = vector.broadcast %cst_335 : f32 to vector<8x128xf32>
    %720 = arith.select %718, %716, %719 : vector<8x128xi1>, vector<8x128xf32>
    %c4_i32_336 = arith.constant 4 : i32
    %721 = vector.broadcast %c4_i32_336 : i32 to vector<8x1xi32>
    %722 = arith.cmpi sgt, %459, %721 : vector<8x1xi32>
    %c32_337 = arith.constant 32 : index
    %c0_338 = arith.constant 0 : index
    %723 = vector.load %arg12[%c32_337, %c0_338] : memref<64x384xf32, #tpu.memory_space<vmem>>, vector<8x384xf32>
    %724 = vector.extract_strided_slice %689 {offsets = [8, 384], sizes = [8, 384], strides = [1, 1]} : vector<16x768xf32> to vector<8x384xf32>
    %725 = vector.extract_strided_slice %723 {offsets = [0, 0], sizes = [8, 256], strides = [1, 1]} : vector<8x384xf32> to vector<8x256xf32>
    %726 = vector.extract_strided_slice %724 {offsets = [0, 0], sizes = [8, 256], strides = [1, 1]} : vector<8x384xf32> to vector<8x256xf32>
    %727 = arith.addf %725, %726 : vector<8x256xf32>
    %728 = arith.negf %727 : vector<8x256xf32>
    %729 = math.exp %728 : vector<8x256xf32>
    %cst_339 = arith.constant 1.000000e+00 : f32
    %730 = vector.broadcast %cst_339 : f32 to vector<8x256xf32>
    %731 = arith.addf %730, %729 : vector<8x256xf32>
    %732 = arith.divf %730, %731 : vector<8x256xf32>
    %733 = vector.extract_strided_slice %732 {offsets = [0, 0], sizes = [8, 128], strides = [1, 1]} : vector<8x256xf32> to vector<8x128xf32>
    %734 = vector.extract_strided_slice %732 {offsets = [0, 128], sizes = [8, 128], strides = [1, 1]} : vector<8x256xf32> to vector<8x128xf32>
    %735 = vector.extract_strided_slice %723 {offsets = [0, 256], sizes = [8, 128], strides = [1, 1]} : vector<8x384xf32> to vector<8x128xf32>
    %736 = vector.extract_strided_slice %724 {offsets = [0, 256], sizes = [8, 128], strides = [1, 1]} : vector<8x384xf32> to vector<8x128xf32>
    %737 = arith.mulf %733, %736 : vector<8x128xf32>
    %738 = arith.addf %735, %737 : vector<8x128xf32>
    %739 = math.tanh %738 : vector<8x128xf32>
    %cst_340 = arith.constant 1.000000e+00 : f32
    %740 = vector.broadcast %cst_340 : f32 to vector<8x128xf32>
    %741 = arith.subf %740, %734 : vector<8x128xf32>
    %742 = arith.mulf %741, %739 : vector<8x128xf32>
    %743 = arith.mulf %734, %673 : vector<8x128xf32>
    %744 = arith.addf %742, %743 : vector<8x128xf32>
    %745 = vector.shape_cast %722 : vector<8x1xi1> to vector<8x1xi1>
    %746 = vector.broadcast %745 : vector<8x1xi1> to vector<8x128xi1>
    %747 = arith.select %746, %744, %673 : vector<8x128xi1>, vector<8x128xf32>
    %cst_341 = arith.constant 0.000000e+00 : f32
    %748 = vector.shape_cast %722 : vector<8x1xi1> to vector<8x1xi1>
    %749 = vector.broadcast %748 : vector<8x1xi1> to vector<8x128xi1>
    %750 = vector.broadcast %cst_341 : f32 to vector<8x128xf32>
    %751 = arith.select %749, %747, %750 : vector<8x128xi1>, vector<8x128xf32>
    %c3_342 = arith.constant 3 : index
    %c0_343 = arith.constant 0 : index
    %c0_344 = arith.constant 0 : index
    %752 = vector.load %arg8[%c3_342, %c0_343, %c0_344] : memref<8x8x128xf32, #tpu.memory_space<vmem>>, vector<1x8x128xf32>
    %753 = vector.shape_cast %752 : vector<1x8x128xf32> to vector<8x128xf32>
    %754 = vector.shape_cast %720 : vector<8x128xf32> to vector<1x8x128xf32>
    tpu.vector_store %arg8[%c3_342, %c0_343, %c0_344], %754 {strides = array<i32>} : memref<8x8x128xf32, #tpu.memory_space<vmem>>, vector<1x8x128xf32>,
    %c4_345 = arith.constant 4 : index
    %c0_346 = arith.constant 0 : index
    %c0_347 = arith.constant 0 : index
    %755 = vector.load %arg8[%c4_345, %c0_346, %c0_347] : memref<8x8x128xf32, #tpu.memory_space<vmem>>, vector<1x8x128xf32>
    %756 = vector.shape_cast %755 : vector<1x8x128xf32> to vector<8x128xf32>
    %757 = vector.shape_cast %751 : vector<8x128xf32> to vector<1x8x128xf32>
    tpu.vector_store %arg8[%c4_345, %c0_346, %c0_347], %757 {strides = array<i32>} : memref<8x8x128xf32, #tpu.memory_space<vmem>>, vector<1x8x128xf32>,
    %758 = tpu.concatenate %716, %747 in 0 : vector<8x128xf32>, vector<8x128xf32> -> vector<16x128xf32>
    %c0_348 = arith.constant 0 : index
    %c0_349 = arith.constant 0 : index
    %759 = vector.load %arg5[%c0_348, %c0_349] : memref<128x768xf32, #tpu.memory_space<vmem>>, vector<128x768xf32>
    %cst_350 = arith.constant dense<0.000000e+00> : vector<16x768xf32>
    %760 = tpu.matmul %758, %759, %cst_350 {dimension_numbers = #tpu.dot_dimension_numbers<[1], [0], [0], [1], [0, 0, 1, 1], [], []>} : vector<16x128xf32>, vector<128x768xf32>, vector<16x768xf32> -> vector<16x768xf32>
    %c0_351 = arith.constant 0 : index
    %c0_352 = arith.constant 0 : index
    %761 = vector.load %arg7[%c0_351, %c0_352] : memref<1x768xf32, #tpu.memory_space<vmem>>, vector<1x768xf32>
    %762 = vector.broadcast %761 : vector<1x768xf32> to vector<16x768xf32>
    %763 = arith.addf %760, %762 : vector<16x768xf32>
    %c4_i32_353 = arith.constant 4 : i32
    %764 = vector.broadcast %c4_i32_353 : i32 to vector<8x1xi32>
    %765 = arith.cmpi sgt, %459, %764 : vector<8x1xi32>
    %c32_354 = arith.constant 32 : index
    %c0_355 = arith.constant 0 : index
    %766 = vector.load %arg11[%c32_354, %c0_355] : memref<64x384xf32, #tpu.memory_space<vmem>>, vector<8x384xf32>
    %767 = vector.extract_strided_slice %763 {offsets = [0, 0], sizes = [8, 384], strides = [1, 1]} : vector<16x768xf32> to vector<8x384xf32>
    %768 = vector.extract_strided_slice %766 {offsets = [0, 0], sizes = [8, 256], strides = [1, 1]} : vector<8x384xf32> to vector<8x256xf32>
    %769 = vector.extract_strided_slice %767 {offsets = [0, 0], sizes = [8, 256], strides = [1, 1]} : vector<8x384xf32> to vector<8x256xf32>
    %770 = arith.addf %768, %769 : vector<8x256xf32>
    %771 = arith.negf %770 : vector<8x256xf32>
    %772 = math.exp %771 : vector<8x256xf32>
    %cst_356 = arith.constant 1.000000e+00 : f32
    %773 = vector.broadcast %cst_356 : f32 to vector<8x256xf32>
    %774 = arith.addf %773, %772 : vector<8x256xf32>
    %775 = arith.divf %773, %774 : vector<8x256xf32>
    %776 = vector.extract_strided_slice %775 {offsets = [0, 0], sizes = [8, 128], strides = [1, 1]} : vector<8x256xf32> to vector<8x128xf32>
    %777 = vector.extract_strided_slice %775 {offsets = [0, 128], sizes = [8, 128], strides = [1, 1]} : vector<8x256xf32> to vector<8x128xf32>
    %778 = vector.extract_strided_slice %766 {offsets = [0, 256], sizes = [8, 128], strides = [1, 1]} : vector<8x384xf32> to vector<8x128xf32>
    %779 = vector.extract_strided_slice %767 {offsets = [0, 256], sizes = [8, 128], strides = [1, 1]} : vector<8x384xf32> to vector<8x128xf32>
    %780 = arith.mulf %776, %779 : vector<8x128xf32>
    %781 = arith.addf %778, %780 : vector<8x128xf32>
    %782 = math.tanh %781 : vector<8x128xf32>
    %cst_357 = arith.constant 1.000000e+00 : f32
    %783 = vector.broadcast %cst_357 : f32 to vector<8x128xf32>
    %784 = arith.subf %783, %777 : vector<8x128xf32>
    %785 = arith.mulf %784, %782 : vector<8x128xf32>
    %786 = arith.mulf %777, %716 : vector<8x128xf32>
    %787 = arith.addf %785, %786 : vector<8x128xf32>
    %788 = vector.shape_cast %765 : vector<8x1xi1> to vector<8x1xi1>
    %789 = vector.broadcast %788 : vector<8x1xi1> to vector<8x128xi1>
    %790 = arith.select %789, %787, %716 : vector<8x128xi1>, vector<8x128xf32>
    %cst_358 = arith.constant 0.000000e+00 : f32
    %791 = vector.shape_cast %765 : vector<8x1xi1> to vector<8x1xi1>
    %792 = vector.broadcast %791 : vector<8x1xi1> to vector<8x128xi1>
    %793 = vector.broadcast %cst_358 : f32 to vector<8x128xf32>
    %794 = arith.select %792, %790, %793 : vector<8x128xi1>, vector<8x128xf32>
    %c3_i32_359 = arith.constant 3 : i32
    %795 = vector.broadcast %c3_i32_359 : i32 to vector<8x1xi32>
    %796 = arith.cmpi sgt, %459, %795 : vector<8x1xi32>
    %c24_360 = arith.constant 24 : index
    %c0_361 = arith.constant 0 : index
    %797 = vector.load %arg12[%c24_360, %c0_361] : memref<64x384xf32, #tpu.memory_space<vmem>>, vector<8x384xf32>
    %798 = vector.extract_strided_slice %763 {offsets = [8, 384], sizes = [8, 384], strides = [1, 1]} : vector<16x768xf32> to vector<8x384xf32>
    %799 = vector.extract_strided_slice %797 {offsets = [0, 0], sizes = [8, 256], strides = [1, 1]} : vector<8x384xf32> to vector<8x256xf32>
    %800 = vector.extract_strided_slice %798 {offsets = [0, 0], sizes = [8, 256], strides = [1, 1]} : vector<8x384xf32> to vector<8x256xf32>
    %801 = arith.addf %799, %800 : vector<8x256xf32>
    %802 = arith.negf %801 : vector<8x256xf32>
    %803 = math.exp %802 : vector<8x256xf32>
    %cst_362 = arith.constant 1.000000e+00 : f32
    %804 = vector.broadcast %cst_362 : f32 to vector<8x256xf32>
    %805 = arith.addf %804, %803 : vector<8x256xf32>
    %806 = arith.divf %804, %805 : vector<8x256xf32>
    %807 = vector.extract_strided_slice %806 {offsets = [0, 0], sizes = [8, 128], strides = [1, 1]} : vector<8x256xf32> to vector<8x128xf32>
    %808 = vector.extract_strided_slice %806 {offsets = [0, 128], sizes = [8, 128], strides = [1, 1]} : vector<8x256xf32> to vector<8x128xf32>
    %809 = vector.extract_strided_slice %797 {offsets = [0, 256], sizes = [8, 128], strides = [1, 1]} : vector<8x384xf32> to vector<8x128xf32>
    %810 = vector.extract_strided_slice %798 {offsets = [0, 256], sizes = [8, 128], strides = [1, 1]} : vector<8x384xf32> to vector<8x128xf32>
    %811 = arith.mulf %807, %810 : vector<8x128xf32>
    %812 = arith.addf %809, %811 : vector<8x128xf32>
    %813 = math.tanh %812 : vector<8x128xf32>
    %cst_363 = arith.constant 1.000000e+00 : f32
    %814 = vector.broadcast %cst_363 : f32 to vector<8x128xf32>
    %815 = arith.subf %814, %808 : vector<8x128xf32>
    %816 = arith.mulf %815, %813 : vector<8x128xf32>
    %817 = arith.mulf %808, %747 : vector<8x128xf32>
    %818 = arith.addf %816, %817 : vector<8x128xf32>
    %819 = vector.shape_cast %796 : vector<8x1xi1> to vector<8x1xi1>
    %820 = vector.broadcast %819 : vector<8x1xi1> to vector<8x128xi1>
    %821 = arith.select %820, %818, %747 : vector<8x128xi1>, vector<8x128xf32>
    %cst_364 = arith.constant 0.000000e+00 : f32
    %822 = vector.shape_cast %796 : vector<8x1xi1> to vector<8x1xi1>
    %823 = vector.broadcast %822 : vector<8x1xi1> to vector<8x128xi1>
    %824 = vector.broadcast %cst_364 : f32 to vector<8x128xf32>
    %825 = arith.select %823, %821, %824 : vector<8x128xi1>, vector<8x128xf32>
    %c4_365 = arith.constant 4 : index
    %c0_366 = arith.constant 0 : index
    %c0_367 = arith.constant 0 : index
    %826 = vector.load %arg8[%c4_365, %c0_366, %c0_367] : memref<8x8x128xf32, #tpu.memory_space<vmem>>, vector<1x8x128xf32>
    %827 = vector.shape_cast %826 : vector<1x8x128xf32> to vector<8x128xf32>
    %828 = arith.addf %827, %794 : vector<8x128xf32>
    %c4_368 = arith.constant 4 : index
    %c0_369 = arith.constant 0 : index
    %c0_370 = arith.constant 0 : index
    %829 = vector.load %arg8[%c4_368, %c0_369, %c0_370] : memref<8x8x128xf32, #tpu.memory_space<vmem>>, vector<1x8x128xf32>
    %830 = vector.shape_cast %829 : vector<1x8x128xf32> to vector<8x128xf32>
    %831 = vector.shape_cast %828 : vector<8x128xf32> to vector<1x8x128xf32>
    tpu.vector_store %arg8[%c4_368, %c0_369, %c0_370], %831 {strides = array<i32>} : memref<8x8x128xf32, #tpu.memory_space<vmem>>, vector<1x8x128xf32>,
    %c3_371 = arith.constant 3 : index
    %c0_372 = arith.constant 0 : index
    %c0_373 = arith.constant 0 : index
    %832 = vector.load %arg8[%c3_371, %c0_372, %c0_373] : memref<8x8x128xf32, #tpu.memory_space<vmem>>, vector<1x8x128xf32>
    %833 = vector.shape_cast %832 : vector<1x8x128xf32> to vector<8x128xf32>
    %834 = arith.addf %833, %825 : vector<8x128xf32>
    %c3_374 = arith.constant 3 : index
    %c0_375 = arith.constant 0 : index
    %c0_376 = arith.constant 0 : index
    %835 = vector.load %arg8[%c3_374, %c0_375, %c0_376] : memref<8x8x128xf32, #tpu.memory_space<vmem>>, vector<1x8x128xf32>
    %836 = vector.shape_cast %835 : vector<1x8x128xf32> to vector<8x128xf32>
    %837 = vector.shape_cast %834 : vector<8x128xf32> to vector<1x8x128xf32>
    tpu.vector_store %arg8[%c3_374, %c0_375, %c0_376], %837 {strides = array<i32>} : memref<8x8x128xf32, #tpu.memory_space<vmem>>, vector<1x8x128xf32>,
    %838 = tpu.concatenate %790, %821 in 0 : vector<8x128xf32>, vector<8x128xf32> -> vector<16x128xf32>
    %c0_377 = arith.constant 0 : index
    %c0_378 = arith.constant 0 : index
    %839 = vector.load %arg5[%c0_377, %c0_378] : memref<128x768xf32, #tpu.memory_space<vmem>>, vector<128x768xf32>
    %cst_379 = arith.constant dense<0.000000e+00> : vector<16x768xf32>
    %840 = tpu.matmul %838, %839, %cst_379 {dimension_numbers = #tpu.dot_dimension_numbers<[1], [0], [0], [1], [0, 0, 1, 1], [], []>} : vector<16x128xf32>, vector<128x768xf32>, vector<16x768xf32> -> vector<16x768xf32>
    %c0_380 = arith.constant 0 : index
    %c0_381 = arith.constant 0 : index
    %841 = vector.load %arg7[%c0_380, %c0_381] : memref<1x768xf32, #tpu.memory_space<vmem>>, vector<1x768xf32>
    %842 = vector.broadcast %841 : vector<1x768xf32> to vector<16x768xf32>
    %843 = arith.addf %840, %842 : vector<16x768xf32>
    %c5_i32_382 = arith.constant 5 : i32
    %844 = vector.broadcast %c5_i32_382 : i32 to vector<8x1xi32>
    %845 = arith.cmpi sgt, %459, %844 : vector<8x1xi32>
    %c40_383 = arith.constant 40 : index
    %c0_384 = arith.constant 0 : index
    %846 = vector.load %arg11[%c40_383, %c0_384] : memref<64x384xf32, #tpu.memory_space<vmem>>, vector<8x384xf32>
    %847 = vector.extract_strided_slice %843 {offsets = [0, 0], sizes = [8, 384], strides = [1, 1]} : vector<16x768xf32> to vector<8x384xf32>
    %848 = vector.extract_strided_slice %846 {offsets = [0, 0], sizes = [8, 256], strides = [1, 1]} : vector<8x384xf32> to vector<8x256xf32>
    %849 = vector.extract_strided_slice %847 {offsets = [0, 0], sizes = [8, 256], strides = [1, 1]} : vector<8x384xf32> to vector<8x256xf32>
    %850 = arith.addf %848, %849 : vector<8x256xf32>
    %851 = arith.negf %850 : vector<8x256xf32>
    %852 = math.exp %851 : vector<8x256xf32>
    %cst_385 = arith.constant 1.000000e+00 : f32
    %853 = vector.broadcast %cst_385 : f32 to vector<8x256xf32>
    %854 = arith.addf %853, %852 : vector<8x256xf32>
    %855 = arith.divf %853, %854 : vector<8x256xf32>
    %856 = vector.extract_strided_slice %855 {offsets = [0, 0], sizes = [8, 128], strides = [1, 1]} : vector<8x256xf32> to vector<8x128xf32>
    %857 = vector.extract_strided_slice %855 {offsets = [0, 128], sizes = [8, 128], strides = [1, 1]} : vector<8x256xf32> to vector<8x128xf32>
    %858 = vector.extract_strided_slice %846 {offsets = [0, 256], sizes = [8, 128], strides = [1, 1]} : vector<8x384xf32> to vector<8x128xf32>
    %859 = vector.extract_strided_slice %847 {offsets = [0, 256], sizes = [8, 128], strides = [1, 1]} : vector<8x384xf32> to vector<8x128xf32>
    %860 = arith.mulf %856, %859 : vector<8x128xf32>
    %861 = arith.addf %858, %860 : vector<8x128xf32>
    %862 = math.tanh %861 : vector<8x128xf32>
    %cst_386 = arith.constant 1.000000e+00 : f32
    %863 = vector.broadcast %cst_386 : f32 to vector<8x128xf32>
    %864 = arith.subf %863, %857 : vector<8x128xf32>
    %865 = arith.mulf %864, %862 : vector<8x128xf32>
    %866 = arith.mulf %857, %790 : vector<8x128xf32>
    %867 = arith.addf %865, %866 : vector<8x128xf32>
    %868 = vector.shape_cast %845 : vector<8x1xi1> to vector<8x1xi1>
    %869 = vector.broadcast %868 : vector<8x1xi1> to vector<8x128xi1>
    %870 = arith.select %869, %867, %790 : vector<8x128xi1>, vector<8x128xf32>
    %cst_387 = arith.constant 0.000000e+00 : f32
    %871 = vector.shape_cast %845 : vector<8x1xi1> to vector<8x1xi1>
    %872 = vector.broadcast %871 : vector<8x1xi1> to vector<8x128xi1>
    %873 = vector.broadcast %cst_387 : f32 to vector<8x128xf32>
    %874 = arith.select %872, %870, %873 : vector<8x128xi1>, vector<8x128xf32>
    %c2_i32_388 = arith.constant 2 : i32
    %875 = vector.broadcast %c2_i32_388 : i32 to vector<8x1xi32>
    %876 = arith.cmpi sgt, %459, %875 : vector<8x1xi32>
    %c16_389 = arith.constant 16 : index
    %c0_390 = arith.constant 0 : index
    %877 = vector.load %arg12[%c16_389, %c0_390] : memref<64x384xf32, #tpu.memory_space<vmem>>, vector<8x384xf32>
    %878 = vector.extract_strided_slice %843 {offsets = [8, 384], sizes = [8, 384], strides = [1, 1]} : vector<16x768xf32> to vector<8x384xf32>
    %879 = vector.extract_strided_slice %877 {offsets = [0, 0], sizes = [8, 256], strides = [1, 1]} : vector<8x384xf32> to vector<8x256xf32>
    %880 = vector.extract_strided_slice %878 {offsets = [0, 0], sizes = [8, 256], strides = [1, 1]} : vector<8x384xf32> to vector<8x256xf32>
    %881 = arith.addf %879, %880 : vector<8x256xf32>
    %882 = arith.negf %881 : vector<8x256xf32>
    %883 = math.exp %882 : vector<8x256xf32>
    %cst_391 = arith.constant 1.000000e+00 : f32
    %884 = vector.broadcast %cst_391 : f32 to vector<8x256xf32>
    %885 = arith.addf %884, %883 : vector<8x256xf32>
    %886 = arith.divf %884, %885 : vector<8x256xf32>
    %887 = vector.extract_strided_slice %886 {offsets = [0, 0], sizes = [8, 128], strides = [1, 1]} : vector<8x256xf32> to vector<8x128xf32>
    %888 = vector.extract_strided_slice %886 {offsets = [0, 128], sizes = [8, 128], strides = [1, 1]} : vector<8x256xf32> to vector<8x128xf32>
    %889 = vector.extract_strided_slice %877 {offsets = [0, 256], sizes = [8, 128], strides = [1, 1]} : vector<8x384xf32> to vector<8x128xf32>
    %890 = vector.extract_strided_slice %878 {offsets = [0, 256], sizes = [8, 128], strides = [1, 1]} : vector<8x384xf32> to vector<8x128xf32>
    %891 = arith.mulf %887, %890 : vector<8x128xf32>
    %892 = arith.addf %889, %891 : vector<8x128xf32>
    %893 = math.tanh %892 : vector<8x128xf32>
    %cst_392 = arith.constant 1.000000e+00 : f32
    %894 = vector.broadcast %cst_392 : f32 to vector<8x128xf32>
    %895 = arith.subf %894, %888 : vector<8x128xf32>
    %896 = arith.mulf %895, %893 : vector<8x128xf32>
    %897 = arith.mulf %888, %821 : vector<8x128xf32>
    %898 = arith.addf %896, %897 : vector<8x128xf32>
    %899 = vector.shape_cast %876 : vector<8x1xi1> to vector<8x1xi1>
    %900 = vector.broadcast %899 : vector<8x1xi1> to vector<8x128xi1>
    %901 = arith.select %900, %898, %821 : vector<8x128xi1>, vector<8x128xf32>
    %cst_393 = arith.constant 0.000000e+00 : f32
    %902 = vector.shape_cast %876 : vector<8x1xi1> to vector<8x1xi1>
    %903 = vector.broadcast %902 : vector<8x1xi1> to vector<8x128xi1>
    %904 = vector.broadcast %cst_393 : f32 to vector<8x128xf32>
    %905 = arith.select %903, %901, %904 : vector<8x128xi1>, vector<8x128xf32>
    %c5_394 = arith.constant 5 : index
    %c0_395 = arith.constant 0 : index
    %c0_396 = arith.constant 0 : index
    %906 = vector.load %arg8[%c5_394, %c0_395, %c0_396] : memref<8x8x128xf32, #tpu.memory_space<vmem>>, vector<1x8x128xf32>
    %907 = vector.shape_cast %906 : vector<1x8x128xf32> to vector<8x128xf32>
    %908 = arith.addf %907, %874 : vector<8x128xf32>
    %c5_397 = arith.constant 5 : index
    %c0_398 = arith.constant 0 : index
    %c0_399 = arith.constant 0 : index
    %909 = vector.load %arg8[%c5_397, %c0_398, %c0_399] : memref<8x8x128xf32, #tpu.memory_space<vmem>>, vector<1x8x128xf32>
    %910 = vector.shape_cast %909 : vector<1x8x128xf32> to vector<8x128xf32>
    %911 = vector.shape_cast %908 : vector<8x128xf32> to vector<1x8x128xf32>
    tpu.vector_store %arg8[%c5_397, %c0_398, %c0_399], %911 {strides = array<i32>} : memref<8x8x128xf32, #tpu.memory_space<vmem>>, vector<1x8x128xf32>,
    %c2_400 = arith.constant 2 : index
    %c0_401 = arith.constant 0 : index
    %c0_402 = arith.constant 0 : index
    %912 = vector.load %arg8[%c2_400, %c0_401, %c0_402] : memref<8x8x128xf32, #tpu.memory_space<vmem>>, vector<1x8x128xf32>
    %913 = vector.shape_cast %912 : vector<1x8x128xf32> to vector<8x128xf32>
    %914 = arith.addf %913, %905 : vector<8x128xf32>
    %c2_403 = arith.constant 2 : index
    %c0_404 = arith.constant 0 : index
    %c0_405 = arith.constant 0 : index
    %915 = vector.load %arg8[%c2_403, %c0_404, %c0_405] : memref<8x8x128xf32, #tpu.memory_space<vmem>>, vector<1x8x128xf32>
    %916 = vector.shape_cast %915 : vector<1x8x128xf32> to vector<8x128xf32>
    %917 = vector.shape_cast %914 : vector<8x128xf32> to vector<1x8x128xf32>
    tpu.vector_store %arg8[%c2_403, %c0_404, %c0_405], %917 {strides = array<i32>} : memref<8x8x128xf32, #tpu.memory_space<vmem>>, vector<1x8x128xf32>,
    %918 = tpu.concatenate %870, %901 in 0 : vector<8x128xf32>, vector<8x128xf32> -> vector<16x128xf32>
    %c0_406 = arith.constant 0 : index
    %c0_407 = arith.constant 0 : index
    %919 = vector.load %arg5[%c0_406, %c0_407] : memref<128x768xf32, #tpu.memory_space<vmem>>, vector<128x768xf32>
    %cst_408 = arith.constant dense<0.000000e+00> : vector<16x768xf32>
    %920 = tpu.matmul %918, %919, %cst_408 {dimension_numbers = #tpu.dot_dimension_numbers<[1], [0], [0], [1], [0, 0, 1, 1], [], []>} : vector<16x128xf32>, vector<128x768xf32>, vector<16x768xf32> -> vector<16x768xf32>
    %c0_409 = arith.constant 0 : index
    %c0_410 = arith.constant 0 : index
    %921 = vector.load %arg7[%c0_409, %c0_410] : memref<1x768xf32, #tpu.memory_space<vmem>>, vector<1x768xf32>
    %922 = vector.broadcast %921 : vector<1x768xf32> to vector<16x768xf32>
    %923 = arith.addf %920, %922 : vector<16x768xf32>
    %c6_i32_411 = arith.constant 6 : i32
    %924 = vector.broadcast %c6_i32_411 : i32 to vector<8x1xi32>
    %925 = arith.cmpi sgt, %459, %924 : vector<8x1xi32>
    %c48_412 = arith.constant 48 : index
    %c0_413 = arith.constant 0 : index
    %926 = vector.load %arg11[%c48_412, %c0_413] : memref<64x384xf32, #tpu.memory_space<vmem>>, vector<8x384xf32>
    %927 = vector.extract_strided_slice %923 {offsets = [0, 0], sizes = [8, 384], strides = [1, 1]} : vector<16x768xf32> to vector<8x384xf32>
    %928 = vector.extract_strided_slice %926 {offsets = [0, 0], sizes = [8, 256], strides = [1, 1]} : vector<8x384xf32> to vector<8x256xf32>
    %929 = vector.extract_strided_slice %927 {offsets = [0, 0], sizes = [8, 256], strides = [1, 1]} : vector<8x384xf32> to vector<8x256xf32>
    %930 = arith.addf %928, %929 : vector<8x256xf32>
    %931 = arith.negf %930 : vector<8x256xf32>
    %932 = math.exp %931 : vector<8x256xf32>
    %cst_414 = arith.constant 1.000000e+00 : f32
    %933 = vector.broadcast %cst_414 : f32 to vector<8x256xf32>
    %934 = arith.addf %933, %932 : vector<8x256xf32>
    %935 = arith.divf %933, %934 : vector<8x256xf32>
    %936 = vector.extract_strided_slice %935 {offsets = [0, 0], sizes = [8, 128], strides = [1, 1]} : vector<8x256xf32> to vector<8x128xf32>
    %937 = vector.extract_strided_slice %935 {offsets = [0, 128], sizes = [8, 128], strides = [1, 1]} : vector<8x256xf32> to vector<8x128xf32>
    %938 = vector.extract_strided_slice %926 {offsets = [0, 256], sizes = [8, 128], strides = [1, 1]} : vector<8x384xf32> to vector<8x128xf32>
    %939 = vector.extract_strided_slice %927 {offsets = [0, 256], sizes = [8, 128], strides = [1, 1]} : vector<8x384xf32> to vector<8x128xf32>
    %940 = arith.mulf %936, %939 : vector<8x128xf32>
    %941 = arith.addf %938, %940 : vector<8x128xf32>
    %942 = math.tanh %941 : vector<8x128xf32>
    %cst_415 = arith.constant 1.000000e+00 : f32
    %943 = vector.broadcast %cst_415 : f32 to vector<8x128xf32>
    %944 = arith.subf %943, %937 : vector<8x128xf32>
    %945 = arith.mulf %944, %942 : vector<8x128xf32>
    %946 = arith.mulf %937, %870 : vector<8x128xf32>
    %947 = arith.addf %945, %946 : vector<8x128xf32>
    %948 = vector.shape_cast %925 : vector<8x1xi1> to vector<8x1xi1>
    %949 = vector.broadcast %948 : vector<8x1xi1> to vector<8x128xi1>
    %950 = arith.select %949, %947, %870 : vector<8x128xi1>, vector<8x128xf32>
    %cst_416 = arith.constant 0.000000e+00 : f32
    %951 = vector.shape_cast %925 : vector<8x1xi1> to vector<8x1xi1>
    %952 = vector.broadcast %951 : vector<8x1xi1> to vector<8x128xi1>
    %953 = vector.broadcast %cst_416 : f32 to vector<8x128xf32>
    %954 = arith.select %952, %950, %953 : vector<8x128xi1>, vector<8x128xf32>
    %c1_i32_417 = arith.constant 1 : i32
    %955 = vector.broadcast %c1_i32_417 : i32 to vector<8x1xi32>
    %956 = arith.cmpi sgt, %459, %955 : vector<8x1xi32>
    %c8_418 = arith.constant 8 : index
    %c0_419 = arith.constant 0 : index
    %957 = vector.load %arg12[%c8_418, %c0_419] : memref<64x384xf32, #tpu.memory_space<vmem>>, vector<8x384xf32>
    %958 = vector.extract_strided_slice %923 {offsets = [8, 384], sizes = [8, 384], strides = [1, 1]} : vector<16x768xf32> to vector<8x384xf32>
    %959 = vector.extract_strided_slice %957 {offsets = [0, 0], sizes = [8, 256], strides = [1, 1]} : vector<8x384xf32> to vector<8x256xf32>
    %960 = vector.extract_strided_slice %958 {offsets = [0, 0], sizes = [8, 256], strides = [1, 1]} : vector<8x384xf32> to vector<8x256xf32>
    %961 = arith.addf %959, %960 : vector<8x256xf32>
    %962 = arith.negf %961 : vector<8x256xf32>
    %963 = math.exp %962 : vector<8x256xf32>
    %cst_420 = arith.constant 1.000000e+00 : f32
    %964 = vector.broadcast %cst_420 : f32 to vector<8x256xf32>
    %965 = arith.addf %964, %963 : vector<8x256xf32>
    %966 = arith.divf %964, %965 : vector<8x256xf32>
    %967 = vector.extract_strided_slice %966 {offsets = [0, 0], sizes = [8, 128], strides = [1, 1]} : vector<8x256xf32> to vector<8x128xf32>
    %968 = vector.extract_strided_slice %966 {offsets = [0, 128], sizes = [8, 128], strides = [1, 1]} : vector<8x256xf32> to vector<8x128xf32>
    %969 = vector.extract_strided_slice %957 {offsets = [0, 256], sizes = [8, 128], strides = [1, 1]} : vector<8x384xf32> to vector<8x128xf32>
    %970 = vector.extract_strided_slice %958 {offsets = [0, 256], sizes = [8, 128], strides = [1, 1]} : vector<8x384xf32> to vector<8x128xf32>
    %971 = arith.mulf %967, %970 : vector<8x128xf32>
    %972 = arith.addf %969, %971 : vector<8x128xf32>
    %973 = math.tanh %972 : vector<8x128xf32>
    %cst_421 = arith.constant 1.000000e+00 : f32
    %974 = vector.broadcast %cst_421 : f32 to vector<8x128xf32>
    %975 = arith.subf %974, %968 : vector<8x128xf32>
    %976 = arith.mulf %975, %973 : vector<8x128xf32>
    %977 = arith.mulf %968, %901 : vector<8x128xf32>
    %978 = arith.addf %976, %977 : vector<8x128xf32>
    %979 = vector.shape_cast %956 : vector<8x1xi1> to vector<8x1xi1>
    %980 = vector.broadcast %979 : vector<8x1xi1> to vector<8x128xi1>
    %981 = arith.select %980, %978, %901 : vector<8x128xi1>, vector<8x128xf32>
    %cst_422 = arith.constant 0.000000e+00 : f32
    %982 = vector.shape_cast %956 : vector<8x1xi1> to vector<8x1xi1>
    %983 = vector.broadcast %982 : vector<8x1xi1> to vector<8x128xi1>
    %984 = vector.broadcast %cst_422 : f32 to vector<8x128xf32>
    %985 = arith.select %983, %981, %984 : vector<8x128xi1>, vector<8x128xf32>
    %c6_423 = arith.constant 6 : index
    %c0_424 = arith.constant 0 : index
    %c0_425 = arith.constant 0 : index
    %986 = vector.load %arg8[%c6_423, %c0_424, %c0_425] : memref<8x8x128xf32, #tpu.memory_space<vmem>>, vector<1x8x128xf32>
    %987 = vector.shape_cast %986 : vector<1x8x128xf32> to vector<8x128xf32>
    %988 = arith.addf %987, %954 : vector<8x128xf32>
    %c6_426 = arith.constant 6 : index
    %c0_427 = arith.constant 0 : index
    %c0_428 = arith.constant 0 : index
    %989 = vector.load %arg8[%c6_426, %c0_427, %c0_428] : memref<8x8x128xf32, #tpu.memory_space<vmem>>, vector<1x8x128xf32>
    %990 = vector.shape_cast %989 : vector<1x8x128xf32> to vector<8x128xf32>
    %991 = vector.shape_cast %988 : vector<8x128xf32> to vector<1x8x128xf32>
    tpu.vector_store %arg8[%c6_426, %c0_427, %c0_428], %991 {strides = array<i32>} : memref<8x8x128xf32, #tpu.memory_space<vmem>>, vector<1x8x128xf32>,
    %c1_429 = arith.constant 1 : index
    %c0_430 = arith.constant 0 : index
    %c0_431 = arith.constant 0 : index
    %992 = vector.load %arg8[%c1_429, %c0_430, %c0_431] : memref<8x8x128xf32, #tpu.memory_space<vmem>>, vector<1x8x128xf32>
    %993 = vector.shape_cast %992 : vector<1x8x128xf32> to vector<8x128xf32>
    %994 = arith.addf %993, %985 : vector<8x128xf32>
    %c1_432 = arith.constant 1 : index
    %c0_433 = arith.constant 0 : index
    %c0_434 = arith.constant 0 : index
    %995 = vector.load %arg8[%c1_432, %c0_433, %c0_434] : memref<8x8x128xf32, #tpu.memory_space<vmem>>, vector<1x8x128xf32>
    %996 = vector.shape_cast %995 : vector<1x8x128xf32> to vector<8x128xf32>
    %997 = vector.shape_cast %994 : vector<8x128xf32> to vector<1x8x128xf32>
    tpu.vector_store %arg8[%c1_432, %c0_433, %c0_434], %997 {strides = array<i32>} : memref<8x8x128xf32, #tpu.memory_space<vmem>>, vector<1x8x128xf32>,
    %998 = tpu.concatenate %950, %981 in 0 : vector<8x128xf32>, vector<8x128xf32> -> vector<16x128xf32>
    %c0_435 = arith.constant 0 : index
    %c0_436 = arith.constant 0 : index
    %999 = vector.load %arg5[%c0_435, %c0_436] : memref<128x768xf32, #tpu.memory_space<vmem>>, vector<128x768xf32>
    %cst_437 = arith.constant dense<0.000000e+00> : vector<16x768xf32>
    %1000 = tpu.matmul %998, %999, %cst_437 {dimension_numbers = #tpu.dot_dimension_numbers<[1], [0], [0], [1], [0, 0, 1, 1], [], []>} : vector<16x128xf32>, vector<128x768xf32>, vector<16x768xf32> -> vector<16x768xf32>
    %c0_438 = arith.constant 0 : index
    %c0_439 = arith.constant 0 : index
    %1001 = vector.load %arg7[%c0_438, %c0_439] : memref<1x768xf32, #tpu.memory_space<vmem>>, vector<1x768xf32>
    %1002 = vector.broadcast %1001 : vector<1x768xf32> to vector<16x768xf32>
    %1003 = arith.addf %1000, %1002 : vector<16x768xf32>
    %c7_i32_440 = arith.constant 7 : i32
    %1004 = vector.broadcast %c7_i32_440 : i32 to vector<8x1xi32>
    %1005 = arith.cmpi sgt, %459, %1004 : vector<8x1xi32>
    %c56_441 = arith.constant 56 : index
    %c0_442 = arith.constant 0 : index
    %1006 = vector.load %arg11[%c56_441, %c0_442] : memref<64x384xf32, #tpu.memory_space<vmem>>, vector<8x384xf32>
    %1007 = vector.extract_strided_slice %1003 {offsets = [0, 0], sizes = [8, 384], strides = [1, 1]} : vector<16x768xf32> to vector<8x384xf32>
    %1008 = vector.extract_strided_slice %1006 {offsets = [0, 0], sizes = [8, 256], strides = [1, 1]} : vector<8x384xf32> to vector<8x256xf32>
    %1009 = vector.extract_strided_slice %1007 {offsets = [0, 0], sizes = [8, 256], strides = [1, 1]} : vector<8x384xf32> to vector<8x256xf32>
    %1010 = arith.addf %1008, %1009 : vector<8x256xf32>
    %1011 = arith.negf %1010 : vector<8x256xf32>
    %1012 = math.exp %1011 : vector<8x256xf32>
    %cst_443 = arith.constant 1.000000e+00 : f32
    %1013 = vector.broadcast %cst_443 : f32 to vector<8x256xf32>
    %1014 = arith.addf %1013, %1012 : vector<8x256xf32>
    %1015 = arith.divf %1013, %1014 : vector<8x256xf32>
    %1016 = vector.extract_strided_slice %1015 {offsets = [0, 0], sizes = [8, 128], strides = [1, 1]} : vector<8x256xf32> to vector<8x128xf32>
    %1017 = vector.extract_strided_slice %1015 {offsets = [0, 128], sizes = [8, 128], strides = [1, 1]} : vector<8x256xf32> to vector<8x128xf32>
    %1018 = vector.extract_strided_slice %1006 {offsets = [0, 256], sizes = [8, 128], strides = [1, 1]} : vector<8x384xf32> to vector<8x128xf32>
    %1019 = vector.extract_strided_slice %1007 {offsets = [0, 256], sizes = [8, 128], strides = [1, 1]} : vector<8x384xf32> to vector<8x128xf32>
    %1020 = arith.mulf %1016, %1019 : vector<8x128xf32>
    %1021 = arith.addf %1018, %1020 : vector<8x128xf32>
    %1022 = math.tanh %1021 : vector<8x128xf32>
    %cst_444 = arith.constant 1.000000e+00 : f32
    %1023 = vector.broadcast %cst_444 : f32 to vector<8x128xf32>
    %1024 = arith.subf %1023, %1017 : vector<8x128xf32>
    %1025 = arith.mulf %1024, %1022 : vector<8x128xf32>
    %1026 = arith.mulf %1017, %950 : vector<8x128xf32>
    %1027 = arith.addf %1025, %1026 : vector<8x128xf32>
    %1028 = vector.shape_cast %1005 : vector<8x1xi1> to vector<8x1xi1>
    %1029 = vector.broadcast %1028 : vector<8x1xi1> to vector<8x128xi1>
    %1030 = arith.select %1029, %1027, %950 : vector<8x128xi1>, vector<8x128xf32>
    %cst_445 = arith.constant 0.000000e+00 : f32
    %1031 = vector.shape_cast %1005 : vector<8x1xi1> to vector<8x1xi1>
    %1032 = vector.broadcast %1031 : vector<8x1xi1> to vector<8x128xi1>
    %1033 = vector.broadcast %cst_445 : f32 to vector<8x128xf32>
    %1034 = arith.select %1032, %1030, %1033 : vector<8x128xi1>, vector<8x128xf32>
    %c0_i32_446 = arith.constant 0 : i32
    %1035 = vector.broadcast %c0_i32_446 : i32 to vector<8x1xi32>
    %1036 = arith.cmpi sgt, %459, %1035 : vector<8x1xi32>
    %c0_447 = arith.constant 0 : index
    %c0_448 = arith.constant 0 : index
    %1037 = vector.load %arg12[%c0_447, %c0_448] : memref<64x384xf32, #tpu.memory_space<vmem>>, vector<8x384xf32>
    %1038 = vector.extract_strided_slice %1003 {offsets = [8, 384], sizes = [8, 384], strides = [1, 1]} : vector<16x768xf32> to vector<8x384xf32>
    %1039 = vector.extract_strided_slice %1037 {offsets = [0, 0], sizes = [8, 256], strides = [1, 1]} : vector<8x384xf32> to vector<8x256xf32>
    %1040 = vector.extract_strided_slice %1038 {offsets = [0, 0], sizes = [8, 256], strides = [1, 1]} : vector<8x384xf32> to vector<8x256xf32>
    %1041 = arith.addf %1039, %1040 : vector<8x256xf32>
    %1042 = arith.negf %1041 : vector<8x256xf32>
    %1043 = math.exp %1042 : vector<8x256xf32>
    %cst_449 = arith.constant 1.000000e+00 : f32
    %1044 = vector.broadcast %cst_449 : f32 to vector<8x256xf32>
    %1045 = arith.addf %1044, %1043 : vector<8x256xf32>
    %1046 = arith.divf %1044, %1045 : vector<8x256xf32>
    %1047 = vector.extract_strided_slice %1046 {offsets = [0, 0], sizes = [8, 128], strides = [1, 1]} : vector<8x256xf32> to vector<8x128xf32>
    %1048 = vector.extract_strided_slice %1046 {offsets = [0, 128], sizes = [8, 128], strides = [1, 1]} : vector<8x256xf32> to vector<8x128xf32>
    %1049 = vector.extract_strided_slice %1037 {offsets = [0, 256], sizes = [8, 128], strides = [1, 1]} : vector<8x384xf32> to vector<8x128xf32>
    %1050 = vector.extract_strided_slice %1038 {offsets = [0, 256], sizes = [8, 128], strides = [1, 1]} : vector<8x384xf32> to vector<8x128xf32>
    %1051 = arith.mulf %1047, %1050 : vector<8x128xf32>
    %1052 = arith.addf %1049, %1051 : vector<8x128xf32>
    %1053 = math.tanh %1052 : vector<8x128xf32>
    %cst_450 = arith.constant 1.000000e+00 : f32
    %1054 = vector.broadcast %cst_450 : f32 to vector<8x128xf32>
    %1055 = arith.subf %1054, %1048 : vector<8x128xf32>
    %1056 = arith.mulf %1055, %1053 : vector<8x128xf32>
    %1057 = arith.mulf %1048, %981 : vector<8x128xf32>
    %1058 = arith.addf %1056, %1057 : vector<8x128xf32>
    %1059 = vector.shape_cast %1036 : vector<8x1xi1> to vector<8x1xi1>
    %1060 = vector.broadcast %1059 : vector<8x1xi1> to vector<8x128xi1>
    %1061 = arith.select %1060, %1058, %981 : vector<8x128xi1>, vector<8x128xf32>
    %cst_451 = arith.constant 0.000000e+00 : f32
    %1062 = vector.shape_cast %1036 : vector<8x1xi1> to vector<8x1xi1>
    %1063 = vector.broadcast %1062 : vector<8x1xi1> to vector<8x128xi1>
    %1064 = vector.broadcast %cst_451 : f32 to vector<8x128xf32>
    %1065 = arith.select %1063, %1061, %1064 : vector<8x128xi1>, vector<8x128xf32>
    %c7_452 = arith.constant 7 : index
    %c0_453 = arith.constant 0 : index
    %c0_454 = arith.constant 0 : index
    %1066 = vector.load %arg8[%c7_452, %c0_453, %c0_454] : memref<8x8x128xf32, #tpu.memory_space<vmem>>, vector<1x8x128xf32>
    %1067 = vector.shape_cast %1066 : vector<1x8x128xf32> to vector<8x128xf32>
    %1068 = arith.addf %1067, %1034 : vector<8x128xf32>
    %c7_455 = arith.constant 7 : index
    %c0_456 = arith.constant 0 : index
    %c0_457 = arith.constant 0 : index
    %1069 = vector.load %arg8[%c7_455, %c0_456, %c0_457] : memref<8x8x128xf32, #tpu.memory_space<vmem>>, vector<1x8x128xf32>
    %1070 = vector.shape_cast %1069 : vector<1x8x128xf32> to vector<8x128xf32>
    %1071 = vector.shape_cast %1068 : vector<8x128xf32> to vector<1x8x128xf32>
    tpu.vector_store %arg8[%c7_455, %c0_456, %c0_457], %1071 {strides = array<i32>} : memref<8x8x128xf32, #tpu.memory_space<vmem>>, vector<1x8x128xf32>,
    %c0_458 = arith.constant 0 : index
    %c0_459 = arith.constant 0 : index
    %c0_460 = arith.constant 0 : index
    %1072 = vector.load %arg8[%c0_458, %c0_459, %c0_460] : memref<8x8x128xf32, #tpu.memory_space<vmem>>, vector<1x8x128xf32>
    %1073 = vector.shape_cast %1072 : vector<1x8x128xf32> to vector<8x128xf32>
    %1074 = arith.addf %1073, %1065 : vector<8x128xf32>
    %c0_461 = arith.constant 0 : index
    %c0_462 = arith.constant 0 : index
    %c0_463 = arith.constant 0 : index
    %1075 = vector.load %arg8[%c0_461, %c0_462, %c0_463] : memref<8x8x128xf32, #tpu.memory_space<vmem>>, vector<1x8x128xf32>
    %1076 = vector.shape_cast %1075 : vector<1x8x128xf32> to vector<8x128xf32>
    %1077 = vector.shape_cast %1074 : vector<8x128xf32> to vector<1x8x128xf32>
    tpu.vector_store %arg8[%c0_461, %c0_462, %c0_463], %1077 {strides = array<i32>} : memref<8x8x128xf32, #tpu.memory_space<vmem>>, vector<1x8x128xf32>,
    %c0_464 = arith.constant 0 : index
    %c0_465 = arith.constant 0 : index
    %c0_466 = arith.constant 0 : index
    %1078 = vector.load %arg9[%c0_464, %c0_465, %c0_466] : memref<2x8x128xf32, #tpu.memory_space<vmem>>, vector<1x8x128xf32>
    %1079 = vector.shape_cast %1078 : vector<1x8x128xf32> to vector<8x128xf32>
    %1080 = vector.shape_cast %1030 : vector<8x128xf32> to vector<1x8x128xf32>
    tpu.vector_store %arg9[%c0_464, %c0_465, %c0_466], %1080 {strides = array<i32>} : memref<2x8x128xf32, #tpu.memory_space<vmem>>, vector<1x8x128xf32>,
    %c1_467 = arith.constant 1 : index
    %c0_468 = arith.constant 0 : index
    %c0_469 = arith.constant 0 : index
    %1081 = vector.load %arg9[%c1_467, %c0_468, %c0_469] : memref<2x8x128xf32, #tpu.memory_space<vmem>>, vector<1x8x128xf32>
    %1082 = vector.shape_cast %1081 : vector<1x8x128xf32> to vector<8x128xf32>
    %1083 = vector.shape_cast %1061 : vector<8x128xf32> to vector<1x8x128xf32>
    tpu.vector_store %arg9[%c1_467, %c0_468, %c0_469], %1083 {strides = array<i32>} : memref<2x8x128xf32, #tpu.memory_space<vmem>>, vector<1x8x128xf32>,
    return
  }
  func.func @transform_0(%arg0: i32, %arg1: memref<64xi32, #tpu.memory_space<smem>>) -> (i32, i32) {
    %c0_i32 = arith.constant 0 : i32
    %c0_i32_0 = arith.constant 0 : i32
    return %arg0, %c0_i32 : i32, i32
  }
  func.func @transform_1(%arg0: i32, %arg1: memref<64xi32, #tpu.memory_space<smem>>) -> (i32, i32) {
    %c0_i32 = arith.constant 0 : i32
    %c0_i32_0 = arith.constant 0 : i32
    %c0_i32_1 = arith.constant 0 : i32
    return %c0_i32, %c0_i32_0 : i32, i32
  }
  func.func @transform_2(%arg0: i32, %arg1: memref<64xi32, #tpu.memory_space<smem>>) -> (i32, i32) {
    %c0_i32 = arith.constant 0 : i32
    %c0_i32_0 = arith.constant 0 : i32
    %c0_i32_1 = arith.constant 0 : i32
    return %c0_i32, %c0_i32_0 : i32, i32
  }
  func.func @transform_3(%arg0: i32, %arg1: memref<64xi32, #tpu.memory_space<smem>>) -> (i32, i32) {
    %c0_i32 = arith.constant 0 : i32
    %c0_i32_0 = arith.constant 0 : i32
    %c0_i32_1 = arith.constant 0 : i32
    return %c0_i32, %c0_i32_0 : i32, i32
  }
  func.func @transform_4(%arg0: i32, %arg1: memref<64xi32, #tpu.memory_space<smem>>) -> (i32, i32) {
    %c0_i32 = arith.constant 0 : i32
    %c0_i32_0 = arith.constant 0 : i32
    %c0_i32_1 = arith.constant 0 : i32
    return %c0_i32, %c0_i32_0 : i32, i32
  }
  func.func @transform_5(%arg0: i32, %arg1: memref<64xi32, #tpu.memory_space<smem>>) -> (i32, i32) {
    %c0_i32 = arith.constant 0 : i32
    %c0_i32_0 = arith.constant 0 : i32
    %c0_i32_1 = arith.constant 0 : i32
    return %c0_i32, %c0_i32_0 : i32, i32
  }
  func.func @transform_6(%arg0: i32, %arg1: memref<64xi32, #tpu.memory_space<smem>>) -> (i32, i32, i32) {
    %c0_i32 = arith.constant 0 : i32
    %c0_i32_0 = arith.constant 0 : i32
    %c0_i32_1 = arith.constant 0 : i32
    return %c0_i32, %arg0, %c0_i32_0 : i32, i32, i32
  }
  func.func @transform_7(%arg0: i32, %arg1: memref<64xi32, #tpu.memory_space<smem>>) -> (i32, i32, i32) {
    %c0_i32 = arith.constant 0 : i32
    %c0_i32_0 = arith.constant 0 : i32
    %c0_i32_1 = arith.constant 0 : i32
    return %c0_i32, %arg0, %c0_i32_0 : i32, i32, i32
  }
}

</mosaic_0001>

<bundles_post_ra>
// kernel: tpu_custom_call.1
= control target key start
LH: loop header
LB: loop body
LE: loop exit
PB: predicated region body
PF: predicated region fallthrough
CT: control target
= control target key end

     0   :  { %s4768_s27 = smov [#allocation6]   ;;  %s7219_s0 = inlined_call_operand.hbm [shape: s32[64], index: 0, kind: input, shape index: {}]   ;;  %s7220_s1 = inlined_call_operand.vmem [shape: s32[8,1], index: 1, kind: input, shape index: {}]   ;;  %s7221_s2 = inlined_call_operand.hbm [shape: f32[64,128], index: 2, kind: input, shape index: {}]   ;;  %s7222_s3 = inlined_call_operand.hbm [shape: f32[128,768], index: 3, kind: input, shape index: {}]   ;;  %s7223_s4 = inlined_call_operand.hbm [shape: f32[128,768], index: 4, kind: input, shape index: {}]   ;;  %s7224_s5 = inlined_call_operand.vmem [shape: f32[1,768], index: 5, kind: input, shape index: {}]   ;;  %s7225_s6 = inlined_call_operand.vmem [shape: f32[1,768], index: 6, kind: input, shape index: {}]   ;;  %s7226_s7 = inlined_call_operand.hbm [shape: f32[8,8,128], index: 7, kind: output, shape index: {0}]   ;;  %s7227_s8 = inlined_call_operand.hbm [shape: f32[2,8,128], index: 8, kind: output, shape index: {1}]  }
   0x1   :  { %7374 = sst [smem:[#allocation87_spill]] %s7220_s1 }
   0x2   :  { %7375 = sst [smem:[#allocation88_spill]] %s7224_s5 }
   0x3   :  { %7376 = sst [smem:[#allocation89_spill]] %s7225_s6 }
   0x4   :  { %7377 = sst [smem:[#allocation90_spill]] %s7226_s7 }
   0x5   :  { %7378 = sst [smem:[#allocation91_spill]] %s7227_s8 }
   0x6   :  { %15 = dma.hbm_to_smem %s7219_s0, 16, %s4768_s27, [#allocation5] }
   0x7   :  { %4758 = dma.done.wait [#allocation5], 16 }
   0x8   :  { %4759 = vsyncadd [#allocation5], 4294967280 }
   0x9   :  { %17 = sfence }
   0xa   :  { %18 = vsyncpa [#allocation8], 0 }
   0xb   :  { %19 = vsyncpa [#allocation11], 0 }
   0xc   :  { %20 = vsyncpa [#allocation9], 0 }
   0xd   :  { %21 = vsyncpa [#allocation15], 0  ;;  %s4769_s30 = smov [#allocation10]  }
   0xe   :  { %s41_s9 = sshll.u32 %s4769_s30, 4  ;;  %s42_s9 = int_to_ptr.vmem [resolvable:$true] %s41_s9 }
   0xf   :  { %s4666_s10 = scalar_lea.vmem %s42_s9, 12288  ;;  %p4671_p1 = scmp.lt.s32.totalorder %s42_s9, %s42_s9 }
  0x10   :  { %p4667_p0 = scmp.ne.s32.totalorder %s42_s9, %s4666_s10  ;;  %p4672_p2 = scmp.lt.s32.totalorder %s4666_s10, %s4666_s10 }
  0x12   :  { %p4673_p3 = por %p4672_p2, %p4671_p1 }
  0x14   :  { %p4674_p4 = pnand %p4673_p3, %p4667_p0 }
  0x16   :  { %4677 = shalt.err (!%p4674_p4)
}
  0x17   :  { %s4770_s11 = smov 768   ;;  %s4771_s12 = smov 48  }
  0x18   :  { %47 = dma.hbm_to_vmem [thread:$0]  %s7222_s3, 12288, %s42_s9, [#allocation11], %s4770_s11, %s4770_s11, %s4771_s12  }
  0x19   :  { %s4772_s14 = smov [#allocation7]  }
  0x1a   :  { %s29_s15 = sshll.u32 %s4772_s14, 4  ;;  %s30_s15 = int_to_ptr.vmem [resolvable:$true] %s29_s15 }
  0x1b   :  { %s4686_s16 = scalar_lea.vmem %s30_s15, 1024  ;;  %p4691_p6 = scmp.lt.s32.totalorder %s30_s15, %s30_s15 }
  0x1c   :  { %p4687_p5 = scmp.ne.s32.totalorder %s30_s15, %s4686_s16  ;;  %p4692_p7 = scmp.lt.s32.totalorder %s4686_s16, %s4686_s16 }
  0x1e   :  { %p4693_p8 = por %p4692_p7, %p4691_p6 }
  0x20   :  { %p4694_p9 = pnand %p4693_p8, %p4687_p5 }
  0x22   :  { %4697 = shalt.err (!%p4694_p9)
}
  0x23   :  { %s7228_s17 = smov 128   ;;  %s7230_s18 = smov 8  }
  0x24   :  { %35 = dma.hbm_to_vmem [thread:$0]  %s7221_s2, 1024, %s30_s15, [#allocation8], %s7228_s17, %s7228_s17, %s7230_s18  }
  0x25   :  { %s4775_s3 = smov [#allocation12]  }
  0x26   :  { %s53_s21 = sshll.u32 %s4775_s3, 4  ;;  %s54_s21 = int_to_ptr.vmem [resolvable:$true] %s53_s21 }
  0x27   :  { %s4706_s22 = scalar_lea.vmem %s54_s21, 12288  ;;  %p4711_p11 = scmp.lt.s32.totalorder %s54_s21, %s54_s21 }
  0x28   :  { %p4707_p10 = scmp.ne.s32.totalorder %s54_s21, %s4706_s22  ;;  %p4712_p12 = scmp.lt.s32.totalorder %s4706_s22, %s4706_s22 }
  0x2a   :  { %p4713_p13 = por %p4712_p12, %p4711_p11 }
  0x2c   :  { %p4714_p0 = pnand %p4713_p13, %p4707_p10 }
  0x2e   :  { %4717 = shalt.err (!%p4714_p0)
}
  0x2f   :  { %59 = dma.hbm_to_vmem [thread:$0]  %s7223_s4, 12288, %s54_s21, [#allocation11], %s4770_s11, %s4770_s11, %s4771_s12  }
  0x30   :  { %4760 = dma.done.wait [#allocation8], 1024  }
  0x31   :  { %4761 = vsyncadd [#allocation8], 4294966272 }
  0x32   :  { %4762 = dma.done.wait [#allocation11], 24576  }
  0x33   :  { %4763 = vsyncadd [#allocation11], 4294942720  ;;  %v7236_v0 = vmov 0.0   ;;  %s4842_s2 = sld [smem:[#allocation6]]  ;;  %v492_v1 = vld [vmem:[#allocation10 + $0x2d8] sm:$0xff]  ;;  %v494_v2 = vld [vmem:[#allocation10 + $0x2e8] sm:$0xff] }
  0x34   :  { %593 = vmatprep.mubr.f32.mxu0 %v7236_v0  ;;  %706 = vmatprep.mubr.f32.mxu1 %v7236_v0  ;;  %s4844_s25 = sld [smem:[#allocation6 + $0x1]]  ;;  %v491_v3 = vld [vmem:[#allocation10 + $0x2d0] sm:$0xff]  ;;  %v493_v4 = vld [vmem:[#allocation10 + $0x2e0] sm:$0xff]  ;;  %v486_v5 = vld [vmem:[#allocation10 + $0x2a8] sm:$0xff] }
  0x35   :  { %s4846_s26 = sld [smem:[#allocation6 + $0x2]]  ;;  %529 = vmatprep.subr.mxu0 %v492_v1  ;;  %642 = vmatprep.subr.mxu1 %v494_v2  ;;  %v488_v6 = vld [vmem:[#allocation10 + $0x2b8] sm:$0xff]  ;;  %v485_v7 = vld [vmem:[#allocation10 + $0x2a0] sm:$0xff]  ;;  %v487_v8 = vld [vmem:[#allocation10 + $0x2b0] sm:$0xff] }
  0x36   :  { %s4848_s27 = sld [smem:[#allocation6 + $0x3]]  ;;  %530 = vmatpush1.msra.mxu0 %v491_v3  ;;  %643 = vmatpush1.msra.mxu1 %v493_v4  ;;  %v480_v9 = vld [vmem:[#allocation10 + $0x278] sm:$0xff]  ;;  %v482_v10 = vld [vmem:[#allocation10 + $0x288] sm:$0xff]  ;;  %v479_v11 = vld [vmem:[#allocation10 + $0x270] sm:$0xff] }
  0x37   :  { %s4850_s4 = sld [smem:[#allocation6 + $0x4]]  ;;  %531 = vmatprep.subr.mxu0 %v486_v5  ;;  %644 = vmatprep.subr.mxu1 %v488_v6  ;;  %v481_v12 = vld [vmem:[#allocation10 + $0x280] sm:$0xff]  ;;  %v474_v13 = vld [vmem:[#allocation10 + $0x248] sm:$0xff]  ;;  %v476_v14 = vld [vmem:[#allocation10 + $0x258] sm:$0xff] }
  0x38   :  { %s4852_s28 = sld [smem:[#allocation6 + $0x5]]  ;;  %532 = vmatpush1.msra.mxu0 %v485_v7  ;;  %645 = vmatpush1.msra.mxu1 %v487_v8  ;;  %v473_v15 = vld [vmem:[#allocation10 + $0x240] sm:$0xff]  ;;  %v475_v16 = vld [vmem:[#allocation10 + $0x250] sm:$0xff]  ;;  %v468_v17 = vld [vmem:[#allocation10 + $0x218] sm:$0xff] }
  0x39   :  { %s4854_s29 = sld [smem:[#allocation6 + $0x6]]  ;;  %533 = vmatprep.subr.mxu0 %v480_v9  ;;  %646 = vmatprep.subr.mxu1 %v482_v10  ;;  %v470_v18 = vld [vmem:[#allocation10 + $0x228] sm:$0xff]  ;;  %v467_v19 = vld [vmem:[#allocation10 + $0x210] sm:$0xff]  ;;  %v469_v20 = vld [vmem:[#allocation10 + $0x220] sm:$0xff]  ;;  %s75_s18 = scalar_lea.vmem [#allocation7], %s4842_s2 }
  0x3a   :  { %s4856_s30 = sld [smem:[#allocation6 + $0x7]]  ;;  %534 = vmatpush1.msra.mxu0 %v479_v11  ;;  %647 = vmatpush1.msra.mxu1 %v481_v12  ;;  %v462_v21 = vld [vmem:[#allocation10 + $0x1e8] sm:$0xff]  ;;  %v464_v22 = vld [vmem:[#allocation10 + $0x1f8] sm:$0xff]  ;;  %v461_v23 = vld [vmem:[#allocation10 + $0x1e0] sm:$0xff]  ;;  %s80_s7 = scalar_lea.vmem [#allocation7], %s4844_s25 }
  0x3b   :  { %s4858_s9 = sld [smem:[#allocation6 + $0x8]]  ;;  %535 = vmatprep.subr.mxu0 %v474_v13  ;;  %648 = vmatprep.subr.mxu1 %v476_v14  ;;  %v463_v24 = vld [vmem:[#allocation10 + $0x1f0] sm:$0xff]  ;;  %v456_v25 = vld [vmem:[#allocation10 + $0x1b8] sm:$0xff]  ;;  %v458_v26 = vld [vmem:[#allocation10 + $0x1c8] sm:$0xff]  ;;  %s85_s6 = scalar_lea.vmem [#allocation7], %s4846_s26 }
  0x3c   :  { %s4860_s10 = sld [smem:[#allocation6 + $0x9]]  ;;  %536 = vmatpush1.msra.mxu0 %v473_v15  ;;  %649 = vmatpush1.msra.mxu1 %v475_v16  ;;  %v455_v27 = vld [vmem:[#allocation10 + $0x1b0] sm:$0xff]  ;;  %v457_v28 = vld [vmem:[#allocation10 + $0x1c0] sm:$0xff]  ;;  %v450_v29 = vld [vmem:[#allocation10 + $0x188] sm:$0xff]  ;;  %s90_s5 = scalar_lea.vmem [#allocation7], %s4848_s27 }
  0x3d   :  { %s4862_s11 = sld [smem:[#allocation6 + $0xa]]  ;;  %537 = vmatprep.subr.mxu0 %v468_v17  ;;  %650 = vmatprep.subr.mxu1 %v470_v18  ;;  %v452_v30 = vld [vmem:[#allocation10 + $0x198] sm:$0xff]  ;;  %v449_v31 = vld [vmem:[#allocation10 + $0x180] sm:$0xff]  ;;  %v451_v32 = vld [vmem:[#allocation10 + $0x190] sm:$0xff]  ;;  %s95_s1 = scalar_lea.vmem [#allocation7], %s4850_s4 }
  0x3e   :  { %s4864_s12 = sld [smem:[#allocation6 + $0xb]]  ;;  %538 = vmatpush1.msra.mxu0 %v467_v19  ;;  %651 = vmatpush1.msra.mxu1 %v469_v20  ;;  %v444_v33 = vld [vmem:[#allocation10 + $0x158] sm:$0xff]  ;;  %v446_v34 = vld [vmem:[#allocation10 + $0x168] sm:$0xff]  ;;  %v443_v35 = vld [vmem:[#allocation10 + $0x150] sm:$0xff] }
  0x3f   :  { %s4866_s0 = sld [smem:[#allocation6 + $0xc]]  ;;  %539 = vmatprep.subr.mxu0 %v462_v21  ;;  %652 = vmatprep.subr.mxu1 %v464_v22  ;;  %v445_v36 = vld [vmem:[#allocation10 + $0x160] sm:$0xff]  ;;  %v438_v37 = vld [vmem:[#allocation10 + $0x128] sm:$0xff]  ;;  %v440_v38 = vld [vmem:[#allocation10 + $0x138] sm:$0xff] }
  0x40   :  { %s4868_s13 = sld [smem:[#allocation6 + $0xd]]  ;;  %540 = vmatpush1.msra.mxu0 %v461_v23  ;;  %653 = vmatpush1.msra.mxu1 %v463_v24  ;;  %v437_v39 = vld [vmem:[#allocation10 + $0x120] sm:$0xff]  ;;  %v439_v40 = vld [vmem:[#allocation10 + $0x130] sm:$0xff]  ;;  %v432_v41 = vld [vmem:[#allocation10 + $0xf8] sm:$0xff]  ;;  %s110_s2 = scalar_lea.vmem [#allocation7], %s4856_s30 }
  0x41   :  { %s4870_s14 = sld [smem:[#allocation6 + $0xe]]  ;;  %541 = vmatprep.subr.mxu0 %v456_v25  ;;  %654 = vmatprep.subr.mxu1 %v458_v26  ;;  %v434_v42 = vld [vmem:[#allocation10 + $0x108] sm:$0xff]  ;;  %v431_v43 = vld [vmem:[#allocation10 + $0xf0] sm:$0xff]  ;;  %v433_v44 = vld [vmem:[#allocation10 + $0x100] sm:$0xff] }
  0x42   :  { %s4872_s15 = sld [smem:[#allocation6 + $0xf]]  ;;  %542 = vmatpush1.msra.mxu0 %v455_v27  ;;  %655 = vmatpush1.msra.mxu1 %v457_v28  ;;  %v426_v45 = vld [vmem:[#allocation10 + $0xc8] sm:$0xff]  ;;  %v428_v46 = vld [vmem:[#allocation10 + $0xd8] sm:$0xff]  ;;  %v425_v47 = vld [vmem:[#allocation10 + $0xc0] sm:$0xff] }
  0x43   :  { %s4874_s16 = sld [smem:[#allocation6 + $0x10]]  ;;  %543 = vmatprep.subr.mxu0 %v450_v29  ;;  %656 = vmatprep.subr.mxu1 %v452_v30  ;;  %v427_v48 = vld [vmem:[#allocation10 + $0xd0] sm:$0xff]  ;;  %v420_v49 = vld [vmem:[#allocation10 + $0x98] sm:$0xff]  ;;  %v422_v50 = vld [vmem:[#allocation10 + $0xa8] sm:$0xff]  ;;  %s125_s25 = scalar_lea.vmem [#allocation7], %s4862_s11 }
  0x44   :  { %s4876_s19 = sld [smem:[#allocation6 + $0x11]]  ;;  %544 = vmatpush1.msra.mxu0 %v449_v31  ;;  %657 = vmatpush1.msra.mxu1 %v451_v32  ;;  %v419_v51 = vld [vmem:[#allocation10 + $0x90] sm:$0xff]  ;;  %v421_v52 = vld [vmem:[#allocation10 + $0xa0] sm:$0xff]  ;;  %v414_v55 = vld [vmem:[#allocation10 + $0x68] sm:$0xff]  ;;  %s130_s26 = scalar_lea.vmem [#allocation7], %s4864_s12 }
  0x45   :  { %s4878_s20 = sld [smem:[#allocation6 + $0x12]]  ;;  %545 = vmatprep.subr.mxu0 %v444_v33  ;;  %658 = vmatprep.subr.mxu1 %v446_v34  ;;  %v76_v53 = vld [vmem:[%s75_s18] sm:$0x1]  ;;  %v416_v56 = vld [vmem:[#allocation10 + $0x78] sm:$0xff]  ;;  %s105_s18 = scalar_lea.vmem [#allocation7], %s4854_s29  ;;  %v415_v1 = vld [vmem:[#allocation10 + $0x70] sm:$0xff] }
  0x46   :  { %s4880_s3 = sld [smem:[#allocation6 + $0x13]]  ;;  %546 = vmatpush1.msra.mxu0 %v443_v35  ;;  %659 = vmatpush1.msra.mxu1 %v445_v36  ;;  %v81_v54 = vld [vmem:[%s80_s7] sm:$0x1]  ;;  %77 = vst [vmem:[#allocation2] sm:$0x1] %v76_v53  ;;  %s100_s7 = scalar_lea.vmem [#allocation7], %s4852_s28 }
  0x47   :  { %s4882_s21 = sld [smem:[#allocation6 + $0x14]]  ;;  %547 = vmatprep.subr.mxu0 %v438_v37  ;;  %660 = vmatprep.subr.mxu1 %v440_v38  ;;  %82 = vst [vmem:[#allocation2 + $0x1] sm:$0x1] %v81_v54  ;;  %v86_v57 = vld [vmem:[%s85_s6] sm:$0x1]  ;;  %v408_v2 = vld [vmem:[#allocation10 + $0x38] sm:$0xff] }
  0x48   :  { %s4884_s22 = sld [smem:[#allocation6 + $0x15]]  ;;  %548 = vmatpush1.msra.mxu0 %v437_v39  ;;  %661 = vmatpush1.msra.mxu1 %v439_v40  ;;  %v91_v58 = vld [vmem:[%s90_s5] sm:$0x1]  ;;  %87 = vst [vmem:[#allocation2 + $0x2] sm:$0x1] %v86_v57  ;;  %v410_v3 = vld [vmem:[#allocation10 + $0x48] sm:$0xff] }
  0x49   :  { %s4886_s23 = sld [smem:[#allocation6 + $0x16]]  ;;  %549 = vmatprep.subr.mxu0 %v432_v41  ;;  %662 = vmatprep.subr.mxu1 %v434_v42  ;;  %v96_v59 = vld [vmem:[%s95_s1] sm:$0x1]  ;;  %92 = vst [vmem:[#allocation2 + $0x3] sm:$0x1] %v91_v58  ;;  %v407_v4 = vld [vmem:[#allocation10 + $0x30] sm:$0xff] }
  0x4a   :  { %s4888_s24 = sld [smem:[#allocation6 + $0x17]]  ;;  %550 = vmatpush1.msra.mxu0 %v431_v43  ;;  %663 = vmatpush1.msra.mxu1 %v433_v44  ;;  %97 = vst [vmem:[#allocation2 + $0x4] sm:$0x1] %v96_v59  ;;  %v101_v60 = vld [vmem:[%s100_s7] sm:$0x1]  ;;  %v402_v6 = vld [vmem:[#allocation10 + $0x8] sm:$0xff] }
  0x4b   :  { %s4890_s17 = sld [smem:[#allocation6 + $0x18]]  ;;  %551 = vmatprep.subr.mxu0 %v426_v45  ;;  %664 = vmatprep.subr.mxu1 %v428_v46  ;;  %v106_v61 = vld [vmem:[%s105_s18] sm:$0x1]  ;;  %102 = vst [vmem:[#allocation2 + $0x5] sm:$0x1] %v101_v60  ;;  %v404_v7 = vld [vmem:[#allocation10 + $0x18] sm:$0xff] }
  0x4c   :  { %s4894_s8 = sld [smem:[#allocation6 + $0x19]]  ;;  %v111_v62 = vld [vmem:[%s110_s2] sm:$0x1]  ;;  %552 = vmatpush1.msra.mxu0 %v425_v47  ;;  %665 = vmatpush1.msra.mxu1 %v427_v48  ;;  %107 = vst [vmem:[#allocation2 + $0x6] sm:$0x1] %v106_v61  ;;  %s115_s5 = scalar_lea.vmem [#allocation7], %s4858_s9 }
  0x4d   :  { %v413_v63 = vld [vmem:[#allocation10 + $0x60] sm:$0xff]  ;;  %112 = vst [vmem:[#allocation2 + $0x7] sm:$0x1] %v111_v62  ;;  %s4902_s1 = sld [smem:[#allocation6 + $0x1a]]  ;;  %553 = vmatprep.subr.mxu0 %v420_v49  ;;  %666 = vmatprep.subr.mxu1 %v422_v50  ;;  %v403_v10 = vld [vmem:[#allocation10 + $0x10] sm:$0xff]  ;;  %s120_s6 = scalar_lea.vmem [#allocation7], %s4860_s10 }
  0x4e   :  { %v409_v5 = vld [vmem:[#allocation10 + $0x40] sm:$0xff]  ;;  %554 = vmatpush1.msra.mxu0 %v419_v51  ;;  %667 = vmatpush1.msra.mxu1 %v421_v52  ;;  %s135_s27 = scalar_lea.vmem [#allocation7], %s4866_s0  ;;  %s140_s4 = scalar_lea.vmem [#allocation7], %s4868_s13  ;;  %v496_v17 = vld [vmem:[#allocation10 + $0x2f8] sm:$0xff]  ;;  %v495_v20 = vld [vmem:[#allocation10 + $0x2f0] sm:$0xff] }
  0x4f   :  { %v116_v8 = vld [vmem:[%s115_s5] sm:$0x1]  ;;  %555 = vmatprep.subr.mxu0 %v414_v55  ;;  %668 = vmatprep.subr.mxu1 %v416_v56  ;;  %s145_s28 = scalar_lea.vmem [#allocation7], %s4870_s14  ;;  %s150_s29 = scalar_lea.vmem [#allocation7], %s4872_s15  ;;  %v1008_v19 = vld [vmem:[#allocation12 + $0x2d8] sm:$0xff]  ;;  %v1007_v21 = vld [vmem:[#allocation12 + $0x2d0] sm:$0xff] }
  0x50   :  { %v401_v9 = vld [vmem:[#allocation10] sm:$0xff]  ;;  %117 = vst [vmem:[#allocation2 + $0x8] sm:$0x1] %v116_v8  ;;  %556 = vmatpush1.msra.mxu0 %v413_v63  ;;  %669 = vmatpush1.msra.mxu1 %v415_v1  ;;  %s4912_s30 = sld [smem:[#allocation6 + $0x1b]]  ;;  %v490_v23 = vld [vmem:[#allocation10 + $0x2c8] sm:$0xff]  ;;  %s155_s11 = scalar_lea.vmem [#allocation7], %s4874_s16 }
  0x51   :  { %v121_v11 = vld [vmem:[%s120_s6] sm:$0x1]  ;;  %557 = vmatprep.subr.mxu0 %v408_v2  ;;  %670 = vmatprep.subr.mxu1 %v410_v3  ;;  %s4914_s9 = sld [smem:[#allocation6 + $0x1c]]  ;;  %v1002_v24 = vld [vmem:[#allocation12 + $0x2a8] sm:$0xff]  ;;  %s160_s12 = scalar_lea.vmem [#allocation7], %s4876_s19  ;;  %v484_v35 = vld [vmem:[#allocation10 + $0x298] sm:$0xff] }
  0x52   :  { %v126_v12 = vld [vmem:[%s125_s25] sm:$0x1]  ;;  %122 = vst [vmem:[#allocation2 + $0x9] sm:$0x1] %v121_v11  ;;  %558 = vmatpush1.msra.mxu0 %v407_v4  ;;  %671 = vmatpush1.msra.mxu1 %v409_v5  ;;  %s4918_s10 = sld [smem:[#allocation6 + $0x1d]]  ;;  %s165_s0 = scalar_lea.vmem [#allocation7], %s4878_s20 }
  0x53   :  { %v131_v13 = vld [vmem:[%s130_s26] sm:$0x1]  ;;  %127 = vst [vmem:[#allocation2 + $0xa] sm:$0x1] %v126_v12  ;;  %559 = vmatprep.subr.mxu0 %v402_v6  ;;  %672 = vmatprep.subr.mxu1 %v404_v7  ;;  %s170_s13 = scalar_lea.vmem [#allocation7], %s4880_s3  ;;  %s175_s14 = scalar_lea.vmem [#allocation7], %s4882_s21 }
  0x54   :  { %132 = vst [vmem:[#allocation2 + $0xb] sm:$0x1] %v131_v13  ;;  %v136_v14 = vld [vmem:[%s135_s27] sm:$0x1]  ;;  %560 = vmatpush1.msra.mxu0 %v401_v9  ;;  %673 = vmatpush1.msra.mxu1 %v403_v10  ;;  %s180_s15 = scalar_lea.vmem [#allocation7], %s4884_s22  ;;  %s185_s16 = scalar_lea.vmem [#allocation7], %s4886_s23 }
  0x55   :  { %v141_v15 = vld [vmem:[%s140_s4] sm:$0x1]  ;;  %137 = vst [vmem:[#allocation2 + $0xc] sm:$0x1] %v136_v14  ;;  %755 = vmatprep.subr.mxu0 %v496_v17  ;;  %1045 = vmatprep.subr.mxu1 %v1008_v19  ;;  %s190_s19 = scalar_lea.vmem [#allocation7], %s4888_s24  ;;  %s4930_s20 = sld [smem:[#allocation6 + $0x1e]] }
  0x56   :  { %v146_v16 = vld [vmem:[%s145_s28] sm:$0x1]  ;;  %142 = vst [vmem:[#allocation2 + $0xd] sm:$0x1] %v141_v15  ;;  %v996_v36 = vld [vmem:[#allocation12 + $0x278] sm:$0xff]  ;;  %v483_v37 = vld [vmem:[#allocation10 + $0x290] sm:$0xff] }
  0x57   :  { %147 = vst [vmem:[#allocation2 + $0xe] sm:$0x1] %v146_v16  ;;  %v151_v18 = vld [vmem:[%s150_s29] sm:$0x1]  ;;  %v995_v38 = vld [vmem:[#allocation12 + $0x270] sm:$0xff]  ;;  %s4932_s3 = sld [smem:[#allocation6 + $0x1f]] }
  0x58   :  { %152 = vst [vmem:[#allocation2 + $0xf] sm:$0x1] %v151_v18  ;;  %v4916_v22 = vld [vmem:[#allocation2] sm:$0xff]  ;;  %v478_v40 = vld [vmem:[#allocation10 + $0x268] sm:$0xff]  ;;  %s4938_s21 = sld [smem:[#allocation6 + $0x20]]  ;;  %s195_s22 = scalar_lea.vmem [#allocation7], %s4890_s17 }
  0x59   :  { %v156_v25 = vld [vmem:[%s155_s11] sm:$0x1]  ;;  %594 = vmatmul.mubr.f32.vlgmr.msra.gmra.mxu0 %v4916_v22  ;;  %707 = vmatmul.mubr.f32.vlgmr.msra.gmra.mxu1 %v4916_v22  ;;  %v990_v41 = vld [vmem:[#allocation12 + $0x248] sm:$0xff]  ;;  %s200_s23 = scalar_lea.vmem [#allocation7], %s4894_s8  ;;  %s205_s24 = scalar_lea.vmem [#allocation7], %s4902_s1  ;;  %v472_v51 = vld [vmem:[#allocation10 + $0x238] sm:$0xff] }
  0x5a   :  { %v161_v26 = vld [vmem:[%s160_s12] sm:$0x1]  ;;  %157 = vst [vmem:[#allocation2 + $0x10] sm:$0x1] %v156_v25  ;;  %756 = vmatpush1.msra.mxu0 %v495_v20  ;;  %1046 = vmatpush1.msra.mxu1 %v1007_v21  ;;  %s210_s7 = scalar_lea.vmem [#allocation7], %s4912_s30  ;;  %s215_s18 = scalar_lea.vmem [#allocation7], %s4914_s9 }
  0x5b   :  { %162 = vst [vmem:[#allocation2 + $0x11] sm:$0x1] %v161_v26  ;;  %v166_v27 = vld [vmem:[%s165_s0] sm:$0x1]  ;;  %757 = vmatprep.subr.mxu0 %v490_v23  ;;  %1047 = vmatprep.subr.mxu1 %v1002_v24  ;;  %s220_s2 = scalar_lea.vmem [#allocation7], %s4918_s10  ;;  %s4948_s8 = sld [smem:[#allocation6 + $0x21]] }
  0x5c   :  { %v171_v28 = vld [vmem:[%s170_s13] sm:$0x1]  ;;  %167 = vst [vmem:[#allocation2 + $0x12] sm:$0x1] %v166_v27  ;;  %599 = vmatprep.mubr.f32.mxu0 %v7236_v0  ;;  %712 = vmatprep.mubr.f32.mxu1 %v7236_v0  ;;  %s4950_s17 = sld [smem:[#allocation6 + $0x22]]  ;;  %s225_s1 = scalar_lea.vmem [#allocation7], %s4930_s20 }
  0x5d   :  { %v176_v29 = vld [vmem:[%s175_s14] sm:$0x1]  ;;  %172 = vst [vmem:[#allocation2 + $0x13] sm:$0x1] %v171_v28  ;;  %v984_v53 = vld [vmem:[#allocation12 + $0x218] sm:$0xff]  ;;  %s230_s5 = scalar_lea.vmem [#allocation7], %s4932_s3 }
  0x5e   :  { %177 = vst [vmem:[#allocation2 + $0x14] sm:$0x1] %v176_v29  ;;  %v181_v30 = vld [vmem:[%s180_s15] sm:$0x1]  ;;  %s4958_s6 = sld [smem:[#allocation6 + $0x23]]  ;;  %v471_v55 = vld [vmem:[#allocation10 + $0x230] sm:$0xff] }
  0x5f   :  { %v186_v31 = vld [vmem:[%s185_s16] sm:$0x1]  ;;  %182 = vst [vmem:[#allocation2 + $0x15] sm:$0x1] %v181_v30  ;;  %v4936_v39 = vld [vmem:[#allocation2 + $0x8] sm:$0xff]  ;;  %v983_v56 = vld [vmem:[#allocation12 + $0x210] sm:$0xff] }
  0x60   :  { %v191_v32 = vld [vmem:[%s190_s19] sm:$0x1]  ;;  %187 = vst [vmem:[#allocation2 + $0x16] sm:$0x1] %v186_v31  ;;  %600 = vmatmul.mubr.f32.gmra.mxu0 %v4936_v39  ;;  %713 = vmatmul.mubr.f32.gmra.mxu1 %v4936_v39  ;;  %s235_s25 = scalar_lea.vmem [#allocation7], %s4938_s21  ;;  %s4961_s26 = sld [smem:[#allocation6 + $0x24]] }
  0x61   :  { %v489_v33 = vld [vmem:[#allocation10 + $0x2c0] sm:$0xff]  ;;  %192 = vst [vmem:[#allocation2 + $0x17] sm:$0x1] %v191_v32  ;;  %605 = vmatprep.mubr.f32.mxu0 %v7236_v0  ;;  %718 = vmatprep.mubr.f32.mxu1 %v7236_v0  ;;  %v466_v58 = vld [vmem:[#allocation10 + $0x208] sm:$0xff]  ;;  %s4965_s27 = sld [smem:[#allocation6 + $0x25]]  ;;  %s240_s28 = scalar_lea.vmem [#allocation7], %s4948_s8 }
  0x62   :  { %v1001_v34 = vld [vmem:[#allocation12 + $0x2a0] sm:$0xff]  ;;  %758 = vmatpush1.msra.mxu0 %v489_v33  ;;  %v978_v59 = vld [vmem:[#allocation12 + $0x1e8] sm:$0xff]  ;;  %s4967_s4 = sld [smem:[#allocation6 + $0x26]]  ;;  %v460_v63 = vld [vmem:[#allocation10 + $0x1d8] sm:$0xff]  ;;  %s245_s30 = scalar_lea.vmem [#allocation7], %s4950_s17 }
  0x63   :  { %1048 = vmatpush1.msra.mxu1 %v1001_v34  ;;  %v196_v42 = vld [vmem:[%s195_s22] sm:$0x1]  ;;  %759 = vmatprep.subr.mxu0 %v484_v35  ;;  %s4970_s29 = sld [smem:[#allocation6 + $0x27]]  ;;  %v972_v1 = vld [vmem:[#allocation12 + $0x1b8] sm:$0xff]  ;;  %v459_v3 = vld [vmem:[#allocation10 + $0x1d0] sm:$0xff] }
  0x64   :  { %v201_v43 = vld [vmem:[%s200_s23] sm:$0x1]  ;;  %197 = vst [vmem:[#allocation2 + $0x18] sm:$0x1] %v196_v42  ;;  %1049 = vmatprep.subr.mxu1 %v996_v36  ;;  %760 = vmatpush1.msra.mxu0 %v483_v37  ;;  %s4973_s9 = sld [smem:[#allocation6 + $0x28]]  ;;  %v971_v4 = vld [vmem:[#allocation12 + $0x1b0] sm:$0xff] }
  0x65   :  { %v206_v44 = vld [vmem:[%s205_s24] sm:$0x1]  ;;  %202 = vst [vmem:[#allocation2 + $0x19] sm:$0x1] %v201_v43  ;;  %1050 = vmatpush1.msra.mxu1 %v995_v38  ;;  %761 = vmatprep.subr.mxu0 %v478_v40  ;;  %v454_v5 = vld [vmem:[#allocation10 + $0x1a8] sm:$0xff]  ;;  %s4977_s10 = sld [smem:[#allocation6 + $0x29]] }
  0x66   :  { %207 = vst [vmem:[#allocation2 + $0x1a] sm:$0x1] %v206_v44  ;;  %v211_v45 = vld [vmem:[%s210_s7] sm:$0x1]  ;;  %1051 = vmatprep.subr.mxu1 %v990_v41  ;;  %v966_v6 = vld [vmem:[#allocation12 + $0x188] sm:$0xff]  ;;  %s250_s11 = scalar_lea.vmem [#allocation7], %s4958_s6 }
  0x67   :  { %v216_v46 = vld [vmem:[%s215_s18] sm:$0x1]  ;;  %212 = vst [vmem:[#allocation2 + $0x1b] sm:$0x1] %v211_v45  ;;  %s4980_s12 = sld [smem:[#allocation6 + $0x2a]]  ;;  %s255_s0 = scalar_lea.vmem [#allocation7], %s4961_s26 }
  0x68   :  { %v221_v47 = vld [vmem:[%s220_s2] sm:$0x1]  ;;  %217 = vst [vmem:[#allocation2 + $0x1c] sm:$0x1] %v216_v46  ;;  %v4952_v50 = vld [vmem:[#allocation2 + $0x10] sm:$0xff]  ;;  %s4985_s13 = sld [smem:[#allocation6 + $0x2b]] }
  0x69   :  { %222 = vst [vmem:[#allocation2 + $0x1d] sm:$0x1] %v221_v47  ;;  %v477_v48 = vld [vmem:[#allocation10 + $0x260] sm:$0xff]  ;;  %606 = vmatmul.mubr.f32.gmra.mxu0 %v4952_v50  ;;  %719 = vmatmul.mubr.f32.gmra.mxu1 %v4952_v50  ;;  %s260_s14 = scalar_lea.vmem [#allocation7], %s4965_s27  ;;  %v448_v13 = vld [vmem:[#allocation10 + $0x178] sm:$0xff]  ;;  %s4990_s15 = sld [smem:[#allocation6 + $0x2c]] }
  0x6a   :  { %v989_v49 = vld [vmem:[#allocation12 + $0x240] sm:$0xff]  ;;  %762 = vmatpush1.msra.mxu0 %v477_v48  ;;  %611 = vmatprep.mubr.f32.mxu0 %v7236_v0  ;;  %v960_v14 = vld [vmem:[#allocation12 + $0x158] sm:$0xff]  ;;  %s265_s16 = scalar_lea.vmem [#allocation7], %s4967_s4  ;;  %v447_v16 = vld [vmem:[#allocation10 + $0x170] sm:$0xff]  ;;  %s4993_s19 = sld [smem:[#allocation6 + $0x2d]] }
  0x6b   :  { %v226_v52 = vld [vmem:[%s225_s1] sm:$0x1]  ;;  %1052 = vmatpush1.msra.mxu1 %v989_v49  ;;  %763 = vmatprep.subr.mxu0 %v472_v51  ;;  %v959_v17 = vld [vmem:[#allocation12 + $0x150] sm:$0xff]  ;;  %s270_s20 = scalar_lea.vmem [#allocation7], %s4970_s29  ;;  %v442_v19 = vld [vmem:[#allocation10 + $0x148] sm:$0xff]  ;;  %s4996_s3 = sld [smem:[#allocation6 + $0x2e]] }
  0x6c   :  { %227 = vst [vmem:[#allocation2 + $0x1e] sm:$0x1] %v226_v52  ;;  %v231_v54 = vld [vmem:[%s230_s5] sm:$0x1]  ;;  %1053 = vmatprep.subr.mxu1 %v984_v53  ;;  %764 = vmatpush1.msra.mxu0 %v471_v55  ;;  %v954_v20 = vld [vmem:[#allocation12 + $0x128] sm:$0xff]  ;;  %s275_s21 = scalar_lea.vmem [#allocation7], %s4973_s9 }
  0x6d   :  { %232 = vst [vmem:[#allocation2 + $0x1f] sm:$0x1] %v231_v54  ;;  %v236_v57 = vld [vmem:[%s235_s25] sm:$0x1]  ;;  %1054 = vmatpush1.msra.mxu1 %v983_v56  ;;  %765 = vmatprep.subr.mxu0 %v466_v58  ;;  %s5001_s22 = sld [smem:[#allocation6 + $0x2f]]  ;;  %s280_s23 = scalar_lea.vmem [#allocation7], %s4977_s10 }
  0x6e   :  { %237 = vst [vmem:[#allocation2 + $0x20] sm:$0x1] %v236_v57  ;;  %v465_v60 = vld [vmem:[#allocation10 + $0x200] sm:$0xff]  ;;  %1055 = vmatprep.subr.mxu1 %v978_v59  ;;  %724 = vmatprep.mubr.f32.mxu1 %v7236_v0  ;;  %v436_v26 = vld [vmem:[#allocation10 + $0x118] sm:$0xff]  ;;  %s5004_s24 = sld [smem:[#allocation6 + $0x30]]  ;;  %s285_s7 = scalar_lea.vmem [#allocation7], %s4980_s12 }
  0x6f   :  { %v977_v61 = vld [vmem:[#allocation12 + $0x1e0] sm:$0xff]  ;;  %766 = vmatpush1.msra.mxu0 %v465_v60  ;;  %v948_v28 = vld [vmem:[#allocation12 + $0xf8] sm:$0xff]  ;;  %s5007_s18 = sld [smem:[#allocation6 + $0x31]]  ;;  %s290_s2 = scalar_lea.vmem [#allocation7], %s4985_s13  ;;  %v435_v30 = vld [vmem:[#allocation10 + $0x110] sm:$0xff] }
  0x70   :  { %v241_v62 = vld [vmem:[%s240_s28] sm:$0x1]  ;;  %1056 = vmatpush1.msra.mxu1 %v977_v61  ;;  %767 = vmatprep.subr.mxu0 %v460_v63  ;;  %s5010_s8 = sld [smem:[#allocation6 + $0x32]]  ;;  %s295_s17 = scalar_lea.vmem [#allocation7], %s4990_s15  ;;  %v947_v32 = vld [vmem:[#allocation12 + $0xf0] sm:$0xff]  ;;  %v430_v34 = vld [vmem:[#allocation10 + $0xe8] sm:$0xff] }
  0x71   :  { %242 = vst [vmem:[#allocation2 + $0x21] sm:$0x1] %v241_v62  ;;  %v246_v2 = vld [vmem:[%s245_s30] sm:$0x1]  ;;  %1057 = vmatprep.subr.mxu1 %v972_v1  ;;  %768 = vmatpush1.msra.mxu0 %v459_v3  ;;  %s5013_s1 = sld [smem:[#allocation6 + $0x33]]  ;;  %s300_s5 = scalar_lea.vmem [#allocation7], %s4993_s19 }
  0x72   :  { %247 = vst [vmem:[#allocation2 + $0x22] sm:$0x1] %v246_v2  ;;  %v251_v7 = vld [vmem:[%s250_s11] sm:$0x1]  ;;  %1058 = vmatpush1.msra.mxu1 %v971_v4  ;;  %769 = vmatprep.subr.mxu0 %v454_v5  ;;  %v942_v35 = vld [vmem:[#allocation12 + $0xc8] sm:$0xff]  ;;  %s5016_s6 = sld [smem:[#allocation6 + $0x34]] }
  0x73   :  { %v453_v9 = vld [vmem:[#allocation10 + $0x1a0] sm:$0xff]  ;;  %252 = vst [vmem:[#allocation2 + $0x23] sm:$0x1] %v251_v7  ;;  %1059 = vmatprep.subr.mxu1 %v966_v6  ;;  %s305_s25 = scalar_lea.vmem [#allocation7], %s4996_s3  ;;  %s5019_s26 = sld [smem:[#allocation6 + $0x35]]  ;;  %v424_v42 = vld [vmem:[#allocation10 + $0xb8] sm:$0xff] }
  0x74   :  { %v4982_v8 = vld [vmem:[#allocation2 + $0x18] sm:$0xff]  ;;  %v965_v10 = vld [vmem:[#allocation12 + $0x180] sm:$0xff]  ;;  %770 = vmatpush1.msra.mxu0 %v453_v9  ;;  %s310_s27 = scalar_lea.vmem [#allocation7], %s5001_s22  ;;  %s5024_s4 = sld [smem:[#allocation6 + $0x36]]  ;;  %v423_v45 = vld [vmem:[#allocation10 + $0xb0] sm:$0xff] }
  0x75   :  { %v256_v11 = vld [vmem:[%s255_s0] sm:$0x1]  ;;  %612 = vmatmul.mubr.f32.gmra.mxu0 %v4982_v8  ;;  %725 = vmatmul.mubr.f32.gmra.mxu1 %v4982_v8  ;;  %v5026_v43 = vld [vmem:[#allocation12 + $0x98] sm:$0xff]  ;;  %s315_s28 = scalar_lea.vmem [#allocation7], %s5004_s24  ;;  %s5031_s29 = sld [smem:[#allocation6 + $0x37]]  ;;  %v5033_v46 = vld [vmem:[#allocation12 + $0x90] sm:$0xff] }
  0x76   :  { %257 = vst [vmem:[#allocation2 + $0x24] sm:$0x1] %v256_v11  ;;  %v261_v12 = vld [vmem:[%s260_s14] sm:$0x1]  ;;  %617 = vmatprep.mubr.f32.mxu0 %v7236_v0  ;;  %730 = vmatprep.mubr.f32.mxu1 %v7236_v0  ;;  %s320_s30 = scalar_lea.vmem [#allocation7], %s5007_s18  ;;  %v418_v48 = vld [vmem:[#allocation10 + $0x88] sm:$0xff] }
  0x77   :  { %262 = vst [vmem:[#allocation2 + $0x25] sm:$0x1] %v261_v12  ;;  %v266_v15 = vld [vmem:[%s265_s16] sm:$0x1]  ;;  %1060 = vmatpush1.msra.mxu1 %v965_v10  ;;  %771 = vmatprep.subr.mxu0 %v448_v13  ;;  %s5038_s9 = sld [smem:[#allocation6 + $0x38]]  ;;  %s325_s10 = scalar_lea.vmem [#allocation7], %s5010_s8 }
  0x78   :  { %267 = vst [vmem:[#allocation2 + $0x26] sm:$0x1] %v266_v15  ;;  %v271_v18 = vld [vmem:[%s270_s20] sm:$0x1]  ;;  %1061 = vmatprep.subr.mxu1 %v960_v14  ;;  %772 = vmatpush1.msra.mxu0 %v447_v16  ;;  %v5041_v51 = vld [vmem:[#allocation12 + $0x68] sm:$0xff]  ;;  %s5043_s11 = sld [smem:[#allocation6 + $0x39]] }
  0x79   :  { %272 = vst [vmem:[#allocation2 + $0x27] sm:$0x1] %v271_v18  ;;  %v441_v21 = vld [vmem:[#allocation10 + $0x140] sm:$0xff]  ;;  %1062 = vmatpush1.msra.mxu1 %v959_v17  ;;  %773 = vmatprep.subr.mxu0 %v442_v19  ;;  %s330_s12 = scalar_lea.vmem [#allocation7], %s5013_s1  ;;  %s5046_s0 = sld [smem:[#allocation6 + $0x3a]]  ;;  %v412_v57 = vld [vmem:[#allocation10 + $0x58] sm:$0xff] }
  0x7a   :  { %v953_v23 = vld [vmem:[#allocation12 + $0x120] sm:$0xff]  ;;  %1063 = vmatprep.subr.mxu1 %v954_v20  ;;  %774 = vmatpush1.msra.mxu0 %v441_v21  ;;  %s335_s13 = scalar_lea.vmem [#allocation7], %s5016_s6  ;;  %s5052_s14 = sld [smem:[#allocation6 + $0x3b]]  ;;  %v5058_v58 = vld [vmem:[#allocation12 + $0x38] sm:$0xff]  ;;  %v411_v60 = vld [vmem:[#allocation10 + $0x50] sm:$0xff]  ;;  %v7233_v17 = vmov 0  }
  0x7b   :  { %v276_v24 = vld [vmem:[%s275_s21] sm:$0x1]  ;;  %1064 = vmatpush1.msra.mxu1 %v953_v23  ;;  %775 = vmatprep.subr.mxu0 %v436_v26  ;;  %s340_s15 = scalar_lea.vmem [#allocation7], %s5019_s26  ;;  %s5056_s16 = sld [smem:[#allocation6 + $0x3c]]  ;;  %v5075_v1 = vld [vmem:[#allocation12 + $0x30] sm:$0xff]  ;;  %v406_v3 = vld [vmem:[#allocation10 + $0x28] sm:$0xff] }
  0x7c   :  { %277 = vst [vmem:[#allocation2 + $0x28] sm:$0x1] %v276_v24  ;;  %v281_v25 = vld [vmem:[%s280_s23] sm:$0x1]  ;;  %1065 = vmatprep.subr.mxu1 %v948_v28  ;;  %776 = vmatpush1.msra.mxu0 %v435_v30  ;;  %s345_s19 = scalar_lea.vmem [#allocation7], %s5024_s4  ;;  %s5062_s20 = sld [smem:[#allocation6 + $0x3d]] }
  0x7d   :  { %282 = vst [vmem:[#allocation2 + $0x29] sm:$0x1] %v281_v25  ;;  %v286_v27 = vld [vmem:[%s285_s7] sm:$0x1]  ;;  %1066 = vmatpush1.msra.mxu1 %v947_v32  ;;  %777 = vmatprep.subr.mxu0 %v430_v34  ;;  %s350_s3 = scalar_lea.vmem [#allocation7], %s5031_s29  ;;  %s5068_s21 = sld [smem:[#allocation6 + $0x3e]] }
  0x7e   :  { %287 = vst [vmem:[#allocation2 + $0x2a] sm:$0x1] %v286_v27  ;;  %v291_v29 = vld [vmem:[%s290_s2] sm:$0x1]  ;;  %1067 = vmatprep.subr.mxu1 %v942_v35  ;;  %s355_s22 = scalar_lea.vmem [#allocation7], %s5038_s9  ;;  %s5073_s23 = sld [smem:[#allocation6 + $0x3f]]  ;;  %4488 = vset.pattern.permute.xlu0 %v7233_v17 }
  0x7f   :  { %292 = vst [vmem:[#allocation2 + $0x2b] sm:$0x1] %v291_v29  ;;  %v296_v31 = vld [vmem:[%s295_s17] sm:$0x1]  ;;  %s360_s24 = scalar_lea.vmem [#allocation7], %s5043_s11  ;;  %v5080_v4 = vld [vmem:[#allocation12 + $0x8] sm:$0xff]  ;;  %4489 = vset.pattern.permute.xlu1 %v7233_v17 }
  0x80   :  { %297 = vst [vmem:[#allocation2 + $0x2c] sm:$0x1] %v296_v31  ;;  %v301_v33 = vld [vmem:[%s300_s5] sm:$0x1]  ;;  %s365_s7 = scalar_lea.vmem [#allocation7], %s5046_s0  ;;  %s370_s18 = scalar_lea.vmem [#allocation7], %s5052_s14 }
  0x81   :  { %302 = vst [vmem:[#allocation2 + $0x2d] sm:$0x1] %v301_v33  ;;  %v306_v36 = vld [vmem:[%s305_s25] sm:$0x1]  ;;  %v5088_v10 = vld [vmem:[#allocation12 + $0x2e8] sm:$0xff]  ;;  %v5090_v11 = vld [vmem:[#allocation12 + $0x2f8] sm:$0xff] }
  0x82   :  { %v429_v37 = vld [vmem:[#allocation10 + $0xe0] sm:$0xff]  ;;  %307 = vst [vmem:[#allocation2 + $0x2e] sm:$0x1] %v306_v36  ;;  %s375_s2 = scalar_lea.vmem [#allocation7], %s5056_s16  ;;  %s380_s8 = scalar_lea.vmem [#allocation7], %s5062_s20  ;;  %v5116_v20 = vld [vmem:[#allocation12 + $0x2f0] sm:$0xff] }
  0x83   :  { %v941_v38 = vld [vmem:[#allocation12 + $0xc0] sm:$0xff]  ;;  %778 = vmatpush1.msra.mxu0 %v429_v37  ;;  %s385_s17 = scalar_lea.vmem [#allocation7], %s5068_s21  ;;  %v5118_v21 = vld [vmem:[#allocation12 + $0x2b8] sm:$0xff]  ;;  %v5120_v23 = vld [vmem:[#allocation12 + $0x2c8] sm:$0xff]  ;;  %s7393_s25 = sld [smem:[#allocation87_spill]] }
  0x84   :  { %v5021_v40 = vld [vmem:[#allocation2 + $0x20] sm:$0xff]  ;;  %1068 = vmatpush1.msra.mxu1 %v941_v38  ;;  %779 = vmatprep.subr.mxu0 %v424_v42  ;;  %s390_s1 = scalar_lea.vmem [#allocation7], %s5073_s23  ;;  %v5124_v24 = vld [vmem:[#allocation12 + $0x2b0] sm:$0xff]  ;;  %v5132_v26 = vld [vmem:[#allocation12 + $0x288] sm:$0xff]  ;;  %s7403_s4 = sld [smem:[#allocation88_spill]] }
  0x85   :  { %v311_v41 = vld [vmem:[%s310_s27] sm:$0x1]  ;;  %618 = vmatmul.mubr.f32.gmra.mxu0 %v5021_v40  ;;  %731 = vmatmul.mubr.f32.gmra.mxu1 %v5021_v40  ;;  %v5134_v27 = vld [vmem:[#allocation12 + $0x298] sm:$0xff]  ;;  %v5140_v28 = vld [vmem:[#allocation12 + $0x290] sm:$0xff]  ;;  %s4778_s23 = smov [#allocation14]  }
  0x86   :  { %312 = vst [vmem:[#allocation2 + $0x2f] sm:$0x1] %v311_v41  ;;  %v316_v44 = vld [vmem:[%s315_s28] sm:$0x1]  ;;  %623 = vmatprep.mubr.f32.mxu0 %v7236_v0  ;;  %736 = vmatprep.mubr.f32.mxu1 %v7236_v0  ;;  %v5144_v29 = vld [vmem:[#allocation12 + $0x258] sm:$0xff]  ;;  %v5146_v30 = vld [vmem:[#allocation12 + $0x268] sm:$0xff] }
  0x87   :  { %317 = vst [vmem:[#allocation2 + $0x30] sm:$0x1] %v316_v44  ;;  %v321_v47 = vld [vmem:[%s320_s30] sm:$0x1]  ;;  %1069 = vmatprep.subr.mxu1 %v5026_v43  ;;  %780 = vmatpush1.msra.mxu0 %v423_v45  ;;  %v5150_v31 = vld [vmem:[#allocation12 + $0x250] sm:$0xff]  ;;  %v5160_v33 = vld [vmem:[#allocation12 + $0x238] sm:$0xff] }
  0x88   :  { %322 = vst [vmem:[#allocation2 + $0x31] sm:$0x1] %v321_v47  ;;  %v326_v49 = vld [vmem:[%s325_s10] sm:$0x1]  ;;  %1070 = vmatpush1.msra.mxu1 %v5033_v46  ;;  %781 = vmatprep.subr.mxu0 %v418_v48  ;;  %v5166_v35 = vld [vmem:[#allocation12 + $0x230] sm:$0xff]  ;;  %v5170_v36 = vld [vmem:[#allocation12 + $0x1f8] sm:$0xff] }
  0x89   :  { %327 = vst [vmem:[#allocation2 + $0x32] sm:$0x1] %v326_v49  ;;  %v331_v52 = vld [vmem:[%s330_s12] sm:$0x1]  ;;  %1071 = vmatprep.subr.mxu1 %v5041_v51  ;;  %v5172_v37 = vld [vmem:[#allocation12 + $0x208] sm:$0xff]  ;;  %v5176_v38 = vld [vmem:[#allocation12 + $0x1f0] sm:$0xff] }
  0x8a   :  { %v417_v53 = vld [vmem:[#allocation10 + $0x80] sm:$0xff]  ;;  %332 = vst [vmem:[#allocation2 + $0x33] sm:$0x1] %v331_v52  ;;  %v5186_v42 = vld [vmem:[#allocation12 + $0x1d8] sm:$0xff]  ;;  %v5192_v45 = vld [vmem:[#allocation12 + $0x1d0] sm:$0xff]  ;;  %s7431_s30 = sld [smem:[#allocation89_spill]] }
  0x8b   :  { %v336_v54 = vld [vmem:[%s335_s13] sm:$0x1]  ;;  %782 = vmatpush1.msra.mxu0 %v417_v53  ;;  %v5196_v47 = vld [vmem:[#allocation12 + $0x198] sm:$0xff]  ;;  %v5198_v48 = vld [vmem:[#allocation12 + $0x1a8] sm:$0xff] }
  0x8c   :  { %v5050_v55 = vld [vmem:[#allocation12 + $0x60] sm:$0xff]  ;;  %337 = vst [vmem:[#allocation2 + $0x34] sm:$0x1] %v336_v54  ;;  %783 = vmatprep.subr.mxu0 %v412_v57  ;;  %v5202_v49 = vld [vmem:[#allocation12 + $0x190] sm:$0xff]  ;;  %v5212_v53 = vld [vmem:[#allocation12 + $0x178] sm:$0xff] }
  0x8d   :  { %v341_v56 = vld [vmem:[%s340_s15] sm:$0x1]  ;;  %v5064_v61 = vld [vmem:[#allocation2 + $0x28] sm:$0xff]  ;;  %1072 = vmatpush1.msra.mxu1 %v5050_v55  ;;  %784 = vmatpush1.msra.mxu0 %v411_v60  ;;  %v5222_v57 = vld [vmem:[#allocation12 + $0x138] sm:$0xff] }
  0x8e   :  { %342 = vst [vmem:[#allocation2 + $0x35] sm:$0x1] %v341_v56  ;;  %v346_v59 = vld [vmem:[%s345_s19] sm:$0x1]  ;;  %624 = vmatmul.mubr.f32.gmra.mxu0 %v5064_v61  ;;  %737 = vmatmul.mubr.f32.gmra.mxu1 %v5064_v61  ;;  %v5218_v56 = vld [vmem:[#allocation12 + $0x170] sm:$0xff]  ;;  %v5274_v17 = vld [vmem:[#allocation12 + $0x78] sm:$0xff] }
  0x8f   :  { %347 = vst [vmem:[#allocation2 + $0x36] sm:$0x1] %v346_v59  ;;  %v351_v62 = vld [vmem:[%s350_s3] sm:$0x1]  ;;  %629 = vmatprep.mubr.f32.mxu0 %v7236_v0  ;;  %742 = vmatprep.mubr.f32.mxu1 %v7236_v0  ;;  %7379 = vst [vmem:[#allocation21_spill] sm:$0xff] %v5218_v56  ;;  %v5224_v59 = vld [vmem:[#allocation12 + $0x148] sm:$0xff] }
  0x90   :  { %352 = vst [vmem:[#allocation2 + $0x37] sm:$0x1] %v351_v62  ;;  %v356_v63 = vld [vmem:[%s355_s22] sm:$0x1]  ;;  %1073 = vmatprep.subr.mxu1 %v5058_v58  ;;  %785 = vmatprep.subr.mxu0 %v406_v3  ;;  %7380 = vst [vmem:[#allocation22_spill] sm:$0xff] %v5224_v59  ;;  %v5228_v60 = vld [vmem:[#allocation12 + $0x130] sm:$0xff] }
  0x91   :  { %357 = vst [vmem:[#allocation2 + $0x38] sm:$0x1] %v356_v63  ;;  %v361_v2 = vld [vmem:[%s360_s24] sm:$0x1]  ;;  %1074 = vmatpush1.msra.mxu1 %v5075_v1  ;;  %v5238_v63 = vld [vmem:[#allocation12 + $0x118] sm:$0xff]  ;;  %v5244_v3 = vld [vmem:[#allocation12 + $0x110] sm:$0xff] }
  0x92   :  { %362 = vst [vmem:[#allocation2 + $0x39] sm:$0x1] %v361_v2  ;;  %v366_v5 = vld [vmem:[%s365_s7] sm:$0x1]  ;;  %1075 = vmatprep.subr.mxu1 %v5080_v4  ;;  %7382 = vst [vmem:[#allocation24_spill] sm:$0xff] %v5238_v63  ;;  %s4262_s24 = sshll.u32 %s4778_s23, 4  ;;  %s4263_s24 = int_to_ptr.vmem [resolvable:$true] %s4262_s24 }
  0x93   :  { %v405_v6 = vld [vmem:[#allocation10 + $0x20] sm:$0xff]  ;;  %367 = vst [vmem:[#allocation2 + $0x3a] sm:$0x1] %v366_v5  ;;  %7383 = vst [vmem:[#allocation25_spill] sm:$0xff] %v5244_v3  ;;  %v5248_v5 = vld [vmem:[#allocation12 + $0xd8] sm:$0xff]  ;;  %s4779_s7 = smov [#allocation13]   ;;  %p4723_p2 = scmp.lt.s32.totalorder %s4263_s24, %s4263_s24 }
  0x94   :  { %v5084_v7 = vld [vmem:[#allocation12] sm:$0xff]  ;;  %786 = vmatpush1.msra.mxu0 %v405_v6  ;;  %v5250_v6 = vld [vmem:[#allocation12 + $0xe8] sm:$0xff] }
  0x95   :  { %v371_v9 = vld [vmem:[%s370_s18] sm:$0x1]  ;;  %1076 = vmatpush1.msra.mxu1 %v5084_v7  ;;  %1120 = vmatprep.subr.mxu0 %v5088_v10  ;;  %7384 = vst [vmem:[#allocation26_spill] sm:$0xff] %v5250_v6  ;;  %s4250_s18 = sshll.u32 %s4779_s7, 4  ;;  %s4251_s18 = int_to_ptr.vmem [resolvable:$true] %s4250_s18 }
  0x96   :  { %372 = vst [vmem:[#allocation2 + $0x3b] sm:$0x1] %v371_v9  ;;  %v376_v12 = vld [vmem:[%s375_s2] sm:$0x1]  ;;  %1195 = vmatprep.subr.mxu1 %v5090_v11  ;;  %v5254_v9 = vld [vmem:[#allocation12 + $0xd0] sm:$0xff]  ;;  %s4718_s2 = scalar_lea.vmem %s4263_s24, 256 }
  0x97   :  { %377 = vst [vmem:[#allocation2 + $0x3c] sm:$0x1] %v376_v12  ;;  %v381_v13 = vld [vmem:[%s380_s8] sm:$0x1]  ;;  %v5099_v15 = vld [vmem:[#allocation2 + $0x30] sm:$0xff]  ;;  %p4719_p1 = scmp.ne.s32.totalorder %s4263_s24, %s4718_s2  ;;  %p4724_p3 = scmp.lt.s32.totalorder %s4718_s2, %s4718_s2 }
  0x98   :  { %382 = vst [vmem:[#allocation2 + $0x3d] sm:$0x1] %v381_v13  ;;  %v386_v14 = vld [vmem:[%s385_s17] sm:$0x1]  ;;  %630 = vmatmul.mubr.f32.gmra.mxu0 %v5099_v15  ;;  %743 = vmatmul.mubr.f32.gmra.mxu1 %v5099_v15  ;;  %v5264_v13 = vld [vmem:[#allocation12 + $0xb8] sm:$0xff] }
  0x99   :  { %387 = vst [vmem:[#allocation2 + $0x3e] sm:$0x1] %v386_v14  ;;  %v391_v16 = vld [vmem:[%s390_s1] sm:$0x1]  ;;  %635 = vmatprep.mubr.f32.mxu0 %v7236_v0  ;;  %748 = vmatprep.mubr.f32.mxu1 %v7236_v0  ;;  %7386 = vst [vmem:[#allocation28_spill] sm:$0xff] %v5264_v13  ;;  %p4725_p4 = por %p4724_p3, %p4723_p2 }
  0x9a   :  { %392 = vst [vmem:[#allocation2 + $0x3f] sm:$0x1] %v391_v16  ;;  %v5114_v19 = vld [vmem:[#allocation12 + $0x2e0] sm:$0xff]  ;;  %v5270_v16 = vld [vmem:[#allocation12 + $0xb0] sm:$0xff] }
  0x9b   :  { %v5128_v25 = vld [vmem:[#allocation12 + $0x2c0] sm:$0xff]  ;;  %7387 = vst [vmem:[#allocation29_spill] sm:$0xff] %v5270_v16  ;;  %p4726_p5 = pnand %p4725_p4, %p4719_p1 }
  0x9c   :  { %v5154_v32 = vld [vmem:[#allocation12 + $0x260] sm:$0xff] }
  0x9d   :  { %v5164_v34 = vld [vmem:[#allocation12 + $0x220] sm:$0xff] }
  0x9e   :  { %v5180_v41 = vld [vmem:[#allocation12 + $0x200] sm:$0xff] }
  0x9f   :  { %v5190_v44 = vld [vmem:[#allocation12 + $0x1c0] sm:$0xff] }
  0xa0   :  { %v5206_v52 = vld [vmem:[#allocation12 + $0x1a0] sm:$0xff] }
  0xa1   :  { %v5108_v18 = vld [vmem:[#allocation2 + $0x38] sm:$0xff]  ;;  %v5216_v54 = vld [vmem:[#allocation12 + $0x160] sm:$0xff] }
  0xa2   :  { %636 = vmatmul.mubr.f32.gmra.mxu0 %v5108_v18  ;;  %749 = vmatmul.mubr.f32.gmra.mxu1 %v5108_v18  ;;  %v5232_v62 = vld [vmem:[#allocation12 + $0x140] sm:$0xff] }
  0xa3   :  { %819 = vmatprep.mubr.f32.mxu0 %v7236_v0  ;;  %1109 = vmatprep.mubr.f32.mxu1 %v7236_v0  ;;  %7381 = vst [vmem:[#allocation23_spill] sm:$0xff] %v5232_v62  ;;  %v5242_v2 = vld [vmem:[#allocation12 + $0x100] sm:$0xff] }
  0xa4   :  { %v5258_v12 = vld [vmem:[#allocation12 + $0xe0] sm:$0xff] }
  0xa5   :  { %7385 = vst [vmem:[#allocation27_spill] sm:$0xff] %v5258_v12  ;;  %v5268_v14 = vld [vmem:[#allocation12 + $0xa0] sm:$0xff] }
  0xa6   :  { %820 = vmatmul.mubr.f32.vlgmr.msra.gmra.mxu0 %v4916_v22  ;;  %1110 = vmatmul.mubr.f32.vlgmr.msra.gmra.mxu1 %v7236_v0  ;;  %v5138_v22 = vld [vmem:[#allocation12 + $0x280] sm:$0xff] }
  0xa7   :  { %1121 = vmatpush1.msra.mxu0 %v5114_v19  ;;  %1196 = vmatpush1.msra.mxu1 %v5116_v20 }
  0xa8   :  { %1122 = vmatprep.subr.mxu0 %v5118_v21  ;;  %1197 = vmatprep.subr.mxu1 %v5120_v23 }
  0xa9   :  { %825 = vmatprep.mubr.f32.mxu0 %v7236_v0  ;;  %1123 = vmatpush1.msra.mxu0 %v5124_v24 }
  0xaa   :  { %1198 = vmatpush1.msra.mxu1 %v5128_v25  ;;  %826 = vmatmul.mubr.f32.gmra.mxu0 %v4936_v39  ;;  %v5158_v39 = vld [vmem:[#allocation12 + $0x228] sm:$0xff] }
  0xab   :  { %1124 = vmatprep.subr.mxu0 %v5132_v26  ;;  %1199 = vmatprep.subr.mxu1 %v5134_v27 }
  0xac   :  { %1125 = vmatpush1.msra.mxu0 %v5138_v22  ;;  %1200 = vmatpush1.msra.mxu1 %v5140_v28 }
  0xad   :  { %1126 = vmatprep.subr.mxu0 %v5144_v29  ;;  %1201 = vmatprep.subr.mxu1 %v5146_v30 }
  0xae   :  { %831 = vmatprep.mubr.f32.mxu0 %v7236_v0  ;;  %1127 = vmatpush1.msra.mxu0 %v5150_v31 }
  0xaf   :  { %1202 = vmatpush1.msra.mxu1 %v5154_v32  ;;  %832 = vmatmul.mubr.f32.gmra.mxu0 %v4952_v50  ;;  %v5184_v50 = vld [vmem:[#allocation12 + $0x1c8] sm:$0xff] }
  0xb0   :  { %1128 = vmatprep.subr.mxu0 %v5158_v39  ;;  %1203 = vmatprep.subr.mxu1 %v5160_v33 }
  0xb1   :  { %1129 = vmatpush1.msra.mxu0 %v5164_v34  ;;  %1204 = vmatpush1.msra.mxu1 %v5166_v35 }
  0xb2   :  { %1130 = vmatprep.subr.mxu0 %v5170_v36  ;;  %1205 = vmatprep.subr.mxu1 %v5172_v37 }
  0xb3   :  { %837 = vmatprep.mubr.f32.mxu0 %v7236_v0  ;;  %1131 = vmatpush1.msra.mxu0 %v5176_v38 }
  0xb4   :  { %1206 = vmatpush1.msra.mxu1 %v5180_v41  ;;  %838 = vmatmul.mubr.f32.gmra.mxu0 %v4982_v8  ;;  %v5210_v8 = vld [vmem:[#allocation12 + $0x168] sm:$0xff] }
  0xb5   :  { %1132 = vmatprep.subr.mxu0 %v5184_v50  ;;  %1207 = vmatprep.subr.mxu1 %v5186_v42 }
  0xb6   :  { %1133 = vmatpush1.msra.mxu0 %v5190_v44  ;;  %1208 = vmatpush1.msra.mxu1 %v5192_v45 }
  0xb7   :  { %1134 = vmatprep.subr.mxu0 %v5196_v47  ;;  %1209 = vmatprep.subr.mxu1 %v5198_v48 }
  0xb8   :  { %843 = vmatprep.mubr.f32.mxu0 %v7236_v0  ;;  %1135 = vmatpush1.msra.mxu0 %v5202_v49 }
  0xb9   :  { %1210 = vmatpush1.msra.mxu1 %v5206_v52  ;;  %844 = vmatmul.mubr.f32.gmra.mxu0 %v5021_v40  ;;  %v5236_v40 = vld [vmem:[#allocation12 + $0x108] sm:$0xff] }
  0xba   :  { %1136 = vmatprep.subr.mxu0 %v5210_v8  ;;  %1211 = vmatprep.subr.mxu1 %v5212_v53 }
  0xbb   :  { %1137 = vmatpush1.msra.mxu0 %v5216_v54  ;;  %1212 = vmatpush1.msra.mxu1 %v5218_v56  ;;  %v5315_v56 = vld [vmem:[#allocation12 + $0x20] sm:$0xff] }
  0xbc   :  { %1138 = vmatprep.subr.mxu0 %v5222_v57  ;;  %1213 = vmatprep.subr.mxu1 %v5224_v59  ;;  %v5309_v59 = vld [vmem:[#allocation12 + $0x28] sm:$0xff]  ;;  %7395 = vst [vmem:[#allocation35_spill] sm:$0xff] %v5315_v56 }
  0xbd   :  { %849 = vmatprep.mubr.f32.mxu0 %v7236_v0  ;;  %1139 = vmatpush1.msra.mxu0 %v5228_v60  ;;  %7394 = vst [vmem:[#allocation34_spill] sm:$0xff] %v5309_v59 }
  0xbe   :  { %1214 = vmatpush1.msra.mxu1 %v5232_v62  ;;  %850 = vmatmul.mubr.f32.gmra.mxu0 %v5064_v61  ;;  %v5262_v61 = vld [vmem:[#allocation12 + $0xa8] sm:$0xff]  ;;  %v5307_v62 = vld [vmem:[#allocation12 + $0x18] sm:$0xff] }
  0xbf   :  { %1140 = vmatprep.subr.mxu0 %v5236_v40  ;;  %1215 = vmatprep.subr.mxu1 %v5238_v63  ;;  %v5292_v63 = vld [vmem:[#allocation12 + $0x58] sm:$0xff] }
  0xc0   :  { %1141 = vmatpush1.msra.mxu0 %v5242_v2  ;;  %1216 = vmatpush1.msra.mxu1 %v5244_v3  ;;  %v5276_v3 = vld [vmem:[#allocation12 + $0x88] sm:$0xff]  ;;  %7391 = vst [vmem:[#allocation32_spill] sm:$0xff] %v5292_v63 }
  0xc1   :  { %1142 = vmatprep.subr.mxu0 %v5248_v5  ;;  %1217 = vmatprep.subr.mxu1 %v5250_v6  ;;  %7388 = vst [vmem:[#allocation30_spill] sm:$0xff] %v5276_v3  ;;  %v5284_v6 = vld [vmem:[#allocation12 + $0x80] sm:$0xff] }
  0xc2   :  { %855 = vmatprep.mubr.f32.mxu0 %v7236_v0  ;;  %1143 = vmatpush1.msra.mxu0 %v5254_v9  ;;  %v5282_v0 = vld [vmem:[#allocation12 + $0x70] sm:$0xff]  ;;  %7389 = vst [vmem:[#allocation31_spill] sm:$0xff] %v5284_v6 }
  0xc3   :  { %1218 = vmatpush1.msra.mxu1 %v5258_v12  ;;  %856 = vmatmul.mubr.f32.gmra.mxu0 %v5099_v15  ;;  %v7390_v15 = vmov 0.0   ;;  %v5290_v12 = vld [vmem:[#allocation12 + $0x48] sm:$0xff] }
  0xc4   :  { %1144 = vmatprep.subr.mxu0 %v5262_v61  ;;  %1219 = vmatprep.subr.mxu1 %v5264_v13  ;;  %v5298_v13 = vld [vmem:[#allocation12 + $0x50] sm:$0xff] }
  0xc5   :  { %1145 = vmatpush1.msra.mxu0 %v5268_v14  ;;  %1220 = vmatpush1.msra.mxu1 %v5270_v16  ;;  %v5296_v16 = vld [vmem:[#allocation12 + $0x40] sm:$0xff]  ;;  %7392 = vst [vmem:[#allocation33_spill] sm:$0xff] %v5298_v13 }
  0xc6   :  { %1146 = vmatprep.subr.mxu0 %v5274_v17  ;;  %1221 = vmatprep.subr.mxu1 %v5276_v3  ;;  %v5303_v3 = vld [vmem:[%s7393_s25] sm:$0xff] }
  0xc7   :  { %861 = vmatprep.mubr.f32.mxu0 %v7390_v15  ;;  %1115 = vmatprep.mubr.f32.mxu1 %v7390_v15  ;;  %vm1270_vm0 = vcmp.gt.s32.totalorder %v5303_v3, 0  ;;  %vm1301_vm1 = vcmp.gt.s32.totalorder %v5303_v3, 7  ;;  %vm2109_vm2 = vcmp.gt.s32.totalorder %v5303_v3, 2  ;;  %vm2530_vm3 = vcmp.gt.s32.totalorder %v5303_v3, 3 }
  0xc8   :  { %1147 = vmatpush1.msra.mxu0 %v5282_v0  ;;  %1222 = vmatpush1.msra.mxu1 %v5284_v6  ;;  %v919_v6 = vld [vmem:[#allocation12 + $0x10] sm:$0xff]  ;;  %vm1688_vm4 = vcmp.gt.s32.totalorder %v5303_v3, 1  ;;  %vm1720_vm5 = vcmp.gt.s32.totalorder %v5303_v3, 6  ;;  %vm2141_vm6 = vcmp.gt.s32.totalorder %v5303_v3, 5  ;;  %vm2562_vm7 = vcmp.gt.s32.totalorder %v5303_v3, 4 }
  0xc9   :  { %862 = vmatmul.mubr.f32.gmra.mxu0 %v5108_v18  ;;  %1116 = vmatmul.mubr.f32.gmra.mxu1 %v7390_v15  ;;  %v7396_v18 = vmov 0  }
  0xca   :  { %1148 = vmatprep.subr.mxu0 %v5290_v12  ;;  %1223 = vmatprep.subr.mxu1 %v5292_v63  ;;  %v1295_v63 = vsel %vm1270_vm0, 1, %v7396_v18  ;;  %v2587_v3 = vsel %vm2562_vm7, 1, %v7396_v18 }
  0xcb   :  { %1149 = vmatpush1.msra.mxu0 %v5296_v16  ;;  %1224 = vmatpush1.msra.mxu1 %v5298_v13 }
  0xcc   :  { %1150 = vmatprep.subr.mxu0 %v5307_v62  ;;  %1225 = vmatprep.subr.mxu1 %v5309_v59  ;;  %v1326_v59 = vsel %vm1301_vm1, 1, %v7396_v18 }
  0xcd   :  { %1151 = vmatpush1.msra.mxu0 %v919_v6  ;;  %1184 = vmatprep.mubr.f32.mxu0 %v7390_v15 }
  0xce   :  { %1226 = vmatpush1.msra.mxu1 %v5315_v56  ;;  %1259 = vmatprep.mubr.f32.mxu1 %v7390_v15 }
  0xcf   :  { %1185 = vmatmul.mubr.f32.vlgmr.msra.gmra.mxu0 %v7390_v15  ;;  %1260 = vmatmul.mubr.f32.vlgmr.msra.gmra.mxu1 %v7390_v15 }
  0xd0   :  { %1189 = vmatprep.mubr.f32.mxu0 %v7390_v15  ;;  %1263 = vmatprep.mubr.f32.mxu1 %v7390_v15 }
  0xd1   :  { %1297 = vperm.xlu0 %4488, %v1295_v63   ;;  %1538 = vmatprep.subr.mxu1 %v5088_v10  ;;  %v2134_v63 = vsel %vm2109_vm2, 1, %v7396_v18  ;;  %v2555_v10 = vsel %vm2530_vm3, 1, %v7396_v18 }
  0xd2   :  { %1539 = vmatpush1.msra.mxu1 %v5114_v19  ;;  %v1426_v19 = vld [vmem:[#allocation12 + $0x2d8] sm:$0xff] }
  0xd3   :  { %1190 = vmatmul.mubr.f32.gmra.mxu0 %v7390_v15  ;;  %1264 = vmatmul.mubr.f32.gmra.mxu1 %v7390_v15 }
  0xd4   :  { %1540 = vmatprep.subr.mxu1 %v5118_v21  ;;  %1527 = vmatprep.mubr.f32.mxu0 %v7390_v15  ;;  %v5369_v21 = vld [vmem:[#allocation12 + $0x2d0] sm:$0xff] }
  0xd5   :  { %1328 = vperm.xlu0 %4488, %v1326_v59   ;;  %1541 = vmatpush1.msra.mxu1 %v5124_v24  ;;  %v5371_v24 = vld [vmem:[#allocation12 + $0x2a8] sm:$0xff]  ;;  %v5426_v59 = vld [vmem:[#allocation12 + $0xf8] sm:$0xff] }
  0xd6   :  { %1542 = vmatprep.subr.mxu1 %v5132_v26  ;;  %1602 = vmatprep.mubr.f32.mxu1 %v7390_v15  ;;  %v5381_v26 = vld [vmem:[#allocation12 + $0x270] sm:$0xff]  ;;  %7399 = vst [vmem:[#allocation38_spill] sm:$0xff] %v5426_v59 }
  0xd7   :  { %1543 = vmatpush1.msra.mxu1 %v5138_v22  ;;  %1463 = vmatprep.subr.mxu0 %v1426_v19  ;;  %v5384_v22 = vld [vmem:[#allocation12 + $0x248] sm:$0xff] }
  0xd8   :  { %1544 = vmatprep.subr.mxu1 %v5144_v29  ;;  %1464 = vmatpush1.msra.mxu0 %v5369_v21  ;;  %v5387_v29 = vld [vmem:[#allocation12 + $0x240] sm:$0xff] }
  0xd9   :  { %2136 = vperm.xlu0 %4488, %v2134_v63   ;;  %1545 = vmatpush1.msra.mxu1 %v5150_v31  ;;  %v5390_v31 = vld [vmem:[#allocation12 + $0x218] sm:$0xff] }
  0xda   :  { %1546 = vmatprep.subr.mxu1 %v5158_v39  ;;  %1465 = vmatprep.subr.mxu0 %v5371_v24  ;;  %v5393_v39 = vld [vmem:[#allocation12 + $0x210] sm:$0xff] }
  0xdb   :  { %1547 = vmatpush1.msra.mxu1 %v5164_v34  ;;  %v5396_v34 = vld [vmem:[#allocation12 + $0x1e8] sm:$0xff] }
  0xdc   :  { %1548 = vmatprep.subr.mxu1 %v5170_v36  ;;  %v5399_v36 = vld [vmem:[#allocation12 + $0x1e0] sm:$0xff] }
  0xdd   :  { %2557 = vperm.xlu0 %4488, %v2555_v10   ;;  %1549 = vmatpush1.msra.mxu1 %v5176_v38  ;;  %v5402_v38 = vld [vmem:[#allocation12 + $0x1b8] sm:$0xff] }
  0xde   :  { %1550 = vmatprep.subr.mxu1 %v5184_v50  ;;  %v5405_v50 = vld [vmem:[#allocation12 + $0x1b0] sm:$0xff] }
  0xdf   :  { %1551 = vmatpush1.msra.mxu1 %v5190_v44  ;;  %v5408_v44 = vld [vmem:[#allocation12 + $0x188] sm:$0xff] }
  0xe0   :  { %1552 = vmatprep.subr.mxu1 %v5196_v47  ;;  %v5411_v47 = vld [vmem:[#allocation12 + $0x180] sm:$0xff] }
  0xe1   :  { %1553 = vmatpush1.msra.mxu1 %v5202_v49  ;;  %v5414_v49 = vld [vmem:[#allocation12 + $0x158] sm:$0xff] }
  0xe2   :  { %1554 = vmatprep.subr.mxu1 %v5210_v8  ;;  %v5417_v8 = vld [vmem:[#allocation12 + $0x150] sm:$0xff] }
  0xe3   :  { %1555 = vmatpush1.msra.mxu1 %v5216_v54  ;;  %v5420_v54 = vld [vmem:[#allocation12 + $0x128] sm:$0xff] }
  0xe4   :  { %1556 = vmatprep.subr.mxu1 %v5222_v57  ;;  %7397 = vst [vmem:[#allocation36_spill] sm:$0xff] %v5420_v54  ;;  %v5423_v57 = vld [vmem:[#allocation12 + $0x120] sm:$0xff] }
  0xe5   :  { %1557 = vmatpush1.msra.mxu1 %v5228_v60  ;;  %7398 = vst [vmem:[#allocation37_spill] sm:$0xff] %v5423_v57  ;;  %v5429_v60 = vld [vmem:[#allocation12 + $0xf0] sm:$0xff] }
  0xe6   :  { %1558 = vmatprep.subr.mxu1 %v5236_v40  ;;  %7400 = vst [vmem:[#allocation39_spill] sm:$0xff] %v5429_v60  ;;  %v5435_v40 = vld [vmem:[#allocation12 + $0xc0] sm:$0xff] }
  0xe7   :  { %1559 = vmatpush1.msra.mxu1 %v5242_v2  ;;  %7402 = vst [vmem:[#allocation41_spill] sm:$0xff] %v5435_v40  ;;  %v499_v2 = vlaneseq }
  0xe8   :  { %1560 = vmatprep.subr.mxu1 %v5248_v5 }
  0xe9   :  { %1561 = vmatpush1.msra.mxu1 %v5254_v9  ;;  %v5441_v5 = vshrl.u32 %v499_v2, 7 }
  0xea   :  { %1562 = vmatprep.subr.mxu1 %v5262_v61 }
  0xeb   :  { %1563 = vmatpush1.msra.mxu1 %v5268_v14  ;;  %v5474_v9 = vsub.s32 1, %v5441_v5 }
  0xec   :  { %1564 = vmatprep.subr.mxu1 %v5274_v17  ;;  %v5375_v17 = vld [vmem:[#allocation12 + $0x2a0] sm:$0xff] }
  0xed   :  { %1565 = vmatpush1.msra.mxu1 %v5282_v0  ;;  %v5377_v0 = vld [vmem:[#allocation12 + $0x278] sm:$0xff]  ;;  %1466 = vmatpush1.msra.mxu0 %v5375_v17  ;;  %7405 = vst [vmem:[#allocation43_spill] sm:$0xff] %v5474_v9 }
  0xee   :  { %1566 = vmatprep.subr.mxu1 %v5290_v12  ;;  %1467 = vmatprep.subr.mxu0 %v5377_v0 }
  0xef   :  { %1567 = vmatpush1.msra.mxu1 %v5296_v16  ;;  %1468 = vmatpush1.msra.mxu0 %v5381_v26 }
  0xf0   :  { %1568 = vmatprep.subr.mxu1 %v5307_v62  ;;  %1469 = vmatprep.subr.mxu0 %v5384_v22  ;;  %v5432_v62 = vld [vmem:[#allocation12 + $0xc8] sm:$0xff] }
  0xf1   :  { %1569 = vmatpush1.msra.mxu1 %v919_v6  ;;  %1470 = vmatpush1.msra.mxu0 %v5387_v29  ;;  %7401 = vst [vmem:[#allocation40_spill] sm:$0xff] %v5432_v62  ;;  %v5446_v6 = vsub.s32 3, %v5441_v5 }
  0xf2   :  { %1884 = vmatprep.subr.mxu1 %v1426_v19  ;;  %1471 = vmatprep.subr.mxu0 %v5390_v31 }
  0xf3   :  { %1472 = vmatpush1.msra.mxu0 %v5393_v39 }
  0xf4   :  { %1473 = vmatprep.subr.mxu0 %v5396_v34 }
  0xf5   :  { %1474 = vmatpush1.msra.mxu0 %v5399_v36 }
  0xf6   :  { %1475 = vmatprep.subr.mxu0 %v5402_v38 }
  0xf7   :  { %1476 = vmatpush1.msra.mxu0 %v5405_v50 }
  0xf8   :  { %1477 = vmatprep.subr.mxu0 %v5408_v44 }
  0xf9   :  { %1478 = vmatpush1.msra.mxu0 %v5411_v47 }
  0xfa   :  { %1479 = vmatprep.subr.mxu0 %v5414_v49 }
  0xfb   :  { %1480 = vmatpush1.msra.mxu0 %v5417_v8 }
  0xfc   :  { %1481 = vmatprep.subr.mxu0 %v5420_v54 }
  0xfd   :  { %1482 = vmatpush1.msra.mxu0 %v5423_v57 }
  0xfe   :  { %1483 = vmatprep.subr.mxu0 %v5426_v59 }
  0xff   :  { %1484 = vmatpush1.msra.mxu0 %v5429_v60 }
 0x100   :  { %1485 = vmatprep.subr.mxu0 %v5432_v62 }
 0x101   :  { %1486 = vmatpush1.msra.mxu0 %v5435_v40 }
 0x102   :  { %1487 = vmatprep.subr.mxu0 %v5026_v43  ;;  %v5454_v43 = vld [vmem:[%s7403_s4] sm:$0x3f] }
 0x103   :  { %1488 = vmatpush1.msra.mxu0 %v5033_v46  ;;  %v5459_v46 = vrot.slane %v5454_v43, %v5446_v6  ;;  %v5489_v63 = vrot.slane %v5454_v43, %v5474_v9 }
 0x104   :  { %1489 = vmatprep.subr.mxu0 %v5041_v51 }
 0x105   :  { %1490 = vmatpush1.msra.mxu0 %v5050_v55 }
 0x106   :  { %1491 = vmatprep.subr.mxu0 %v5058_v58  ;;  %v5466_v58 = vsub.s32 0, %v5441_v5 }
 0x107   :  { %1492 = vmatpush1.msra.mxu0 %v5075_v1  ;;  %v5469_v1 = vsub.s32 2, %v5441_v5 }
 0x108   :  { %1493 = vmatprep.subr.mxu0 %v5080_v4  ;;  %7404 = vst [vmem:[#allocation42_spill] sm:$0xff] %v5466_v58  ;;  %v5481_v12 = vrot.slane %v5454_v43, %v5466_v58 }
 0x109   :  { %1494 = vmatpush1.msra.mxu0 %v5084_v7  ;;  %v5485_v61 = vrot.slane %v5454_v43, %v5469_v1 }
 0x10a   :  { %1613 = vmatprep.subr.mxu0 %v5090_v11 }
 0x119   :  { %v5461_v51 = vpop.f32.mrf.mxu0  ;;  %v5463_v55 = vpop.f32.mrf.mxu1 }
 0x11b   :  { %v5471_v4 = vpop.f32.mrf.mxu0  ;;  %v710_v7 = vpop.f32.mrf.mxu1 }
 0x11c   :  { %v5477_v11 = vadd.f32 %v710_v7, %v5459_v46 }
 0x11e   :  { %7406 = vst [vmem:[#allocation44_spill] sm:$0xff] %v5477_v11 }
 0x120   :  { %v601_v14 = vpop.f32.mrf.mxu0  ;;  %v714_v16 = vpop.f32.mrf.mxu1 }
 0x121   :  { %v5492_v10 = vadd.f32 %v601_v14, %v5481_v12  ;;  %v5495_v19 = vadd.f32 %v714_v16, %v5485_v61 }
 0x122   :  { %v603_v2 = vpop.f32.mrf.mxu0  ;;  %v716_v7 = vpop.f32.mrf.mxu1 }
 0x123   :  { %7407 = vst [vmem:[#allocation45_spill] sm:$0xff] %v5492_v10  ;;  %7408 = vst [vmem:[#allocation46_spill] sm:$0xff] %v5495_v19  ;;  %v5498_v11 = vadd.f32 %v603_v2, %v5489_v63  ;;  %v5501_v56 = vadd.f32 %v716_v7, %v5459_v46 }
 0x125   :  { %7409 = vst [vmem:[#allocation47_spill] sm:$0xff] %v5498_v11  ;;  %7410 = vst [vmem:[#allocation48_spill] sm:$0xff] %v5501_v56 }
 0x129   :  { %v607_v13 = vpop.f32.mrf.mxu0  ;;  %v720_v40 = vpop.f32.mrf.mxu1 }
 0x12a   :  { %v5504_v62 = vadd.f32 %v607_v13, %v5481_v12  ;;  %v5507_v60 = vadd.f32 %v720_v40, %v5485_v61 }
 0x12b   :  { %v609_v14 = vpop.f32.mrf.mxu0  ;;  %v722_v10 = vpop.f32.mrf.mxu1 }
 0x12c   :  { %7411 = vst [vmem:[#allocation49_spill] sm:$0xff] %v5504_v62  ;;  %7412 = vst [vmem:[#allocation50_spill] sm:$0xff] %v5507_v60  ;;  %v5510_v16 = vadd.f32 %v609_v14, %v5489_v63  ;;  %v5513_v19 = vadd.f32 %v722_v10, %v5459_v46 }
 0x12e   :  { %7413 = vst [vmem:[#allocation51_spill] sm:$0xff] %v5510_v16  ;;  %7414 = vst [vmem:[#allocation52_spill] sm:$0xff] %v5513_v19 }
 0x135   :  { %v613_v2 = vpop.f32.mrf.mxu0  ;;  %v726_v11 = vpop.f32.mrf.mxu1 }
 0x136   :  { %v5516_v7 = vadd.f32 %v613_v2, %v5481_v12  ;;  %v5519_v56 = vadd.f32 %v726_v11, %v5485_v61 }
 0x137   :  { %v615_v13 = vpop.f32.mrf.mxu0  ;;  %v728_v62 = vpop.f32.mrf.mxu1 }
 0x138   :  { %7415 = vst [vmem:[#allocation53_spill] sm:$0xff] %v5516_v7  ;;  %7416 = vst [vmem:[#allocation54_spill] sm:$0xff] %v5519_v56  ;;  %v5522_v40 = vadd.f32 %v615_v13, %v5489_v63  ;;  %v5525_v60 = vadd.f32 %v728_v62, %v5459_v46 }
 0x13a   :  { %7417 = vst [vmem:[#allocation55_spill] sm:$0xff] %v5522_v40  ;;  %7418 = vst [vmem:[#allocation56_spill] sm:$0xff] %v5525_v60 }
 0x145   :  { %v619_v14 = vpop.f32.mrf.mxu0  ;;  %v732_v16 = vpop.f32.mrf.mxu1 }
 0x146   :  { %v5528_v10 = vadd.f32 %v619_v14, %v5481_v12  ;;  %v5531_v19 = vadd.f32 %v732_v16, %v5485_v61 }
 0x147   :  { %v621_v2 = vpop.f32.mrf.mxu0  ;;  %v734_v7 = vpop.f32.mrf.mxu1 }
 0x148   :  { %7419 = vst [vmem:[#allocation57_spill] sm:$0xff] %v5528_v10  ;;  %7420 = vst [vmem:[#allocation58_spill] sm:$0xff] %v5531_v19  ;;  %v5534_v11 = vadd.f32 %v621_v2, %v5489_v63  ;;  %v5537_v56 = vadd.f32 %v734_v7, %v5459_v46  ;;  %v1713_v7 = vsel %vm1688_vm4, 1, %v7396_v18 }
 0x149   :  { %1715 = vperm.xlu1 %4489, %v1713_v7   ;;  %v5569_v7 = vsub.s32 4, %v5441_v5 }
 0x14a   :  { %7421 = vst [vmem:[#allocation59_spill] sm:$0xff] %v5534_v11  ;;  %7422 = vst [vmem:[#allocation60_spill] sm:$0xff] %v5537_v56 }
 0x14e   :  { %v625_v13 = vpop.f32.mrf.mxu0  ;;  %v738_v40 = vpop.f32.mrf.mxu1 }
 0x14f   :  { %v5540_v62 = vadd.f32 %v625_v13, %v5481_v12  ;;  %v5543_v60 = vadd.f32 %v738_v40, %v5485_v61 }
 0x150   :  { %v627_v14 = vpop.f32.mrf.mxu0  ;;  %v740_v10 = vpop.f32.mrf.mxu1 }
 0x151   :  { %7423 = vst [vmem:[#allocation61_spill] sm:$0xff] %v5540_v62  ;;  %7424 = vst [vmem:[#allocation62_spill] sm:$0xff] %v5543_v60  ;;  %v5546_v16 = vadd.f32 %v627_v14, %v5489_v63  ;;  %v5549_v19 = vadd.f32 %v740_v10, %v5459_v46  ;;  %v1745_v14 = vsel %vm1720_vm5, 1, %v7396_v18 }
 0x152   :  { %1747 = vperm.xlu1 %4489, %v1745_v14  }
 0x153   :  { %7425 = vst [vmem:[#allocation63_spill] sm:$0xff] %v5546_v16  ;;  %7426 = vst [vmem:[#allocation64_spill] sm:$0xff] %v5549_v19 }
 0x158   :  { %v631_v2 = vpop.f32.mrf.mxu0  ;;  %v744_v13 = vpop.f32.mrf.mxu1 }
 0x159   :  { %v5555_v40 = vadd.f32 %v631_v2, %v5481_v12  ;;  %v5558_v60 = vadd.f32 %v744_v13, %v5485_v61  ;;  %v2166_v2 = vsel %vm2141_vm6, 1, %v7396_v18  ;;  %v5575_v13 = vld [vmem:[%s7431_s30] sm:$0x3f] }
 0x15a   :  { %v633_v16 = vpop.f32.mrf.mxu0  ;;  %v746_v10 = vpop.f32.mrf.mxu1  ;;  %2168 = vperm.xlu1 %4489, %v2166_v2   ;;  %v1018_v56 = vrot.slane %v5575_v13, %v5466_v58 }
 0x15b   :  { %7427 = vst [vmem:[#allocation65_spill] sm:$0xff] %v5555_v40  ;;  %7428 = vst [vmem:[#allocation66_spill] sm:$0xff] %v5558_v60  ;;  %v5563_v62 = vadd.f32 %v633_v16, %v5489_v63  ;;  %v5566_v11 = vadd.f32 %v746_v10, %v5459_v46  ;;  %v5579_v60 = vsub.s32 5, %v5441_v5  ;;  %v5583_v10 = vrot.slane %v5454_v43, %v5569_v7 }
 0x15d   :  { %7429 = vst [vmem:[#allocation67_spill] sm:$0xff] %v5563_v62  ;;  %7430 = vst [vmem:[#allocation68_spill] sm:$0xff] %v5566_v11  ;;  %v5601_v2 = vrot.slane %v5454_v43, %v5579_v60 }
 0x15e   :  { %7432 = vst [vmem:[#allocation69_spill] sm:$0xff] %v5579_v60  ;;  %2589 = vperm.xlu1 %4489, %v2587_v3  }
 0x162   :  { %v637_v16 = vpop.f32.mrf.mxu0  ;;  %v750_v62 = vpop.f32.mrf.mxu1 }
 0x163   :  { %v5586_v14 = vadd.f32 %v637_v16, %v5481_v12  ;;  %v5589_v40 = vadd.f32 %v750_v62, %v5485_v61  ;;  %v596_v62 = vadd.f32 %v5461_v51, %v5481_v12  ;;  %v1022_v51 = vrot.slane %v5575_v13, %v5474_v9 }
 0x164   :  { %v639_v5 = vpop.f32.mrf.mxu0  ;;  %v5594_v19 = vpop.f32.mrf.mxu1 }
 0x165   :  { %7433 = vst [vmem:[#allocation70_spill] sm:$0xff] %v5586_v14  ;;  %7434 = vst [vmem:[#allocation71_spill] sm:$0xff] %v5589_v40  ;;  %v5597_v11 = vadd.f32 %v639_v5, %v5489_v63 }
 0x166   :  { %v821_v16 = vpop.f32.mrf.mxu0  ;;  %v1111_v14 = vpop.f32.mrf.mxu1 }
 0x167   :  { %7435 = vst [vmem:[#allocation72_spill] sm:$0xff] %v5597_v11  ;;  %v5606_v40 = vadd.f32 %v821_v16, %v5583_v10  ;;  %v1112_v18 = vadd.f32 %v1111_v14, %v1018_v56 }
 0x168   :  { %v823_v58 = vpop.f32.mrf.mxu0  ;;  %v1113_v12 = vpop.f32.mrf.mxu1 }
 0x169   :  { %7436 = vst [vmem:[#allocation73_spill] sm:$0xff] %v5606_v40  ;;  %v1274_v59 = vadd.f32 %v1112_v18, %v596_v62  ;;  %v5609_v57 = vadd.f32 %v823_v58, %v5601_v2  ;;  %v1114_v16 = vadd.f32 %v1113_v12, %v1022_v51  ;;  %v598_v62 = vadd.f32 %v5471_v4, %v5489_v63 }
 0x16a   :  { %v827_v5 = vpop.f32.mrf.mxu0 }
 0x16b   :  { %7437 = vst [vmem:[#allocation74_spill] sm:$0xff] %v5609_v57  ;;  %v4406_v11 = vmul.f32 -1.442695, %v1274_v59  ;;  %v5612_v43 = vadd.f32 %v827_v5, %v5583_v10 }
 0x16c   :  { %v829_v54 = vpop.f32.mrf.mxu0 }
 0x16d   :  { %7438 = vst [vmem:[#allocation75_spill] sm:$0xff] %v5612_v43  ;;  %v5615_v3 = vadd.f32 %v829_v54, %v5601_v2  ;;  %4490 = vpow2.f32 %v4406_v11  ;;  %v1275_v11 = vadd.f32 %v1114_v16, %v598_v62 }
 0x16f   :  { %7439 = vst [vmem:[#allocation76_spill] sm:$0xff] %v5615_v3  ;;  %v833_v56 = vpop.f32.mrf.mxu0 }
 0x170   :  { %v5620_v14 = vadd.f32 %v833_v56, %v5583_v10  ;;  %v4407_v56 = vmul.f32 -1.442695, %v1275_v11 }
 0x171   :  { %v835_v58 = vpop.f32.mrf.mxu0 }
 0x172   :  { %7440 = vst [vmem:[#allocation77_spill] sm:$0xff] %v5620_v14  ;;  %v5623_v59 = vadd.f32 %v835_v58, %v5601_v2  ;;  %4492 = vpow2.f32 %v4407_v56  ;;  %v1026_v14 = vrot.slane %v5575_v13, %v5469_v1 }
 0x174   :  { %7441 = vst [vmem:[#allocation78_spill] sm:$0xff] %v5623_v59  ;;  %v839_v18 = vpop.f32.mrf.mxu0 }
 0x175   :  { %v5628_v54 = vadd.f32 %v839_v18, %v5583_v10 }
 0x176   :  { %v841_v5 = vpop.f32.mrf.mxu0 }
 0x177   :  { %7442 = vst [vmem:[#allocation79_spill] sm:$0xff] %v5628_v54  ;;  %v5631_v57 = vadd.f32 %v841_v5, %v5601_v2 }
 0x179   :  { %7443 = vst [vmem:[#allocation80_spill] sm:$0xff] %v5631_v57  ;;  %v845_v40 = vpop.f32.mrf.mxu0 }
 0x17a   :  { %v5634_v3 = vadd.f32 %v845_v40, %v5583_v10  ;;  %v4491_v51 = vpop.eup %4490 }
 0x17b   :  { %v847_v12 = vpop.f32.mrf.mxu0  ;;  %v1282_v4 = vadd.f32 1.0, %v4491_v51 }
 0x17c   :  { %7444 = vst [vmem:[#allocation81_spill] sm:$0xff] %v5634_v3  ;;  %v5637_v58 = vadd.f32 %v847_v12, %v5601_v2 }
 0x17d   :  { %4494 = vrcp.f32 %v1282_v4 }
 0x17e   :  { %7445 = vst [vmem:[#allocation82_spill] sm:$0xff] %v5637_v58  ;;  %v851_v63 = vpop.f32.mrf.mxu0 }
 0x17f   :  { %v5640_v18 = vadd.f32 %v851_v63, %v5583_v10  ;;  %v4493_v56 = vpop.eup %4492 }
 0x180   :  { %v853_v16 = vpop.f32.mrf.mxu0 }
 0x181   :  { %7446 = vst [vmem:[#allocation83_spill] sm:$0xff] %v5640_v18  ;;  %v5643_v62 = vadd.f32 %v853_v16, %v5601_v2  ;;  %v1283_v16 = vadd.f32 1.0, %v4493_v56  ;;  %v753_v56 = vadd.f32 %v5594_v19, %v5459_v46 }
 0x183   :  { %7447 = vst [vmem:[#allocation84_spill] sm:$0xff] %v5643_v62  ;;  %v857_v11 = vpop.f32.mrf.mxu0  ;;  %4496 = vrcp.f32 %v1283_v16  ;;  %v5664_v16 = vpop.permute.xlu0 %1297 }
 0x184   :  { %v5646_v40 = vadd.f32 %v857_v11, %v5583_v10  ;;  %7449 = vst [vmem:[#allocation86_spill] sm:$0xff] %v5664_v16  ;;  %vm1299_vm8 = vcmp.eq.s32.totalorder %v5664_v16, 1 }
 0x185   :  { %v859_v5 = vpop.f32.mrf.mxu0 }
 0x186   :  { %v5649_v43 = vadd.f32 %v859_v5, %v5601_v2  ;;  %v709_v5 = vadd.f32 %v5463_v55, %v5485_v61 }
 0x188   :  { %7448 = vst [vmem:[#allocation85_spill] sm:$0xff] %v5649_v43 }
 0x189   :  { %v863_v12 = vpop.f32.mrf.mxu0  ;;  %v1117_v51 = vpop.f32.mrf.mxu1 }
 0x18a   :  { %v4495_v57 = vpop.eup %4494  ;;  %v1030_v51 = vrot.slane %v5575_v13, %v5446_v6 }
 0x18b   :  { %v5651_v59 = vpop.f32.mrf.mxu0  ;;  %v1118_v63 = vpop.f32.mrf.mxu1 }
 0x18f   :  { %v1186_v4 = vpop.f32.mrf.mxu0  ;;  %v1261_v54 = vpop.f32.mrf.mxu1 }
 0x190   :  { %v1187_v58 = vadd.f32 %v1186_v4, %v1026_v14  ;;  %v1034_v14 = vrot.slane %v5575_v13, %v5569_v7 }
 0x191   :  { %v1188_v11 = vpop.f32.mrf.mxu0  ;;  %v1262_v3 = vpop.f32.mrf.mxu1 }
 0x192   :  { %v1288_v62 = vmul.f32 %v4495_v57, %v1187_v58  ;;  %v864_v57 = vadd.f32 %v863_v12, %v5583_v10  ;;  %v4497_v58 = vpop.eup %4496 }
 0x193   :  { %v1191_v18 = vpop.f32.mrf.mxu0  ;;  %v1265_v3 = vpop.f32.mrf.mxu1  ;;  %v1293_v19 = vmul.f32 0.0, %v4497_v58 }
 0x194   :  { %v1289_v63 = vadd.f32 %v1288_v62, %v709_v5  ;;  %v1266_v11 = vadd.f32 %v1265_v3, %v1034_v14  ;;  %v1291_v18 = vsub.f32 1.0, %v4497_v58  ;;  %v5762_v14 = vld [vmem:[#allocation12 + $0x2e8] sm:$0xff]  ;;  %v5768_v3 = vld [vmem:[#allocation12 + $0x2b8] sm:$0xff] }
 0x195   :  { %v1192_v43 = vpop.f32.mrf.mxu0  ;;  %v5786_v58 = vld [vmem:[#allocation12 + $0x228] sm:$0xff] }
 0x196   :  { %4498 = vtanh.f32 %v1289_v63  ;;  %v1193_v54 = vadd.f32 %v1192_v43, %v1030_v51  ;;  %v1306_v61 = vadd.f32 %v1266_v11, %v864_v57  ;;  %v5774_v11 = vld [vmem:[#allocation12 + $0x288] sm:$0xff]  ;;  %v5780_v57 = vld [vmem:[#allocation12 + $0x258] sm:$0xff] }
 0x198   :  { %v1305_v4 = vadd.f32 %v1193_v54, %v753_v56  ;;  %v4409_v62 = vmul.f32 -1.442695, %v1306_v61  ;;  %v5765_v54 = vld [vmem:[#allocation12 + $0x2e0] sm:$0xff]  ;;  %v5783_v61 = vld [vmem:[#allocation12 + $0x250] sm:$0xff] }
 0x19a   :  { %v4408_v55 = vmul.f32 -1.442695, %v1305_v4  ;;  %v5771_v4 = vld [vmem:[#allocation12 + $0x2b0] sm:$0xff] }
 0x19c   :  { %4500 = vpow2.f32 %v4408_v55  ;;  %v5777_v55 = vld [vmem:[#allocation12 + $0x280] sm:$0xff] }
 0x19d   :  { %4502 = vpow2.f32 %v4409_v62  ;;  %v5792_v62 = vld [vmem:[#allocation12 + $0x1f8] sm:$0xff] }
 0x1a3   :  { %v4499_v5 = vpop.eup %4498 }
 0x1a4   :  { %v1292_v46 = vmul.f32 %v4499_v5, %v1291_v18  ;;  %v5789_v18 = vld [vmem:[#allocation12 + $0x220] sm:$0xff]  ;;  %v5795_v5 = vld [vmem:[#allocation12 + $0x1f0] sm:$0xff] }
 0x1a6   :  { %v5667_v43 = vadd.f32 %v1293_v19, %v1292_v46  ;;  %v5798_v46 = vld [vmem:[#allocation12 + $0x1c8] sm:$0xff]  ;;  %v5801_v19 = vld [vmem:[#allocation12 + $0x1c0] sm:$0xff] }
 0x1a8   :  { %4410 = vmatmul.mubr.msk.f32.vlgmr.msra.gmra.mxu0 %vm1299_vm8, %v5667_v43  ;;  %4412 = vmatmul.mubr.msk.f32.vlgmr.msra.gmra.mxu1 %vm1299_vm8, %v5667_v43  ;;  %v5678_v10 = vsel %vm1299_vm8, %v5667_v43, 0.0 }
 0x1a9   :  { %v4501_v12 = vpop.eup %4500  ;;  %1614 = vmatpush1.msra.mxu0 %v5116_v20  ;;  %1533 = vmatprep.mubr.f32.mxu0 %v7390_v15  ;;  %1332 = vst [vmem:[#allocation13] sm:$0xff] %v5678_v10 }
 0x1aa   :  { %v1313_v51 = vadd.f32 1.0, %v4501_v12  ;;  %1615 = vmatprep.subr.mxu0 %v5120_v23  ;;  %1607 = vmatprep.mubr.f32.mxu1 %v7390_v15  ;;  %v4503_v20 = vpop.eup %4502  ;;  %v1038_v23 = vrot.slane %v5575_v13, %v5579_v60  ;;  %v5807_v12 = vld [vmem:[#allocation12 + $0x190] sm:$0xff] }
 0x1ab   :  { %1616 = vmatpush1.msra.mxu0 %v5128_v25  ;;  %1885 = vmatpush1.msra.mxu1 %v5369_v21  ;;  %v1267_v25 = vpop.f32.mrf.mxu1  ;;  %v7457_v21 = vld [vmem:[#allocation26_spill] sm:$0xff] }
 0x1ac   :  { %4504 = vrcp.f32 %v1313_v51  ;;  %1617 = vmatprep.subr.mxu0 %v5134_v27  ;;  %1886 = vmatprep.subr.mxu1 %v5371_v24  ;;  %v1314_v27 = vadd.f32 1.0, %v4503_v20  ;;  %v7458_v24 = vld [vmem:[#allocation38_spill] sm:$0xff]  ;;  %v5810_v51 = vld [vmem:[#allocation12 + $0x168] sm:$0xff]  ;;  %v5813_v20 = vld [vmem:[#allocation12 + $0x160] sm:$0xff] }
 0x1ad   :  { %1618 = vmatpush1.msra.mxu0 %v5140_v28  ;;  %1887 = vmatpush1.msra.mxu1 %v5375_v17  ;;  %v1268_v28 = vadd.f32 %v1267_v25, %v1038_v23  ;;  %v7459_v17 = vld [vmem:[#allocation27_spill] sm:$0xff]  ;;  %v5816_v23 = vld [vmem:[#allocation12 + $0x138] sm:$0xff]  ;;  %v5819_v25 = vld [vmem:[#allocation12 + $0x130] sm:$0xff] }
 0x1ae   :  { %1619 = vmatprep.subr.mxu0 %v5146_v30  ;;  %1888 = vmatprep.subr.mxu1 %v5377_v0  ;;  %4506 = vrcp.f32 %v1314_v27  ;;  %v7460_v0 = vld [vmem:[#allocation39_spill] sm:$0xff]  ;;  %v5822_v27 = vld [vmem:[#allocation12 + $0x108] sm:$0xff] }
 0x1af   :  { %1620 = vmatpush1.msra.mxu0 %v5154_v32  ;;  %1889 = vmatpush1.msra.mxu1 %v5381_v26  ;;  %v7450_v32 = vld [vmem:[#allocation21_spill] sm:$0xff]  ;;  %v7461_v26 = vld [vmem:[#allocation28_spill] sm:$0xff] }
 0x1b0   :  { %1621 = vmatprep.subr.mxu0 %v5160_v33  ;;  %1890 = vmatprep.subr.mxu1 %v5384_v22  ;;  %v866_v33 = vadd.f32 %v5651_v59, %v5601_v2  ;;  %v7462_v22 = vld [vmem:[#allocation40_spill] sm:$0xff]  ;;  %v5741_v59 = vpop.permute.xlu0 %1328 }
 0x1b1   :  { %1622 = vmatpush1.msra.mxu0 %v5166_v35  ;;  %1891 = vmatpush1.msra.mxu1 %v5387_v29  ;;  %v7463_v29 = vld [vmem:[#allocation29_spill] sm:$0xff]  ;;  %7471 = vst [vmem:[#allocation21_spill] sm:$0xff] %v5741_v59  ;;  %vm1330_vm9 = vcmp.eq.s32.totalorder %v5741_v59, 1  ;;  %v7479_v59 = vld [vmem:[#allocation47_spill] sm:$0xff] }
 0x1b2   :  { %1623 = vmatprep.subr.mxu0 %v5172_v37  ;;  %1892 = vmatprep.subr.mxu1 %v5390_v31  ;;  %v7451_v37 = vld [vmem:[#allocation22_spill] sm:$0xff]  ;;  %v7464_v31 = vld [vmem:[#allocation41_spill] sm:$0xff] }
 0x1b3   :  { %1624 = vmatpush1.msra.mxu0 %v5180_v41  ;;  %1893 = vmatpush1.msra.mxu1 %v5393_v39  ;;  %v7452_v41 = vld [vmem:[#allocation23_spill] sm:$0xff]  ;;  %v7465_v39 = vld [vmem:[#allocation30_spill] sm:$0xff] }
 0x1b4   :  { %1625 = vmatprep.subr.mxu0 %v5186_v42  ;;  %1894 = vmatprep.subr.mxu1 %v5396_v34  ;;  %v7466_v34 = vld [vmem:[#allocation31_spill] sm:$0xff] }
 0x1b5   :  { %1626 = vmatpush1.msra.mxu0 %v5192_v45  ;;  %1895 = vmatpush1.msra.mxu1 %v5399_v36  ;;  %v7453_v45 = vld [vmem:[#allocation24_spill] sm:$0xff] }
 0x1b6   :  { %1627 = vmatprep.subr.mxu0 %v5198_v48  ;;  %1896 = vmatprep.subr.mxu1 %v5402_v38  ;;  %v7454_v48 = vld [vmem:[#allocation36_spill] sm:$0xff]  ;;  %v7468_v38 = vld [vmem:[#allocation33_spill] sm:$0xff] }
 0x1b7   :  { %1628 = vmatpush1.msra.mxu0 %v5206_v52  ;;  %1897 = vmatpush1.msra.mxu1 %v5405_v50  ;;  %v7455_v52 = vld [vmem:[#allocation25_spill] sm:$0xff]  ;;  %v7467_v36 = vld [vmem:[#allocation32_spill] sm:$0xff]  ;;  %v7469_v50 = vld [vmem:[#allocation34_spill] sm:$0xff] }
 0x1b8   :  { %1629 = vmatprep.subr.mxu0 %v5212_v53  ;;  %1898 = vmatprep.subr.mxu1 %v5408_v44  ;;  %v7456_v53 = vld [vmem:[#allocation37_spill] sm:$0xff] }
 0x1b9   :  { %v4505_v30 = vpop.eup %4504  ;;  %1630 = vmatpush1.msra.mxu0 %v7450_v32  ;;  %1899 = vmatpush1.msra.mxu1 %v5411_v47  ;;  %v7470_v47 = vld [vmem:[#allocation35_spill] sm:$0xff]  ;;  %v5831_v32 = vld [vmem:[#allocation12 + $0xd0] sm:$0xff] }
 0x1ba   :  { %v1319_v35 = vmul.f32 %v4505_v30, %v1268_v28  ;;  %1631 = vmatprep.subr.mxu0 %v7451_v37  ;;  %1900 = vmatprep.subr.mxu1 %v5414_v49  ;;  %v5825_v28 = vld [vmem:[#allocation12 + $0x100] sm:$0xff]  ;;  %v5828_v30 = vld [vmem:[#allocation12 + $0xd8] sm:$0xff]  ;;  %v5840_v37 = vld [vmem:[#allocation12 + $0x90] sm:$0xff] }
 0x1bb   :  { %1632 = vmatpush1.msra.mxu0 %v7452_v41  ;;  %1901 = vmatpush1.msra.mxu1 %v5417_v8  ;;  %v4507_v44 = vpop.eup %4506  ;;  %v5842_v41 = vld [vmem:[#allocation12 + $0xa0] sm:$0xff] }
 0x1bc   :  { %v1320_v42 = vadd.f32 %v1319_v35, %v866_v33  ;;  %1633 = vmatprep.subr.mxu0 %v7453_v45  ;;  %1902 = vmatprep.subr.mxu1 %v7454_v48  ;;  %v1322_v49 = vsub.f32 1.0, %v4507_v44  ;;  %v1324_v2 = vmul.f32 0.0, %v4507_v44  ;;  %v5834_v33 = vld [vmem:[#allocation12 + $0x98] sm:$0xff]  ;;  %v5836_v35 = vld [vmem:[#allocation12 + $0xa8] sm:$0xff]  ;;  %v5852_v48 = vld [vmem:[#allocation12 + $0x60] sm:$0xff] }
 0x1bd   :  { %1634 = vmatpush1.msra.mxu0 %v7455_v52  ;;  %1903 = vmatpush1.msra.mxu1 %v7456_v53  ;;  %v5848_v45 = vld [vmem:[#allocation12 + $0x78] sm:$0xff]  ;;  %v5854_v52 = vld [vmem:[#allocation12 + $0x70] sm:$0xff] }
 0x1be   :  { %4508 = vtanh.f32 %v1320_v42  ;;  %1635 = vmatprep.subr.mxu0 %v7457_v21  ;;  %1904 = vmatprep.subr.mxu1 %v7458_v24  ;;  %v5846_v42 = vld [vmem:[#allocation12 + $0x68] sm:$0xff]  ;;  %v5858_v53 = vld [vmem:[#allocation12 + $0x38] sm:$0xff]  ;;  %v5864_v24 = vld [vmem:[#allocation12 + $0x30] sm:$0xff] }
 0x1bf   :  { %1636 = vmatpush1.msra.mxu0 %v7459_v17  ;;  %1905 = vmatpush1.msra.mxu1 %v7460_v0  ;;  %7472 = vst [vmem:[#allocation22_spill] sm:$0xff] %v5858_v53  ;;  %v5860_v21 = vld [vmem:[#allocation12 + $0x48] sm:$0xff]  ;;  %7473 = vst [vmem:[#allocation23_spill] sm:$0xff] %v5864_v24  ;;  %v5866_v17 = vld [vmem:[#allocation12 + $0x40] sm:$0xff] }
 0x1c0   :  { %1637 = vmatprep.subr.mxu0 %v7461_v26  ;;  %1906 = vmatprep.subr.mxu1 %v7462_v22  ;;  %v5870_v0 = vld [vmem:[#allocation12 + $0x8] sm:$0xff]  ;;  %v5872_v26 = vld [vmem:[#allocation12 + $0x18] sm:$0xff]  ;;  %v5876_v22 = vld [vmem:[#allocation12] sm:$0xff] }
 0x1c1   :  { %1638 = vmatpush1.msra.mxu0 %v7463_v29  ;;  %1907 = vmatpush1.msra.mxu1 %v7464_v31  ;;  %7474 = vst [vmem:[#allocation24_spill] sm:$0xff] %v5870_v0  ;;  %7475 = vst [vmem:[#allocation36_spill] sm:$0xff] %v5876_v22  ;;  %v5878_v29 = vld [vmem:[#allocation12 + $0x10] sm:$0xff]  ;;  %v5882_v31 = vld [vmem:[#allocation12 + $0x2f8] sm:$0xff] }
 0x1c2   :  { %1639 = vmatprep.subr.mxu0 %v7465_v39  ;;  %1908 = vmatprep.subr.mxu1 %v5834_v33  ;;  %7476 = vst [vmem:[#allocation25_spill] sm:$0xff] %v5882_v31  ;;  %v5888_v39 = vld [vmem:[%s7431_s30] sm:$0x3f] }
 0x1c3   :  { %1640 = vmatpush1.msra.mxu0 %v7466_v34  ;;  %1909 = vmatpush1.msra.mxu1 %v5840_v37  ;;  %v7477_v34 = vld [vmem:[#allocation42_spill] sm:$0xff] }
 0x1c4   :  { %1641 = vmatprep.subr.mxu0 %v7467_v36  ;;  %1910 = vmatprep.subr.mxu1 %v5846_v42  ;;  %v1436_v36 = vrot.slane %v5888_v39, %v7477_v34 }
 0x1c5   :  { %1642 = vmatpush1.msra.mxu0 %v7468_v38  ;;  %1911 = vmatpush1.msra.mxu1 %v5852_v48 }
 0x1c6   :  { %1643 = vmatprep.subr.mxu0 %v7469_v50  ;;  %1912 = vmatprep.subr.mxu1 %v5858_v53 }
 0x1c7   :  { %1644 = vmatpush1.msra.mxu0 %v7470_v47  ;;  %1913 = vmatpush1.msra.mxu1 %v5864_v24  ;;  %v1440_v47 = vrot.slane %v5888_v39, %v5474_v9 }
 0x1c8   :  { %1959 = vmatprep.subr.mxu0 %v5762_v14  ;;  %1914 = vmatprep.subr.mxu1 %v5870_v0 }
 0x1c9   :  { %1915 = vmatpush1.msra.mxu1 %v5876_v22 }
 0x1ca   :  { %2034 = vmatprep.subr.mxu1 %v5882_v31 }
 0x1cb   :  { %v4509_v8 = vpop.eup %4508 }
 0x1cc   :  { %v1323_v13 = vmul.f32 %v4509_v8, %v1322_v49 }
 0x1ce   :  { %v1325_v63 = vadd.f32 %v1324_v2, %v1323_v13  ;;  %v7478_v13 = vld [vmem:[#allocation45_spill] sm:$0xff] }
 0x1d0   :  { %4411 = vmatmul.mubr.msk.f32.gmra.mxu0 %vm1330_vm9, %v1325_v63  ;;  %4413 = vmatmul.mubr.msk.f32.gmra.mxu1 %vm1330_vm9, %v1325_v63  ;;  %v5750_v56 = vsel %vm1330_vm9, %v1325_v63, 0.0 }
 0x1d1   :  { %1677 = vmatprep.mubr.f32.mxu0 %v7390_v15  ;;  %1948 = vmatprep.mubr.f32.mxu1 %v7390_v15  ;;  %1334 = vst [vmem:[#allocation13 + $0x38] sm:$0xff] %v5750_v56 }
 0x1d4   :  { %4414 = vmatmul.mubr.msk.f32.vlgmr.msra.gmra.mxu0 %vm1299_vm8, %v5667_v43  ;;  %v5804_v43 = vld [vmem:[#allocation12 + $0x198] sm:$0xff] }
 0x1d5   :  { %1681 = vmatprep.mubr.f32.mxu0 %v7390_v15  ;;  %1960 = vmatpush1.msra.mxu0 %v5765_v54 }
 0x1d6   :  { %1961 = vmatprep.subr.mxu0 %v5768_v3 }
 0x1d7   :  { %1962 = vmatpush1.msra.mxu0 %v5771_v4 }
 0x1d8   :  { %4415 = vmatmul.mubr.msk.f32.gmra.mxu0 %vm1330_vm9, %v1325_v63  ;;  %1963 = vmatprep.subr.mxu0 %v5774_v11 }
 0x1d9   :  { %2023 = vmatprep.mubr.f32.mxu0 %v7390_v15  ;;  %1964 = vmatpush1.msra.mxu0 %v5777_v55 }
 0x1da   :  { %1965 = vmatprep.subr.mxu0 %v5780_v57 }
 0x1db   :  { %1966 = vmatpush1.msra.mxu0 %v5783_v61 }
 0x1dc   :  { %1967 = vmatprep.subr.mxu0 %v5786_v58 }
 0x1dd   :  { %1968 = vmatpush1.msra.mxu0 %v5789_v18 }
 0x1de   :  { %1969 = vmatprep.subr.mxu0 %v5792_v62 }
 0x1df   :  { %1970 = vmatpush1.msra.mxu0 %v5795_v5 }
 0x1e0   :  { %1971 = vmatprep.subr.mxu0 %v5798_v46 }
 0x1e1   :  { %1972 = vmatpush1.msra.mxu0 %v5801_v19 }
 0x1e2   :  { %1973 = vmatprep.subr.mxu0 %v5804_v43 }
 0x1e3   :  { %1974 = vmatpush1.msra.mxu0 %v5807_v12 }
 0x1e4   :  { %1975 = vmatprep.subr.mxu0 %v5810_v51 }
 0x1e5   :  { %1976 = vmatpush1.msra.mxu0 %v5813_v20 }
 0x1e6   :  { %1977 = vmatprep.subr.mxu0 %v5816_v23 }
 0x1e7   :  { %1978 = vmatpush1.msra.mxu0 %v5819_v25 }
 0x1e8   :  { %1979 = vmatprep.subr.mxu0 %v5822_v27 }
 0x1e9   :  { %1980 = vmatpush1.msra.mxu0 %v5825_v28 }
 0x1ea   :  { %1981 = vmatprep.subr.mxu0 %v5828_v30 }
 0x1eb   :  { %1982 = vmatpush1.msra.mxu0 %v5831_v32 }
 0x1ec   :  { %1983 = vmatprep.subr.mxu0 %v5836_v35 }
 0x1ed   :  { %1984 = vmatpush1.msra.mxu0 %v5842_v41 }
 0x1ee   :  { %1985 = vmatprep.subr.mxu0 %v5848_v45 }
 0x1ef   :  { %1986 = vmatpush1.msra.mxu0 %v5854_v52 }
 0x1f0   :  { %1987 = vmatprep.subr.mxu0 %v5860_v21 }
 0x1f1   :  { %1988 = vmatpush1.msra.mxu0 %v5866_v17 }
 0x1f2   :  { %1989 = vmatprep.subr.mxu0 %v5872_v26 }
 0x1f3   :  { %1990 = vmatpush1.msra.mxu0 %v5878_v29 }
 0x268   :  { %v1529_v38 = vpop.f32.mrf.mxu0  ;;  %v1604_v50 = vpop.f32.mrf.mxu1 }
 0x269   :  { %v1530_v44 = vadd.f32 %v1529_v38, %v1436_v36  ;;  %v1444_v36 = vrot.slane %v5888_v39, %v5469_v1 }
 0x26a   :  { %v1531_v49 = vpop.f32.mrf.mxu0  ;;  %v1606_v8 = vpop.f32.mrf.mxu1 }
 0x26b   :  { %v1692_v2 = vadd.f32 %v1530_v44, %v7478_v13  ;;  %v1532_v16 = vadd.f32 %v1531_v49, %v1440_v47  ;;  %v1605_v9 = vadd.f32 %v1604_v50, %v1444_v36  ;;  %v7480_v44 = vld [vmem:[#allocation46_spill] sm:$0xff]  ;;  %v1448_v47 = vrot.slane %v5888_v39, %v5446_v6  ;;  %v7481_v49 = vld [vmem:[#allocation68_spill] sm:$0xff] }
 0x26d   :  { %v4416_v63 = vmul.f32 -1.442695, %v1692_v2  ;;  %v1693_v31 = vadd.f32 %v1532_v16, %v7479_v59 }
 0x26f   :  { %4510 = vpow2.f32 %v4416_v63  ;;  %v4417_v22 = vmul.f32 -1.442695, %v1693_v31 }
 0x271   :  { %4512 = vpow2.f32 %v4417_v22 }
 0x27c   :  { %v4511_v0 = vpop.eup %4510 }
 0x27d   :  { %v1700_v24 = vadd.f32 1.0, %v4511_v0 }
 0x27e   :  { %v4513_v34 = vpop.eup %4512 }
 0x27f   :  { %4514 = vrcp.f32 %v1700_v24  ;;  %v1701_v38 = vadd.f32 1.0, %v4513_v34  ;;  %v1452_v34 = vrot.slane %v5888_v39, %v5569_v7 }
 0x281   :  { %4516 = vrcp.f32 %v1701_v38 }
 0x28c   :  { %v4515_v53 = vpop.eup %4514 }
 0x28d   :  { %v1706_v8 = vmul.f32 %v4515_v53, %v1605_v9 }
 0x28e   :  { %v4517_v36 = vpop.eup %4516 }
 0x28f   :  { %v1707_v13 = vadd.f32 %v1706_v8, %v7480_v44  ;;  %v5905_v8 = vpop.permute.xlu1 %1715  ;;  %v1709_v44 = vsub.f32 1.0, %v4517_v36 }
 0x290   :  { %v1535_v16 = vpop.f32.mrf.mxu0  ;;  %v1609_v59 = vpop.f32.mrf.mxu1  ;;  %7482 = vst [vmem:[#allocation37_spill] sm:$0xff] %v5905_v8  ;;  %vm1717_vm10 = vcmp.eq.s32.totalorder %v5905_v8, 1  ;;  %v5968_v8 = vld [vmem:[#allocation12 + $0x170] sm:$0xff] }
 0x291   :  { %4518 = vtanh.f32 %v1707_v13  ;;  %v1711_v59 = vmul.f32 %v4517_v36, %v5678_v10  ;;  %v5942_v36 = vld [vmem:[#allocation12 + $0x230] sm:$0xff]  ;;  %7490 = vst [vmem:[#allocation41_spill] sm:$0xff] %v5968_v8 }
 0x292   :  { %v1536_v22 = vpop.f32.mrf.mxu0  ;;  %v1610_v0 = vpop.f32.mrf.mxu1  ;;  %7483 = vst [vmem:[#allocation26_spill] sm:$0xff] %v5942_v36 }
 0x293   :  { %v1611_v24 = vadd.f32 %v1610_v0, %v1448_v47  ;;  %v5909_v0 = vld [vmem:[#allocation12 + $0x2f0] sm:$0xff] }
 0x294   :  { %v1679_v31 = vpop.f32.mrf.mxu0 }
 0x295   :  { %v1724_v2 = vadd.f32 %v1611_v24, %v7481_v49  ;;  %v5918_v31 = vld [vmem:[#allocation12 + $0x2c8] sm:$0xff]  ;;  %v5922_v49 = vld [vmem:[#allocation12 + $0x2c0] sm:$0xff] }
 0x296   :  { %v1680_v50 = vpop.f32.mrf.mxu0 }
 0x297   :  { %v4418_v9 = vmul.f32 -1.442695, %v1724_v2  ;;  %v5925_v2 = vld [vmem:[#allocation12 + $0x298] sm:$0xff] }
 0x298   :  { %v1683_v53 = vpop.f32.mrf.mxu0 }
 0x299   :  { %4520 = vpow2.f32 %v4418_v9  ;;  %v1684_v63 = vadd.f32 %v1683_v53, %v1452_v34  ;;  %v5929_v34 = vld [vmem:[#allocation12 + $0x290] sm:$0xff]  ;;  %v5933_v9 = vld [vmem:[#allocation12 + $0x268] sm:$0xff]  ;;  %v5936_v53 = vld [vmem:[#allocation12 + $0x260] sm:$0xff] }
 0x29b   :  { %v1725_v38 = vadd.f32 %v1684_v63, %v5646_v40  ;;  %v5939_v63 = vld [vmem:[#allocation12 + $0x238] sm:$0xff] }
 0x29d   :  { %v4419_v16 = vmul.f32 -1.442695, %v1725_v38  ;;  %v5945_v38 = vld [vmem:[#allocation12 + $0x208] sm:$0xff] }
 0x29e   :  { %v4519_v13 = vpop.eup %4518  ;;  %7484 = vst [vmem:[#allocation38_spill] sm:$0xff] %v5945_v38 }
 0x29f   :  { %v1710_v47 = vmul.f32 %v4519_v13, %v1709_v44  ;;  %4522 = vpow2.f32 %v4419_v16  ;;  %v5948_v44 = vld [vmem:[#allocation12 + $0x200] sm:$0xff]  ;;  %v5951_v13 = vld [vmem:[#allocation12 + $0x1d8] sm:$0xff]  ;;  %v5954_v16 = vld [vmem:[#allocation12 + $0x1d0] sm:$0xff] }
 0x2a0   :  { %7485 = vst [vmem:[#allocation27_spill] sm:$0xff] %v5948_v44  ;;  %7486 = vst [vmem:[#allocation39_spill] sm:$0xff] %v5951_v13 }
 0x2a1   :  { %v1712_v22 = vadd.f32 %v1711_v59, %v1710_v47  ;;  %v5957_v47 = vld [vmem:[#allocation12 + $0x1a8] sm:$0xff] }
 0x2a2   :  { %7487 = vst [vmem:[#allocation28_spill] sm:$0xff] %v5957_v47 }
 0x2a3   :  { %v5914_v24 = vsel %vm1717_vm10, %v1712_v22, %v5678_v10  ;;  %v1719_v40 = vsel %vm1717_vm10, %v1712_v22, 0.0  ;;  %v5960_v22 = vld [vmem:[#allocation12 + $0x1a0] sm:$0xff] }
 0x2a4   :  { %1753 = vst [vmem:[#allocation13 + $0x8] sm:$0xff] %v1719_v40  ;;  %1949 = vmatmul.mubr.f32.vlgmr.msra.gmra.mxu1 %v5914_v24  ;;  %2024 = vmatmul.mubr.f32.vlgmr.msra.gmra.mxu0 %v5914_v24  ;;  %7488 = vst [vmem:[#allocation40_spill] sm:$0xff] %v5960_v22  ;;  %v1456_v40 = vrot.slane %v5888_v39, %v5579_v60  ;;  %v5977_v39 = vld [vmem:[#allocation12 + $0x118] sm:$0xff] }
 0x2a5   :  { %2035 = vmatpush1.msra.mxu1 %v5909_v0  ;;  %1954 = vmatprep.mubr.f32.mxu1 %v7390_v15 }
 0x2a6   :  { %v4521_v10 = vpop.eup %4520  ;;  %2036 = vmatprep.subr.mxu1 %v5918_v31  ;;  %2028 = vmatprep.mubr.f32.mxu0 %v7390_v15 }
 0x2a7   :  { %v1732_v50 = vadd.f32 1.0, %v4521_v10  ;;  %2037 = vmatpush1.msra.mxu1 %v5922_v49  ;;  %v5965_v10 = vld [vmem:[#allocation12 + $0x178] sm:$0xff] }
 0x2a8   :  { %2038 = vmatprep.subr.mxu1 %v5925_v2  ;;  %7489 = vst [vmem:[#allocation29_spill] sm:$0xff] %v5965_v10 }
 0x2a9   :  { %4524 = vrcp.f32 %v1732_v50  ;;  %2039 = vmatpush1.msra.mxu1 %v5929_v34  ;;  %v1685_v50 = vpop.f32.mrf.mxu0 }
 0x2aa   :  { %2040 = vmatprep.subr.mxu1 %v5933_v9 }
 0x2ab   :  { %2041 = vmatpush1.msra.mxu1 %v5936_v53 }
 0x2ac   :  { %2042 = vmatprep.subr.mxu1 %v5939_v63  ;;  %v4523_v59 = vpop.eup %4522 }
 0x2ad   :  { %2043 = vmatpush1.msra.mxu1 %v5942_v36  ;;  %v1686_v36 = vadd.f32 %v1685_v50, %v1456_v40  ;;  %v7495_v40 = vld [vmem:[#allocation85_spill] sm:$0xff] }
 0x2ae   :  { %2044 = vmatprep.subr.mxu1 %v5945_v38  ;;  %v5971_v38 = vld [vmem:[#allocation12 + $0x148] sm:$0xff] }
 0x2af   :  { %2045 = vmatpush1.msra.mxu1 %v5948_v44  ;;  %v1733_v44 = vadd.f32 1.0, %v4523_v59  ;;  %7491 = vst [vmem:[#allocation30_spill] sm:$0xff] %v5971_v38 }
 0x2b0   :  { %2046 = vmatprep.subr.mxu1 %v5951_v13  ;;  %v5974_v13 = vld [vmem:[#allocation12 + $0x140] sm:$0xff] }
 0x2b1   :  { %2047 = vmatpush1.msra.mxu1 %v5954_v16  ;;  %4526 = vrcp.f32 %v1733_v44  ;;  %v6002_v44 = vld [vmem:[#allocation12 + $0x58] sm:$0xff] }
 0x2b2   :  { %2048 = vmatprep.subr.mxu1 %v5957_v47  ;;  %v5980_v47 = vld [vmem:[#allocation12 + $0x110] sm:$0xff] }
 0x2b3   :  { %2049 = vmatpush1.msra.mxu1 %v5960_v22  ;;  %7492 = vst [vmem:[#allocation31_spill] sm:$0xff] %v5980_v47  ;;  %v5983_v22 = vld [vmem:[#allocation12 + $0xe8] sm:$0xff] }
 0x2b4   :  { %2050 = vmatprep.subr.mxu1 %v5965_v10  ;;  %7493 = vst [vmem:[#allocation32_spill] sm:$0xff] %v5983_v22  ;;  %v5986_v10 = vld [vmem:[#allocation12 + $0xe0] sm:$0xff] }
 0x2b5   :  { %2051 = vmatpush1.msra.mxu1 %v5968_v8  ;;  %7494 = vst [vmem:[#allocation33_spill] sm:$0xff] %v5986_v10  ;;  %v5990_v8 = vld [vmem:[#allocation12 + $0xb8] sm:$0xff] }
 0x2b6   :  { %v4525_v60 = vpop.eup %4524  ;;  %2052 = vmatprep.subr.mxu1 %v5971_v38  ;;  %7496 = vst [vmem:[#allocation34_spill] sm:$0xff] %v5990_v8  ;;  %v5993_v38 = vld [vmem:[#allocation12 + $0xb0] sm:$0xff] }
 0x2b7   :  { %v1738_v59 = vmul.f32 %v4525_v60, %v1686_v36  ;;  %2053 = vmatpush1.msra.mxu1 %v5974_v13  ;;  %7497 = vst [vmem:[#allocation35_spill] sm:$0xff] %v5993_v38  ;;  %v5996_v60 = vld [vmem:[#allocation12 + $0x88] sm:$0xff]  ;;  %v5999_v36 = vld [vmem:[#allocation12 + $0x80] sm:$0xff] }
 0x2b8   :  { %2054 = vmatprep.subr.mxu1 %v5977_v39  ;;  %7498 = vst [vmem:[#allocation45_spill] sm:$0xff] %v5996_v60  ;;  %7499 = vst [vmem:[#allocation47_spill] sm:$0xff] %v5999_v36 }
 0x2b9   :  { %v1739_v50 = vadd.f32 %v1738_v59, %v7495_v40  ;;  %2055 = vmatpush1.msra.mxu1 %v5980_v47  ;;  %v6005_v59 = vld [vmem:[#allocation12 + $0x50] sm:$0xff]  ;;  %v6008_v40 = vld [vmem:[#allocation12 + $0x28] sm:$0xff] }
 0x2ba   :  { %2056 = vmatprep.subr.mxu1 %v5983_v22  ;;  %7500 = vst [vmem:[#allocation46_spill] sm:$0xff] %v6005_v59  ;;  %v6018_v22 = vpop.permute.xlu1 %1747 }
 0x2bb   :  { %4528 = vtanh.f32 %v1739_v50  ;;  %2057 = vmatpush1.msra.mxu1 %v5986_v10  ;;  %v6011_v50 = vld [vmem:[#allocation12 + $0x20] sm:$0xff]  ;;  %7502 = vst [vmem:[#allocation85_spill] sm:$0xff] %v6018_v22  ;;  %vm1749_vm11 = vcmp.eq.s32.totalorder %v6018_v22, 1 }
 0x2bc   :  { %2058 = vmatprep.subr.mxu1 %v5990_v8  ;;  %7501 = vst [vmem:[#allocation68_spill] sm:$0xff] %v6011_v50 }
 0x2bd   :  { %2059 = vmatpush1.msra.mxu1 %v5993_v38 }
 0x2be   :  { %2060 = vmatprep.subr.mxu1 %v5996_v60  ;;  %v4527_v38 = vpop.eup %4526 }
 0x2bf   :  { %2061 = vmatpush1.msra.mxu1 %v5999_v36  ;;  %v1741_v60 = vsub.f32 1.0, %v4527_v38  ;;  %v1743_v36 = vmul.f32 %v4527_v38, %v5750_v56 }
 0x2c0   :  { %2062 = vmatprep.subr.mxu1 %v6002_v44 }
 0x2c1   :  { %2063 = vmatpush1.msra.mxu1 %v6005_v59 }
 0x2c2   :  { %2064 = vmatprep.subr.mxu1 %v6008_v40 }
 0x2c3   :  { %2065 = vmatpush1.msra.mxu1 %v6011_v50 }
 0x2c4   :  { %2380 = vmatprep.subr.mxu1 %v5762_v14  ;;  %v6067_v14 = vld [vmem:[#allocation12 + $0x2d0] sm:$0xff] }
 0x2c8   :  { %v4529_v8 = vpop.eup %4528 }
 0x2c9   :  { %v1742_v10 = vmul.f32 %v4529_v8, %v1741_v60 }
 0x2cb   :  { %v1744_v47 = vadd.f32 %v1743_v36, %v1742_v10 }
 0x2cd   :  { %v6024_v59 = vsel %vm1749_vm11, %v1744_v47, %v5750_v56  ;;  %v1751_v50 = vsel %vm1749_vm11, %v1744_v47, 0.0  ;;  %v2268_v56 = vld [vmem:[#allocation12 + $0x2d8] sm:$0xff]  ;;  %v7510_v47 = vld [vmem:[#allocation49_spill] sm:$0xff] }
 0x2ce   :  { %1755 = vst [vmem:[#allocation13 + $0x30] sm:$0xff] %v1751_v50  ;;  %1955 = vmatmul.mubr.f32.gmra.mxu1 %v6024_v59  ;;  %2029 = vmatmul.mubr.f32.gmra.mxu0 %v6024_v59  ;;  %v7511_v50 = vld [vmem:[#allocation51_spill] sm:$0xff] }
 0x2cf   :  { %2098 = vmatprep.mubr.f32.mxu1 %v7390_v15  ;;  %2369 = vmatprep.mubr.f32.mxu0 %v7390_v15 }
 0x2d0   :  { %2305 = vmatprep.subr.mxu0 %v2268_v56 }
 0x2d1   :  { %2306 = vmatpush1.msra.mxu0 %v6067_v14 }
 0x2d2   :  { %2099 = vmatmul.mubr.f32.vlgmr.msra.gmra.mxu1 %v5914_v24 }
 0x2d3   :  { %2102 = vmatprep.mubr.f32.mxu1 %v7390_v15  ;;  %2381 = vmatpush1.msra.mxu1 %v5765_v54  ;;  %v6070_v54 = vld [vmem:[#allocation12 + $0x2a8] sm:$0xff] }
 0x2d4   :  { %2382 = vmatprep.subr.mxu1 %v5768_v3  ;;  %2307 = vmatprep.subr.mxu0 %v6070_v54  ;;  %v6073_v3 = vld [vmem:[#allocation12 + $0x2a0] sm:$0xff] }
 0x2d5   :  { %2383 = vmatpush1.msra.mxu1 %v5771_v4  ;;  %2308 = vmatpush1.msra.mxu0 %v6073_v3  ;;  %v6076_v4 = vld [vmem:[#allocation12 + $0x278] sm:$0xff] }
 0x2d6   :  { %2103 = vmatmul.mubr.f32.gmra.mxu1 %v6024_v59  ;;  %2384 = vmatprep.subr.mxu1 %v5774_v11  ;;  %v6079_v11 = vld [vmem:[#allocation12 + $0x270] sm:$0xff] }
 0x2d7   :  { %2385 = vmatpush1.msra.mxu1 %v5777_v55  ;;  %2444 = vmatprep.mubr.f32.mxu1 %v7390_v15  ;;  %v6082_v55 = vld [vmem:[#allocation12 + $0x248] sm:$0xff] }
 0x2d8   :  { %2386 = vmatprep.subr.mxu1 %v5780_v57  ;;  %2309 = vmatprep.subr.mxu0 %v6076_v4  ;;  %v6085_v57 = vld [vmem:[#allocation12 + $0x240] sm:$0xff] }
 0x2d9   :  { %2387 = vmatpush1.msra.mxu1 %v5783_v61  ;;  %2310 = vmatpush1.msra.mxu0 %v6079_v11  ;;  %v6088_v61 = vld [vmem:[#allocation12 + $0x218] sm:$0xff] }
 0x2da   :  { %2388 = vmatprep.subr.mxu1 %v5786_v58  ;;  %2311 = vmatprep.subr.mxu0 %v6082_v55  ;;  %v6091_v58 = vld [vmem:[#allocation12 + $0x210] sm:$0xff] }
 0x2db   :  { %2389 = vmatpush1.msra.mxu1 %v5789_v18  ;;  %2312 = vmatpush1.msra.mxu0 %v6085_v57  ;;  %v6094_v18 = vld [vmem:[#allocation12 + $0x1e8] sm:$0xff] }
 0x2dc   :  { %2390 = vmatprep.subr.mxu1 %v5792_v62  ;;  %2313 = vmatprep.subr.mxu0 %v6088_v61  ;;  %v6097_v62 = vld [vmem:[#allocation12 + $0x1e0] sm:$0xff] }
 0x2dd   :  { %2391 = vmatpush1.msra.mxu1 %v5795_v5  ;;  %2314 = vmatpush1.msra.mxu0 %v6091_v58  ;;  %v6100_v5 = vld [vmem:[#allocation12 + $0x1b8] sm:$0xff] }
 0x2de   :  { %2392 = vmatprep.subr.mxu1 %v5798_v46  ;;  %2315 = vmatprep.subr.mxu0 %v6094_v18  ;;  %v6103_v46 = vld [vmem:[#allocation12 + $0x1b0] sm:$0xff] }
 0x2df   :  { %2393 = vmatpush1.msra.mxu1 %v5801_v19  ;;  %2316 = vmatpush1.msra.mxu0 %v6097_v62  ;;  %v6106_v19 = vld [vmem:[#allocation12 + $0x188] sm:$0xff] }
 0x2e0   :  { %2394 = vmatprep.subr.mxu1 %v5804_v43  ;;  %2317 = vmatprep.subr.mxu0 %v6100_v5  ;;  %v6109_v43 = vld [vmem:[#allocation12 + $0x180] sm:$0xff] }
 0x2e1   :  { %2395 = vmatpush1.msra.mxu1 %v5807_v12  ;;  %2318 = vmatpush1.msra.mxu0 %v6103_v46  ;;  %v6112_v12 = vld [vmem:[#allocation12 + $0x158] sm:$0xff] }
 0x2e2   :  { %2396 = vmatprep.subr.mxu1 %v5810_v51  ;;  %2319 = vmatprep.subr.mxu0 %v6106_v19  ;;  %v6115_v51 = vld [vmem:[#allocation12 + $0x150] sm:$0xff] }
 0x2e3   :  { %2397 = vmatpush1.msra.mxu1 %v5813_v20  ;;  %2320 = vmatpush1.msra.mxu0 %v6109_v43  ;;  %v6118_v20 = vld [vmem:[#allocation12 + $0x128] sm:$0xff] }
 0x2e4   :  { %2398 = vmatprep.subr.mxu1 %v5816_v23  ;;  %2321 = vmatprep.subr.mxu0 %v6112_v12  ;;  %v6121_v23 = vld [vmem:[#allocation12 + $0x120] sm:$0xff] }
 0x2e5   :  { %2399 = vmatpush1.msra.mxu1 %v5819_v25  ;;  %2322 = vmatpush1.msra.mxu0 %v6115_v51  ;;  %v6124_v25 = vld [vmem:[#allocation12 + $0xf8] sm:$0xff] }
 0x2e6   :  { %2400 = vmatprep.subr.mxu1 %v5822_v27  ;;  %2323 = vmatprep.subr.mxu0 %v6118_v20  ;;  %v6127_v27 = vld [vmem:[#allocation12 + $0xf0] sm:$0xff] }
 0x2e7   :  { %2401 = vmatpush1.msra.mxu1 %v5825_v28  ;;  %2324 = vmatpush1.msra.mxu0 %v6121_v23  ;;  %v6130_v28 = vld [vmem:[#allocation12 + $0xc8] sm:$0xff] }
 0x2e8   :  { %2402 = vmatprep.subr.mxu1 %v5828_v30  ;;  %2325 = vmatprep.subr.mxu0 %v6124_v25  ;;  %v6133_v30 = vld [vmem:[#allocation12 + $0xc0] sm:$0xff] }
 0x2e9   :  { %2403 = vmatpush1.msra.mxu1 %v5831_v32  ;;  %2326 = vmatpush1.msra.mxu0 %v6127_v27  ;;  %v7503_v32 = vld [vmem:[#allocation22_spill] sm:$0xff] }
 0x2ea   :  { %2404 = vmatprep.subr.mxu1 %v5836_v35  ;;  %2327 = vmatprep.subr.mxu0 %v6130_v28  ;;  %v7504_v35 = vld [vmem:[#allocation23_spill] sm:$0xff] }
 0x2eb   :  { %2405 = vmatpush1.msra.mxu1 %v5842_v41  ;;  %2328 = vmatpush1.msra.mxu0 %v6133_v30  ;;  %v7505_v41 = vld [vmem:[#allocation24_spill] sm:$0xff] }
 0x2ec   :  { %2406 = vmatprep.subr.mxu1 %v5848_v45  ;;  %2329 = vmatprep.subr.mxu0 %v5834_v33  ;;  %v7506_v45 = vld [vmem:[#allocation36_spill] sm:$0xff]  ;;  %v6148_v33 = vld [vmem:[%s7431_s30] sm:$0x3f] }
 0x2ed   :  { %2407 = vmatpush1.msra.mxu1 %v5854_v52  ;;  %2330 = vmatpush1.msra.mxu0 %v5840_v37  ;;  %v7507_v52 = vld [vmem:[#allocation25_spill] sm:$0xff]  ;;  %v7508_v37 = vld [vmem:[#allocation42_spill] sm:$0xff] }
 0x2ee   :  { %2408 = vmatprep.subr.mxu1 %v5860_v21  ;;  %2331 = vmatprep.subr.mxu0 %v5846_v42  ;;  %v1857_v42 = vrot.slane %v6148_v33, %v7508_v37 }
 0x2ef   :  { %2409 = vmatpush1.msra.mxu1 %v5866_v17  ;;  %2332 = vmatpush1.msra.mxu0 %v5852_v48 }
 0x2f0   :  { %2410 = vmatprep.subr.mxu1 %v5872_v26  ;;  %2333 = vmatprep.subr.mxu0 %v7503_v32  ;;  %v7509_v26 = vld [vmem:[#allocation43_spill] sm:$0xff] }
 0x2f1   :  { %2411 = vmatpush1.msra.mxu1 %v5878_v29  ;;  %2334 = vmatpush1.msra.mxu0 %v7504_v35  ;;  %v1861_v29 = vrot.slane %v6148_v33, %v7509_v26 }
 0x2f2   :  { %2726 = vmatprep.subr.mxu1 %v2268_v56  ;;  %2335 = vmatprep.subr.mxu0 %v7505_v41 }
 0x2f3   :  { %2336 = vmatpush1.msra.mxu0 %v7506_v45 }
 0x2f4   :  { %2455 = vmatprep.subr.mxu0 %v7507_v52  ;;  %v1865_v52 = vrot.slane %v6148_v33, %v5469_v1 }
 0x364   :  { %v1950_v21 = vpop.f32.mrf.mxu1  ;;  %v2025_v48 = vpop.f32.mrf.mxu0 }
 0x365   :  { %v1951_v17 = vadd.f32 %v1950_v21, %v1857_v42  ;;  %v2026_v21 = vadd.f32 %v2025_v48, %v1865_v52  ;;  %v1873_v48 = vrot.slane %v6148_v33, %v5569_v7 }
 0x366   :  { %v1952_v8 = vpop.f32.mrf.mxu1  ;;  %v2027_v38 = vpop.f32.mrf.mxu0 }
 0x367   :  { %v2113_v10 = vadd.f32 %v1951_v17, %v7510_v47  ;;  %v1953_v36 = vadd.f32 %v1952_v8, %v1861_v29  ;;  %v7512_v17 = vld [vmem:[#allocation50_spill] sm:$0xff]  ;;  %v1869_v29 = vrot.slane %v6148_v33, %v5446_v6 }
 0x369   :  { %v4420_v60 = vmul.f32 -1.442695, %v2113_v10  ;;  %v2114_v56 = vadd.f32 %v1953_v36, %v7511_v50 }
 0x36b   :  { %4530 = vpow2.f32 %v4420_v60  ;;  %v4421_v32 = vmul.f32 -1.442695, %v2114_v56 }
 0x36d   :  { %4532 = vpow2.f32 %v4421_v32  ;;  %v7513_v32 = vld [vmem:[#allocation64_spill] sm:$0xff] }
 0x378   :  { %v4531_v35 = vpop.eup %4530 }
 0x379   :  { %v2121_v41 = vadd.f32 1.0, %v4531_v35 }
 0x37a   :  { %v4533_v45 = vpop.eup %4532 }
 0x37b   :  { %4534 = vrcp.f32 %v2121_v41  ;;  %v2122_v42 = vadd.f32 1.0, %v4533_v45 }
 0x37d   :  { %4536 = vrcp.f32 %v2122_v42 }
 0x388   :  { %v4535_v22 = vpop.eup %4534 }
 0x389   :  { %v2127_v38 = vmul.f32 %v4535_v22, %v2026_v21  ;;  %v7514_v21 = vld [vmem:[#allocation83_spill] sm:$0xff] }
 0x38a   :  { %v4537_v45 = vpop.eup %4536 }
 0x38b   :  { %v2128_v47 = vadd.f32 %v2127_v38, %v7512_v17  ;;  %v2130_v17 = vsub.f32 1.0, %v4537_v45 }
 0x38d   :  { %4538 = vtanh.f32 %v2128_v47 }
 0x38e   :  { %v1956_v8 = vpop.f32.mrf.mxu1  ;;  %v2030_v10 = vpop.f32.mrf.mxu0 }
 0x38f   :  { %v2132_v10 = vmul.f32 %v4537_v45, %v5914_v24  ;;  %v6271_v45 = vld [vmem:[#allocation12 + $0x280] sm:$0xff] }
 0x390   :  { %v1957_v60 = vpop.f32.mrf.mxu1  ;;  %v2031_v36 = vpop.f32.mrf.mxu0 }
 0x391   :  { %v2032_v50 = vadd.f32 %v2031_v36, %v1869_v29  ;;  %v6166_v29 = vpop.permute.xlu0 %2136 }
 0x392   :  { %v2100_v56 = vpop.f32.mrf.mxu1  ;;  %7515 = vst [vmem:[#allocation22_spill] sm:$0xff] %v6166_v29  ;;  %vm2138_vm12 = vcmp.eq.s32.totalorder %v6166_v29, 1  ;;  %v7542_v29 = vld [vmem:[#allocation55_spill] sm:$0xff] }
 0x393   :  { %v2145_v35 = vadd.f32 %v2032_v50, %v7513_v32 }
 0x394   :  { %v2101_v41 = vpop.f32.mrf.mxu1 }
 0x395   :  { %v4422_v22 = vmul.f32 -1.442695, %v2145_v35  ;;  %v6259_v35 = vld [vmem:[#allocation12 + $0x2e0] sm:$0xff]  ;;  %v6265_v41 = vld [vmem:[#allocation12 + $0x2b0] sm:$0xff] }
 0x396   :  { %v2104_v52 = vpop.f32.mrf.mxu1 }
 0x397   :  { %4540 = vpow2.f32 %v4422_v22  ;;  %v2105_v42 = vadd.f32 %v2104_v52, %v1873_v48  ;;  %v6262_v48 = vld [vmem:[#allocation12 + $0x2b8] sm:$0xff]  ;;  %v6268_v22 = vld [vmem:[#allocation12 + $0x288] sm:$0xff] }
 0x398   :  { %v6274_v52 = vld [vmem:[#allocation12 + $0x258] sm:$0xff] }
 0x399   :  { %v2146_v38 = vadd.f32 %v2105_v42, %v7514_v21  ;;  %v6277_v42 = vld [vmem:[#allocation12 + $0x250] sm:$0xff]  ;;  %v6280_v21 = vld [vmem:[#allocation12 + $0x228] sm:$0xff] }
 0x39a   :  { %v4539_v47 = vpop.eup %4538 }
 0x39b   :  { %v2131_v8 = vmul.f32 %v4539_v47, %v2130_v17  ;;  %v4423_v60 = vmul.f32 -1.442695, %v2146_v38  ;;  %v6283_v38 = vld [vmem:[#allocation12 + $0x220] sm:$0xff]  ;;  %v6286_v17 = vld [vmem:[#allocation12 + $0x1f8] sm:$0xff]  ;;  %v6289_v47 = vld [vmem:[#allocation12 + $0x1f0] sm:$0xff] }
 0x39d   :  { %v2133_v36 = vadd.f32 %v2132_v10, %v2131_v8  ;;  %4542 = vpow2.f32 %v4423_v60  ;;  %v6292_v8 = vld [vmem:[#allocation12 + $0x1c8] sm:$0xff]  ;;  %v6294_v10 = vld [vmem:[#allocation12 + $0x1c0] sm:$0xff]  ;;  %v6298_v60 = vld [vmem:[#allocation12 + $0x198] sm:$0xff] }
 0x39f   :  { %v6172_v50 = vsel %vm2138_vm12, %v2133_v36, %v5914_v24  ;;  %v2140_v56 = vsel %vm2138_vm12, %v2133_v36, 0.0  ;;  %v6301_v36 = vld [vmem:[#allocation12 + $0x190] sm:$0xff] }
 0x3a0   :  { %2174 = vst [vmem:[#allocation13 + $0x10] sm:$0xff] %v2140_v56  ;;  %2370 = vmatmul.mubr.f32.vlgmr.msra.gmra.mxu0 %v6172_v50  ;;  %2445 = vmatmul.mubr.f32.vlgmr.msra.gmra.mxu1 %v6172_v50  ;;  %v6304_v56 = vld [vmem:[#allocation12 + $0x168] sm:$0xff] }
 0x3a1   :  { %2456 = vmatpush1.msra.mxu0 %v5909_v0  ;;  %2375 = vmatprep.mubr.f32.mxu0 %v7390_v15  ;;  %v7516_v0 = vld [vmem:[#allocation26_spill] sm:$0xff] }
 0x3a2   :  { %2457 = vmatprep.subr.mxu0 %v5918_v31  ;;  %2449 = vmatprep.mubr.f32.mxu1 %v7390_v15  ;;  %v7517_v31 = vld [vmem:[#allocation38_spill] sm:$0xff] }
 0x3a3   :  { %2458 = vmatpush1.msra.mxu0 %v5922_v49  ;;  %2727 = vmatpush1.msra.mxu1 %v6067_v14  ;;  %v7518_v49 = vld [vmem:[#allocation27_spill] sm:$0xff]  ;;  %v7522_v14 = vld [vmem:[#allocation40_spill] sm:$0xff] }
 0x3a4   :  { %v4541_v24 = vpop.eup %4540  ;;  %2459 = vmatprep.subr.mxu0 %v5925_v2  ;;  %2728 = vmatprep.subr.mxu1 %v6070_v54  ;;  %v7519_v2 = vld [vmem:[#allocation39_spill] sm:$0xff]  ;;  %v2106_v54 = vpop.f32.mrf.mxu1 }
 0x3a5   :  { %v2153_v32 = vadd.f32 1.0, %v4541_v24  ;;  %2460 = vmatpush1.msra.mxu0 %v5929_v34  ;;  %2729 = vmatpush1.msra.mxu1 %v6073_v3  ;;  %v7523_v3 = vld [vmem:[#allocation29_spill] sm:$0xff]  ;;  %v6307_v24 = vld [vmem:[#allocation12 + $0x160] sm:$0xff] }
 0x3a6   :  { %2461 = vmatprep.subr.mxu0 %v5933_v9  ;;  %2730 = vmatprep.subr.mxu1 %v6076_v4  ;;  %v7520_v9 = vld [vmem:[#allocation28_spill] sm:$0xff]  ;;  %v7524_v4 = vld [vmem:[#allocation41_spill] sm:$0xff] }
 0x3a7   :  { %4544 = vrcp.f32 %v2153_v32  ;;  %2462 = vmatpush1.msra.mxu0 %v5936_v53  ;;  %2731 = vmatpush1.msra.mxu1 %v6079_v11  ;;  %v7521_v53 = vld [vmem:[#allocation69_spill] sm:$0xff]  ;;  %v7525_v11 = vld [vmem:[#allocation30_spill] sm:$0xff] }
 0x3a8   :  { %2463 = vmatprep.subr.mxu0 %v5939_v63  ;;  %2732 = vmatprep.subr.mxu1 %v6082_v55  ;;  %v1877_v63 = vrot.slane %v6148_v33, %v7521_v53  ;;  %v6238_v33 = vpop.permute.xlu1 %2168  ;;  %v6310_v32 = vld [vmem:[#allocation12 + $0x138] sm:$0xff] }
 0x3a9   :  { %2464 = vmatpush1.msra.mxu0 %v7516_v0  ;;  %2733 = vmatpush1.msra.mxu1 %v6085_v57  ;;  %7536 = vst [vmem:[#allocation23_spill] sm:$0xff] %v6238_v33  ;;  %vm2170_vm13 = vcmp.eq.s32.totalorder %v6238_v33, 1  ;;  %v6313_v0 = vld [vmem:[#allocation12 + $0x130] sm:$0xff] }
 0x3aa   :  { %2465 = vmatprep.subr.mxu0 %v7517_v31  ;;  %2734 = vmatprep.subr.mxu1 %v6088_v61  ;;  %v4543_v34 = vpop.eup %4542  ;;  %v2107_v55 = vadd.f32 %v2106_v54, %v1877_v63  ;;  %v6316_v31 = vld [vmem:[#allocation12 + $0x108] sm:$0xff]  ;;  %v6336_v54 = vld [vmem:[#allocation12 + $0xa0] sm:$0xff] }
 0x3ab   :  { %2466 = vmatpush1.msra.mxu0 %v7518_v49  ;;  %2735 = vmatpush1.msra.mxu1 %v6091_v58  ;;  %v7526_v58 = vld [vmem:[#allocation31_spill] sm:$0xff]  ;;  %v6330_v63 = vld [vmem:[#allocation12 + $0xa8] sm:$0xff] }
 0x3ac   :  { %2467 = vmatprep.subr.mxu0 %v7519_v2  ;;  %2736 = vmatprep.subr.mxu1 %v6094_v18  ;;  %v7527_v18 = vld [vmem:[#allocation32_spill] sm:$0xff]  ;;  %v6319_v49 = vld [vmem:[#allocation12 + $0x100] sm:$0xff]  ;;  %v6322_v2 = vld [vmem:[#allocation12 + $0xd8] sm:$0xff] }
 0x3ad   :  { %2468 = vmatpush1.msra.mxu0 %v5954_v16  ;;  %2737 = vmatpush1.msra.mxu1 %v6097_v62  ;;  %v2154_v16 = vadd.f32 1.0, %v4543_v34  ;;  %v7528_v62 = vld [vmem:[#allocation84_spill] sm:$0xff]  ;;  %v6325_v34 = vld [vmem:[#allocation12 + $0xd0] sm:$0xff] }
 0x3ae   :  { %2469 = vmatprep.subr.mxu0 %v7520_v9  ;;  %2738 = vmatprep.subr.mxu1 %v6100_v5  ;;  %v6328_v9 = vld [vmem:[#allocation12 + $0x98] sm:$0xff] }
 0x3af   :  { %2470 = vmatpush1.msra.mxu0 %v7522_v14  ;;  %2739 = vmatpush1.msra.mxu1 %v6103_v46  ;;  %4546 = vrcp.f32 %v2154_v16  ;;  %v7530_v46 = vld [vmem:[#allocation34_spill] sm:$0xff]  ;;  %v6334_v14 = vld [vmem:[#allocation12 + $0x90] sm:$0xff] }
 0x3b0   :  { %2471 = vmatprep.subr.mxu0 %v7523_v3  ;;  %2740 = vmatprep.subr.mxu1 %v6106_v19  ;;  %v7532_v19 = vld [vmem:[#allocation45_spill] sm:$0xff]  ;;  %v6340_v3 = vld [vmem:[#allocation12 + $0x68] sm:$0xff]  ;;  %v6342_v16 = vld [vmem:[#allocation12 + $0x78] sm:$0xff] }
 0x3b1   :  { %2472 = vmatpush1.msra.mxu0 %v7524_v4  ;;  %2741 = vmatpush1.msra.mxu1 %v6109_v43  ;;  %v7533_v43 = vld [vmem:[#allocation47_spill] sm:$0xff] }
 0x3b2   :  { %2473 = vmatprep.subr.mxu0 %v7525_v11  ;;  %2742 = vmatprep.subr.mxu1 %v6112_v12  ;;  %v7534_v12 = vld [vmem:[#allocation46_spill] sm:$0xff]  ;;  %v6346_v4 = vld [vmem:[#allocation12 + $0x60] sm:$0xff]  ;;  %v6348_v11 = vld [vmem:[#allocation12 + $0x70] sm:$0xff] }
 0x3b3   :  { %2474 = vmatpush1.msra.mxu0 %v5974_v13  ;;  %2743 = vmatpush1.msra.mxu1 %v6115_v51  ;;  %v7529_v13 = vld [vmem:[#allocation33_spill] sm:$0xff]  ;;  %v7535_v51 = vld [vmem:[#allocation68_spill] sm:$0xff] }
 0x3b4   :  { %v4545_v57 = vpop.eup %4544  ;;  %2475 = vmatprep.subr.mxu0 %v5977_v39  ;;  %2744 = vmatprep.subr.mxu1 %v6118_v20  ;;  %v7531_v39 = vld [vmem:[#allocation35_spill] sm:$0xff] }
 0x3b5   :  { %v2159_v61 = vmul.f32 %v4545_v57, %v2107_v55  ;;  %2476 = vmatpush1.msra.mxu0 %v7526_v58  ;;  %2745 = vmatpush1.msra.mxu1 %v6121_v23  ;;  %v6352_v55 = vld [vmem:[#allocation12 + $0x38] sm:$0xff]  ;;  %v6354_v57 = vld [vmem:[#allocation12 + $0x48] sm:$0xff]  ;;  %v6360_v58 = vld [vmem:[#allocation12 + $0x40] sm:$0xff] }
 0x3b6   :  { %2477 = vmatprep.subr.mxu0 %v7527_v18  ;;  %2746 = vmatprep.subr.mxu1 %v6124_v25  ;;  %v6364_v18 = vld [vmem:[#allocation12 + $0x8] sm:$0xff] }
 0x3b7   :  { %v2160_v5 = vadd.f32 %v2159_v61, %v7528_v62  ;;  %2478 = vmatpush1.msra.mxu0 %v7529_v13  ;;  %2747 = vmatpush1.msra.mxu1 %v6127_v27  ;;  %v6358_v61 = vld [vmem:[#allocation12 + $0x30] sm:$0xff]  ;;  %7538 = vst [vmem:[#allocation36_spill] sm:$0xff] %v6364_v18  ;;  %v6366_v62 = vld [vmem:[#allocation12 + $0x18] sm:$0xff] }
 0x3b8   :  { %2479 = vmatprep.subr.mxu0 %v7530_v46  ;;  %2748 = vmatprep.subr.mxu1 %v6130_v28  ;;  %7537 = vst [vmem:[#allocation24_spill] sm:$0xff] %v6358_v61  ;;  %v6372_v13 = vld [vmem:[#allocation12 + $0x10] sm:$0xff]  ;;  %v6376_v46 = vld [vmem:[#allocation12 + $0x2f8] sm:$0xff] }
 0x3b9   :  { %4548 = vtanh.f32 %v2160_v5  ;;  %2480 = vmatpush1.msra.mxu0 %v7531_v39  ;;  %2749 = vmatpush1.msra.mxu1 %v6133_v30  ;;  %v6370_v5 = vld [vmem:[#allocation12] sm:$0xff]  ;;  %7540 = vst [vmem:[#allocation49_spill] sm:$0xff] %v6376_v46 }
 0x3ba   :  { %2481 = vmatprep.subr.mxu0 %v7532_v19  ;;  %2750 = vmatprep.subr.mxu1 %v6328_v9  ;;  %7539 = vst [vmem:[#allocation25_spill] sm:$0xff] %v6370_v5  ;;  %v6382_v39 = vld [vmem:[%s7431_s30] sm:$0x3f] }
 0x3bb   :  { %2482 = vmatpush1.msra.mxu0 %v7533_v43  ;;  %2751 = vmatpush1.msra.mxu1 %v6334_v14  ;;  %v2278_v19 = vrot.slane %v6382_v39, %v7508_v37 }
 0x3bc   :  { %2483 = vmatprep.subr.mxu0 %v6002_v44  ;;  %v4547_v20 = vpop.eup %4546  ;;  %2752 = vmatprep.subr.mxu1 %v6340_v3 }
 0x3bd   :  { %2484 = vmatpush1.msra.mxu0 %v7534_v12  ;;  %v2162_v23 = vsub.f32 1.0, %v4547_v20  ;;  %v2164_v28 = vmul.f32 %v4547_v20, %v6024_v59  ;;  %2753 = vmatpush1.msra.mxu1 %v6346_v4  ;;  %v2282_v20 = vrot.slane %v6382_v39, %v7509_v26 }
 0x3be   :  { %2485 = vmatprep.subr.mxu0 %v6008_v40  ;;  %2754 = vmatprep.subr.mxu1 %v6352_v55 }
 0x3bf   :  { %2486 = vmatpush1.msra.mxu0 %v7535_v51  ;;  %2755 = vmatpush1.msra.mxu1 %v6358_v61 }
 0x3c0   :  { %2756 = vmatprep.subr.mxu1 %v6364_v18 }
 0x3c1   :  { %2757 = vmatpush1.msra.mxu1 %v6370_v5 }
 0x3c2   :  { %2876 = vmatprep.subr.mxu1 %v6376_v46 }
 0x3c6   :  { %v4549_v25 = vpop.eup %4548 }
 0x3c7   :  { %v2163_v27 = vmul.f32 %v4549_v25, %v2162_v23 }
 0x3c9   :  { %v2165_v30 = vadd.f32 %v2164_v28, %v2163_v27  ;;  %v7541_v27 = vld [vmem:[#allocation53_spill] sm:$0xff] }
 0x3cb   :  { %v6244_v44 = vsel %vm2170_vm13, %v2165_v30, %v6024_v59  ;;  %v2172_v40 = vsel %vm2170_vm13, %v2165_v30, 0.0  ;;  %v6256_v59 = vld [vmem:[#allocation12 + $0x2e8] sm:$0xff] }
 0x3cc   :  { %2176 = vst [vmem:[#allocation13 + $0x28] sm:$0xff] %v2172_v40  ;;  %2376 = vmatmul.mubr.f32.gmra.mxu0 %v6244_v44  ;;  %2450 = vmatmul.mubr.f32.gmra.mxu1 %v6244_v44 }
 0x3cd   :  { %2519 = vmatprep.mubr.f32.mxu0 %v7390_v15  ;;  %2790 = vmatprep.mubr.f32.mxu1 %v7390_v15 }
 0x3ce   :  { %2801 = vmatprep.subr.mxu0 %v6256_v59 }
 0x3d0   :  { %2520 = vmatmul.mubr.f32.vlgmr.msra.gmra.mxu0 %v6172_v50 }
 0x3d1   :  { %2523 = vmatprep.mubr.f32.mxu0 %v7390_v15  ;;  %2802 = vmatpush1.msra.mxu0 %v6259_v35 }
 0x3d2   :  { %2803 = vmatprep.subr.mxu0 %v6262_v48 }
 0x3d3   :  { %2804 = vmatpush1.msra.mxu0 %v6265_v41 }
 0x3d4   :  { %2524 = vmatmul.mubr.f32.gmra.mxu0 %v6244_v44  ;;  %2805 = vmatprep.subr.mxu0 %v6268_v22 }
 0x3d5   :  { %2865 = vmatprep.mubr.f32.mxu0 %v7390_v15  ;;  %2806 = vmatpush1.msra.mxu0 %v6271_v45 }
 0x3d6   :  { %2807 = vmatprep.subr.mxu0 %v6274_v52 }
 0x3d7   :  { %2808 = vmatpush1.msra.mxu0 %v6277_v42 }
 0x3d8   :  { %2809 = vmatprep.subr.mxu0 %v6280_v21 }
 0x3d9   :  { %2810 = vmatpush1.msra.mxu0 %v6283_v38 }
 0x3da   :  { %2811 = vmatprep.subr.mxu0 %v6286_v17 }
 0x3db   :  { %2812 = vmatpush1.msra.mxu0 %v6289_v47 }
 0x3dc   :  { %2813 = vmatprep.subr.mxu0 %v6292_v8 }
 0x3dd   :  { %2814 = vmatpush1.msra.mxu0 %v6294_v10 }
 0x3de   :  { %2815 = vmatprep.subr.mxu0 %v6298_v60 }
 0x3df   :  { %2816 = vmatpush1.msra.mxu0 %v6301_v36 }
 0x3e0   :  { %2817 = vmatprep.subr.mxu0 %v6304_v56 }
 0x3e1   :  { %2818 = vmatpush1.msra.mxu0 %v6307_v24 }
 0x3e2   :  { %2819 = vmatprep.subr.mxu0 %v6310_v32 }
 0x3e3   :  { %2820 = vmatpush1.msra.mxu0 %v6313_v0 }
 0x3e4   :  { %2821 = vmatprep.subr.mxu0 %v6316_v31 }
 0x3e5   :  { %2822 = vmatpush1.msra.mxu0 %v6319_v49 }
 0x3e6   :  { %2823 = vmatprep.subr.mxu0 %v6322_v2 }
 0x3e7   :  { %2824 = vmatpush1.msra.mxu0 %v6325_v34 }
 0x3e8   :  { %2825 = vmatprep.subr.mxu0 %v6330_v63 }
 0x3e9   :  { %2826 = vmatpush1.msra.mxu0 %v6336_v54 }
 0x3ea   :  { %2827 = vmatprep.subr.mxu0 %v6342_v16 }
 0x3eb   :  { %2828 = vmatpush1.msra.mxu0 %v6348_v11 }
 0x3ec   :  { %2829 = vmatprep.subr.mxu0 %v6354_v57 }
 0x3ed   :  { %2830 = vmatpush1.msra.mxu0 %v6360_v58 }
 0x3ee   :  { %2831 = vmatprep.subr.mxu0 %v6366_v62 }
 0x3ef   :  { %2832 = vmatpush1.msra.mxu0 %v6372_v13 }
 0x460   :  { %v2371_v43 = vpop.f32.mrf.mxu0  ;;  %v2446_v12 = vpop.f32.mrf.mxu1 }
 0x461   :  { %v2372_v51 = vadd.f32 %v2371_v43, %v2278_v19  ;;  %v2286_v19 = vrot.slane %v6382_v39, %v5469_v1 }
 0x462   :  { %v2373_v23 = vpop.f32.mrf.mxu0  ;;  %v2448_v25 = vpop.f32.mrf.mxu1 }
 0x463   :  { %v2534_v28 = vadd.f32 %v2372_v51, %v7541_v27  ;;  %v2374_v40 = vadd.f32 %v2373_v23, %v2282_v20  ;;  %v2447_v26 = vadd.f32 %v2446_v12, %v2286_v19  ;;  %v7543_v51 = vld [vmem:[#allocation54_spill] sm:$0xff] }
 0x465   :  { %v4424_v30 = vmul.f32 -1.442695, %v2534_v28  ;;  %v2535_v33 = vadd.f32 %v2374_v40, %v7542_v29  ;;  %v2290_v29 = vrot.slane %v6382_v39, %v5446_v6  ;;  %v7544_v28 = vld [vmem:[#allocation60_spill] sm:$0xff] }
 0x467   :  { %4550 = vpow2.f32 %v4424_v30  ;;  %v4425_v46 = vmul.f32 -1.442695, %v2535_v33 }
 0x469   :  { %4552 = vpow2.f32 %v4425_v46 }
 0x474   :  { %v4551_v5 = vpop.eup %4550 }
 0x475   :  { %v2542_v18 = vadd.f32 1.0, %v4551_v5 }
 0x476   :  { %v4553_v37 = vpop.eup %4552 }
 0x477   :  { %4554 = vrcp.f32 %v2542_v18  ;;  %v2543_v43 = vadd.f32 1.0, %v4553_v37  ;;  %v2294_v37 = vrot.slane %v6382_v39, %v5569_v7 }
 0x479   :  { %4556 = vrcp.f32 %v2543_v43 }
 0x484   :  { %v4555_v61 = vpop.eup %4554 }
 0x485   :  { %v2548_v25 = vmul.f32 %v4555_v61, %v2447_v26 }
 0x486   :  { %v4557_v12 = vpop.eup %4556 }
 0x487   :  { %v2549_v27 = vadd.f32 %v2548_v25, %v7543_v51  ;;  %v2551_v43 = vsub.f32 1.0, %v4557_v12  ;;  %v6398_v51 = vpop.permute.xlu0 %2557 }
 0x488   :  { %7545 = vst [vmem:[#allocation51_spill] sm:$0xff] %v6398_v51  ;;  %vm2559_vm14 = vcmp.eq.s32.totalorder %v6398_v51, 1  ;;  %v6464_v51 = vld [vmem:[#allocation12 + $0x148] sm:$0xff] }
 0x489   :  { %4558 = vtanh.f32 %v2549_v27  ;;  %v7546_v27 = vld [vmem:[#allocation81_spill] sm:$0xff]  ;;  %7557 = vst [vmem:[#allocation41_spill] sm:$0xff] %v6464_v51 }
 0x48c   :  { %v2377_v33 = vpop.f32.mrf.mxu0  ;;  %v2451_v46 = vpop.f32.mrf.mxu1 }
 0x48e   :  { %v2378_v20 = vpop.f32.mrf.mxu0  ;;  %v2452_v5 = vpop.f32.mrf.mxu1 }
 0x48f   :  { %v2453_v18 = vadd.f32 %v2452_v5, %v2290_v29  ;;  %v2553_v29 = vmul.f32 %v4557_v12, %v6172_v50  ;;  %v6405_v5 = vld [vmem:[#allocation12 + $0x2f0] sm:$0xff] }
 0x490   :  { %v2521_v23 = vpop.f32.mrf.mxu0  ;;  %v6424_v12 = vld [vmem:[#allocation12 + $0x290] sm:$0xff] }
 0x491   :  { %v2566_v30 = vadd.f32 %v2453_v18, %v7544_v28  ;;  %v6413_v28 = vld [vmem:[#allocation12 + $0x2c8] sm:$0xff] }
 0x492   :  { %v2522_v26 = vpop.f32.mrf.mxu0 }
 0x493   :  { %v4426_v61 = vmul.f32 -1.442695, %v2566_v30  ;;  %v6417_v30 = vld [vmem:[#allocation12 + $0x2c0] sm:$0xff] }
 0x494   :  { %v2525_v40 = vpop.f32.mrf.mxu0  ;;  %v6431_v26 = vld [vmem:[#allocation12 + $0x260] sm:$0xff] }
 0x495   :  { %4560 = vpow2.f32 %v4426_v61  ;;  %v2526_v19 = vadd.f32 %v2525_v40, %v2294_v37  ;;  %v6420_v37 = vld [vmem:[#allocation12 + $0x298] sm:$0xff] }
 0x496   :  { %v4559_v25 = vpop.eup %4558  ;;  %v6434_v61 = vld [vmem:[#allocation12 + $0x238] sm:$0xff] }
 0x497   :  { %v2567_v33 = vadd.f32 %v2526_v19, %v7546_v27  ;;  %v2552_v46 = vmul.f32 %v4559_v25, %v2551_v43  ;;  %7548 = vst [vmem:[#allocation64_spill] sm:$0xff] %v6434_v61  ;;  %v6437_v19 = vld [vmem:[#allocation12 + $0x230] sm:$0xff]  ;;  %v6440_v25 = vld [vmem:[#allocation12 + $0x208] sm:$0xff]  ;;  %v6443_v27 = vld [vmem:[#allocation12 + $0x200] sm:$0xff] }
 0x498   :  { %7549 = vst [vmem:[#allocation83_spill] sm:$0xff] %v6437_v19  ;;  %7550 = vst [vmem:[#allocation26_spill] sm:$0xff] %v6440_v25 }
 0x499   :  { %v6402_v20 = vadd.f32 %v2553_v29, %v2552_v46  ;;  %v4427_v18 = vmul.f32 -1.442695, %v2567_v33  ;;  %7551 = vst [vmem:[#allocation38_spill] sm:$0xff] %v6443_v27  ;;  %v6446_v33 = vld [vmem:[#allocation12 + $0x1d8] sm:$0xff]  ;;  %v6449_v46 = vld [vmem:[#allocation12 + $0x1d0] sm:$0xff]  ;;  %v6452_v29 = vld [vmem:[#allocation12 + $0x1a8] sm:$0xff] }
 0x49a   :  { %7552 = vst [vmem:[#allocation27_spill] sm:$0xff] %v6446_v33  ;;  %7553 = vst [vmem:[#allocation39_spill] sm:$0xff] %v6449_v46 }
 0x49b   :  { %7547 = vst [vmem:[#allocation50_spill] sm:$0xff] %v6402_v20  ;;  %v6411_v23 = vsel %vm2559_vm14, %v6402_v20, %v6172_v50  ;;  %4562 = vpow2.f32 %v4427_v18  ;;  %v6428_v50 = vld [vmem:[#allocation12 + $0x268] sm:$0xff]  ;;  %7554 = vst [vmem:[#allocation28_spill] sm:$0xff] %v6452_v29  ;;  %v6455_v18 = vld [vmem:[#allocation12 + $0x1a0] sm:$0xff] }
 0x49c   :  { %2791 = vmatmul.mubr.f32.vlgmr.msra.gmra.mxu1 %v6411_v23  ;;  %2866 = vmatmul.mubr.f32.vlgmr.msra.gmra.mxu0 %v6411_v23  ;;  %7555 = vst [vmem:[#allocation40_spill] sm:$0xff] %v6455_v18 }
 0x49d   :  { %2877 = vmatpush1.msra.mxu1 %v6405_v5  ;;  %2796 = vmatprep.mubr.f32.mxu1 %v7390_v15 }
 0x49e   :  { %2878 = vmatprep.subr.mxu1 %v6413_v28  ;;  %2870 = vmatprep.mubr.f32.mxu0 %v7390_v15 }
 0x49f   :  { %2879 = vmatpush1.msra.mxu1 %v6417_v30 }
 0x4a0   :  { %2880 = vmatprep.subr.mxu1 %v6420_v37 }
 0x4a1   :  { %2881 = vmatpush1.msra.mxu1 %v6424_v12 }
 0x4a2   :  { %v4561_v40 = vpop.eup %4560  ;;  %2882 = vmatprep.subr.mxu1 %v6428_v50 }
 0x4a3   :  { %v2574_v43 = vadd.f32 1.0, %v4561_v40  ;;  %2883 = vmatpush1.msra.mxu1 %v6431_v26  ;;  %v6458_v40 = vld [vmem:[#allocation12 + $0x178] sm:$0xff] }
 0x4a4   :  { %2884 = vmatprep.subr.mxu1 %v6434_v61  ;;  %7556 = vst [vmem:[#allocation29_spill] sm:$0xff] %v6458_v40 }
 0x4a5   :  { %4564 = vrcp.f32 %v2574_v43  ;;  %2885 = vmatpush1.msra.mxu1 %v6437_v19  ;;  %v6461_v43 = vld [vmem:[#allocation12 + $0x170] sm:$0xff]  ;;  %v6478_v19 = vld [vmem:[#allocation12 + $0xe8] sm:$0xff] }
 0x4a6   :  { %2886 = vmatprep.subr.mxu1 %v6440_v25  ;;  %v2527_v25 = vpop.f32.mrf.mxu0  ;;  %7561 = vst [vmem:[#allocation84_spill] sm:$0xff] %v6478_v19 }
 0x4a7   :  { %2887 = vmatpush1.msra.mxu1 %v6443_v27  ;;  %v6467_v27 = vld [vmem:[#allocation12 + $0x140] sm:$0xff] }
 0x4a8   :  { %2888 = vmatprep.subr.mxu1 %v6446_v33  ;;  %v4563_v20 = vpop.eup %4562  ;;  %7558 = vst [vmem:[#allocation30_spill] sm:$0xff] %v6467_v27  ;;  %v2298_v33 = vrot.slane %v6382_v39, %v7521_v53  ;;  %v6484_v39 = vld [vmem:[#allocation12 + $0xb8] sm:$0xff] }
 0x4a9   :  { %2889 = vmatpush1.msra.mxu1 %v6449_v46  ;;  %v6472_v46 = vld [vmem:[#allocation12 + $0x118] sm:$0xff] }
 0x4aa   :  { %2890 = vmatprep.subr.mxu1 %v6452_v29  ;;  %7559 = vst [vmem:[#allocation31_spill] sm:$0xff] %v6472_v46  ;;  %v6475_v29 = vld [vmem:[#allocation12 + $0x110] sm:$0xff]  ;;  %v2528_v61 = vadd.f32 %v2527_v25, %v2298_v33  ;;  %v7565_v25 = vld [vmem:[#allocation82_spill] sm:$0xff] }
 0x4ab   :  { %2891 = vmatpush1.msra.mxu1 %v6455_v18  ;;  %7560 = vst [vmem:[#allocation32_spill] sm:$0xff] %v6475_v29  ;;  %v2575_v18 = vadd.f32 1.0, %v4563_v20 }
 0x4ac   :  { %2892 = vmatprep.subr.mxu1 %v6458_v40  ;;  %v6481_v40 = vld [vmem:[#allocation12 + $0xe0] sm:$0xff] }
 0x4ad   :  { %2893 = vmatpush1.msra.mxu1 %v6461_v43  ;;  %4566 = vrcp.f32 %v2575_v18 }
 0x4ae   :  { %2894 = vmatprep.subr.mxu1 %v6464_v51  ;;  %v6487_v51 = vld [vmem:[#allocation12 + $0xb0] sm:$0xff] }
 0x4af   :  { %2895 = vmatpush1.msra.mxu1 %v6467_v27  ;;  %7562 = vst [vmem:[#allocation33_spill] sm:$0xff] %v6487_v51  ;;  %v6490_v27 = vld [vmem:[#allocation12 + $0x88] sm:$0xff] }
 0x4b0   :  { %2896 = vmatprep.subr.mxu1 %v6472_v46  ;;  %7563 = vst [vmem:[#allocation34_spill] sm:$0xff] %v6490_v27  ;;  %v6493_v46 = vld [vmem:[#allocation12 + $0x80] sm:$0xff] }
 0x4b1   :  { %2897 = vmatpush1.msra.mxu1 %v6475_v29  ;;  %7564 = vst [vmem:[#allocation35_spill] sm:$0xff] %v6493_v46  ;;  %v6497_v29 = vld [vmem:[#allocation12 + $0x58] sm:$0xff] }
 0x4b2   :  { %v4565_v53 = vpop.eup %4564  ;;  %2898 = vmatprep.subr.mxu1 %v6478_v19  ;;  %v6500_v19 = vld [vmem:[#allocation12 + $0x50] sm:$0xff] }
 0x4b3   :  { %v2580_v20 = vmul.f32 %v4565_v53, %v2528_v61  ;;  %2899 = vmatpush1.msra.mxu1 %v6481_v40  ;;  %v6503_v53 = vld [vmem:[#allocation12 + $0x28] sm:$0xff]  ;;  %v6506_v61 = vld [vmem:[#allocation12 + $0x20] sm:$0xff] }
 0x4b4   :  { %2900 = vmatprep.subr.mxu1 %v6484_v39  ;;  %7566 = vst [vmem:[#allocation45_spill] sm:$0xff] %v6503_v53 }
 0x4b5   :  { %v2581_v33 = vadd.f32 %v2580_v20, %v7565_v25  ;;  %2901 = vmatpush1.msra.mxu1 %v6487_v51 }
 0x4b6   :  { %2902 = vmatprep.subr.mxu1 %v6490_v27 }
 0x4b7   :  { %4568 = vtanh.f32 %v2581_v33  ;;  %2903 = vmatpush1.msra.mxu1 %v6493_v46  ;;  %v6512_v33 = vpop.permute.xlu1 %2589 }
 0x4b8   :  { %2904 = vmatprep.subr.mxu1 %v6497_v29  ;;  %vm2591_vm15 = vcmp.eq.s32.totalorder %v6512_v33, 1  ;;  %v7585_v33 = vld [vmem:[#allocation40_spill] sm:$0xff] }
 0x4b9   :  { %2905 = vmatpush1.msra.mxu1 %v6500_v19 }
 0x4ba   :  { %2906 = vmatprep.subr.mxu1 %v6503_v53  ;;  %v4567_v18 = vpop.eup %4566 }
 0x4bb   :  { %2907 = vmatpush1.msra.mxu1 %v6506_v61  ;;  %v2583_v20 = vsub.f32 1.0, %v4567_v18  ;;  %v2585_v27 = vmul.f32 %v4567_v18, %v6244_v44 }
 0x4bc   :  { %3212 = vmatprep.subr.mxu1 %v6256_v59  ;;  %v6563_v59 = vld [vmem:[#allocation12 + $0x2d0] sm:$0xff] }
 0x4c4   :  { %v4569_v25 = vpop.eup %4568 }
 0x4c5   :  { %v2584_v46 = vmul.f32 %v4569_v25, %v2583_v20  ;;  %v7574_v25 = vld [vmem:[#allocation59_spill] sm:$0xff] }
 0x4c7   :  { %v6515_v51 = vadd.f32 %v2585_v27, %v2584_v46  ;;  %v7573_v27 = vld [vmem:[#allocation57_spill] sm:$0xff] }
 0x4c9   :  { %v6522_v53 = vsel %vm2591_vm15, %v6515_v51, %v6244_v44  ;;  %v3100_v44 = vld [vmem:[#allocation12 + $0x2d8] sm:$0xff] }
 0x4ca   :  { %2797 = vmatmul.mubr.f32.gmra.mxu1 %v6522_v53  ;;  %2871 = vmatmul.mubr.f32.gmra.mxu0 %v6522_v53 }
 0x4cb   :  { %2940 = vmatprep.mubr.f32.mxu1 %v7390_v15  ;;  %3201 = vmatprep.mubr.f32.mxu0 %v7390_v15 }
 0x4cc   :  { %3137 = vmatprep.subr.mxu0 %v3100_v44 }
 0x4cd   :  { %3138 = vmatpush1.msra.mxu0 %v6563_v59 }
 0x4ce   :  { %2941 = vmatmul.mubr.f32.vlgmr.msra.gmra.mxu1 %v6411_v23 }
 0x4cf   :  { %2944 = vmatprep.mubr.f32.mxu1 %v7390_v15  ;;  %3213 = vmatpush1.msra.mxu1 %v6259_v35  ;;  %v6566_v35 = vld [vmem:[#allocation12 + $0x2a8] sm:$0xff] }
 0x4d0   :  { %3214 = vmatprep.subr.mxu1 %v6262_v48  ;;  %3139 = vmatprep.subr.mxu0 %v6566_v35  ;;  %v6569_v48 = vld [vmem:[#allocation12 + $0x2a0] sm:$0xff] }
 0x4d1   :  { %3215 = vmatpush1.msra.mxu1 %v6265_v41  ;;  %3140 = vmatpush1.msra.mxu0 %v6569_v48  ;;  %v6572_v41 = vld [vmem:[#allocation12 + $0x278] sm:$0xff] }
 0x4d2   :  { %2945 = vmatmul.mubr.f32.gmra.mxu1 %v6522_v53  ;;  %3216 = vmatprep.subr.mxu1 %v6268_v22  ;;  %v6575_v22 = vld [vmem:[#allocation12 + $0x270] sm:$0xff] }
 0x4d3   :  { %3217 = vmatpush1.msra.mxu1 %v6271_v45  ;;  %3276 = vmatprep.mubr.f32.mxu1 %v7390_v15  ;;  %v6578_v45 = vld [vmem:[#allocation12 + $0x248] sm:$0xff] }
 0x4d4   :  { %3218 = vmatprep.subr.mxu1 %v6274_v52  ;;  %3141 = vmatprep.subr.mxu0 %v6572_v41  ;;  %v6581_v52 = vld [vmem:[#allocation12 + $0x240] sm:$0xff] }
 0x4d5   :  { %3219 = vmatpush1.msra.mxu1 %v6277_v42  ;;  %3142 = vmatpush1.msra.mxu0 %v6575_v22  ;;  %v6584_v42 = vld [vmem:[#allocation12 + $0x218] sm:$0xff] }
 0x4d6   :  { %3220 = vmatprep.subr.mxu1 %v6280_v21  ;;  %3143 = vmatprep.subr.mxu0 %v6578_v45  ;;  %v6587_v21 = vld [vmem:[#allocation12 + $0x210] sm:$0xff] }
 0x4d7   :  { %3221 = vmatpush1.msra.mxu1 %v6283_v38  ;;  %3144 = vmatpush1.msra.mxu0 %v6581_v52  ;;  %v6590_v38 = vld [vmem:[#allocation12 + $0x1e8] sm:$0xff] }
 0x4d8   :  { %3222 = vmatprep.subr.mxu1 %v6286_v17  ;;  %3145 = vmatprep.subr.mxu0 %v6584_v42  ;;  %v6593_v17 = vld [vmem:[#allocation12 + $0x1e0] sm:$0xff] }
 0x4d9   :  { %3223 = vmatpush1.msra.mxu1 %v6289_v47  ;;  %3146 = vmatpush1.msra.mxu0 %v6587_v21  ;;  %v6596_v47 = vld [vmem:[#allocation12 + $0x1b8] sm:$0xff] }
 0x4da   :  { %3224 = vmatprep.subr.mxu1 %v6292_v8  ;;  %3147 = vmatprep.subr.mxu0 %v6590_v38  ;;  %v6598_v8 = vld [vmem:[#allocation12 + $0x1b0] sm:$0xff] }
 0x4db   :  { %3225 = vmatpush1.msra.mxu1 %v6294_v10  ;;  %3148 = vmatpush1.msra.mxu0 %v6593_v17  ;;  %v6600_v10 = vld [vmem:[#allocation12 + $0x188] sm:$0xff] }
 0x4dc   :  { %3226 = vmatprep.subr.mxu1 %v6298_v60  ;;  %3149 = vmatprep.subr.mxu0 %v6596_v47  ;;  %v6603_v60 = vld [vmem:[#allocation12 + $0x180] sm:$0xff] }
 0x4dd   :  { %3227 = vmatpush1.msra.mxu1 %v6301_v36  ;;  %3150 = vmatpush1.msra.mxu0 %v6598_v8  ;;  %v6608_v36 = vld [vmem:[#allocation12 + $0x158] sm:$0xff] }
 0x4de   :  { %3228 = vmatprep.subr.mxu1 %v6304_v56  ;;  %3151 = vmatprep.subr.mxu0 %v6600_v10  ;;  %v6611_v56 = vld [vmem:[#allocation12 + $0x150] sm:$0xff] }
 0x4df   :  { %3229 = vmatpush1.msra.mxu1 %v6307_v24  ;;  %3152 = vmatpush1.msra.mxu0 %v6603_v60  ;;  %v6614_v24 = vld [vmem:[#allocation12 + $0x128] sm:$0xff] }
 0x4e0   :  { %3230 = vmatprep.subr.mxu1 %v6310_v32  ;;  %3153 = vmatprep.subr.mxu0 %v6608_v36  ;;  %v6617_v32 = vld [vmem:[#allocation12 + $0x120] sm:$0xff] }
 0x4e1   :  { %3231 = vmatpush1.msra.mxu1 %v6313_v0  ;;  %3154 = vmatpush1.msra.mxu0 %v6611_v56  ;;  %v6620_v0 = vld [vmem:[#allocation12 + $0xf8] sm:$0xff] }
 0x4e2   :  { %3232 = vmatprep.subr.mxu1 %v6316_v31  ;;  %3155 = vmatprep.subr.mxu0 %v6614_v24  ;;  %v6623_v31 = vld [vmem:[#allocation12 + $0xf0] sm:$0xff] }
 0x4e3   :  { %3233 = vmatpush1.msra.mxu1 %v6319_v49  ;;  %3156 = vmatpush1.msra.mxu0 %v6617_v32  ;;  %v6626_v49 = vld [vmem:[#allocation12 + $0xc8] sm:$0xff] }
 0x4e4   :  { %3234 = vmatprep.subr.mxu1 %v6322_v2  ;;  %3157 = vmatprep.subr.mxu0 %v6620_v0  ;;  %v6629_v2 = vld [vmem:[#allocation12 + $0xc0] sm:$0xff] }
 0x4e5   :  { %3235 = vmatpush1.msra.mxu1 %v6325_v34  ;;  %3158 = vmatpush1.msra.mxu0 %v6623_v31  ;;  %v7567_v34 = vld [vmem:[#allocation24_spill] sm:$0xff] }
 0x4e6   :  { %3236 = vmatprep.subr.mxu1 %v6330_v63  ;;  %3159 = vmatprep.subr.mxu0 %v6626_v49  ;;  %v7568_v63 = vld [vmem:[#allocation36_spill] sm:$0xff] }
 0x4e7   :  { %3237 = vmatpush1.msra.mxu1 %v6336_v54  ;;  %3160 = vmatpush1.msra.mxu0 %v6629_v2  ;;  %v7569_v54 = vld [vmem:[#allocation25_spill] sm:$0xff] }
 0x4e8   :  { %3238 = vmatprep.subr.mxu1 %v6342_v16  ;;  %3161 = vmatprep.subr.mxu0 %v6328_v9  ;;  %v7570_v16 = vld [vmem:[#allocation49_spill] sm:$0xff]  ;;  %v6644_v9 = vld [vmem:[%s7431_s30] sm:$0x3f] }
 0x4e9   :  { %3239 = vmatpush1.msra.mxu1 %v6348_v11  ;;  %3162 = vmatpush1.msra.mxu0 %v6334_v14  ;;  %v7571_v14 = vld [vmem:[#allocation42_spill] sm:$0xff] }
 0x4ea   :  { %3240 = vmatprep.subr.mxu1 %v6354_v57  ;;  %3163 = vmatprep.subr.mxu0 %v6340_v3  ;;  %v2699_v3 = vrot.slane %v6644_v9, %v7571_v14 }
 0x4eb   :  { %3241 = vmatpush1.msra.mxu1 %v6360_v58  ;;  %3164 = vmatpush1.msra.mxu0 %v6346_v4 }
 0x4ec   :  { %3242 = vmatprep.subr.mxu1 %v6366_v62  ;;  %3165 = vmatprep.subr.mxu0 %v6352_v55  ;;  %v7572_v55 = vld [vmem:[#allocation43_spill] sm:$0xff] }
 0x4ed   :  { %3243 = vmatpush1.msra.mxu1 %v6372_v13  ;;  %3166 = vmatpush1.msra.mxu0 %v7567_v34  ;;  %v2703_v58 = vrot.slane %v6644_v9, %v7572_v55 }
 0x4ee   :  { %3548 = vmatprep.subr.mxu1 %v3100_v44  ;;  %3167 = vmatprep.subr.mxu0 %v7568_v63 }
 0x4ef   :  { %3168 = vmatpush1.msra.mxu0 %v7569_v54 }
 0x4f0   :  { %3287 = vmatprep.subr.mxu0 %v7570_v16 }
 0x55c   :  { %v2792_v11 = vpop.f32.mrf.mxu1  ;;  %v2867_v4 = vpop.f32.mrf.mxu0 }
 0x55d   :  { %v2793_v57 = vadd.f32 %v2792_v11, %v2699_v3  ;;  %v2707_v3 = vrot.slane %v6644_v9, %v5469_v1 }
 0x55e   :  { %v2794_v62 = vpop.f32.mrf.mxu1  ;;  %v2869_v13 = vpop.f32.mrf.mxu0 }
 0x55f   :  { %v2954_v46 = vadd.f32 %v2793_v57, %v7573_v27  ;;  %v2795_v20 = vadd.f32 %v2794_v62, %v2703_v58  ;;  %v2868_v55 = vadd.f32 %v2867_v4, %v2707_v3  ;;  %v7575_v57 = vld [vmem:[#allocation58_spill] sm:$0xff]  ;;  %v2711_v58 = vrot.slane %v6644_v9, %v5446_v6 }
 0x560   :  { %v2715_v4 = vrot.slane %v6644_v9, %v5569_v7 }
 0x561   :  { %v4428_v18 = vmul.f32 -1.442695, %v2954_v46  ;;  %v2955_v44 = vadd.f32 %v2795_v20, %v7574_v25 }
 0x563   :  { %4570 = vpow2.f32 %v4428_v18  ;;  %v4429_v34 = vmul.f32 -1.442695, %v2955_v44 }
 0x565   :  { %4572 = vpow2.f32 %v4429_v34 }
 0x570   :  { %v4571_v63 = vpop.eup %4570 }
 0x571   :  { %v2962_v54 = vadd.f32 1.0, %v4571_v63  ;;  %v7576_v63 = vld [vmem:[#allocation56_spill] sm:$0xff] }
 0x572   :  { %v4573_v16 = vpop.eup %4572 }
 0x573   :  { %4574 = vrcp.f32 %v2962_v54  ;;  %v2963_v11 = vadd.f32 1.0, %v4573_v16 }
 0x575   :  { %4576 = vrcp.f32 %v2963_v11 }
 0x580   :  { %v4575_v14 = vpop.eup %4574 }
 0x581   :  { %v2968_v13 = vmul.f32 %v4575_v14, %v2868_v55 }
 0x582   :  { %v4577_v44 = vpop.eup %4576 }
 0x583   :  { %v2969_v27 = vadd.f32 %v2968_v13, %v7575_v57  ;;  %v2971_v16 = vsub.f32 1.0, %v4577_v44 }
 0x585   :  { %4578 = vtanh.f32 %v2969_v27  ;;  %v2973_v27 = vmul.f32 %v4577_v44, %v6411_v23 }
 0x58a   :  { %v2798_v62 = vpop.f32.mrf.mxu1  ;;  %v2872_v46 = vpop.f32.mrf.mxu0 }
 0x58b   :  { %v7577_v62 = vld [vmem:[#allocation79_spill] sm:$0xff] }
 0x58c   :  { %v2799_v18 = vpop.f32.mrf.mxu1  ;;  %v2873_v20 = vpop.f32.mrf.mxu0 }
 0x58d   :  { %v2874_v25 = vadd.f32 %v2873_v20, %v2711_v58  ;;  %v2593_v18 = vsel %vm2591_vm15, %v6515_v51, 0.0 }
 0x58e   :  { %v2942_v34 = vpop.f32.mrf.mxu1 }
 0x58f   :  { %v2980_v54 = vadd.f32 %v2874_v25, %v7576_v63 }
 0x590   :  { %v2943_v14 = vpop.f32.mrf.mxu1 }
 0x591   :  { %v4430_v55 = vmul.f32 -1.442695, %v2980_v54  ;;  %v6758_v14 = vld [vmem:[#allocation12 + $0x2b8] sm:$0xff] }
 0x592   :  { %v4579_v3 = vpop.eup %4578  ;;  %v2946_v11 = vpop.f32.mrf.mxu1 }
 0x593   :  { %4580 = vpow2.f32 %v4430_v55  ;;  %v2947_v13 = vadd.f32 %v2946_v11, %v2715_v4  ;;  %v2972_v57 = vmul.f32 %v4579_v3, %v2971_v16  ;;  %v6755_v4 = vld [vmem:[#allocation12 + $0x2e0] sm:$0xff]  ;;  %v6761_v55 = vld [vmem:[#allocation12 + $0x2b0] sm:$0xff]  ;;  %v6764_v16 = vld [vmem:[#allocation12 + $0x288] sm:$0xff] }
 0x594   :  { %v6767_v3 = vld [vmem:[#allocation12 + $0x280] sm:$0xff]  ;;  %v6770_v11 = vld [vmem:[#allocation12 + $0x258] sm:$0xff] }
 0x595   :  { %v2981_v46 = vadd.f32 %v2947_v13, %v7577_v62  ;;  %v2974_v58 = vadd.f32 %v2973_v27, %v2972_v57  ;;  %v6773_v13 = vld [vmem:[#allocation12 + $0x250] sm:$0xff]  ;;  %v6776_v57 = vld [vmem:[#allocation12 + $0x228] sm:$0xff]  ;;  %v6779_v27 = vld [vmem:[#allocation12 + $0x220] sm:$0xff] }
 0x596   :  { %v6782_v62 = vld [vmem:[#allocation12 + $0x1f8] sm:$0xff] }
 0x597   :  { %v6668_v20 = vsel %vm2591_vm15, %v2974_v58, %v6411_v23  ;;  %v2976_v25 = vsel %vm2591_vm15, %v2974_v58, 0.0  ;;  %v4431_v44 = vmul.f32 -1.442695, %v2981_v46  ;;  %v6785_v46 = vld [vmem:[#allocation12 + $0x1f0] sm:$0xff]  ;;  %v6788_v58 = vld [vmem:[#allocation12 + $0x1c8] sm:$0xff] }
 0x598   :  { %v3004_v34 = vadd.f32 %v2976_v25, %v2593_v18  ;;  %3202 = vmatmul.mubr.f32.vlgmr.msra.gmra.mxu0 %v6668_v20  ;;  %3277 = vmatmul.mubr.f32.vlgmr.msra.gmra.mxu1 %v6668_v20  ;;  %v6790_v18 = vld [vmem:[#allocation12 + $0x1c0] sm:$0xff]  ;;  %v6792_v25 = vld [vmem:[#allocation12 + $0x198] sm:$0xff] }
 0x599   :  { %3288 = vmatpush1.msra.mxu0 %v6405_v5  ;;  %3207 = vmatprep.mubr.f32.mxu0 %v7390_v15  ;;  %4582 = vpow2.f32 %v4431_v44  ;;  %v7578_v5 = vld [vmem:[#allocation64_spill] sm:$0xff] }
 0x59a   :  { %3005 = vst [vmem:[#allocation13 + $0x20] sm:$0xff] %v3004_v34  ;;  %3289 = vmatprep.subr.mxu0 %v6413_v28  ;;  %3281 = vmatprep.mubr.f32.mxu1 %v7390_v15  ;;  %v7579_v28 = vld [vmem:[#allocation83_spill] sm:$0xff]  ;;  %v6795_v34 = vld [vmem:[#allocation12 + $0x190] sm:$0xff]  ;;  %v6798_v44 = vld [vmem:[#allocation12 + $0x168] sm:$0xff] }
 0x59b   :  { %3290 = vmatpush1.msra.mxu0 %v6417_v30  ;;  %3549 = vmatpush1.msra.mxu1 %v6563_v59  ;;  %v7580_v30 = vld [vmem:[#allocation26_spill] sm:$0xff]  ;;  %v7586_v59 = vld [vmem:[#allocation29_spill] sm:$0xff] }
 0x59c   :  { %3291 = vmatprep.subr.mxu0 %v6420_v37  ;;  %3550 = vmatprep.subr.mxu1 %v6566_v35  ;;  %v7581_v37 = vld [vmem:[#allocation38_spill] sm:$0xff] }
 0x59d   :  { %3292 = vmatpush1.msra.mxu0 %v6424_v12  ;;  %3551 = vmatpush1.msra.mxu1 %v6569_v48  ;;  %v7582_v12 = vld [vmem:[#allocation27_spill] sm:$0xff]  ;;  %v7587_v48 = vld [vmem:[#allocation41_spill] sm:$0xff] }
 0x59e   :  { %3293 = vmatprep.subr.mxu0 %v6428_v50  ;;  %3552 = vmatprep.subr.mxu1 %v6572_v41  ;;  %v7583_v50 = vld [vmem:[#allocation39_spill] sm:$0xff]  ;;  %v7588_v41 = vld [vmem:[#allocation69_spill] sm:$0xff] }
 0x59f   :  { %3294 = vmatpush1.msra.mxu0 %v6431_v26  ;;  %3553 = vmatpush1.msra.mxu1 %v6575_v22  ;;  %v7584_v26 = vld [vmem:[#allocation28_spill] sm:$0xff]  ;;  %v2719_v22 = vrot.slane %v6644_v9, %v7588_v41  ;;  %v7598_v9 = vld [vmem:[#allocation50_spill] sm:$0xff] }
 0x5a0   :  { %v4581_v51 = vpop.eup %4580  ;;  %3295 = vmatprep.subr.mxu0 %v7578_v5  ;;  %3554 = vmatprep.subr.mxu1 %v6578_v45  ;;  %v7589_v45 = vld [vmem:[#allocation30_spill] sm:$0xff]  ;;  %v2561_v54 = vsel %vm2559_vm14, %v7598_v9, 0.0 }
 0x5a1   :  { %v2988_v23 = vadd.f32 1.0, %v4581_v51  ;;  %3296 = vmatpush1.msra.mxu0 %v7579_v28  ;;  %3555 = vmatpush1.msra.mxu1 %v6581_v52  ;;  %v2948_v52 = vpop.f32.mrf.mxu1  ;;  %v6801_v51 = vld [vmem:[#allocation12 + $0x160] sm:$0xff]  ;;  %v6806_v5 = vld [vmem:[#allocation12 + $0x138] sm:$0xff]  ;;  %v6812_v28 = vld [vmem:[#allocation12 + $0x108] sm:$0xff] }
 0x5a2   :  { %3297 = vmatprep.subr.mxu0 %v7580_v30  ;;  %3556 = vmatprep.subr.mxu1 %v6584_v42  ;;  %v7590_v42 = vld [vmem:[#allocation31_spill] sm:$0xff] }
 0x5a3   :  { %4584 = vrcp.f32 %v2988_v23  ;;  %3298 = vmatpush1.msra.mxu0 %v7581_v37  ;;  %3557 = vmatpush1.msra.mxu1 %v6587_v21  ;;  %v7591_v21 = vld [vmem:[#allocation32_spill] sm:$0xff]  ;;  %v6809_v23 = vld [vmem:[#allocation12 + $0x130] sm:$0xff]  ;;  %v6815_v30 = vld [vmem:[#allocation12 + $0x100] sm:$0xff] }
 0x5a4   :  { %3299 = vmatprep.subr.mxu0 %v7582_v12  ;;  %3558 = vmatprep.subr.mxu1 %v6590_v38  ;;  %v7592_v38 = vld [vmem:[#allocation84_spill] sm:$0xff]  ;;  %v6818_v37 = vld [vmem:[#allocation12 + $0xd8] sm:$0xff]  ;;  %v6821_v12 = vld [vmem:[#allocation12 + $0xd0] sm:$0xff] }
 0x5a5   :  { %3300 = vmatpush1.msra.mxu0 %v7583_v50  ;;  %3559 = vmatpush1.msra.mxu1 %v6593_v17  ;;  %v2949_v17 = vadd.f32 %v2948_v52, %v2719_v22  ;;  %v6824_v50 = vld [vmem:[#allocation12 + $0x98] sm:$0xff]  ;;  %v6842_v22 = vld [vmem:[#allocation12 + $0x60] sm:$0xff] }
 0x5a6   :  { %3301 = vmatprep.subr.mxu0 %v7584_v26  ;;  %3560 = vmatprep.subr.mxu1 %v6596_v47  ;;  %v4583_v35 = vpop.eup %4582  ;;  %v6826_v26 = vld [vmem:[#allocation12 + $0xa8] sm:$0xff]  ;;  %v6848_v52 = vld [vmem:[#allocation12 + $0x38] sm:$0xff] }
 0x5a7   :  { %3302 = vmatpush1.msra.mxu0 %v7585_v33  ;;  %3561 = vmatpush1.msra.mxu1 %v6598_v8  ;;  %v6830_v33 = vld [vmem:[#allocation12 + $0x90] sm:$0xff]  ;;  %7600 = vst [vmem:[#allocation47_spill] sm:$0xff] %v6848_v52 }
 0x5a8   :  { %3303 = vmatprep.subr.mxu0 %v7586_v59  ;;  %3562 = vmatprep.subr.mxu1 %v6600_v10  ;;  %v7593_v10 = vld [vmem:[#allocation33_spill] sm:$0xff]  ;;  %v6832_v59 = vld [vmem:[#allocation12 + $0xa0] sm:$0xff] }
 0x5a9   :  { %3304 = vmatpush1.msra.mxu0 %v6461_v43  ;;  %3563 = vmatpush1.msra.mxu1 %v6603_v60  ;;  %v2989_v43 = vadd.f32 1.0, %v4583_v35  ;;  %v7594_v60 = vld [vmem:[#allocation34_spill] sm:$0xff]  ;;  %v6836_v35 = vld [vmem:[#allocation12 + $0x68] sm:$0xff] }
 0x5aa   :  { %3305 = vmatprep.subr.mxu0 %v7587_v48  ;;  %3564 = vmatprep.subr.mxu1 %v6608_v36  ;;  %v7595_v36 = vld [vmem:[#allocation80_spill] sm:$0xff]  ;;  %v6838_v48 = vld [vmem:[#allocation12 + $0x78] sm:$0xff] }
 0x5ab   :  { %3306 = vmatpush1.msra.mxu0 %v7589_v45  ;;  %3565 = vmatpush1.msra.mxu1 %v6611_v56  ;;  %4586 = vrcp.f32 %v2989_v43  ;;  %v6844_v45 = vld [vmem:[#allocation12 + $0x70] sm:$0xff] }
 0x5ac   :  { %3307 = vmatprep.subr.mxu0 %v7590_v42  ;;  %3566 = vmatprep.subr.mxu1 %v6614_v24  ;;  %v7596_v24 = vld [vmem:[#allocation35_spill] sm:$0xff]  ;;  %v6850_v42 = vld [vmem:[#allocation12 + $0x48] sm:$0xff]  ;;  %v6854_v43 = vld [vmem:[#allocation12 + $0x30] sm:$0xff] }
 0x5ad   :  { %3308 = vmatpush1.msra.mxu0 %v7591_v21  ;;  %3567 = vmatpush1.msra.mxu1 %v6617_v32  ;;  %7601 = vst [vmem:[#allocation46_spill] sm:$0xff] %v6854_v43  ;;  %v6856_v21 = vld [vmem:[#allocation12 + $0x40] sm:$0xff] }
 0x5ae   :  { %3309 = vmatprep.subr.mxu0 %v7592_v38  ;;  %3568 = vmatprep.subr.mxu1 %v6620_v0  ;;  %v6860_v38 = vld [vmem:[#allocation12 + $0x8] sm:$0xff] }
 0x5af   :  { %3310 = vmatpush1.msra.mxu0 %v6481_v40  ;;  %3569 = vmatpush1.msra.mxu1 %v6623_v31  ;;  %v7597_v40 = vld [vmem:[#allocation45_spill] sm:$0xff]  ;;  %7602 = vst [vmem:[#allocation68_spill] sm:$0xff] %v6860_v38 }
 0x5b0   :  { %v4585_v47 = vpop.eup %4584  ;;  %3311 = vmatprep.subr.mxu0 %v6484_v39  ;;  %3570 = vmatprep.subr.mxu1 %v6626_v49 }
 0x5b1   :  { %v2994_v8 = vmul.f32 %v4585_v47, %v2949_v17  ;;  %3312 = vmatpush1.msra.mxu0 %v7593_v10  ;;  %3571 = vmatpush1.msra.mxu1 %v6629_v2  ;;  %v6862_v17 = vld [vmem:[#allocation12 + $0x18] sm:$0xff]  ;;  %v6866_v47 = vld [vmem:[#allocation12] sm:$0xff] }
 0x5b2   :  { %3313 = vmatprep.subr.mxu0 %v7594_v60  ;;  %3572 = vmatprep.subr.mxu1 %v6824_v50  ;;  %7603 = vst [vmem:[#allocation53_spill] sm:$0xff] %v6866_v47  ;;  %v6872_v10 = vld [vmem:[#allocation12 + $0x2f8] sm:$0xff]  ;;  %v6878_v60 = vld [vmem:[%s7431_s30] sm:$0x3f] }
 0x5b3   :  { %v2995_v56 = vadd.f32 %v2994_v8, %v7595_v36  ;;  %3314 = vmatpush1.msra.mxu0 %v7596_v24  ;;  %3573 = vmatpush1.msra.mxu1 %v6830_v33  ;;  %v6868_v8 = vld [vmem:[#allocation12 + $0x10] sm:$0xff]  ;;  %v7604_v36 = vld [vmem:[#allocation42_spill] sm:$0xff] }
 0x5b4   :  { %3315 = vmatprep.subr.mxu0 %v6497_v29  ;;  %3574 = vmatprep.subr.mxu1 %v6836_v35 }
 0x5b5   :  { %4588 = vtanh.f32 %v2995_v56  ;;  %3316 = vmatpush1.msra.mxu0 %v6500_v19  ;;  %3575 = vmatpush1.msra.mxu1 %v6842_v22  ;;  %v3110_v56 = vrot.slane %v6878_v60, %v7604_v36 }
 0x5b6   :  { %3317 = vmatprep.subr.mxu0 %v7597_v40  ;;  %3576 = vmatprep.subr.mxu1 %v6848_v52 }
 0x5b7   :  { %3318 = vmatpush1.msra.mxu0 %v6506_v61  ;;  %3577 = vmatpush1.msra.mxu1 %v6854_v43 }
 0x5b8   :  { %v4587_v39 = vpop.eup %4586  ;;  %3578 = vmatprep.subr.mxu1 %v6860_v38 }
 0x5b9   :  { %v2997_v32 = vsub.f32 1.0, %v4587_v39  ;;  %v2999_v49 = vmul.f32 %v4587_v39, %v6522_v53  ;;  %3579 = vmatpush1.msra.mxu1 %v6866_v47 }
 0x5ba   :  { %3698 = vmatprep.subr.mxu1 %v6872_v10 }
 0x5c2   :  { %v4589_v0 = vpop.eup %4588 }
 0x5c3   :  { %v2998_v31 = vmul.f32 %v4589_v0, %v2997_v32  ;;  %v7605_v32 = vld [vmem:[#allocation43_spill] sm:$0xff] }
 0x5c4   :  { %v3114_v0 = vrot.slane %v6878_v60, %v7605_v32 }
 0x5c5   :  { %v3000_v2 = vadd.f32 %v2999_v49, %v2998_v31 }
 0x5c7   :  { %v6740_v29 = vsel %vm2559_vm14, %v3000_v2, %v6522_v53  ;;  %v3002_v19 = vsel %vm2559_vm14, %v3000_v2, 0.0  ;;  %v6752_v53 = vld [vmem:[#allocation12 + $0x2e8] sm:$0xff]  ;;  %v7606_v2 = vld [vmem:[#allocation61_spill] sm:$0xff] }
 0x5c8   :  { %v3007_v61 = vadd.f32 %v3002_v19, %v2561_v54  ;;  %3208 = vmatmul.mubr.f32.gmra.mxu0 %v6740_v29  ;;  %3282 = vmatmul.mubr.f32.gmra.mxu1 %v6740_v29  ;;  %v7607_v19 = vld [vmem:[#allocation63_spill] sm:$0xff] }
 0x5c9   :  { %3351 = vmatprep.mubr.f32.mxu0 %v7390_v15  ;;  %3612 = vmatprep.mubr.f32.mxu1 %v7390_v15 }
 0x5ca   :  { %3008 = vst [vmem:[#allocation13 + $0x18] sm:$0xff] %v3007_v61  ;;  %3623 = vmatprep.subr.mxu0 %v6752_v53 }
 0x5cc   :  { %3352 = vmatmul.mubr.f32.vlgmr.msra.gmra.mxu0 %v6668_v20 }
 0x5cd   :  { %3355 = vmatprep.mubr.f32.mxu0 %v7390_v15  ;;  %3624 = vmatpush1.msra.mxu0 %v6755_v4 }
 0x5ce   :  { %3625 = vmatprep.subr.mxu0 %v6758_v14 }
 0x5cf   :  { %3626 = vmatpush1.msra.mxu0 %v6761_v55 }
 0x5d0   :  { %3356 = vmatmul.mubr.f32.gmra.mxu0 %v6740_v29  ;;  %3627 = vmatprep.subr.mxu0 %v6764_v16 }
 0x5d1   :  { %3687 = vmatprep.mubr.f32.mxu0 %v7390_v15  ;;  %3628 = vmatpush1.msra.mxu0 %v6767_v3 }
 0x5d2   :  { %3629 = vmatprep.subr.mxu0 %v6770_v11 }
 0x5d3   :  { %3630 = vmatpush1.msra.mxu0 %v6773_v13 }
 0x5d4   :  { %3631 = vmatprep.subr.mxu0 %v6776_v57 }
 0x5d5   :  { %3632 = vmatpush1.msra.mxu0 %v6779_v27 }
 0x5d6   :  { %3633 = vmatprep.subr.mxu0 %v6782_v62 }
 0x5d7   :  { %3634 = vmatpush1.msra.mxu0 %v6785_v46 }
 0x5d8   :  { %3635 = vmatprep.subr.mxu0 %v6788_v58 }
 0x5d9   :  { %3636 = vmatpush1.msra.mxu0 %v6790_v18 }
 0x5da   :  { %3637 = vmatprep.subr.mxu0 %v6792_v25 }
 0x5db   :  { %3638 = vmatpush1.msra.mxu0 %v6795_v34 }
 0x5dc   :  { %3639 = vmatprep.subr.mxu0 %v6798_v44 }
 0x5dd   :  { %3640 = vmatpush1.msra.mxu0 %v6801_v51 }
 0x5de   :  { %3641 = vmatprep.subr.mxu0 %v6806_v5 }
 0x5df   :  { %3642 = vmatpush1.msra.mxu0 %v6809_v23 }
 0x5e0   :  { %3643 = vmatprep.subr.mxu0 %v6812_v28 }
 0x5e1   :  { %3644 = vmatpush1.msra.mxu0 %v6815_v30 }
 0x5e2   :  { %3645 = vmatprep.subr.mxu0 %v6818_v37 }
 0x5e3   :  { %3646 = vmatpush1.msra.mxu0 %v6821_v12 }
 0x5e4   :  { %3647 = vmatprep.subr.mxu0 %v6826_v26 }
 0x5e5   :  { %3648 = vmatpush1.msra.mxu0 %v6832_v59 }
 0x5e6   :  { %3649 = vmatprep.subr.mxu0 %v6838_v48 }
 0x5e7   :  { %3650 = vmatpush1.msra.mxu0 %v6844_v45 }
 0x5e8   :  { %3651 = vmatprep.subr.mxu0 %v6850_v42 }
 0x5e9   :  { %3652 = vmatpush1.msra.mxu0 %v6856_v21 }
 0x5ea   :  { %3653 = vmatprep.subr.mxu0 %v6862_v17 }
 0x5eb   :  { %3654 = vmatpush1.msra.mxu0 %v6868_v8 }
 0x658   :  { %v3203_v24 = vpop.f32.mrf.mxu0  ;;  %v3278_v40 = vpop.f32.mrf.mxu1 }
 0x659   :  { %v3204_v39 = vadd.f32 %v3203_v24, %v3110_v56  ;;  %v3118_v56 = vrot.slane %v6878_v60, %v5469_v1 }
 0x65a   :  { %v3205_v31 = vpop.f32.mrf.mxu0  ;;  %v3280_v49 = vpop.f32.mrf.mxu1 }
 0x65b   :  { %v3365_v9 = vadd.f32 %v3204_v39, %v7606_v2  ;;  %v3206_v54 = vadd.f32 %v3205_v31, %v3114_v0  ;;  %v3279_v32 = vadd.f32 %v3278_v40, %v3118_v56  ;;  %v7608_v39 = vld [vmem:[#allocation62_spill] sm:$0xff]  ;;  %v3122_v0 = vrot.slane %v6878_v60, %v5446_v6 }
 0x65d   :  { %v4432_v63 = vmul.f32 -1.442695, %v3365_v9  ;;  %v3366_v61 = vadd.f32 %v3206_v54, %v7607_v19  ;;  %v7609_v19 = vld [vmem:[#allocation52_spill] sm:$0xff] }
 0x65f   :  { %4590 = vpow2.f32 %v4432_v63  ;;  %v4433_v47 = vmul.f32 -1.442695, %v3366_v61 }
 0x661   :  { %4592 = vpow2.f32 %v4433_v47 }
 0x66c   :  { %v4591_v38 = vpop.eup %4590 }
 0x66d   :  { %v3373_v43 = vadd.f32 1.0, %v4591_v38 }
 0x66e   :  { %v4593_v36 = vpop.eup %4592 }
 0x66f   :  { %4594 = vrcp.f32 %v3373_v43  ;;  %v3374_v24 = vadd.f32 1.0, %v4593_v36  ;;  %v3126_v36 = vrot.slane %v6878_v60, %v5569_v7 }
 0x671   :  { %4596 = vrcp.f32 %v3374_v24 }
 0x67c   :  { %v4595_v52 = vpop.eup %4594 }
 0x67d   :  { %v3379_v49 = vmul.f32 %v4595_v52, %v3279_v32 }
 0x67e   :  { %v4597_v9 = vpop.eup %4596 }
 0x67f   :  { %v3380_v2 = vadd.f32 %v3379_v49, %v7608_v39  ;;  %v3382_v52 = vsub.f32 1.0, %v4597_v9  ;;  %v3384_v49 = vmul.f32 %v4597_v9, %v6668_v20 }
 0x681   :  { %4598 = vtanh.f32 %v3380_v2 }
 0x688   :  { %v3209_v31 = vpop.f32.mrf.mxu0  ;;  %v3283_v47 = vpop.f32.mrf.mxu1 }
 0x689   :  { %v6895_v47 = vld [vmem:[#allocation12 + $0x2f0] sm:$0xff] }
 0x68a   :  { %v3210_v38 = vpop.f32.mrf.mxu0  ;;  %v3284_v43 = vpop.f32.mrf.mxu1 }
 0x68b   :  { %v3285_v63 = vadd.f32 %v3284_v43, %v3122_v0  ;;  %v7610_v0 = vld [vmem:[#allocation77_spill] sm:$0xff] }
 0x68c   :  { %v3353_v54 = vpop.f32.mrf.mxu0 }
 0x68d   :  { %v3391_v61 = vadd.f32 %v3285_v63, %v7609_v19  ;;  %v3414_v19 = vld [vmem:[#allocation13 + $0x28] sm:$0xff] }
 0x68e   :  { %v4599_v40 = vpop.eup %4598  ;;  %v3354_v32 = vpop.f32.mrf.mxu0 }
 0x68f   :  { %v4434_v56 = vmul.f32 -1.442695, %v3391_v61  ;;  %v3383_v24 = vmul.f32 %v4599_v40, %v3382_v52  ;;  %v6905_v61 = vld [vmem:[#allocation12 + $0x2c8] sm:$0xff]  ;;  %v6912_v52 = vld [vmem:[#allocation12 + $0x298] sm:$0xff] }
 0x690   :  { %v3357_v39 = vpop.f32.mrf.mxu0  ;;  %v6920_v32 = vld [vmem:[#allocation12 + $0x268] sm:$0xff] }
 0x691   :  { %4600 = vpow2.f32 %v4434_v56  ;;  %v3358_v2 = vadd.f32 %v3357_v39, %v3126_v36  ;;  %v3385_v31 = vadd.f32 %v3384_v49, %v3383_v24  ;;  %v6909_v36 = vld [vmem:[#allocation12 + $0x2c0] sm:$0xff]  ;;  %v6926_v24 = vld [vmem:[#allocation12 + $0x238] sm:$0xff]  ;;  %v6929_v49 = vld [vmem:[#allocation12 + $0x230] sm:$0xff] }
 0x692   :  { %v6923_v56 = vld [vmem:[#allocation12 + $0x260] sm:$0xff]  ;;  %7612 = vst [vmem:[#allocation55_spill] sm:$0xff] %v6926_v24  ;;  %7613 = vst [vmem:[#allocation54_spill] sm:$0xff] %v6929_v49  ;;  %v6932_v39 = vld [vmem:[#allocation12 + $0x208] sm:$0xff] }
 0x693   :  { %v3392_v38 = vadd.f32 %v3358_v2, %v7610_v0  ;;  %v6901_v63 = vsel %vm2170_vm13, %v3385_v31, %v6668_v20  ;;  %v3387_v54 = vsel %vm2170_vm13, %v3385_v31, 0.0  ;;  %v6916_v20 = vld [vmem:[#allocation12 + $0x290] sm:$0xff]  ;;  %7614 = vst [vmem:[#allocation60_spill] sm:$0xff] %v6932_v39  ;;  %v6935_v2 = vld [vmem:[#allocation12 + $0x200] sm:$0xff]  ;;  %v6938_v31 = vld [vmem:[#allocation12 + $0x1d8] sm:$0xff] }
 0x694   :  { %v3415_v9 = vadd.f32 %v3414_v19, %v3387_v54  ;;  %3613 = vmatmul.mubr.f32.vlgmr.msra.gmra.mxu1 %v6901_v63  ;;  %3688 = vmatmul.mubr.f32.vlgmr.msra.gmra.mxu0 %v6901_v63  ;;  %7615 = vst [vmem:[#allocation81_spill] sm:$0xff] %v6935_v2  ;;  %7616 = vst [vmem:[#allocation82_spill] sm:$0xff] %v6938_v31  ;;  %v6944_v54 = vld [vmem:[#allocation12 + $0x1a8] sm:$0xff]  ;;  %v6947_v19 = vld [vmem:[#allocation12 + $0x1a0] sm:$0xff] }
 0x695   :  { %3699 = vmatpush1.msra.mxu1 %v6895_v47  ;;  %3618 = vmatprep.mubr.f32.mxu1 %v7390_v15  ;;  %v4435_v40 = vmul.f32 -1.442695, %v3392_v38  ;;  %v6941_v38 = vld [vmem:[#allocation12 + $0x1d0] sm:$0xff]  ;;  %7618 = vst [vmem:[#allocation36_spill] sm:$0xff] %v6944_v54  ;;  %7619 = vst [vmem:[#allocation25_spill] sm:$0xff] %v6947_v19 }
 0x696   :  { %3416 = vst [vmem:[#allocation13 + $0x28] sm:$0xff] %v3415_v9  ;;  %3700 = vmatprep.subr.mxu1 %v6905_v61  ;;  %3692 = vmatprep.mubr.f32.mxu0 %v7390_v15  ;;  %7617 = vst [vmem:[#allocation24_spill] sm:$0xff] %v6941_v38  ;;  %v6950_v9 = vld [vmem:[#allocation12 + $0x178] sm:$0xff] }
 0x697   :  { %3701 = vmatpush1.msra.mxu1 %v6909_v36  ;;  %4602 = vpow2.f32 %v4435_v40  ;;  %7620 = vst [vmem:[#allocation49_spill] sm:$0xff] %v6950_v9  ;;  %v6953_v40 = vld [vmem:[#allocation12 + $0x170] sm:$0xff] }
 0x698   :  { %3702 = vmatprep.subr.mxu1 %v6912_v52  ;;  %7621 = vst [vmem:[#allocation57_spill] sm:$0xff] %v6953_v40 }
 0x699   :  { %3703 = vmatpush1.msra.mxu1 %v6916_v20 }
 0x69a   :  { %3704 = vmatprep.subr.mxu1 %v6920_v32 }
 0x69b   :  { %3705 = vmatpush1.msra.mxu1 %v6923_v56 }
 0x69c   :  { %3706 = vmatprep.subr.mxu1 %v6926_v24 }
 0x69d   :  { %3707 = vmatpush1.msra.mxu1 %v6929_v49  ;;  %v6982_v49 = vld [vmem:[#allocation12 + $0x88] sm:$0xff] }
 0x69e   :  { %v4601_v0 = vpop.eup %4600  ;;  %3708 = vmatprep.subr.mxu1 %v6932_v39  ;;  %v3359_v39 = vpop.f32.mrf.mxu0  ;;  %7629 = vst [vmem:[#allocation38_spill] sm:$0xff] %v6982_v49 }
 0x69f   :  { %v3399_v43 = vadd.f32 1.0, %v4601_v0  ;;  %3709 = vmatpush1.msra.mxu1 %v6935_v2  ;;  %v6956_v0 = vld [vmem:[#allocation12 + $0x148] sm:$0xff]  ;;  %v6959_v2 = vld [vmem:[#allocation12 + $0x140] sm:$0xff] }
 0x6a0   :  { %3710 = vmatprep.subr.mxu1 %v6938_v31  ;;  %7622 = vst [vmem:[#allocation59_spill] sm:$0xff] %v6956_v0  ;;  %7623 = vst [vmem:[#allocation58_spill] sm:$0xff] %v6959_v2  ;;  %v6962_v31 = vld [vmem:[#allocation12 + $0x118] sm:$0xff] }
 0x6a1   :  { %4604 = vrcp.f32 %v3399_v43  ;;  %3711 = vmatpush1.msra.mxu1 %v6941_v38  ;;  %7624 = vst [vmem:[#allocation56_spill] sm:$0xff] %v6962_v31  ;;  %v6965_v43 = vld [vmem:[#allocation12 + $0x110] sm:$0xff] }
 0x6a2   :  { %3712 = vmatprep.subr.mxu1 %v6944_v54  ;;  %v6968_v54 = vld [vmem:[#allocation12 + $0xe8] sm:$0xff] }
 0x6a3   :  { %3713 = vmatpush1.msra.mxu1 %v6947_v19  ;;  %7625 = vst [vmem:[#allocation79_spill] sm:$0xff] %v6968_v54  ;;  %v6971_v19 = vld [vmem:[#allocation12 + $0xe0] sm:$0xff] }
 0x6a4   :  { %3714 = vmatprep.subr.mxu1 %v6950_v9  ;;  %v4603_v38 = vpop.eup %4602  ;;  %7626 = vst [vmem:[#allocation64_spill] sm:$0xff] %v6971_v19  ;;  %v3130_v9 = vrot.slane %v6878_v60, %v7588_v41  ;;  %v6988_v60 = vld [vmem:[#allocation12 + $0x58] sm:$0xff] }
 0x6a5   :  { %3715 = vmatpush1.msra.mxu1 %v6953_v40  ;;  %v6976_v40 = vld [vmem:[#allocation12 + $0xb8] sm:$0xff]  ;;  %7631 = vst [vmem:[#allocation39_spill] sm:$0xff] %v6988_v60 }
 0x6a6   :  { %3716 = vmatprep.subr.mxu1 %v6956_v0  ;;  %7627 = vst [vmem:[#allocation83_spill] sm:$0xff] %v6976_v40  ;;  %v6979_v0 = vld [vmem:[#allocation12 + $0xb0] sm:$0xff]  ;;  %v3360_v24 = vadd.f32 %v3359_v39, %v3130_v9  ;;  %v7633_v39 = vld [vmem:[#allocation78_spill] sm:$0xff] }
 0x6a7   :  { %3717 = vmatpush1.msra.mxu1 %v6959_v2  ;;  %7628 = vst [vmem:[#allocation26_spill] sm:$0xff] %v6979_v0  ;;  %v3400_v2 = vadd.f32 1.0, %v4603_v38 }
 0x6a8   :  { %3718 = vmatprep.subr.mxu1 %v6962_v31  ;;  %v6985_v31 = vld [vmem:[#allocation12 + $0x80] sm:$0xff] }
 0x6a9   :  { %3719 = vmatpush1.msra.mxu1 %v6965_v43  ;;  %7630 = vst [vmem:[#allocation27_spill] sm:$0xff] %v6985_v31  ;;  %4606 = vrcp.f32 %v3400_v2 }
 0x6aa   :  { %3720 = vmatprep.subr.mxu1 %v6968_v54  ;;  %v6991_v54 = vld [vmem:[#allocation12 + $0x50] sm:$0xff] }
 0x6ab   :  { %3721 = vmatpush1.msra.mxu1 %v6971_v19  ;;  %v6994_v19 = vld [vmem:[#allocation12 + $0x28] sm:$0xff] }
 0x6ac   :  { %3722 = vmatprep.subr.mxu1 %v6976_v40  ;;  %7632 = vst [vmem:[#allocation28_spill] sm:$0xff] %v6994_v19  ;;  %v6997_v40 = vld [vmem:[#allocation12 + $0x20] sm:$0xff] }
 0x6ad   :  { %3723 = vmatpush1.msra.mxu1 %v6979_v0 }
 0x6ae   :  { %v4605_v41 = vpop.eup %4604  ;;  %3724 = vmatprep.subr.mxu1 %v6982_v49 }
 0x6af   :  { %v3405_v38 = vmul.f32 %v4605_v41, %v3360_v24  ;;  %3725 = vmatpush1.msra.mxu1 %v6985_v31 }
 0x6b0   :  { %3726 = vmatprep.subr.mxu1 %v6988_v60 }
 0x6b1   :  { %v3406_v9 = vadd.f32 %v3405_v38, %v7633_v39  ;;  %3727 = vmatpush1.msra.mxu1 %v6991_v54 }
 0x6b2   :  { %3728 = vmatprep.subr.mxu1 %v6994_v19 }
 0x6b3   :  { %4608 = vtanh.f32 %v3406_v9  ;;  %3729 = vmatpush1.msra.mxu1 %v6997_v40  ;;  %v3417_v9 = vld [vmem:[#allocation13 + $0x10] sm:$0xff] }
 0x6b4   :  { %4034 = vmatprep.subr.mxu1 %v6752_v53  ;;  %v3921_v53 = vld [vmem:[#allocation12 + $0x2d0] sm:$0xff] }
 0x6b6   :  { %v4607_v41 = vpop.eup %4606 }
 0x6b7   :  { %v3408_v24 = vsub.f32 1.0, %v4607_v41  ;;  %v3410_v49 = vmul.f32 %v4607_v41, %v6740_v29 }
 0x6c0   :  { %v4609_v2 = vpop.eup %4608 }
 0x6c1   :  { %v3409_v31 = vmul.f32 %v4609_v2, %v3408_v24 }
 0x6c3   :  { %v3411_v60 = vadd.f32 %v3410_v49, %v3409_v31  ;;  %v7641_v31 = vld [vmem:[#allocation65_spill] sm:$0xff] }
 0x6c5   :  { %v7008_v38 = vsel %vm2138_vm12, %v3411_v60, %v6740_v29  ;;  %v3413_v39 = vsel %vm2138_vm12, %v3411_v60, 0.0  ;;  %v3922_v29 = vld [vmem:[#allocation12 + $0x2d8] sm:$0xff]  ;;  %v7642_v60 = vld [vmem:[#allocation67_spill] sm:$0xff] }
 0x6c6   :  { %v3418_v19 = vadd.f32 %v3417_v9, %v3413_v39  ;;  %3619 = vmatmul.mubr.f32.gmra.mxu1 %v7008_v38  ;;  %3693 = vmatmul.mubr.f32.gmra.mxu0 %v7008_v38 }
 0x6c7   :  { %3762 = vmatprep.mubr.f32.mxu1 %v7390_v15  ;;  %4023 = vmatprep.mubr.f32.mxu0 %v7390_v15 }
 0x6c8   :  { %3419 = vst [vmem:[#allocation13 + $0x10] sm:$0xff] %v3418_v19  ;;  %3959 = vmatprep.subr.mxu0 %v3922_v29 }
 0x6c9   :  { %3960 = vmatpush1.msra.mxu0 %v3921_v53 }
 0x6ca   :  { %3763 = vmatmul.mubr.f32.vlgmr.msra.gmra.mxu1 %v6901_v63 }
 0x6cb   :  { %3766 = vmatprep.mubr.f32.mxu1 %v7390_v15  ;;  %4035 = vmatpush1.msra.mxu1 %v6755_v4  ;;  %v3916_v4 = vld [vmem:[#allocation12 + $0x2a8] sm:$0xff] }
 0x6cc   :  { %4036 = vmatprep.subr.mxu1 %v6758_v14  ;;  %3961 = vmatprep.subr.mxu0 %v3916_v4  ;;  %v3915_v14 = vld [vmem:[#allocation12 + $0x2a0] sm:$0xff] }
 0x6cd   :  { %4037 = vmatpush1.msra.mxu1 %v6761_v55  ;;  %3962 = vmatpush1.msra.mxu0 %v3915_v14  ;;  %v3910_v55 = vld [vmem:[#allocation12 + $0x278] sm:$0xff] }
 0x6ce   :  { %3767 = vmatmul.mubr.f32.gmra.mxu1 %v7008_v38  ;;  %4038 = vmatprep.subr.mxu1 %v6764_v16  ;;  %v3909_v16 = vld [vmem:[#allocation12 + $0x270] sm:$0xff] }
 0x6cf   :  { %4039 = vmatpush1.msra.mxu1 %v6767_v3  ;;  %4098 = vmatprep.mubr.f32.mxu1 %v7390_v15  ;;  %v3904_v3 = vld [vmem:[#allocation12 + $0x248] sm:$0xff] }
 0x6d0   :  { %4040 = vmatprep.subr.mxu1 %v6770_v11  ;;  %3963 = vmatprep.subr.mxu0 %v3910_v55  ;;  %v3903_v11 = vld [vmem:[#allocation12 + $0x240] sm:$0xff] }
 0x6d1   :  { %4041 = vmatpush1.msra.mxu1 %v6773_v13  ;;  %3964 = vmatpush1.msra.mxu0 %v3909_v16  ;;  %v3898_v13 = vld [vmem:[#allocation12 + $0x218] sm:$0xff] }
 0x6d2   :  { %4042 = vmatprep.subr.mxu1 %v6776_v57  ;;  %3965 = vmatprep.subr.mxu0 %v3904_v3  ;;  %v3897_v57 = vld [vmem:[#allocation12 + $0x210] sm:$0xff]  ;;  %v7643_v16 = vld [vmem:[#allocation66_spill] sm:$0xff] }
 0x6d3   :  { %4043 = vmatpush1.msra.mxu1 %v6779_v27  ;;  %3966 = vmatpush1.msra.mxu0 %v3903_v11  ;;  %v3892_v27 = vld [vmem:[#allocation12 + $0x1e8] sm:$0xff] }
 0x6d4   :  { %4044 = vmatprep.subr.mxu1 %v6782_v62  ;;  %3967 = vmatprep.subr.mxu0 %v3898_v13  ;;  %v3891_v62 = vld [vmem:[#allocation12 + $0x1e0] sm:$0xff] }
 0x6d5   :  { %4045 = vmatpush1.msra.mxu1 %v6785_v46  ;;  %3968 = vmatpush1.msra.mxu0 %v3897_v57  ;;  %v3886_v46 = vld [vmem:[#allocation12 + $0x1b8] sm:$0xff] }
 0x6d6   :  { %4046 = vmatprep.subr.mxu1 %v6788_v58  ;;  %3969 = vmatprep.subr.mxu0 %v3892_v27  ;;  %v3885_v58 = vld [vmem:[#allocation12 + $0x1b0] sm:$0xff] }
 0x6d7   :  { %4047 = vmatpush1.msra.mxu1 %v6790_v18  ;;  %3970 = vmatpush1.msra.mxu0 %v3891_v62  ;;  %v3880_v18 = vld [vmem:[#allocation12 + $0x188] sm:$0xff] }
 0x6d8   :  { %4048 = vmatprep.subr.mxu1 %v6792_v25  ;;  %3971 = vmatprep.subr.mxu0 %v3886_v46  ;;  %v3879_v25 = vld [vmem:[#allocation12 + $0x180] sm:$0xff] }
 0x6d9   :  { %4049 = vmatpush1.msra.mxu1 %v6795_v34  ;;  %3972 = vmatpush1.msra.mxu0 %v3885_v58  ;;  %v3874_v34 = vld [vmem:[#allocation12 + $0x158] sm:$0xff] }
 0x6da   :  { %4050 = vmatprep.subr.mxu1 %v6798_v44  ;;  %3973 = vmatprep.subr.mxu0 %v3880_v18  ;;  %v3873_v44 = vld [vmem:[#allocation12 + $0x150] sm:$0xff] }
 0x6db   :  { %4051 = vmatpush1.msra.mxu1 %v6801_v51  ;;  %3974 = vmatpush1.msra.mxu0 %v3879_v25  ;;  %v3868_v51 = vld [vmem:[#allocation12 + $0x128] sm:$0xff] }
 0x6dc   :  { %4052 = vmatprep.subr.mxu1 %v6806_v5  ;;  %3975 = vmatprep.subr.mxu0 %v3874_v34  ;;  %v3867_v5 = vld [vmem:[#allocation12 + $0x120] sm:$0xff] }
 0x6dd   :  { %4053 = vmatpush1.msra.mxu1 %v6809_v23  ;;  %3976 = vmatpush1.msra.mxu0 %v3873_v44  ;;  %v3862_v23 = vld [vmem:[#allocation12 + $0xf8] sm:$0xff]  ;;  %v7644_v44 = vld [vmem:[#allocation48_spill] sm:$0xff] }
 0x6de   :  { %4054 = vmatprep.subr.mxu1 %v6812_v28  ;;  %3977 = vmatprep.subr.mxu0 %v3868_v51  ;;  %v3861_v28 = vld [vmem:[#allocation12 + $0xf0] sm:$0xff] }
 0x6df   :  { %4055 = vmatpush1.msra.mxu1 %v6815_v30  ;;  %3978 = vmatpush1.msra.mxu0 %v3867_v5  ;;  %v3856_v30 = vld [vmem:[#allocation12 + $0xc8] sm:$0xff] }
 0x6e0   :  { %4056 = vmatprep.subr.mxu1 %v6818_v37  ;;  %3979 = vmatprep.subr.mxu0 %v3862_v23  ;;  %v3855_v37 = vld [vmem:[#allocation12 + $0xc0] sm:$0xff] }
 0x6e1   :  { %4057 = vmatpush1.msra.mxu1 %v6821_v12  ;;  %3980 = vmatpush1.msra.mxu0 %v3861_v28  ;;  %v7635_v12 = vld [vmem:[#allocation47_spill] sm:$0xff] }
 0x6e2   :  { %4058 = vmatprep.subr.mxu1 %v6826_v26  ;;  %3981 = vmatprep.subr.mxu0 %v3856_v30  ;;  %v7636_v26 = vld [vmem:[#allocation46_spill] sm:$0xff] }
 0x6e3   :  { %4059 = vmatpush1.msra.mxu1 %v6832_v59  ;;  %3982 = vmatpush1.msra.mxu0 %v3855_v37  ;;  %v7637_v59 = vld [vmem:[#allocation68_spill] sm:$0xff] }
 0x6e4   :  { %4060 = vmatprep.subr.mxu1 %v6838_v48  ;;  %3983 = vmatprep.subr.mxu0 %v6824_v50  ;;  %v7638_v48 = vld [vmem:[#allocation53_spill] sm:$0xff]  ;;  %v7064_v50 = vld [vmem:[%s7431_s30] sm:$0x3f] }
 0x6e5   :  { %4061 = vmatpush1.msra.mxu1 %v6844_v45  ;;  %3984 = vmatpush1.msra.mxu0 %v6830_v33  ;;  %v7639_v33 = vld [vmem:[#allocation42_spill] sm:$0xff]  ;;  %v3529_v29 = vrot.slane %v7064_v50, %v5469_v1  ;;  %v3533_v11 = vrot.slane %v7064_v50, %v5446_v6  ;;  %v3537_v5 = vrot.slane %v7064_v50, %v5569_v7 }
 0x6e6   :  { %4062 = vmatprep.subr.mxu1 %v6850_v42  ;;  %3985 = vmatprep.subr.mxu0 %v6836_v35  ;;  %v3521_v35 = vrot.slane %v7064_v50, %v7639_v33 }
 0x6e7   :  { %4063 = vmatpush1.msra.mxu1 %v6856_v21  ;;  %3986 = vmatpush1.msra.mxu0 %v6842_v22  ;;  %v7640_v21 = vld [vmem:[#allocation43_spill] sm:$0xff] }
 0x6e8   :  { %4064 = vmatprep.subr.mxu1 %v6862_v17  ;;  %3987 = vmatprep.subr.mxu0 %v7635_v12  ;;  %v3525_v17 = vrot.slane %v7064_v50, %v7640_v21 }
 0x6e9   :  { %4065 = vmatpush1.msra.mxu1 %v6868_v8  ;;  %3988 = vmatpush1.msra.mxu0 %v7636_v26 }
 0x6ea   :  { %4444 = vmatprep.subr.mxu1 %v6872_v10  ;;  %3989 = vmatprep.subr.mxu0 %v7637_v59 }
 0x6eb   :  { %3990 = vmatpush1.msra.mxu0 %v7638_v48 }
 0x6ec   :  { %4109 = vmatprep.subr.mxu0 %v6872_v10 }
 0x754   :  { %v3614_v45 = vpop.f32.mrf.mxu1  ;;  %v3689_v22 = vpop.f32.mrf.mxu0 }
 0x755   :  { %v3615_v42 = vadd.f32 %v3614_v45, %v3521_v35  ;;  %v3690_v4 = vadd.f32 %v3689_v22, %v3529_v29  ;;  %v3825_v22 = vld [vmem:[#allocation13 + $0x30] sm:$0xff] }
 0x756   :  { %v3616_v8 = vpop.f32.mrf.mxu1  ;;  %v3691_v49 = vpop.f32.mrf.mxu0 }
 0x757   :  { %v3776_v19 = vadd.f32 %v3615_v42, %v7641_v31  ;;  %v3617_v10 = vadd.f32 %v3616_v8, %v3525_v17  ;;  %v7646_v17 = vld [vmem:[#allocation75_spill] sm:$0xff]  ;;  %v7652_v49 = vld [vmem:[#allocation24_spill] sm:$0xff] }
 0x758   :  { %v7653_v31 = vld [vmem:[#allocation36_spill] sm:$0xff] }
 0x759   :  { %v4436_v0 = vmul.f32 -1.442695, %v3776_v19  ;;  %v3777_v41 = vadd.f32 %v3617_v10, %v7642_v60  ;;  %v7654_v19 = vld [vmem:[#allocation25_spill] sm:$0xff]  ;;  %v7657_v60 = vld [vmem:[#allocation59_spill] sm:$0xff] }
 0x75a   :  { %v7656_v10 = vld [vmem:[#allocation57_spill] sm:$0xff] }
 0x75b   :  { %4610 = vpow2.f32 %v4436_v0  ;;  %v4437_v24 = vmul.f32 -1.442695, %v3777_v41  ;;  %v7655_v0 = vld [vmem:[#allocation49_spill] sm:$0xff]  ;;  %v7658_v41 = vld [vmem:[#allocation58_spill] sm:$0xff] }
 0x75d   :  { %4612 = vpow2.f32 %v4437_v24  ;;  %v7659_v24 = vld [vmem:[#allocation56_spill] sm:$0xff] }
 0x768   :  { %v4611_v2 = vpop.eup %4610 }
 0x769   :  { %v3784_v39 = vadd.f32 1.0, %v4611_v2 }
 0x76a   :  { %v4613_v9 = vpop.eup %4612 }
 0x76b   :  { %4614 = vrcp.f32 %v3784_v39  ;;  %v3785_v53 = vadd.f32 1.0, %v4613_v9  ;;  %v7660_v39 = vld [vmem:[#allocation79_spill] sm:$0xff]  ;;  %v7661_v9 = vld [vmem:[#allocation69_spill] sm:$0xff] }
 0x76c   :  { %v3541_v29 = vrot.slane %v7064_v50, %v7661_v9 }
 0x76d   :  { %4616 = vrcp.f32 %v3785_v53  ;;  %v7662_v53 = vld [vmem:[#allocation64_spill] sm:$0xff] }
 0x778   :  { %v4615_v14 = vpop.eup %4614 }
 0x779   :  { %v3790_v55 = vmul.f32 %v4615_v14, %v3690_v4  ;;  %v7663_v14 = vld [vmem:[#allocation83_spill] sm:$0xff] }
 0x77a   :  { %v4617_v13 = vpop.eup %4616 }
 0x77b   :  { %v3791_v3 = vadd.f32 %v3790_v55, %v7643_v16  ;;  %v3793_v18 = vsub.f32 1.0, %v4617_v13  ;;  %v3795_v28 = vmul.f32 %v4617_v13, %v6901_v63  ;;  %v7664_v16 = vld [vmem:[#allocation26_spill] sm:$0xff] }
 0x77d   :  { %4618 = vtanh.f32 %v3791_v3 }
 0x786   :  { %v3620_v57 = vpop.f32.mrf.mxu1  ;;  %v3694_v27 = vpop.f32.mrf.mxu0 }
 0x787   :  { %v7667_v57 = vld [vmem:[#allocation39_spill] sm:$0xff]  ;;  %v7668_v27 = vld [vmem:[#allocation76_spill] sm:$0xff] }
 0x788   :  { %v3621_v62 = vpop.f32.mrf.mxu1  ;;  %v3695_v46 = vpop.f32.mrf.mxu0 }
 0x789   :  { %v3696_v58 = vadd.f32 %v3695_v46, %v3533_v11  ;;  %v7666_v11 = vld [vmem:[#allocation27_spill] sm:$0xff]  ;;  %v7669_v46 = vld [vmem:[#allocation28_spill] sm:$0xff] }
 0x78a   :  { %v4619_v25 = vpop.eup %4618  ;;  %v3764_v34 = vpop.f32.mrf.mxu1 }
 0x78b   :  { %v3802_v51 = vadd.f32 %v3696_v58, %v7644_v44  ;;  %v3794_v23 = vmul.f32 %v4619_v25, %v3793_v18 }
 0x78c   :  { %v3765_v30 = vpop.f32.mrf.mxu1 }
 0x78d   :  { %v4438_v37 = vmul.f32 -1.442695, %v3802_v51  ;;  %v3796_v12 = vadd.f32 %v3795_v28, %v3794_v23  ;;  %v3828_v28 = vld [vmem:[#allocation13 + $0x8] sm:$0xff] }
 0x78e   :  { %v3768_v26 = vpop.f32.mrf.mxu1 }
 0x78f   :  { %4620 = vpow2.f32 %v4438_v37  ;;  %v3769_v59 = vadd.f32 %v3768_v26, %v3537_v5  ;;  %v7084_v35 = vsel %vm1749_vm11, %v3796_v12, %v6901_v63  ;;  %v3798_v45 = vsel %vm1749_vm11, %v3796_v12, 0.0 }
 0x790   :  { %v3826_v42 = vadd.f32 %v3825_v22, %v3798_v45  ;;  %4024 = vmatmul.mubr.f32.vlgmr.msra.gmra.mxu0 %v7084_v35  ;;  %4099 = vmatmul.mubr.f32.vlgmr.msra.gmra.mxu1 %v7084_v35  ;;  %v3770_v4 = vpop.f32.mrf.mxu1  ;;  %v7671_v45 = vld [vmem:[#allocation70_spill] sm:$0xff] }
 0x791   :  { %v3803_v8 = vadd.f32 %v3769_v59, %v7646_v17  ;;  %4110 = vmatpush1.msra.mxu0 %v6895_v47  ;;  %4460 = vmatpush1.msra.mxu1 %v6895_v47  ;;  %v7647_v47 = vld [vmem:[#allocation55_spill] sm:$0xff]  ;;  %v3771_v3 = vadd.f32 %v3770_v4, %v3541_v29 }
 0x792   :  { %3827 = vst [vmem:[#allocation13 + $0x30] sm:$0xff] %v3826_v42  ;;  %4111 = vmatprep.subr.mxu0 %v6905_v61  ;;  %4445 = vmatprep.subr.mxu1 %v6905_v61  ;;  %v7648_v61 = vld [vmem:[#allocation54_spill] sm:$0xff] }
 0x793   :  { %4112 = vmatpush1.msra.mxu0 %v6909_v36  ;;  %4461 = vmatpush1.msra.mxu1 %v6909_v36  ;;  %v4439_v63 = vmul.f32 -1.442695, %v3803_v8  ;;  %v7649_v36 = vld [vmem:[#allocation60_spill] sm:$0xff] }
 0x794   :  { %4113 = vmatprep.subr.mxu0 %v6912_v52  ;;  %4446 = vmatprep.subr.mxu1 %v6912_v52  ;;  %v7650_v52 = vld [vmem:[#allocation81_spill] sm:$0xff]  ;;  %v7672_v8 = vld [vmem:[#allocation72_spill] sm:$0xff] }
 0x795   :  { %4114 = vmatpush1.msra.mxu0 %v6916_v20  ;;  %4462 = vmatpush1.msra.mxu1 %v6916_v20  ;;  %4622 = vpow2.f32 %v4439_v63 }
 0x796   :  { %4115 = vmatprep.subr.mxu0 %v6920_v32  ;;  %4447 = vmatprep.subr.mxu1 %v6920_v32  ;;  %v7651_v32 = vld [vmem:[#allocation82_spill] sm:$0xff] }
 0x797   :  { %4116 = vmatpush1.msra.mxu0 %v6923_v56  ;;  %4463 = vmatpush1.msra.mxu1 %v6923_v56 }
 0x798   :  { %4117 = vmatprep.subr.mxu0 %v7647_v47  ;;  %4448 = vmatprep.subr.mxu1 %v7647_v47 }
 0x799   :  { %4118 = vmatpush1.msra.mxu0 %v7648_v61  ;;  %4464 = vmatpush1.msra.mxu1 %v7648_v61 }
 0x79a   :  { %4119 = vmatprep.subr.mxu0 %v7649_v36  ;;  %4449 = vmatprep.subr.mxu1 %v7649_v36 }
 0x79b   :  { %4120 = vmatpush1.msra.mxu0 %v7650_v52  ;;  %4465 = vmatpush1.msra.mxu1 %v7650_v52 }
 0x79c   :  { %v4621_v20 = vpop.eup %4620  ;;  %4121 = vmatprep.subr.mxu0 %v7651_v32  ;;  %4450 = vmatprep.subr.mxu1 %v7651_v32 }
 0x79d   :  { %v3810_v56 = vadd.f32 1.0, %v4621_v20  ;;  %4122 = vmatpush1.msra.mxu0 %v7652_v49  ;;  %4466 = vmatpush1.msra.mxu1 %v7652_v49  ;;  %v7673_v49 = vld [vmem:[#allocation71_spill] sm:$0xff] }
 0x79e   :  { %4123 = vmatprep.subr.mxu0 %v7653_v31  ;;  %4451 = vmatprep.subr.mxu1 %v7653_v31 }
 0x79f   :  { %4624 = vrcp.f32 %v3810_v56  ;;  %4124 = vmatpush1.msra.mxu0 %v7654_v19  ;;  %4467 = vmatpush1.msra.mxu1 %v7654_v19 }
 0x7a0   :  { %4125 = vmatprep.subr.mxu0 %v7655_v0  ;;  %4452 = vmatprep.subr.mxu1 %v7655_v0 }
 0x7a1   :  { %4126 = vmatpush1.msra.mxu0 %v7656_v10  ;;  %4468 = vmatpush1.msra.mxu1 %v7656_v10 }
 0x7a2   :  { %4127 = vmatprep.subr.mxu0 %v7657_v60  ;;  %4453 = vmatprep.subr.mxu1 %v7657_v60  ;;  %v4623_v2 = vpop.eup %4622 }
 0x7a3   :  { %4128 = vmatpush1.msra.mxu0 %v7658_v41  ;;  %4469 = vmatpush1.msra.mxu1 %v7658_v41  ;;  %v3811_v55 = vadd.f32 1.0, %v4623_v2 }
 0x7a4   :  { %4129 = vmatprep.subr.mxu0 %v7659_v24  ;;  %4454 = vmatprep.subr.mxu1 %v7659_v24 }
 0x7a5   :  { %4130 = vmatpush1.msra.mxu0 %v6965_v43  ;;  %4470 = vmatpush1.msra.mxu1 %v6965_v43  ;;  %v7665_v43 = vld [vmem:[#allocation38_spill] sm:$0xff]  ;;  %4626 = vrcp.f32 %v3811_v55 }
 0x7a6   :  { %4131 = vmatprep.subr.mxu0 %v7660_v39  ;;  %4455 = vmatprep.subr.mxu1 %v7660_v39 }
 0x7a7   :  { %4132 = vmatpush1.msra.mxu0 %v7662_v53  ;;  %4471 = vmatpush1.msra.mxu1 %v7662_v53 }
 0x7a8   :  { %4133 = vmatprep.subr.mxu0 %v7663_v14  ;;  %4456 = vmatprep.subr.mxu1 %v7663_v14 }
 0x7a9   :  { %4134 = vmatpush1.msra.mxu0 %v7664_v16  ;;  %4472 = vmatpush1.msra.mxu1 %v7664_v16 }
 0x7aa   :  { %4135 = vmatprep.subr.mxu0 %v7665_v43  ;;  %4457 = vmatprep.subr.mxu1 %v7665_v43  ;;  %v7674_v43 = vld [vmem:[#allocation44_spill] sm:$0xff] }
 0x7ab   :  { %4029 = vmatprep.mubr.f32.mxu0 %v7390_v15  ;;  %4103 = vmatprep.mubr.f32.mxu1 %v7390_v15 }
 0x7ac   :  { %v4625_v50 = vpop.eup %4624  ;;  %4136 = vmatpush1.msra.mxu0 %v7666_v11  ;;  %4473 = vmatpush1.msra.mxu1 %v7666_v11 }
 0x7ad   :  { %v3816_v13 = vmul.f32 %v4625_v50, %v3771_v3  ;;  %4137 = vmatprep.subr.mxu0 %v7667_v57  ;;  %4458 = vmatprep.subr.mxu1 %v7667_v57 }
 0x7ae   :  { %4138 = vmatpush1.msra.mxu0 %v6991_v54  ;;  %4474 = vmatpush1.msra.mxu1 %v6991_v54 }
 0x7af   :  { %v3817_v62 = vadd.f32 %v3816_v13, %v7668_v27  ;;  %4139 = vmatprep.subr.mxu0 %v7669_v46  ;;  %4459 = vmatprep.subr.mxu1 %v7669_v46  ;;  %v4236_v13 = vld [vmem:[#allocation13 + $0x38] sm:$0xff] }
 0x7b0   :  { %4140 = vmatpush1.msra.mxu0 %v6997_v40  ;;  %4475 = vmatpush1.msra.mxu1 %v6997_v40  ;;  %v7175_v40 = vld [vmem:[%s7431_s30] sm:$0x3f] }
 0x7b1   :  { %4628 = vtanh.f32 %v3817_v62  ;;  %v3936_v59 = vrot.slane %v7175_v40, %v7640_v21  ;;  %v3940_v52 = vrot.slane %v7175_v40, %v5469_v1  ;;  %v3944_v0 = vrot.slane %v7175_v40, %v5446_v6 }
 0x7b2   :  { %v4627_v58 = vpop.eup %4626  ;;  %v3948_v4 = vrot.slane %v7175_v40, %v5569_v7  ;;  %v7676_v7 = vld [vmem:[#allocation73_spill] sm:$0xff] }
 0x7b3   :  { %v3819_v18 = vsub.f32 1.0, %v4627_v58  ;;  %v3821_v44 = vmul.f32 %v4627_v58, %v7008_v38 }
 0x7be   :  { %v4629_v25 = vpop.eup %4628 }
 0x7bf   :  { %v3820_v34 = vmul.f32 %v4629_v25, %v3819_v18 }
 0x7c1   :  { %v3822_v51 = vadd.f32 %v3821_v44, %v3820_v34 }
 0x7c3   :  { %v7162_v5 = vsel %vm1717_vm10, %v3822_v51, %v7008_v38  ;;  %v3824_v23 = vsel %vm1717_vm10, %v3822_v51, 0.0  ;;  %v3932_v38 = vrot.slane %v7175_v40, %v7639_v33  ;;  %v3952_v51 = vrot.slane %v7175_v40, %v7661_v9 }
 0x7c4   :  { %v3829_v30 = vadd.f32 %v3828_v28, %v3824_v23  ;;  %4030 = vmatmul.mubr.f32.gmra.mxu0 %v7162_v5  ;;  %4104 = vmatmul.mubr.f32.gmra.mxu1 %v7162_v5 }
 0x7c5   :  { %4173 = vmatprep.mubr.f32.mxu0 %v7390_v15  ;;  %4177 = vmatprep.mubr.f32.mxu1 %v7390_v15 }
 0x7c6   :  { %3830 = vst [vmem:[#allocation13 + $0x8] sm:$0xff] %v3829_v30 }
 0x7c8   :  { %4174 = vmatmul.mubr.f32.vlgmr.msra.gmra.mxu0 %v7084_v35  ;;  %4178 = vmatmul.mubr.f32.vlgmr.msra.gmra.mxu1 %v7162_v5 }
 0x850   :  { %v4025_v37 = vpop.f32.mrf.mxu0  ;;  %v4100_v12 = vpop.f32.mrf.mxu1 }
 0x851   :  { %v4026_v26 = vadd.f32 %v4025_v37, %v3932_v38  ;;  %v4101_v21 = vadd.f32 %v4100_v12, %v3940_v52  ;;  %v7677_v38 = vld [vmem:[#allocation74_spill] sm:$0xff] }
 0x852   :  { %v4027_v15 = vpop.f32.mrf.mxu0  ;;  %v4102_v48 = vpop.f32.mrf.mxu1 }
 0x853   :  { %v4187_v22 = vadd.f32 %v4026_v26, %v7671_v45  ;;  %v4028_v17 = vadd.f32 %v4027_v15, %v3936_v59 }
 0x855   :  { %v4440_v42 = vmul.f32 -1.442695, %v4187_v22  ;;  %v4188_v63 = vadd.f32 %v4028_v17, %v7672_v8  ;;  %v4239_v22 = vld [vmem:[#allocation13] sm:$0xff] }
 0x857   :  { %4630 = vpow2.f32 %v4440_v42  ;;  %v4441_v47 = vmul.f32 -1.442695, %v4188_v63 }
 0x859   :  { %4632 = vpow2.f32 %v4441_v47 }
 0x864   :  { %v4631_v61 = vpop.eup %4630 }
 0x865   :  { %v4195_v36 = vadd.f32 1.0, %v4631_v61 }
 0x866   :  { %v4633_v33 = vpop.eup %4632 }
 0x867   :  { %4634 = vrcp.f32 %v4195_v36  ;;  %v4196_v20 = vadd.f32 1.0, %v4633_v33 }
 0x869   :  { %4636 = vrcp.f32 %v4196_v20 }
 0x874   :  { %v4635_v32 = vpop.eup %4634 }
 0x875   :  { %v4201_v56 = vmul.f32 %v4635_v32, %v4101_v21 }
 0x876   :  { %v4637_v19 = vpop.eup %4636 }
 0x877   :  { %v4202_v31 = vadd.f32 %v4201_v56, %v7673_v49  ;;  %v4204_v41 = vsub.f32 1.0, %v4637_v19  ;;  %v4206_v1 = vmul.f32 %v4637_v19, %v7084_v35 }
 0x879   :  { %4638 = vtanh.f32 %v4202_v31 }
 0x884   :  { %v4031_v10 = vpop.f32.mrf.mxu0  ;;  %v4105_v60 = vpop.f32.mrf.mxu1 }
 0x886   :  { %v4639_v24 = vpop.eup %4638  ;;  %v4032_v2 = vpop.f32.mrf.mxu0 }
 0x887   :  { %v4106_v39 = vpop.f32.mrf.mxu1  ;;  %v4205_v29 = vmul.f32 %v4639_v24, %v4204_v41 }
 0x888   :  { %v4107_v53 = vadd.f32 %v4106_v39, %v3944_v0  ;;  %v4175_v14 = vpop.f32.mrf.mxu0 }
 0x889   :  { %v4179_v55 = vpop.f32.mrf.mxu1  ;;  %v4207_v16 = vadd.f32 %v4206_v1, %v4205_v29 }
 0x88a   :  { %v4213_v3 = vadd.f32 %v4107_v53, %v7674_v43  ;;  %v4176_v50 = vpop.f32.mrf.mxu0  ;;  %v4180_v27 = vadd.f32 %v4179_v55, %v3948_v4 }
 0x88b   :  { %v4209_v11 = vsel %vm1330_vm9, %v4207_v16, 0.0  ;;  %v4208_v46 = vsel %vm1330_vm9, %v4207_v16, %v7084_v35  ;;  %v4181_v54 = vpop.f32.mrf.mxu1 }
 0x88c   :  { %v4442_v57 = vmul.f32 -1.442695, %v4213_v3  ;;  %v4237_v62 = vadd.f32 %v4236_v13, %v4209_v11  ;;  %4242 = vst [vmem:[#allocation14] sm:$0xff] %v4208_v46  ;;  %v4214_v58 = vadd.f32 %v4180_v27, %v7676_v7  ;;  %v4182_v28 = vadd.f32 %v4181_v54, %v3952_v51 }
 0x88e   :  { %4640 = vpow2.f32 %v4442_v57  ;;  %4238 = vst [vmem:[#allocation13 + $0x38] sm:$0xff] %v4237_v62  ;;  %v4443_v18 = vmul.f32 -1.442695, %v4214_v58 }
 0x890   :  { %4642 = vpow2.f32 %v4443_v18 }
 0x89b   :  { %v4641_v25 = vpop.eup %4640 }
 0x89c   :  { %v4221_v34 = vadd.f32 1.0, %v4641_v25 }
 0x89d   :  { %v4643_v44 = vpop.eup %4642 }
 0x89e   :  { %4644 = vrcp.f32 %v4221_v34  ;;  %v4222_v23 = vadd.f32 1.0, %v4643_v44 }
 0x8a0   :  { %4646 = vrcp.f32 %v4222_v23 }
 0x8ab   :  { %v4645_v30 = vpop.eup %4644 }
 0x8ac   :  { %v4227_v35 = vmul.f32 %v4645_v30, %v4182_v28 }
 0x8ad   :  { %v4647_v12 = vpop.eup %4646 }
 0x8ae   :  { %v4228_v37 = vadd.f32 %v4227_v35, %v7677_v38  ;;  %v4230_v26 = vsub.f32 1.0, %v4647_v12  ;;  %v4232_v15 = vmul.f32 %v4647_v12, %v7162_v5 }
 0x8b0   :  { %4648 = vtanh.f32 %v4228_v37 }
 0x8bd   :  { %v4649_v59 = vpop.eup %4648 }
 0x8be   :  { %v4231_v48 = vmul.f32 %v4649_v59, %v4230_v26 }
 0x8c0   :  { %v4233_v45 = vadd.f32 %v4232_v15, %v4231_v48 }
 0x8c2   :  { %v4235_v40 = vsel %vm1299_vm8, %v4233_v45, 0.0  ;;  %v4234_v42 = vsel %vm1299_vm8, %v4233_v45, %v7162_v5 }
 0x8c3   :  { %v4240_v17 = vadd.f32 %v4239_v22, %v4235_v40  ;;  %4244 = vst [vmem:[#allocation14 + $0x8] sm:$0xff] %v4234_v42 }
 0x8c4   :  { %4729 = shalt.err (!%p4726_p5)
}
 0x8c5   :  { %s7679_s8 = smov 8   ;;  %s7680_s17 = smov 128   ;;  %4241 = vst [vmem:[#allocation13] sm:$0xff] %v4240_v17 }
 0x8c6   :  { %s7681_s6 = sld [smem:[#allocation91_spill]]  ;;  %s4738_s25 = scalar_lea.vmem %s4251_s18, 1024 }
 0x8c7   :  { %p4739_p6 = scmp.ne.s32.totalorder %s4251_s18, %s4738_s25  ;;  %p4743_p7 = scmp.lt.s32.totalorder %s4251_s18, %s4251_s18 }
 0x8c8   :  { %p4744_p8 = scmp.lt.s32.totalorder %s4738_s25, %s4738_s25 }
 0x8ca   :  { %p4745_p9 = por %p4744_p8, %p4743_p7 }
 0x8cc   :  { %4268 = dma.vmem_to_hbm [thread:$0]  %s4263_s24, 256, %s7681_s6, [#allocation15], %s7680_s17, %s7680_s17, %s7679_s8  }
 0x8cd   :  { %p4746_p10 = pnand %p4745_p9, %p4739_p6 }
 0x8cf   :  { %4749 = shalt.err (!%p4746_p10)
}
 0x8d0   :  { %s7682_s4 = sld [smem:[#allocation90_spill]] }
 0x8d6   :  { %4256 = dma.vmem_to_hbm [thread:$0]  %s4251_s18, 1024, %s7682_s4, [#allocation9], %s7680_s17, %s7680_s17, %s7679_s8  }
 0x8d7   :  { %4764 = dma.done.wait [#allocation9], 1024  }
 0x8d8   :  { %4765 = vsyncadd [#allocation9], 4294966272 }
 0x8d9   :  { %4766 = dma.done.wait [#allocation15], 256  }
 0x8da   :  { %4767 = vsyncadd [#allocation15], 4294967040 }
 0x8db   :  { %4275 = vsyncpa [#allocation8], 1 }
 0x8dc   :  { %4276 = vsyncpa [#allocation11], 1 }
 0x8dd   :  { %4277 = vsyncpa [#allocation9], 1 }
 0x8de   :  { %4278 = vsyncpa [#allocation15], 1 }

</bundles_post_ra>
